<compile_context>
chip_gen: v7x
topology: tpu7x:2x2x1
jax: 0.10.0
libtpu: 0.0.40
codegen_flags: <defaults>
</compile_context>

<pallas_src>
from functools import partial

import numpy as np
import jax
import jax.numpy as jnp
from jax.experimental import pallas as pl
from jax.experimental.pallas import tpu as pltpu


# ----------------------------------------------------------------------------
# helpers
# ----------------------------------------------------------------------------

BN_EPS = 1e-5
DTYPE_MM = jnp.bfloat16        # MXU operand dtype; accumulation is f32
TM_MAX = 512                   # max token-tile rows for matmul / affine
TK_MAX = 256                   # K tile (K-tiled accumulation above this)
WB_MAX = 128                   # windows per attention grid step


def _ru(x, m):
    return ((x + m - 1) // m) * m


def _cparams(*semantics):
    return pltpu.CompilerParams(
        dimension_semantics=semantics,
        vmem_limit_bytes=32 * 1024 * 1024,   # fits v7x (64 MiB phys) with margin
    )


# ----------------------------------------------------------------------------
# Pallas kernels
# ----------------------------------------------------------------------------

def _matmul_kernel(x_ref, w_ref, *rest, activation, has_bias, has_residual):
    i = 0
    b_ref = rest[i] if has_bias else None
    i += int(has_bias)
    r_ref = rest[i] if has_residual else None
    i += int(has_residual)
    o_ref, acc_ref = rest[i], rest[i + 1]

    @pl.when(pl.program_id(1) == 0)
    def _():
        acc_ref[...] = jnp.zeros_like(acc_ref)

    acc_ref[...] += jnp.dot(x_ref[...], w_ref[...],
                            preferred_element_type=jnp.float32)

    @pl.when(pl.program_id(1) == pl.num_programs(1) - 1)
    def _():
        y = acc_ref[...]
        if has_bias:
            y = y + b_ref[...]
        if activation == "relu6":
            y = jnp.minimum(jnp.maximum(y, 0.0), 6.0)
        if has_residual:
            y = y + r_ref[...].astype(jnp.float32)
        o_ref[...] = y.astype(o_ref.dtype)


def pallas_matmul(x, w, b=None, activation="none", residual=None,
                  out_dtype=jnp.float32):
    """x: (M, K), w: (K, N), b: (N,)|None, residual: (M, N)|None -> (M, N)."""
    M, K = x.shape
    K2, N = w.shape
    assert K == K2
    tm = min(TM_MAX, _ru(M, 8))
    Mp = _ru(M, tm)
    tk = K if K <= TK_MAX else TK_MAX
    Kp = _ru(K, tk)

    x = x.astype(DTYPE_MM)
    w = w.astype(DTYPE_MM)
    if Mp != M or Kp != K:
        x = jnp.pad(x, ((0, Mp - M), (0, Kp - K)))
    if Kp != K:
        w = jnp.pad(w, ((0, Kp - K), (0, 0)))

    in_specs = [pl.BlockSpec((tm, tk), lambda i, k: (i, k)),
                pl.BlockSpec((tk, N), lambda i, k: (k, 0))]
    args = [x, w]
    if b is not None:
        in_specs.append(pl.BlockSpec((1, N), lambda i, k: (0, 0)))
        args.append(b.reshape(1, N).astype(jnp.float32))
    if residual is not None:
        r = residual.astype(jnp.float32)
        if Mp != M:
            r = jnp.pad(r, ((0, Mp - M), (0, 0)))
        in_specs.append(pl.BlockSpec((tm, N), lambda i, k: (i, 0)))
        args.append(r)

    out = pl.pallas_call(
        partial(_matmul_kernel, activation=activation,
                has_bias=b is not None, has_residual=residual is not None),
        out_shape=jax.ShapeDtypeStruct((Mp, N), out_dtype),
        grid=(Mp // tm, Kp // tk),
        in_specs=in_specs,
        out_specs=pl.BlockSpec((tm, N), lambda i, k: (i, 0)),
        scratch_shapes=[pltpu.VMEM((tm, N), jnp.float32)],
        compiler_params=_cparams("parallel", "arbitrary"),
    )(*args)
    return out[:M] if Mp != M else out


def _affine_kernel(x_ref, s_ref, t_ref, o_ref):
    o_ref[...] = (x_ref[...] * s_ref[...] + t_ref[...]).astype(o_ref.dtype)


def pallas_affine(x2d, scale, shift):
    """Per-channel affine (BatchNorm eval) on (M, C) tokens."""
    M, C = x2d.shape
    tm = min(1024, _ru(M, 8))
    Mp = _ru(M, tm)
    xp = x2d.astype(jnp.float32)
    if Mp != M:
        xp = jnp.pad(xp, ((0, Mp - M), (0, 0)))
    out = pl.pallas_call(
        _affine_kernel,
        out_shape=jax.ShapeDtypeStruct((Mp, C), jnp.float32),
        grid=(Mp // tm,),
        in_specs=[pl.BlockSpec((tm, C), lambda i: (i, 0)),
                  pl.BlockSpec((1, C), lambda i: (0, 0)),
                  pl.BlockSpec((1, C), lambda i: (0, 0))],
        out_specs=pl.BlockSpec((tm, C), lambda i: (i, 0)),
        compiler_params=_cparams("parallel"),
    )(xp, scale.reshape(1, C).astype(jnp.float32),
      shift.reshape(1, C).astype(jnp.float32))
    return out[:M] if Mp != M else out


def _dwconv_kernel(t_ref, w_ref, r_ref, o_ref, *, taps):
    acc = r_ref[...].astype(jnp.float32)
    for t in range(taps):
        acc = acc + t_ref[t] * w_ref[t]
    o_ref[...] = acc.astype(o_ref.dtype)


def pallas_dwconv_residual(taps, w_dw, residual):
    """Depthwise conv as per-tap weighted sum, with residual add fused.

    taps: (T, N, C), w_dw: (T, 1, C), residual: (N, C) -> (N, C).
    """
    T, N, C = taps.shape
    tn = min(512, _ru(N, 8))
    # keep the double-buffered tap block comfortably inside VMEM (v7x: 64 MiB)
    while T * tn * C * 4 > (8 << 20) and tn > 8:
        tn = max(8, (tn // 16) * 8)
    Np = _ru(N, tn)
    taps = taps.astype(jnp.float32)
    residual = residual.astype(jnp.float32)
    if Np != N:
        taps = jnp.pad(taps, ((0, 0), (0, Np - N), (0, 0)))
        residual = jnp.pad(residual, ((0, Np - N), (0, 0)))
    out = pl.pallas_call(
        partial(_dwconv_kernel, taps=T),
        out_shape=jax.ShapeDtypeStruct((Np, C), jnp.float32),
        grid=(Np // tn,),
        in_specs=[pl.BlockSpec((T, tn, C), lambda i: (0, i, 0)),
                  pl.BlockSpec((T, 1, C), lambda i: (0, 0, 0)),
                  pl.BlockSpec((tn, C), lambda i: (i, 0))],
        out_specs=pl.BlockSpec((tn, C), lambda i: (i, 0)),
        compiler_params=_cparams("parallel"),
    )(taps, w_dw.astype(jnp.float32), residual)
    return out[:N] if Np != N else out


def _attn_kernel(q_ref, k_ref, v_ref, b_ref, o_ref, *, scale):
    q = q_ref[0]                              # (Wb, T, D) bf16
    k = k_ref[0]
    v = v_ref[0]
    s = jnp.einsum("wqd,wkd->wqk", q, k, preferred_element_type=jnp.float32)
    s = s * scale + b_ref[...]                # (1,T,T) bias broadcasts
    s = s - jnp.max(s, axis=-1, keepdims=True)
    e = jnp.exp(s)
    inv = pl.reciprocal(jnp.sum(e, axis=-1, keepdims=True), approx=True)
    p = (e * inv).astype(v.dtype)
    out = jnp.einsum("wqk,wkd->wqd", p, v, preferred_element_type=jnp.float32)
    o_ref[0] = out.astype(o_ref.dtype)


def pallas_window_attention(q, k, v, bias, scale):
    """q,k,v: (nh, Bw, T, D); bias: (nh, T, T) -> (nh, Bw, T, D) bf16.

    Grid is (heads, window_blocks): each step does a batch of Wb windows so
    per-step overhead is amortized and the MXU sees batched matmuls.
    """
    nh, Bw, T, D = q.shape
    wb = min(WB_MAX, Bw)
    Bp = _ru(Bw, wb)
    q = q.astype(DTYPE_MM)
    k = k.astype(DTYPE_MM)
    v = v.astype(DTYPE_MM)
    if Bp != Bw:
        pad = ((0, 0), (0, Bp - Bw), (0, 0), (0, 0))
        q, k, v = jnp.pad(q, pad), jnp.pad(k, pad), jnp.pad(v, pad)
    spec = pl.BlockSpec((1, wb, T, D), lambda h, w: (h, w, 0, 0))
    out = pl.pallas_call(
        partial(_attn_kernel, scale=scale),
        out_shape=jax.ShapeDtypeStruct((nh, Bp, T, D), DTYPE_MM),
        grid=(nh, Bp // wb),
        in_specs=[spec, spec, spec,
                  pl.BlockSpec((1, T, T), lambda h, w: (h, 0, 0))],
        out_specs=spec,
        compiler_params=_cparams("parallel", "parallel"),
    )(q, k, v, bias.astype(jnp.float32))
    return out[:, :Bw] if Bp != Bw else out


# ----------------------------------------------------------------------------
# Model glue (NHWC)
# ----------------------------------------------------------------------------

def bn_scale_shift(bn):
    s = bn["gamma"] / jnp.sqrt(bn["var"] + BN_EPS)
    t = bn["beta"] - bn["mean"] * s
    return s, t


def conv3x3_s2(x, w, b, activation="none"):
    """3x3, stride 2, pad 1 conv via im2col + Pallas matmul. w: (9*Cin, Cout)."""
    # TODO(synk): weight layout is tap-major (9 taps outer, Cin inner); permute
    # if importing real PyTorch (Cout, Cin, 3, 3) weights.
    B, H, W, Cin = x.shape
    Ho, Wo = H // 2, W // 2
    xp = jnp.pad(x, ((0, 0), (1, 1), (1, 1), (0, 0)))
    taps = [xp[:, i:i + 2 * Ho:2, j:j + 2 * Wo:2, :]
            for i in range(3) for j in range(3)]
    xc = jnp.stack(taps, axis=3).reshape(B * Ho * Wo, 9 * Cin)
    y = pallas_matmul(xc, w, b, activation=activation)
    return y.reshape(B, Ho, Wo, -1)


def patch_embed_forward(x, p):
    # BN folded into the conv weights; ReLU6 fused in the matmul epilogue.
    s1, t1 = bn_scale_shift(p["bn1"])
    x = conv3x3_s2(x, p["conv1_w"] * s1[None, :], p["conv1_b"] * s1 + t1,
                   activation="relu6")
    s2, t2 = bn_scale_shift(p["bn2"])
    x = conv3x3_s2(x, p["conv2_w"] * s2[None, :], p["conv2_b"] * s2 + t2,
                   activation="relu6")
    B, H, W, C = x.shape
    y = pallas_matmul(x.reshape(-1, C), p["conv3_w"], p["conv3_b"])
    return y.reshape(B, H, W, -1)


def window_partition(t, ws, shuffle):
    """t: (B, H, W, nh, d) -> (nh, B*hh*ww, ws*ws, d)."""
    B, H, W, nh, d = t.shape
    hh, ww = H // ws, W // ws
    if shuffle:
        t = t.reshape(B, ws, hh, ws, ww, nh, d).transpose(5, 0, 2, 4, 1, 3, 6)
    else:
        t = t.reshape(B, hh, ws, ww, ws, nh, d).transpose(5, 0, 1, 3, 2, 4, 6)
    return t.reshape(nh, B * hh * ww, ws * ws, d)


def window_reverse(t, ws, shuffle, B, H, W):
    """t: (nh, B*hh*ww, ws*ws, d) -> (B, H, W, nh*d)."""
    nh, _, _, d = t.shape
    hh, ww = H // ws, W // ws
    t = t.reshape(nh, B, hh, ww, ws, ws, d)
    if shuffle:
        t = t.transpose(1, 4, 2, 5, 3, 0, 6)   # B, ws1, hh, ws2, ww, nh, d
    else:
        t = t.transpose(1, 2, 4, 3, 5, 0, 6)   # B, hh, ws1, ww, ws2, nh, d
    return t.reshape(B, H, W, nh * d)


def attention_forward(x, norm1, p, num_heads, ws, shuffle):
    B, H, W, C = x.shape
    d = C // num_heads
    scale = d ** (-0.5)
    T = ws * ws
    x2d = x.reshape(-1, C)

    # Fold BatchNorm(norm1) into qkv: (x*s + t) @ W == x @ (s*W) + t @ W.
    s1, t1 = bn_scale_shift(norm1)
    w_qkv = p["w_qkv"] * s1[:, None]
    b_qkv = t1 @ p["w_qkv"]

    qkv = pallas_matmul(x2d, w_qkv, b_qkv, out_dtype=DTYPE_MM)     # (M, 3C)
    qkv = qkv.reshape(B, H, W, 3, num_heads, d)
    q = window_partition(qkv[:, :, :, 0], ws, shuffle)
    k = window_partition(qkv[:, :, :, 1], ws, shuffle)
    v = window_partition(qkv[:, :, :, 2], ws, shuffle)

    bias = p["rel_table"][p["rel_index"].reshape(-1)]
    bias = bias.reshape(T, T, num_heads).transpose(2, 0, 1)        # (nh, T, T)

    out = pallas_window_attention(q, k, v, bias, scale)
    out = window_reverse(out, ws, shuffle, B, H, W).reshape(-1, C)
    # Projection with the residual (x + attn) fused into the matmul epilogue.
    y = pallas_matmul(out, p["w_proj"], p["b_proj"], residual=x2d)
    return y.reshape(B, H, W, C)


def local_conv_forward(x, norm2, w_dw, ws):
    B, H, W, C = x.shape
    x2d = x.reshape(-1, C)
    # norm2 cannot be folded into the depthwise weights exactly (PyTorch
    # zero-pads the *normalized* tensor, so boundary pixels would get a wrong
    # shift) -> keep one fused affine pass.
    s2, t2 = bn_scale_shift(norm2)
    xn = pallas_affine(x2d, s2, t2).reshape(B, H, W, C)
    pad_total = ws - 1
    p_lo = pad_total // 2
    p_hi = pad_total - p_lo
    xp = jnp.pad(xn, ((0, 0), (p_lo, p_hi), (p_lo, p_hi), (0, 0)))
    taps = [xp[:, i:i + H, j:j + W, :] for i in range(ws) for j in range(ws)]
    taps = jnp.stack(taps, axis=0).reshape(ws * ws, B * H * W, C)
    # TODO(synk): taps are materialized via im2col in HBM (T x the activation);
    # a halo-DMA depthwise kernel would avoid this extra traffic.
    y = pallas_dwconv_residual(taps, w_dw, x2d)     # residual add fused
    return y.reshape(B, H, W, C)


def mlp_forward(x, norm3, p):
    B, H, W, C = x.shape
    x2d = x.reshape(-1, C)
    # Fold BatchNorm(norm3) into fc1.
    s3, t3 = bn_scale_shift(norm3)
    w1 = p["w1"] * s3[:, None]
    b1 = p["b1"] + t3 @ p["w1"]
    h = pallas_matmul(x2d, w1, b1, activation="relu6", out_dtype=DTYPE_MM)
    y = pallas_matmul(h, p["w2"], p["b2"], residual=x2d)   # residual fused
    return y.reshape(B, H, W, -1)


def block_forward(x, p, num_heads, ws, shuffle):
    x = attention_forward(x, p["norm1"], p["attn"], num_heads, ws, shuffle)
    x = local_conv_forward(x, p["norm2"], p["local_conv_w"], ws)
    x = mlp_forward(x, p["norm3"], p["mlp"])
    return x


def patch_merging_forward(x, p):
    B, H, W, C = x.shape
    s, t = bn_scale_shift(p["bn"])
    taps = [x[:, i::2, j::2, :] for i in range(2) for j in range(2)]
    xc = jnp.stack(taps, axis=3).reshape(B * (H // 2) * (W // 2), 4 * C)
    # Fold the merge BatchNorm into the reduction weight (tap-major rows).
    w = p["w"] * jnp.tile(s, 4)[:, None]
    b = jnp.tile(t, 4) @ p["w"]
    y = pallas_matmul(xc, w, b)
    return y.reshape(B, H // 2, W // 2, -1)


def stage_forward(x, p, num_heads, ws):
    if p["merge"] is not None:
        x = patch_merging_forward(x, p["merge"])
    for blk_pair in p["blocks"]:
        x = block_forward(x, blk_pair[0], num_heads, ws, shuffle=False)
        x = block_forward(x, blk_pair[1], num_heads, ws, shuffle=True)
    return x


def shuffle_transformer_forward(params, x_nchw, cfg):
    # NCHW input (PyTorch convention) -> NHWC internally.
    x = jnp.transpose(x_nchw, (0, 2, 3, 1)).astype(jnp.float32)
    x = patch_embed_forward(x, params["patch_embed"])
    for si in range(4):
        x = stage_forward(x, params["stages"][si],
                          cfg["num_heads"][si], cfg["window_size"])
    feat = jnp.mean(x, axis=(1, 2))          # AdaptiveAvgPool2d((1,1)) + flatten
    logits = pallas_matmul(feat, params["head_w"], params["head_b"])
    return logits


# ----------------------------------------------------------------------------
# Deterministic parameter initialization
# ----------------------------------------------------------------------------

class KeyGen:
    def __init__(self, seed):
        self.key = jax.random.PRNGKey(seed)

    def __call__(self):
        self.key, sub = jax.random.split(self.key)
        return sub


def rel_pos_index(ws):
    coords = np.stack(np.meshgrid(np.arange(ws), np.arange(ws), indexing="ij"))
    cf = coords.reshape(2, -1)
    rel = cf[:, :, None] - cf[:, None, :]
    rel = rel.transpose(1, 2, 0).copy()
    rel[:, :, 0] += ws - 1
    rel[:, :, 1] += ws - 1
    rel[:, :, 0] *= 2 * ws - 1
    return rel.sum(-1).astype(np.int32)


def init_params(cfg, kg):
    def w(shape, std=0.02):
        return std * jax.random.normal(kg(), shape, jnp.float32)

    def b(shape):
        return 0.01 * jax.random.normal(kg(), shape, jnp.float32)

    def bn(c):
        return dict(
            gamma=1.0 + 0.1 * jax.random.normal(kg(), (c,), jnp.float32),
            beta=0.05 * jax.random.normal(kg(), (c,), jnp.float32),
            mean=0.05 * jax.random.normal(kg(), (c,), jnp.float32),
            var=0.5 + 0.2 * jnp.abs(jax.random.normal(kg(), (c,), jnp.float32)),
        )

    ws = cfg["window_size"]
    mlp_ratio = cfg["mlp_ratio"]

    def init_block(dim, num_heads):
        hidden = int(dim * mlp_ratio)
        T = ws * ws
        return dict(
            norm1=bn(dim), norm2=bn(dim), norm3=bn(dim),
            attn=dict(
                w_qkv=w((dim, dim * 3)),
                w_proj=w((dim, dim)),
                b_proj=b((dim,)),
                rel_table=w(((2 * ws - 1) ** 2, num_heads)),
                rel_index=jnp.asarray(rel_pos_index(ws)),
            ),
            local_conv_w=w((T, 1, dim)),
            mlp=dict(w1=w((dim, hidden)), b1=b((hidden,)),
                     w2=w((hidden, dim)), b2=b((dim,))),
        )

    in_chans, token_dim, embed_dim = cfg["in_chans"], cfg["token_dim"], cfg["embed_dim"]
    dims = [h * 32 for h in cfg["num_heads"]]

    patch_embed = dict(
        conv1_w=w((9 * in_chans, token_dim)), conv1_b=b((token_dim,)), bn1=bn(token_dim),
        conv2_w=w((9 * token_dim, embed_dim)), conv2_b=b((embed_dim,)), bn2=bn(embed_dim),
        conv3_w=w((embed_dim, embed_dim)), conv3_b=b((embed_dim,)),
    )

    stages = []
    prev = embed_dim
    for si in range(4):
        out_dim = dims[si]
        nh = cfg["num_heads"][si]
        merge = None
        if prev != out_dim:
            merge = dict(bn=bn(prev), w=w((4 * prev, out_dim)))
        n_pairs = cfg["layers"][si] // 2
        blocks = [[init_block(out_dim, nh), init_block(out_dim, nh)]
                  for _ in range(n_pairs)]
        stages.append(dict(merge=merge, blocks=blocks))
        prev = out_dim

    head_w = w((dims[3], cfg["num_classes"]))
    head_b = b((cfg["num_classes"],))

    return dict(patch_embed=patch_embed, stages=stages,
                head_w=head_w, head_b=head_b)


# ----------------------------------------------------------------------------
# main
# ----------------------------------------------------------------------------

if __name__ == "__main__":
    # Small configuration consistent with the module:
    # dims = [h*32 for h in num_heads]; embed_dim == dims[0], so stage1 has no
    # patch merging (mirroring the original 96->96).
    cfg = dict(
        img_size=32, in_chans=3, num_classes=10,
        token_dim=8, embed_dim=32, mlp_ratio=4.0,
        layers=[2, 2, 2, 2], num_heads=[1, 2, 2, 4],
        window_size=2, relative_pos_embedding=True,
    )

    kg = KeyGen(0)
    params = init_params(cfg, kg)

    x = jax.random.normal(jax.random.PRNGKey(0),
                          (2, cfg["in_chans"], cfg["img_size"], cfg["img_size"]),
                          jnp.float32)

    fwd = jax.jit(lambda p, xx: shuffle_transformer_forward(p, xx, cfg))
    logits = fwd(params, x)
    logits = jax.block_until_ready(logits)

    assert logits.shape == (2, cfg["num_classes"])
    assert bool(jnp.all(jnp.isfinite(logits)))
    # TODO(synk): BatchNorm is eval-mode (running stats); training-mode batch
    # statistics are not reproduced.
    print("KERNEL_OK")
</pallas_src>

<mosaic_0001>
module attributes {stable_mosaic.version = 11 : i64} {
  func.func @_matmul_kernel(%arg0: i32, %arg1: i32, %arg2: memref<512x27xbf16, #tpu.memory_space<vmem>>, %arg3: memref<27x8xbf16, #tpu.memory_space<vmem>>, %arg4: memref<1x8xf32, #tpu.memory_space<vmem>>, %arg5: memref<512x8xf32, #tpu.memory_space<vmem>>, %arg6: memref<512x8xf32, #tpu.memory_space<vmem>>) attributes {dimension_semantics = [#tpu.dimension_semantics<parallel>, #tpu.dimension_semantics<arbitrary>], iteration_bounds = array<i64: 1, 1>, scalar_prefetch = 0 : i64, scratch_operands = 1 : i64, tpu.core_type = #tpu.core_type<tc>, window_params = [{transform_indices = @transform_0, window_bounds = array<i64: 512, 27>}, {transform_indices = @transform_1, window_bounds = array<i64: 27, 8>}, {pipeline_mode = #tpu.pipeline_mode<synchronous>, transform_indices = @transform_2, window_bounds = array<i64: 1, 8>}, {transform_indices = @transform_3, window_bounds = array<i64: 512, 8>}]} {
    %c0_i32 = arith.constant 0 : i32
    %0 = arith.cmpi eq, %arg1, %c0_i32 : i32
    %1 = arith.extui %0 : i1 to i32
    %c0_i32_0 = arith.constant 0 : i32
    %2 = arith.cmpi ne, %1, %c0_i32_0 : i32
    scf.if %2 {
      %cst_10 = arith.constant 0.000000e+00 : f32
      %12 = vector.broadcast %cst_10 : f32 to vector<512x8xf32>
      %c0_11 = arith.constant 0 : index
      %c0_12 = arith.constant 0 : index
      %13 = vector.load %arg6[%c0_11, %c0_12] : memref<512x8xf32, #tpu.memory_space<vmem>>, vector<512x8xf32>
      tpu.vector_store %arg6[%c0_11, %c0_12], %12 {strides = array<i32>} : memref<512x8xf32, #tpu.memory_space<vmem>>, vector<512x8xf32>,
    } else {
    }
    %c0 = arith.constant 0 : index
    %c0_1 = arith.constant 0 : index
    %3 = vector.load %arg6[%c0, %c0_1] : memref<512x8xf32, #tpu.memory_space<vmem>>, vector<512x8xf32>
    %c0_2 = arith.constant 0 : index
    %c0_3 = arith.constant 0 : index
    %4 = vector.load %arg2[%c0_2, %c0_3] : memref<512x27xbf16, #tpu.memory_space<vmem>>, vector<512x27xbf16>
    %c0_4 = arith.constant 0 : index
    %c0_5 = arith.constant 0 : index
    %5 = vector.load %arg3[%c0_4, %c0_5] : memref<27x8xbf16, #tpu.memory_space<vmem>>, vector<27x8xbf16>
    %cst = arith.constant dense<0.000000e+00> : vector<512x8xf32>
    %6 = tpu.matmul %4, %5, %cst {dimension_numbers = #tpu.dot_dimension_numbers<[1], [0], [0], [1], [0, 0, 1, 1], [], []>} : vector<512x27xbf16>, vector<27x8xbf16>, vector<512x8xf32> -> vector<512x8xf32>
    %7 = arith.addf %3, %6 : vector<512x8xf32>
    %c0_6 = arith.constant 0 : index
    %c0_7 = arith.constant 0 : index
    %8 = vector.load %arg6[%c0_6, %c0_7] : memref<512x8xf32, #tpu.memory_space<vmem>>, vector<512x8xf32>
    tpu.vector_store %arg6[%c0_6, %c0_7], %7 {strides = array<i32>} : memref<512x8xf32, #tpu.memory_space<vmem>>, vector<512x8xf32>,
    %c0_i32_8 = arith.constant 0 : i32
    %9 = arith.cmpi eq, %arg1, %c0_i32_8 : i32
    %10 = arith.extui %9 : i1 to i32
    %c0_i32_9 = arith.constant 0 : i32
    %11 = arith.cmpi ne, %10, %c0_i32_9 : i32
    scf.if %11 {
      %c0_10 = arith.constant 0 : index
      %c0_11 = arith.constant 0 : index
      %12 = vector.load %arg6[%c0_10, %c0_11] : memref<512x8xf32, #tpu.memory_space<vmem>>, vector<512x8xf32>
      %c0_12 = arith.constant 0 : index
      %c0_13 = arith.constant 0 : index
      %13 = vector.load %arg4[%c0_12, %c0_13] : memref<1x8xf32, #tpu.memory_space<vmem>>, vector<1x8xf32>
      %14 = vector.broadcast %13 : vector<1x8xf32> to vector<512x8xf32>
      %15 = arith.addf %12, %14 : vector<512x8xf32>
      %cst_14 = arith.constant 0.000000e+00 : f32
      %16 = vector.broadcast %cst_14 : f32 to vector<512x8xf32>
      %17 = arith.maximumf %15, %16 : vector<512x8xf32>
      %cst_15 = arith.constant 6.000000e+00 : f32
      %18 = vector.broadcast %cst_15 : f32 to vector<512x8xf32>
      %19 = arith.minimumf %17, %18 : vector<512x8xf32>
      %c0_16 = arith.constant 0 : index
      %c0_17 = arith.constant 0 : index
      %20 = vector.load %arg5[%c0_16, %c0_17] : memref<512x8xf32, #tpu.memory_space<vmem>>, vector<512x8xf32>
      tpu.vector_store %arg5[%c0_16, %c0_17], %19 {strides = array<i32>} : memref<512x8xf32, #tpu.memory_space<vmem>>, vector<512x8xf32>,
    } else {
    }
    return
  }
  func.func @transform_0(%arg0: i32, %arg1: i32) -> (i32, i32) {
    %c0_i32 = arith.constant 0 : i32
    return %arg0, %arg1 : i32, i32
  }
  func.func @transform_1(%arg0: i32, %arg1: i32) -> (i32, i32) {
    %c0_i32 = arith.constant 0 : i32
    %c0_i32_0 = arith.constant 0 : i32
    return %arg1, %c0_i32 : i32, i32
  }
  func.func @transform_2(%arg0: i32, %arg1: i32) -> (i32, i32) {
    %c0_i32 = arith.constant 0 : i32
    %c0_i32_0 = arith.constant 0 : i32
    %c0_i32_1 = arith.constant 0 : i32
    return %c0_i32, %c0_i32_0 : i32, i32
  }
  func.func @transform_3(%arg0: i32, %arg1: i32) -> (i32, i32) {
    %c0_i32 = arith.constant 0 : i32
    %c0_i32_0 = arith.constant 0 : i32
    return %arg0, %c0_i32 : i32, i32
  }
}

module attributes {stable_mosaic.version = 11 : i64} {
  func.func @_matmul_kernel(%arg0: i32, %arg1: i32, %arg2: memref<128x72xbf16, #tpu.memory_space<vmem>>, %arg3: memref<72x32xbf16, #tpu.memory_space<vmem>>, %arg4: memref<1x32xf32, #tpu.memory_space<vmem>>, %arg5: memref<128x32xf32, #tpu.memory_space<vmem>>, %arg6: memref<128x32xf32, #tpu.memory_space<vmem>>) attributes {dimension_semantics = [#tpu.dimension_semantics<parallel>, #tpu.dimension_semantics<arbitrary>], iteration_bounds = array<i64: 1, 1>, scalar_prefetch = 0 : i64, scratch_operands = 1 : i64, tpu.core_type = #tpu.core_type<tc>, window_params = [{transform_indices = @transform_0, window_bounds = array<i64: 128, 72>}, {transform_indices = @transform_1, window_bounds = array<i64: 72, 32>}, {pipeline_mode = #tpu.pipeline_mode<synchronous>, transform_indices = @transform_2, window_bounds = array<i64: 1, 32>}, {transform_indices = @transform_3, window_bounds = array<i64: 128, 32>}]} {
    %c0_i32 = arith.constant 0 : i32
    %0 = arith.cmpi eq, %arg1, %c0_i32 : i32
    %1 = arith.extui %0 : i1 to i32
    %c0_i32_0 = arith.constant 0 : i32
    %2 = arith.cmpi ne, %1, %c0_i32_0 : i32
    scf.if %2 {
      %cst_10 = arith.constant 0.000000e+00 : f32
      %12 = vector.broadcast %cst_10 : f32 to vector<128x32xf32>
      %c0_11 = arith.constant 0 : index
      %c0_12 = arith.constant 0 : index
      %13 = vector.load %arg6[%c0_11, %c0_12] : memref<128x32xf32, #tpu.memory_space<vmem>>, vector<128x32xf32>
      tpu.vector_store %arg6[%c0_11, %c0_12], %12 {strides = array<i32>} : memref<128x32xf32, #tpu.memory_space<vmem>>, vector<128x32xf32>,
    } else {
    }
    %c0 = arith.constant 0 : index
    %c0_1 = arith.constant 0 : index
    %3 = vector.load %arg6[%c0, %c0_1] : memref<128x32xf32, #tpu.memory_space<vmem>>, vector<128x32xf32>
    %c0_2 = arith.constant 0 : index
    %c0_3 = arith.constant 0 : index
    %4 = vector.load %arg2[%c0_2, %c0_3] : memref<128x72xbf16, #tpu.memory_space<vmem>>, vector<128x72xbf16>
    %c0_4 = arith.constant 0 : index
    %c0_5 = arith.constant 0 : index
    %5 = vector.load %arg3[%c0_4, %c0_5] : memref<72x32xbf16, #tpu.memory_space<vmem>>, vector<72x32xbf16>
    %cst = arith.constant dense<0.000000e+00> : vector<128x32xf32>
    %6 = tpu.matmul %4, %5, %cst {dimension_numbers = #tpu.dot_dimension_numbers<[1], [0], [0], [1], [0, 0, 1, 1], [], []>} : vector<128x72xbf16>, vector<72x32xbf16>, vector<128x32xf32> -> vector<128x32xf32>
    %7 = arith.addf %3, %6 : vector<128x32xf32>
    %c0_6 = arith.constant 0 : index
    %c0_7 = arith.constant 0 : index
    %8 = vector.load %arg6[%c0_6, %c0_7] : memref<128x32xf32, #tpu.memory_space<vmem>>, vector<128x32xf32>
    tpu.vector_store %arg6[%c0_6, %c0_7], %7 {strides = array<i32>} : memref<128x32xf32, #tpu.memory_space<vmem>>, vector<128x32xf32>,
    %c0_i32_8 = arith.constant 0 : i32
    %9 = arith.cmpi eq, %arg1, %c0_i32_8 : i32
    %10 = arith.extui %9 : i1 to i32
    %c0_i32_9 = arith.constant 0 : i32
    %11 = arith.cmpi ne, %10, %c0_i32_9 : i32
    scf.if %11 {
      %c0_10 = arith.constant 0 : index
      %c0_11 = arith.constant 0 : index
      %12 = vector.load %arg6[%c0_10, %c0_11] : memref<128x32xf32, #tpu.memory_space<vmem>>, vector<128x32xf32>
      %c0_12 = arith.constant 0 : index
      %c0_13 = arith.constant 0 : index
      %13 = vector.load %arg4[%c0_12, %c0_13] : memref<1x32xf32, #tpu.memory_space<vmem>>, vector<1x32xf32>
      %14 = vector.broadcast %13 : vector<1x32xf32> to vector<128x32xf32>
      %15 = arith.addf %12, %14 : vector<128x32xf32>
      %cst_14 = arith.constant 0.000000e+00 : f32
      %16 = vector.broadcast %cst_14 : f32 to vector<128x32xf32>
      %17 = arith.maximumf %15, %16 : vector<128x32xf32>
      %cst_15 = arith.constant 6.000000e+00 : f32
      %18 = vector.broadcast %cst_15 : f32 to vector<128x32xf32>
      %19 = arith.minimumf %17, %18 : vector<128x32xf32>
      %c0_16 = arith.constant 0 : index
      %c0_17 = arith.constant 0 : index
      %20 = vector.load %arg5[%c0_16, %c0_17] : memref<128x32xf32, #tpu.memory_space<vmem>>, vector<128x32xf32>
      tpu.vector_store %arg5[%c0_16, %c0_17], %19 {strides = array<i32>} : memref<128x32xf32, #tpu.memory_space<vmem>>, vector<128x32xf32>,
    } else {
    }
    return
  }
  func.func @transform_0(%arg0: i32, %arg1: i32) -> (i32, i32) {
    %c0_i32 = arith.constant 0 : i32
    return %arg0, %arg1 : i32, i32
  }
  func.func @transform_1(%arg0: i32, %arg1: i32) -> (i32, i32) {
    %c0_i32 = arith.constant 0 : i32
    %c0_i32_0 = arith.constant 0 : i32
    return %arg1, %c0_i32 : i32, i32
  }
  func.func @transform_2(%arg0: i32, %arg1: i32) -> (i32, i32) {
    %c0_i32 = arith.constant 0 : i32
    %c0_i32_0 = arith.constant 0 : i32
    %c0_i32_1 = arith.constant 0 : i32
    return %c0_i32, %c0_i32_0 : i32, i32
  }
  func.func @transform_3(%arg0: i32, %arg1: i32) -> (i32, i32) {
    %c0_i32 = arith.constant 0 : i32
    %c0_i32_0 = arith.constant 0 : i32
    return %arg0, %c0_i32 : i32, i32
  }
}

module attributes {stable_mosaic.version = 11 : i64} {
  func.func @_matmul_kernel(%arg0: i32, %arg1: i32, %arg2: memref<128x32xbf16, #tpu.memory_space<vmem>>, %arg3: memref<32x96xbf16, #tpu.memory_space<vmem>>, %arg4: memref<1x96xf32, #tpu.memory_space<vmem>>, %arg5: memref<128x96xbf16, #tpu.memory_space<vmem>>, %arg6: memref<128x96xf32, #tpu.memory_space<vmem>>) attributes {dimension_semantics = [#tpu.dimension_semantics<parallel>, #tpu.dimension_semantics<arbitrary>], iteration_bounds = array<i64: 1, 1>, scalar_prefetch = 0 : i64, scratch_operands = 1 : i64, tpu.core_type = #tpu.core_type<tc>, window_params = [{transform_indices = @transform_0, window_bounds = array<i64: 128, 32>}, {transform_indices = @transform_1, window_bounds = array<i64: 32, 96>}, {pipeline_mode = #tpu.pipeline_mode<synchronous>, transform_indices = @transform_2, window_bounds = array<i64: 1, 96>}, {transform_indices = @transform_3, window_bounds = array<i64: 128, 96>}]} {
    %c0_i32 = arith.constant 0 : i32
    %0 = arith.cmpi eq, %arg1, %c0_i32 : i32
    %1 = arith.extui %0 : i1 to i32
    %c0_i32_0 = arith.constant 0 : i32
    %2 = arith.cmpi ne, %1, %c0_i32_0 : i32
    scf.if %2 {
      %cst_10 = arith.constant 0.000000e+00 : f32
      %12 = vector.broadcast %cst_10 : f32 to vector<128x96xf32>
      %c0_11 = arith.constant 0 : index
      %c0_12 = arith.constant 0 : index
      %13 = vector.load %arg6[%c0_11, %c0_12] : memref<128x96xf32, #tpu.memory_space<vmem>>, vector<128x96xf32>
      tpu.vector_store %arg6[%c0_11, %c0_12], %12 {strides = array<i32>} : memref<128x96xf32, #tpu.memory_space<vmem>>, vector<128x96xf32>,
    } else {
    }
    %c0 = arith.constant 0 : index
    %c0_1 = arith.constant 0 : index
    %3 = vector.load %arg6[%c0, %c0_1] : memref<128x96xf32, #tpu.memory_space<vmem>>, vector<128x96xf32>
    %c0_2 = arith.constant 0 : index
    %c0_3 = arith.constant 0 : index
    %4 = vector.load %arg2[%c0_2, %c0_3] : memref<128x32xbf16, #tpu.memory_space<vmem>>, vector<128x32xbf16>
    %c0_4 = arith.constant 0 : index
    %c0_5 = arith.constant 0 : index
    %5 = vector.load %arg3[%c0_4, %c0_5] : memref<32x96xbf16, #tpu.memory_space<vmem>>, vector<32x96xbf16>
    %cst = arith.constant dense<0.000000e+00> : vector<128x96xf32>
    %6 = tpu.matmul %4, %5, %cst {dimension_numbers = #tpu.dot_dimension_numbers<[1], [0], [0], [1], [0, 0, 1, 1], [], []>} : vector<128x32xbf16>, vector<32x96xbf16>, vector<128x96xf32> -> vector<128x96xf32>
    %7 = arith.addf %3, %6 : vector<128x96xf32>
    %c0_6 = arith.constant 0 : index
    %c0_7 = arith.constant 0 : index
    %8 = vector.load %arg6[%c0_6, %c0_7] : memref<128x96xf32, #tpu.memory_space<vmem>>, vector<128x96xf32>
    tpu.vector_store %arg6[%c0_6, %c0_7], %7 {strides = array<i32>} : memref<128x96xf32, #tpu.memory_space<vmem>>, vector<128x96xf32>,
    %c0_i32_8 = arith.constant 0 : i32
    %9 = arith.cmpi eq, %arg1, %c0_i32_8 : i32
    %10 = arith.extui %9 : i1 to i32
    %c0_i32_9 = arith.constant 0 : i32
    %11 = arith.cmpi ne, %10, %c0_i32_9 : i32
    scf.if %11 {
      %c0_10 = arith.constant 0 : index
      %c0_11 = arith.constant 0 : index
      %12 = vector.load %arg6[%c0_10, %c0_11] : memref<128x96xf32, #tpu.memory_space<vmem>>, vector<128x96xf32>
      %c0_12 = arith.constant 0 : index
      %c0_13 = arith.constant 0 : index
      %13 = vector.load %arg4[%c0_12, %c0_13] : memref<1x96xf32, #tpu.memory_space<vmem>>, vector<1x96xf32>
      %14 = vector.broadcast %13 : vector<1x96xf32> to vector<128x96xf32>
      %15 = arith.addf %12, %14 : vector<128x96xf32>
      %16 = arith.truncf %15 : vector<128x96xf32> to vector<128x96xbf16>
      %c0_14 = arith.constant 0 : index
      %c0_15 = arith.constant 0 : index
      %17 = vector.load %arg5[%c0_14, %c0_15] : memref<128x96xbf16, #tpu.memory_space<vmem>>, vector<128x96xbf16>
      tpu.vector_store %arg5[%c0_14, %c0_15], %16 {strides = array<i32>} : memref<128x96xbf16, #tpu.memory_space<vmem>>, vector<128x96xbf16>,
    } else {
    }
    return
  }
  func.func @transform_0(%arg0: i32, %arg1: i32) -> (i32, i32) {
    %c0_i32 = arith.constant 0 : i32
    return %arg0, %arg1 : i32, i32
  }
  func.func @transform_1(%arg0: i32, %arg1: i32) -> (i32, i32) {
    %c0_i32 = arith.constant 0 : i32
    %c0_i32_0 = arith.constant 0 : i32
    return %arg1, %c0_i32 : i32, i32
  }
  func.func @transform_2(%arg0: i32, %arg1: i32) -> (i32, i32) {
    %c0_i32 = arith.constant 0 : i32
    %c0_i32_0 = arith.constant 0 : i32
    %c0_i32_1 = arith.constant 0 : i32
    return %c0_i32, %c0_i32_0 : i32, i32
  }
  func.func @transform_3(%arg0: i32, %arg1: i32) -> (i32, i32) {
    %c0_i32 = arith.constant 0 : i32
    %c0_i32_0 = arith.constant 0 : i32
    return %arg0, %c0_i32 : i32, i32
  }
}

module attributes {stable_mosaic.version = 11 : i64} {
  func.func @_matmul_kernel(%arg0: i32, %arg1: i32, %arg2: memref<128x32xbf16, #tpu.memory_space<vmem>>, %arg3: memref<32x32xbf16, #tpu.memory_space<vmem>>, %arg4: memref<1x32xf32, #tpu.memory_space<vmem>>, %arg5: memref<128x32xf32, #tpu.memory_space<vmem>>, %arg6: memref<128x32xf32, #tpu.memory_space<vmem>>) attributes {dimension_semantics = [#tpu.dimension_semantics<parallel>, #tpu.dimension_semantics<arbitrary>], iteration_bounds = array<i64: 1, 1>, scalar_prefetch = 0 : i64, scratch_operands = 1 : i64, tpu.core_type = #tpu.core_type<tc>, window_params = [{transform_indices = @transform_0, window_bounds = array<i64: 128, 32>}, {transform_indices = @transform_1, window_bounds = array<i64: 32, 32>}, {pipeline_mode = #tpu.pipeline_mode<synchronous>, transform_indices = @transform_2, window_bounds = array<i64: 1, 32>}, {transform_indices = @transform_3, window_bounds = array<i64: 128, 32>}]} {
    %c0_i32 = arith.constant 0 : i32
    %0 = arith.cmpi eq, %arg1, %c0_i32 : i32
    %1 = arith.extui %0 : i1 to i32
    %c0_i32_0 = arith.constant 0 : i32
    %2 = arith.cmpi ne, %1, %c0_i32_0 : i32
    scf.if %2 {
      %cst_10 = arith.constant 0.000000e+00 : f32
      %12 = vector.broadcast %cst_10 : f32 to vector<128x32xf32>
      %c0_11 = arith.constant 0 : index
      %c0_12 = arith.constant 0 : index
      %13 = vector.load %arg6[%c0_11, %c0_12] : memref<128x32xf32, #tpu.memory_space<vmem>>, vector<128x32xf32>
      tpu.vector_store %arg6[%c0_11, %c0_12], %12 {strides = array<i32>} : memref<128x32xf32, #tpu.memory_space<vmem>>, vector<128x32xf32>,
    } else {
    }
    %c0 = arith.constant 0 : index
    %c0_1 = arith.constant 0 : index
    %3 = vector.load %arg6[%c0, %c0_1] : memref<128x32xf32, #tpu.memory_space<vmem>>, vector<128x32xf32>
    %c0_2 = arith.constant 0 : index
    %c0_3 = arith.constant 0 : index
    %4 = vector.load %arg2[%c0_2, %c0_3] : memref<128x32xbf16, #tpu.memory_space<vmem>>, vector<128x32xbf16>
    %c0_4 = arith.constant 0 : index
    %c0_5 = arith.constant 0 : index
    %5 = vector.load %arg3[%c0_4, %c0_5] : memref<32x32xbf16, #tpu.memory_space<vmem>>, vector<32x32xbf16>
    %cst = arith.constant dense<0.000000e+00> : vector<128x32xf32>
    %6 = tpu.matmul %4, %5, %cst {dimension_numbers = #tpu.dot_dimension_numbers<[1], [0], [0], [1], [0, 0, 1, 1], [], []>} : vector<128x32xbf16>, vector<32x32xbf16>, vector<128x32xf32> -> vector<128x32xf32>
    %7 = arith.addf %3, %6 : vector<128x32xf32>
    %c0_6 = arith.constant 0 : index
    %c0_7 = arith.constant 0 : index
    %8 = vector.load %arg6[%c0_6, %c0_7] : memref<128x32xf32, #tpu.memory_space<vmem>>, vector<128x32xf32>
    tpu.vector_store %arg6[%c0_6, %c0_7], %7 {strides = array<i32>} : memref<128x32xf32, #tpu.memory_space<vmem>>, vector<128x32xf32>,
    %c0_i32_8 = arith.constant 0 : i32
    %9 = arith.cmpi eq, %arg1, %c0_i32_8 : i32
    %10 = arith.extui %9 : i1 to i32
    %c0_i32_9 = arith.constant 0 : i32
    %11 = arith.cmpi ne, %10, %c0_i32_9 : i32
    scf.if %11 {
      %c0_10 = arith.constant 0 : index
      %c0_11 = arith.constant 0 : index
      %12 = vector.load %arg6[%c0_10, %c0_11] : memref<128x32xf32, #tpu.memory_space<vmem>>, vector<128x32xf32>
      %c0_12 = arith.constant 0 : index
      %c0_13 = arith.constant 0 : index
      %13 = vector.load %arg4[%c0_12, %c0_13] : memref<1x32xf32, #tpu.memory_space<vmem>>, vector<1x32xf32>
      %14 = vector.broadcast %13 : vector<1x32xf32> to vector<128x32xf32>
      %15 = arith.addf %12, %14 : vector<128x32xf32>
      %c0_14 = arith.constant 0 : index
      %c0_15 = arith.constant 0 : index
      %16 = vector.load %arg5[%c0_14, %c0_15] : memref<128x32xf32, #tpu.memory_space<vmem>>, vector<128x32xf32>
      tpu.vector_store %arg5[%c0_14, %c0_15], %15 {strides = array<i32>} : memref<128x32xf32, #tpu.memory_space<vmem>>, vector<128x32xf32>,
    } else {
    }
    return
  }
  func.func @transform_0(%arg0: i32, %arg1: i32) -> (i32, i32) {
    %c0_i32 = arith.constant 0 : i32
    return %arg0, %arg1 : i32, i32
  }
  func.func @transform_1(%arg0: i32, %arg1: i32) -> (i32, i32) {
    %c0_i32 = arith.constant 0 : i32
    %c0_i32_0 = arith.constant 0 : i32
    return %arg1, %c0_i32 : i32, i32
  }
  func.func @transform_2(%arg0: i32, %arg1: i32) -> (i32, i32) {
    %c0_i32 = arith.constant 0 : i32
    %c0_i32_0 = arith.constant 0 : i32
    %c0_i32_1 = arith.constant 0 : i32
    return %c0_i32, %c0_i32_0 : i32, i32
  }
  func.func @transform_3(%arg0: i32, %arg1: i32) -> (i32, i32) {
    %c0_i32 = arith.constant 0 : i32
    %c0_i32_0 = arith.constant 0 : i32
    return %arg0, %c0_i32 : i32, i32
  }
}

module attributes {stable_mosaic.version = 11 : i64} {
  func.func @_matmul_kernel(%arg0: i32, %arg1: i32, %arg2: memref<128x32xbf16, #tpu.memory_space<vmem>>, %arg3: memref<32x32xbf16, #tpu.memory_space<vmem>>, %arg4: memref<1x32xf32, #tpu.memory_space<vmem>>, %arg5: memref<128x32xf32, #tpu.memory_space<vmem>>, %arg6: memref<128x32xf32, #tpu.memory_space<vmem>>, %arg7: memref<128x32xf32, #tpu.memory_space<vmem>>) attributes {dimension_semantics = [#tpu.dimension_semantics<parallel>, #tpu.dimension_semantics<arbitrary>], iteration_bounds = array<i64: 1, 1>, scalar_prefetch = 0 : i64, scratch_operands = 1 : i64, tpu.core_type = #tpu.core_type<tc>, window_params = [{transform_indices = @transform_0, window_bounds = array<i64: 128, 32>}, {transform_indices = @transform_1, window_bounds = array<i64: 32, 32>}, {pipeline_mode = #tpu.pipeline_mode<synchronous>, transform_indices = @transform_2, window_bounds = array<i64: 1, 32>}, {transform_indices = @transform_3, window_bounds = array<i64: 128, 32>}, {transform_indices = @transform_4, window_bounds = array<i64: 128, 32>}]} {
    %c0_i32 = arith.constant 0 : i32
    %0 = arith.cmpi eq, %arg1, %c0_i32 : i32
    %1 = arith.extui %0 : i1 to i32
    %c0_i32_0 = arith.constant 0 : i32
    %2 = arith.cmpi ne, %1, %c0_i32_0 : i32
    scf.if %2 {
      %cst_10 = arith.constant 0.000000e+00 : f32
      %12 = vector.broadcast %cst_10 : f32 to vector<128x32xf32>
      %c0_11 = arith.constant 0 : index
      %c0_12 = arith.constant 0 : index
      %13 = vector.load %arg7[%c0_11, %c0_12] : memref<128x32xf32, #tpu.memory_space<vmem>>, vector<128x32xf32>
      tpu.vector_store %arg7[%c0_11, %c0_12], %12 {strides = array<i32>} : memref<128x32xf32, #tpu.memory_space<vmem>>, vector<128x32xf32>,
    } else {
    }
    %c0 = arith.constant 0 : index
    %c0_1 = arith.constant 0 : index
    %3 = vector.load %arg7[%c0, %c0_1] : memref<128x32xf32, #tpu.memory_space<vmem>>, vector<128x32xf32>
    %c0_2 = arith.constant 0 : index
    %c0_3 = arith.constant 0 : index
    %4 = vector.load %arg2[%c0_2, %c0_3] : memref<128x32xbf16, #tpu.memory_space<vmem>>, vector<128x32xbf16>
    %c0_4 = arith.constant 0 : index
    %c0_5 = arith.constant 0 : index
    %5 = vector.load %arg3[%c0_4, %c0_5] : memref<32x32xbf16, #tpu.memory_space<vmem>>, vector<32x32xbf16>
    %cst = arith.constant dense<0.000000e+00> : vector<128x32xf32>
    %6 = tpu.matmul %4, %5, %cst {dimension_numbers = #tpu.dot_dimension_numbers<[1], [0], [0], [1], [0, 0, 1, 1], [], []>} : vector<128x32xbf16>, vector<32x32xbf16>, vector<128x32xf32> -> vector<128x32xf32>
    %7 = arith.addf %3, %6 : vector<128x32xf32>
    %c0_6 = arith.constant 0 : index
    %c0_7 = arith.constant 0 : index
    %8 = vector.load %arg7[%c0_6, %c0_7] : memref<128x32xf32, #tpu.memory_space<vmem>>, vector<128x32xf32>
    tpu.vector_store %arg7[%c0_6, %c0_7], %7 {strides = array<i32>} : memref<128x32xf32, #tpu.memory_space<vmem>>, vector<128x32xf32>,
    %c0_i32_8 = arith.constant 0 : i32
    %9 = arith.cmpi eq, %arg1, %c0_i32_8 : i32
    %10 = arith.extui %9 : i1 to i32
    %c0_i32_9 = arith.constant 0 : i32
    %11 = arith.cmpi ne, %10, %c0_i32_9 : i32
    scf.if %11 {
      %c0_10 = arith.constant 0 : index
      %c0_11 = arith.constant 0 : index
      %12 = vector.load %arg7[%c0_10, %c0_11] : memref<128x32xf32, #tpu.memory_space<vmem>>, vector<128x32xf32>
      %c0_12 = arith.constant 0 : index
      %c0_13 = arith.constant 0 : index
      %13 = vector.load %arg4[%c0_12, %c0_13] : memref<1x32xf32, #tpu.memory_space<vmem>>, vector<1x32xf32>
      %14 = vector.broadcast %13 : vector<1x32xf32> to vector<128x32xf32>
      %15 = arith.addf %12, %14 : vector<128x32xf32>
      %c0_14 = arith.constant 0 : index
      %c0_15 = arith.constant 0 : index
      %16 = vector.load %arg5[%c0_14, %c0_15] : memref<128x32xf32, #tpu.memory_space<vmem>>, vector<128x32xf32>
      %17 = arith.addf %15, %16 : vector<128x32xf32>
      %c0_16 = arith.constant 0 : index
      %c0_17 = arith.constant 0 : index
      %18 = vector.load %arg6[%c0_16, %c0_17] : memref<128x32xf32, #tpu.memory_space<vmem>>, vector<128x32xf32>
      tpu.vector_store %arg6[%c0_16, %c0_17], %17 {strides = array<i32>} : memref<128x32xf32, #tpu.memory_space<vmem>>, vector<128x32xf32>,
    } else {
    }
    return
  }
  func.func @transform_0(%arg0: i32, %arg1: i32) -> (i32, i32) {
    %c0_i32 = arith.constant 0 : i32
    return %arg0, %arg1 : i32, i32
  }
  func.func @transform_1(%arg0: i32, %arg1: i32) -> (i32, i32) {
    %c0_i32 = arith.constant 0 : i32
    %c0_i32_0 = arith.constant 0 : i32
    return %arg1, %c0_i32 : i32, i32
  }
  func.func @transform_2(%arg0: i32, %arg1: i32) -> (i32, i32) {
    %c0_i32 = arith.constant 0 : i32
    %c0_i32_0 = arith.constant 0 : i32
    %c0_i32_1 = arith.constant 0 : i32
    return %c0_i32, %c0_i32_0 : i32, i32
  }
  func.func @transform_3(%arg0: i32, %arg1: i32) -> (i32, i32) {
    %c0_i32 = arith.constant 0 : i32
    %c0_i32_0 = arith.constant 0 : i32
    return %arg0, %c0_i32 : i32, i32
  }
  func.func @transform_4(%arg0: i32, %arg1: i32) -> (i32, i32) {
    %c0_i32 = arith.constant 0 : i32
    %c0_i32_0 = arith.constant 0 : i32
    return %arg0, %c0_i32 : i32, i32
  }
}

module attributes {stable_mosaic.version = 11 : i64} {
  func.func @_attn_kernel(%arg0: i32, %arg1: i32, %arg2: memref<1x32x4x32xbf16, #tpu.memory_space<vmem>>, %arg3: memref<1x32x4x32xbf16, #tpu.memory_space<vmem>>, %arg4: memref<1x32x4x32xbf16, #tpu.memory_space<vmem>>, %arg5: memref<1x4x4xf32, #tpu.memory_space<vmem>>, %arg6: memref<1x32x4x32xbf16, #tpu.memory_space<vmem>>) attributes {dimension_semantics = [#tpu.dimension_semantics<parallel>, #tpu.dimension_semantics<parallel>], iteration_bounds = array<i64: 1, 1>, scalar_prefetch = 0 : i64, scratch_operands = 0 : i64, tpu.core_type = #tpu.core_type<tc>, window_params = [{transform_indices = @transform_0, window_bounds = array<i64: 1, 32, 4, 32>}, {transform_indices = @transform_1, window_bounds = array<i64: 1, 32, 4, 32>}, {transform_indices = @transform_2, window_bounds = array<i64: 1, 32, 4, 32>}, {transform_indices = @transform_3, window_bounds = array<i64: 1, 4, 4>}, {transform_indices = @transform_4, window_bounds = array<i64: 1, 32, 4, 32>}]} {
    %c0 = arith.constant 0 : index
    %c0_0 = arith.constant 0 : index
    %c0_1 = arith.constant 0 : index
    %c0_2 = arith.constant 0 : index
    %0 = vector.load %arg2[%c0, %c0_0, %c0_1, %c0_2] : memref<1x32x4x32xbf16, #tpu.memory_space<vmem>>, vector<1x32x4x32xbf16>
    %1 = vector.shape_cast %0 : vector<1x32x4x32xbf16> to vector<32x4x32xbf16>
    %c0_3 = arith.constant 0 : index
    %c0_4 = arith.constant 0 : index
    %c0_5 = arith.constant 0 : index
    %c0_6 = arith.constant 0 : index
    %2 = vector.load %arg3[%c0_3, %c0_4, %c0_5, %c0_6] : memref<1x32x4x32xbf16, #tpu.memory_space<vmem>>, vector<1x32x4x32xbf16>
    %3 = vector.shape_cast %2 : vector<1x32x4x32xbf16> to vector<32x4x32xbf16>
    %c0_7 = arith.constant 0 : index
    %c0_8 = arith.constant 0 : index
    %c0_9 = arith.constant 0 : index
    %c0_10 = arith.constant 0 : index
    %4 = vector.load %arg4[%c0_7, %c0_8, %c0_9, %c0_10] : memref<1x32x4x32xbf16, #tpu.memory_space<vmem>>, vector<1x32x4x32xbf16>
    %5 = vector.shape_cast %4 : vector<1x32x4x32xbf16> to vector<32x4x32xbf16>
    "tpu.trace_start"() <{level = 10 : i32, message = "wqd,wkd->wqk"}> : () -> ()
    %cst = arith.constant dense<0.000000e+00> : vector<32x4x4xf32>
    %6 = tpu.matmul %1, %3, %cst {dimension_numbers = #tpu.dot_dimension_numbers<[2], [2], [1], [1], [0, 0, 0, 1, 1, 1], [0], [0]>} : vector<32x4x32xbf16>, vector<32x4x32xbf16>, vector<32x4x4xf32> -> vector<32x4x4xf32>
    "tpu.trace_stop"() : () -> ()
    %cst_11 = arith.constant 0.176776692 : f32
    %7 = vector.broadcast %cst_11 : f32 to vector<32x4x4xf32>
    %8 = arith.mulf %6, %7 : vector<32x4x4xf32>
    %c0_12 = arith.constant 0 : index
    %c0_13 = arith.constant 0 : index
    %c0_14 = arith.constant 0 : index
    %9 = vector.load %arg5[%c0_12, %c0_13, %c0_14] : memref<1x4x4xf32, #tpu.memory_space<vmem>>, vector<1x4x4xf32>
    %10 = vector.broadcast %9 : vector<1x4x4xf32> to vector<32x4x4xf32>
    %11 = arith.addf %8, %10 : vector<32x4x4xf32>
    %cst_15 = arith.constant dense<0xFF800000> : vector<32x4xf32>
    %12 = vector.multi_reduction <maximumf>, %11, %cst_15 [2] : vector<32x4x4xf32> to vector<32x4xf32>
    %13 = vector.shape_cast %12 : vector<32x4xf32> to vector<32x4x1xf32>
    %14 = vector.broadcast %13 : vector<32x4x1xf32> to vector<32x4x4xf32>
    %15 = arith.subf %11, %14 : vector<32x4x4xf32>
    %16 = math.exp %15 : vector<32x4x4xf32>
    %cst_16 = arith.constant dense<0.000000e+00> : vector<32x4xf32>
    %17 = vector.multi_reduction <add>, %16, %cst_16 [2] : vector<32x4x4xf32> to vector<32x4xf32>
    %18 = vector.shape_cast %17 : vector<32x4xf32> to vector<32x4x1xf32>
    %19 = tpu.reciprocal %18 {approx = true} : vector<32x4x1xf32> -> vector<32x4x1xf32>
    %20 = vector.broadcast %19 : vector<32x4x1xf32> to vector<32x4x4xf32>
    %21 = arith.mulf %16, %20 : vector<32x4x4xf32>
    %22 = arith.truncf %21 : vector<32x4x4xf32> to vector<32x4x4xbf16>
    "tpu.trace_start"() <{level = 10 : i32, message = "wqk,wkd->wqd"}> : () -> ()
    %cst_17 = arith.constant dense<0.000000e+00> : vector<32x4x32xf32>
    %23 = tpu.matmul %22, %5, %cst_17 {dimension_numbers = #tpu.dot_dimension_numbers<[2], [1], [1], [2], [0, 0, 0, 1, 1, 2], [0], [0]>} : vector<32x4x4xbf16>, vector<32x4x32xbf16>, vector<32x4x32xf32> -> vector<32x4x32xf32>
    "tpu.trace_stop"() : () -> ()
    %24 = arith.truncf %23 : vector<32x4x32xf32> to vector<32x4x32xbf16>
    %c0_18 = arith.constant 0 : index
    %c0_19 = arith.constant 0 : index
    %c0_20 = arith.constant 0 : index
    %c0_21 = arith.constant 0 : index
    %25 = vector.load %arg6[%c0_18, %c0_19, %c0_20, %c0_21] : memref<1x32x4x32xbf16, #tpu.memory_space<vmem>>, vector<1x32x4x32xbf16>
    %26 = vector.shape_cast %25 : vector<1x32x4x32xbf16> to vector<32x4x32xbf16>
    %27 = vector.shape_cast %24 : vector<32x4x32xbf16> to vector<1x32x4x32xbf16>
    tpu.vector_store %arg6[%c0_18, %c0_19, %c0_20, %c0_21], %27 {strides = array<i32>} : memref<1x32x4x32xbf16, #tpu.memory_space<vmem>>, vector<1x32x4x32xbf16>,
    return
  }
  func.func @transform_0(%arg0: i32, %arg1: i32) -> (i32, i32, i32, i32) {
    %c0_i32 = arith.constant 0 : i32
    %c0_i32_0 = arith.constant 0 : i32
    %c0_i32_1 = arith.constant 0 : i32
    return %arg0, %arg1, %c0_i32, %c0_i32_0 : i32, i32, i32, i32
  }
  func.func @transform_1(%arg0: i32, %arg1: i32) -> (i32, i32, i32, i32) {
    %c0_i32 = arith.constant 0 : i32
    %c0_i32_0 = arith.constant 0 : i32
    %c0_i32_1 = arith.constant 0 : i32
    return %arg0, %arg1, %c0_i32, %c0_i32_0 : i32, i32, i32, i32
  }
  func.func @transform_2(%arg0: i32, %arg1: i32) -> (i32, i32, i32, i32) {
    %c0_i32 = arith.constant 0 : i32
    %c0_i32_0 = arith.constant 0 : i32
    %c0_i32_1 = arith.constant 0 : i32
    return %arg0, %arg1, %c0_i32, %c0_i32_0 : i32, i32, i32, i32
  }
  func.func @transform_3(%arg0: i32, %arg1: i32) -> (i32, i32, i32) {
    %c0_i32 = arith.constant 0 : i32
    %c0_i32_0 = arith.constant 0 : i32
    %c0_i32_1 = arith.constant 0 : i32
    return %arg0, %c0_i32, %c0_i32_0 : i32, i32, i32
  }
  func.func @transform_4(%arg0: i32, %arg1: i32) -> (i32, i32, i32, i32) {
    %c0_i32 = arith.constant 0 : i32
    %c0_i32_0 = arith.constant 0 : i32
    %c0_i32_1 = arith.constant 0 : i32
    return %arg0, %arg1, %c0_i32, %c0_i32_0 : i32, i32, i32, i32
  }
}

module attributes {stable_mosaic.version = 11 : i64} {
  func.func @_affine_kernel(%arg0: i32, %arg1: memref<128x32xf32, #tpu.memory_space<vmem>>, %arg2: memref<1x32xf32, #tpu.memory_space<vmem>>, %arg3: memref<1x32xf32, #tpu.memory_space<vmem>>, %arg4: memref<128x32xf32, #tpu.memory_space<vmem>>) attributes {dimension_semantics = [#tpu.dimension_semantics<parallel>], iteration_bounds = array<i64: 1>, scalar_prefetch = 0 : i64, scratch_operands = 0 : i64, tpu.core_type = #tpu.core_type<tc>, window_params = [{transform_indices = @transform_0, window_bounds = array<i64: 128, 32>}, {pipeline_mode = #tpu.pipeline_mode<synchronous>, transform_indices = @transform_1, window_bounds = array<i64: 1, 32>}, {pipeline_mode = #tpu.pipeline_mode<synchronous>, transform_indices = @transform_2, window_bounds = array<i64: 1, 32>}, {transform_indices = @transform_3, window_bounds = array<i64: 128, 32>}]} {
    %c0 = arith.constant 0 : index
    %c0_0 = arith.constant 0 : index
    %0 = vector.load %arg1[%c0, %c0_0] : memref<128x32xf32, #tpu.memory_space<vmem>>, vector<128x32xf32>
    %c0_1 = arith.constant 0 : index
    %c0_2 = arith.constant 0 : index
    %1 = vector.load %arg2[%c0_1, %c0_2] : memref<1x32xf32, #tpu.memory_space<vmem>>, vector<1x32xf32>
    %2 = vector.broadcast %1 : vector<1x32xf32> to vector<128x32xf32>
    %3 = arith.mulf %0, %2 : vector<128x32xf32>
    %c0_3 = arith.constant 0 : index
    %c0_4 = arith.constant 0 : index
    %4 = vector.load %arg3[%c0_3, %c0_4] : memref<1x32xf32, #tpu.memory_space<vmem>>, vector<1x32xf32>
    %5 = vector.broadcast %4 : vector<1x32xf32> to vector<128x32xf32>
    %6 = arith.addf %3, %5 : vector<128x32xf32>
    %c0_5 = arith.constant 0 : index
    %c0_6 = arith.constant 0 : index
    %7 = vector.load %arg4[%c0_5, %c0_6] : memref<128x32xf32, #tpu.memory_space<vmem>>, vector<128x32xf32>
    tpu.vector_store %arg4[%c0_5, %c0_6], %6 {strides = array<i32>} : memref<128x32xf32, #tpu.memory_space<vmem>>, vector<128x32xf32>,
    return
  }
  func.func @transform_0(%arg0: i32) -> (i32, i32) {
    %c0_i32 = arith.constant 0 : i32
    %c0_i32_0 = arith.constant 0 : i32
    return %arg0, %c0_i32 : i32, i32
  }
  func.func @transform_1(%arg0: i32) -> (i32, i32) {
    %c0_i32 = arith.constant 0 : i32
    %c0_i32_0 = arith.constant 0 : i32
    %c0_i32_1 = arith.constant 0 : i32
    return %c0_i32, %c0_i32_0 : i32, i32
  }
  func.func @transform_2(%arg0: i32) -> (i32, i32) {
    %c0_i32 = arith.constant 0 : i32
    %c0_i32_0 = arith.constant 0 : i32
    %c0_i32_1 = arith.constant 0 : i32
    return %c0_i32, %c0_i32_0 : i32, i32
  }
  func.func @transform_3(%arg0: i32) -> (i32, i32) {
    %c0_i32 = arith.constant 0 : i32
    %c0_i32_0 = arith.constant 0 : i32
    return %arg0, %c0_i32 : i32, i32
  }
}

module attributes {stable_mosaic.version = 11 : i64} {
  func.func @_dwconv_kernel(%arg0: i32, %arg1: memref<4x128x32xf32, #tpu.memory_space<vmem>>, %arg2: memref<4x1x32xf32, #tpu.memory_space<vmem>>, %arg3: memref<128x32xf32, #tpu.memory_space<vmem>>, %arg4: memref<128x32xf32, #tpu.memory_space<vmem>>) attributes {dimension_semantics = [#tpu.dimension_semantics<parallel>], iteration_bounds = array<i64: 1>, scalar_prefetch = 0 : i64, scratch_operands = 0 : i64, tpu.core_type = #tpu.core_type<tc>, window_params = [{transform_indices = @transform_0, window_bounds = array<i64: 4, 128, 32>}, {pipeline_mode = #tpu.pipeline_mode<synchronous>, transform_indices = @transform_1, window_bounds = array<i64: 4, 1, 32>}, {transform_indices = @transform_2, window_bounds = array<i64: 128, 32>}, {transform_indices = @transform_3, window_bounds = array<i64: 128, 32>}]} {
    %c0 = arith.constant 0 : index
    %c0_0 = arith.constant 0 : index
    %0 = vector.load %arg3[%c0, %c0_0] : memref<128x32xf32, #tpu.memory_space<vmem>>, vector<128x32xf32>
    %c0_1 = arith.constant 0 : index
    %c0_2 = arith.constant 0 : index
    %c0_3 = arith.constant 0 : index
    %1 = vector.load %arg1[%c0_1, %c0_2, %c0_3] : memref<4x128x32xf32, #tpu.memory_space<vmem>>, vector<1x128x32xf32>
    %2 = vector.shape_cast %1 : vector<1x128x32xf32> to vector<128x32xf32>
    %c0_4 = arith.constant 0 : index
    %c0_5 = arith.constant 0 : index
    %c0_6 = arith.constant 0 : index
    %3 = vector.load %arg2[%c0_4, %c0_5, %c0_6] : memref<4x1x32xf32, #tpu.memory_space<vmem>>, vector<1x1x32xf32>
    %4 = vector.shape_cast %3 : vector<1x1x32xf32> to vector<1x32xf32>
    %5 = vector.broadcast %4 : vector<1x32xf32> to vector<128x32xf32>
    %6 = arith.mulf %2, %5 : vector<128x32xf32>
    %7 = arith.addf %0, %6 : vector<128x32xf32>
    %c1 = arith.constant 1 : index
    %c0_7 = arith.constant 0 : index
    %c0_8 = arith.constant 0 : index
    %8 = vector.load %arg1[%c1, %c0_7, %c0_8] : memref<4x128x32xf32, #tpu.memory_space<vmem>>, vector<1x128x32xf32>
    %9 = vector.shape_cast %8 : vector<1x128x32xf32> to vector<128x32xf32>
    %c1_9 = arith.constant 1 : index
    %c0_10 = arith.constant 0 : index
    %c0_11 = arith.constant 0 : index
    %10 = vector.load %arg2[%c1_9, %c0_10, %c0_11] : memref<4x1x32xf32, #tpu.memory_space<vmem>>, vector<1x1x32xf32>
    %11 = vector.shape_cast %10 : vector<1x1x32xf32> to vector<1x32xf32>
    %12 = vector.broadcast %11 : vector<1x32xf32> to vector<128x32xf32>
    %13 = arith.mulf %9, %12 : vector<128x32xf32>
    %14 = arith.addf %7, %13 : vector<128x32xf32>
    %c2 = arith.constant 2 : index
    %c0_12 = arith.constant 0 : index
    %c0_13 = arith.constant 0 : index
    %15 = vector.load %arg1[%c2, %c0_12, %c0_13] : memref<4x128x32xf32, #tpu.memory_space<vmem>>, vector<1x128x32xf32>
    %16 = vector.shape_cast %15 : vector<1x128x32xf32> to vector<128x32xf32>
    %c2_14 = arith.constant 2 : index
    %c0_15 = arith.constant 0 : index
    %c0_16 = arith.constant 0 : index
    %17 = vector.load %arg2[%c2_14, %c0_15, %c0_16] : memref<4x1x32xf32, #tpu.memory_space<vmem>>, vector<1x1x32xf32>
    %18 = vector.shape_cast %17 : vector<1x1x32xf32> to vector<1x32xf32>
    %19 = vector.broadcast %18 : vector<1x32xf32> to vector<128x32xf32>
    %20 = arith.mulf %16, %19 : vector<128x32xf32>
    %21 = arith.addf %14, %20 : vector<128x32xf32>
    %c3 = arith.constant 3 : index
    %c0_17 = arith.constant 0 : index
    %c0_18 = arith.constant 0 : index
    %22 = vector.load %arg1[%c3, %c0_17, %c0_18] : memref<4x128x32xf32, #tpu.memory_space<vmem>>, vector<1x128x32xf32>
    %23 = vector.shape_cast %22 : vector<1x128x32xf32> to vector<128x32xf32>
    %c3_19 = arith.constant 3 : index
    %c0_20 = arith.constant 0 : index
    %c0_21 = arith.constant 0 : index
    %24 = vector.load %arg2[%c3_19, %c0_20, %c0_21] : memref<4x1x32xf32, #tpu.memory_space<vmem>>, vector<1x1x32xf32>
    %25 = vector.shape_cast %24 : vector<1x1x32xf32> to vector<1x32xf32>
    %26 = vector.broadcast %25 : vector<1x32xf32> to vector<128x32xf32>
    %27 = arith.mulf %23, %26 : vector<128x32xf32>
    %28 = arith.addf %21, %27 : vector<128x32xf32>
    %c0_22 = arith.constant 0 : index
    %c0_23 = arith.constant 0 : index
    %29 = vector.load %arg4[%c0_22, %c0_23] : memref<128x32xf32, #tpu.memory_space<vmem>>, vector<128x32xf32>
    tpu.vector_store %arg4[%c0_22, %c0_23], %28 {strides = array<i32>} : memref<128x32xf32, #tpu.memory_space<vmem>>, vector<128x32xf32>,
    return
  }
  func.func @transform_0(%arg0: i32) -> (i32, i32, i32) {
    %c0_i32 = arith.constant 0 : i32
    %c0_i32_0 = arith.constant 0 : i32
    %c0_i32_1 = arith.constant 0 : i32
    return %c0_i32, %arg0, %c0_i32_0 : i32, i32, i32
  }
  func.func @transform_1(%arg0: i32) -> (i32, i32, i32) {
    %c0_i32 = arith.constant 0 : i32
    %c0_i32_0 = arith.constant 0 : i32
    %c0_i32_1 = arith.constant 0 : i32
    %c0_i32_2 = arith.constant 0 : i32
    return %c0_i32, %c0_i32_0, %c0_i32_1 : i32, i32, i32
  }
  func.func @transform_2(%arg0: i32) -> (i32, i32) {
    %c0_i32 = arith.constant 0 : i32
    %c0_i32_0 = arith.constant 0 : i32
    return %arg0, %c0_i32 : i32, i32
  }
  func.func @transform_3(%arg0: i32) -> (i32, i32) {
    %c0_i32 = arith.constant 0 : i32
    %c0_i32_0 = arith.constant 0 : i32
    return %arg0, %c0_i32 : i32, i32
  }
}

module attributes {stable_mosaic.version = 11 : i64} {
  func.func @_matmul_kernel(%arg0: i32, %arg1: i32, %arg2: memref<128x128xbf16, #tpu.memory_space<vmem>>, %arg3: memref<128x32xbf16, #tpu.memory_space<vmem>>, %arg4: memref<1x32xf32, #tpu.memory_space<vmem>>, %arg5: memref<128x32xf32, #tpu.memory_space<vmem>>, %arg6: memref<128x32xf32, #tpu.memory_space<vmem>>, %arg7: memref<128x32xf32, #tpu.memory_space<vmem>>) attributes {dimension_semantics = [#tpu.dimension_semantics<parallel>, #tpu.dimension_semantics<arbitrary>], iteration_bounds = array<i64: 1, 1>, scalar_prefetch = 0 : i64, scratch_operands = 1 : i64, tpu.core_type = #tpu.core_type<tc>, window_params = [{transform_indices = @transform_0, window_bounds = array<i64: 128, 128>}, {transform_indices = @transform_1, window_bounds = array<i64: 128, 32>}, {pipeline_mode = #tpu.pipeline_mode<synchronous>, transform_indices = @transform_2, window_bounds = array<i64: 1, 32>}, {transform_indices = @transform_3, window_bounds = array<i64: 128, 32>}, {transform_indices = @transform_4, window_bounds = array<i64: 128, 32>}]} {
    %c0_i32 = arith.constant 0 : i32
    %0 = arith.cmpi eq, %arg1, %c0_i32 : i32
    %1 = arith.extui %0 : i1 to i32
    %c0_i32_0 = arith.constant 0 : i32
    %2 = arith.cmpi ne, %1, %c0_i32_0 : i32
    scf.if %2 {
      %cst_10 = arith.constant 0.000000e+00 : f32
      %12 = vector.broadcast %cst_10 : f32 to vector<128x32xf32>
      %c0_11 = arith.constant 0 : index
      %c0_12 = arith.constant 0 : index
      %13 = vector.load %arg7[%c0_11, %c0_12] : memref<128x32xf32, #tpu.memory_space<vmem>>, vector<128x32xf32>
      tpu.vector_store %arg7[%c0_11, %c0_12], %12 {strides = array<i32>} : memref<128x32xf32, #tpu.memory_space<vmem>>, vector<128x32xf32>,
    } else {
    }
    %c0 = arith.constant 0 : index
    %c0_1 = arith.constant 0 : index
    %3 = vector.load %arg7[%c0, %c0_1] : memref<128x32xf32, #tpu.memory_space<vmem>>, vector<128x32xf32>
    %c0_2 = arith.constant 0 : index
    %c0_3 = arith.constant 0 : index
    %4 = vector.load %arg2[%c0_2, %c0_3] : memref<128x128xbf16, #tpu.memory_space<vmem>>, vector<128x128xbf16>
    %c0_4 = arith.constant 0 : index
    %c0_5 = arith.constant 0 : index
    %5 = vector.load %arg3[%c0_4, %c0_5] : memref<128x32xbf16, #tpu.memory_space<vmem>>, vector<128x32xbf16>
    %cst = arith.constant dense<0.000000e+00> : vector<128x32xf32>
    %6 = tpu.matmul %4, %5, %cst {dimension_numbers = #tpu.dot_dimension_numbers<[1], [0], [0], [1], [0, 0, 1, 1], [], []>} : vector<128x128xbf16>, vector<128x32xbf16>, vector<128x32xf32> -> vector<128x32xf32>
    %7 = arith.addf %3, %6 : vector<128x32xf32>
    %c0_6 = arith.constant 0 : index
    %c0_7 = arith.constant 0 : index
    %8 = vector.load %arg7[%c0_6, %c0_7] : memref<128x32xf32, #tpu.memory_space<vmem>>, vector<128x32xf32>
    tpu.vector_store %arg7[%c0_6, %c0_7], %7 {strides = array<i32>} : memref<128x32xf32, #tpu.memory_space<vmem>>, vector<128x32xf32>,
    %c0_i32_8 = arith.constant 0 : i32
    %9 = arith.cmpi eq, %arg1, %c0_i32_8 : i32
    %10 = arith.extui %9 : i1 to i32
    %c0_i32_9 = arith.constant 0 : i32
    %11 = arith.cmpi ne, %10, %c0_i32_9 : i32
    scf.if %11 {
      %c0_10 = arith.constant 0 : index
      %c0_11 = arith.constant 0 : index
      %12 = vector.load %arg7[%c0_10, %c0_11] : memref<128x32xf32, #tpu.memory_space<vmem>>, vector<128x32xf32>
      %c0_12 = arith.constant 0 : index
      %c0_13 = arith.constant 0 : index
      %13 = vector.load %arg4[%c0_12, %c0_13] : memref<1x32xf32, #tpu.memory_space<vmem>>, vector<1x32xf32>
      %14 = vector.broadcast %13 : vector<1x32xf32> to vector<128x32xf32>
      %15 = arith.addf %12, %14 : vector<128x32xf32>
      %c0_14 = arith.constant 0 : index
      %c0_15 = arith.constant 0 : index
      %16 = vector.load %arg5[%c0_14, %c0_15] : memref<128x32xf32, #tpu.memory_space<vmem>>, vector<128x32xf32>
      %17 = arith.addf %15, %16 : vector<128x32xf32>
      %c0_16 = arith.constant 0 : index
      %c0_17 = arith.constant 0 : index
      %18 = vector.load %arg6[%c0_16, %c0_17] : memref<128x32xf32, #tpu.memory_space<vmem>>, vector<128x32xf32>
      tpu.vector_store %arg6[%c0_16, %c0_17], %17 {strides = array<i32>} : memref<128x32xf32, #tpu.memory_space<vmem>>, vector<128x32xf32>,
    } else {
    }
    return
  }
  func.func @transform_0(%arg0: i32, %arg1: i32) -> (i32, i32) {
    %c0_i32 = arith.constant 0 : i32
    return %arg0, %arg1 : i32, i32
  }
  func.func @transform_1(%arg0: i32, %arg1: i32) -> (i32, i32) {
    %c0_i32 = arith.constant 0 : i32
    %c0_i32_0 = arith.constant 0 : i32
    return %arg1, %c0_i32 : i32, i32
  }
  func.func @transform_2(%arg0: i32, %arg1: i32) -> (i32, i32) {
    %c0_i32 = arith.constant 0 : i32
    %c0_i32_0 = arith.constant 0 : i32
    %c0_i32_1 = arith.constant 0 : i32
    return %c0_i32, %c0_i32_0 : i32, i32
  }
  func.func @transform_3(%arg0: i32, %arg1: i32) -> (i32, i32) {
    %c0_i32 = arith.constant 0 : i32
    %c0_i32_0 = arith.constant 0 : i32
    return %arg0, %c0_i32 : i32, i32
  }
  func.func @transform_4(%arg0: i32, %arg1: i32) -> (i32, i32) {
    %c0_i32 = arith.constant 0 : i32
    %c0_i32_0 = arith.constant 0 : i32
    return %arg0, %c0_i32 : i32, i32
  }
}

module attributes {stable_mosaic.version = 11 : i64} {
  func.func @_matmul_kernel(%arg0: i32, %arg1: i32, %arg2: memref<128x32xbf16, #tpu.memory_space<vmem>>, %arg3: memref<32x128xbf16, #tpu.memory_space<vmem>>, %arg4: memref<1x128xf32, #tpu.memory_space<vmem>>, %arg5: memref<128x128xbf16, #tpu.memory_space<vmem>>, %arg6: memref<128x128xf32, #tpu.memory_space<vmem>>) attributes {dimension_semantics = [#tpu.dimension_semantics<parallel>, #tpu.dimension_semantics<arbitrary>], iteration_bounds = array<i64: 1, 1>, scalar_prefetch = 0 : i64, scratch_operands = 1 : i64, tpu.core_type = #tpu.core_type<tc>, window_params = [{transform_indices = @transform_0, window_bounds = array<i64: 128, 32>}, {transform_indices = @transform_1, window_bounds = array<i64: 32, 128>}, {pipeline_mode = #tpu.pipeline_mode<synchronous>, transform_indices = @transform_2, window_bounds = array<i64: 1, 128>}, {transform_indices = @transform_3, window_bounds = array<i64: 128, 128>}]} {
    %c0_i32 = arith.constant 0 : i32
    %0 = arith.cmpi eq, %arg1, %c0_i32 : i32
    %1 = arith.extui %0 : i1 to i32
    %c0_i32_0 = arith.constant 0 : i32
    %2 = arith.cmpi ne, %1, %c0_i32_0 : i32
    scf.if %2 {
      %cst_10 = arith.constant 0.000000e+00 : f32
      %12 = vector.broadcast %cst_10 : f32 to vector<128x128xf32>
      %c0_11 = arith.constant 0 : index
      %c0_12 = arith.constant 0 : index
      %13 = vector.load %arg6[%c0_11, %c0_12] : memref<128x128xf32, #tpu.memory_space<vmem>>, vector<128x128xf32>
      tpu.vector_store %arg6[%c0_11, %c0_12], %12 {strides = array<i32>} : memref<128x128xf32, #tpu.memory_space<vmem>>, vector<128x128xf32>,
    } else {
    }
    %c0 = arith.constant 0 : index
    %c0_1 = arith.constant 0 : index
    %3 = vector.load %arg6[%c0, %c0_1] : memref<128x128xf32, #tpu.memory_space<vmem>>, vector<128x128xf32>
    %c0_2 = arith.constant 0 : index
    %c0_3 = arith.constant 0 : index
    %4 = vector.load %arg2[%c0_2, %c0_3] : memref<128x32xbf16, #tpu.memory_space<vmem>>, vector<128x32xbf16>
    %c0_4 = arith.constant 0 : index
    %c0_5 = arith.constant 0 : index
    %5 = vector.load %arg3[%c0_4, %c0_5] : memref<32x128xbf16, #tpu.memory_space<vmem>>, vector<32x128xbf16>
    %cst = arith.constant dense<0.000000e+00> : vector<128x128xf32>
    %6 = tpu.matmul %4, %5, %cst {dimension_numbers = #tpu.dot_dimension_numbers<[1], [0], [0], [1], [0, 0, 1, 1], [], []>} : vector<128x32xbf16>, vector<32x128xbf16>, vector<128x128xf32> -> vector<128x128xf32>
    %7 = arith.addf %3, %6 : vector<128x128xf32>
    %c0_6 = arith.constant 0 : index
    %c0_7 = arith.constant 0 : index
    %8 = vector.load %arg6[%c0_6, %c0_7] : memref<128x128xf32, #tpu.memory_space<vmem>>, vector<128x128xf32>
    tpu.vector_store %arg6[%c0_6, %c0_7], %7 {strides = array<i32>} : memref<128x128xf32, #tpu.memory_space<vmem>>, vector<128x128xf32>,
    %c0_i32_8 = arith.constant 0 : i32
    %9 = arith.cmpi eq, %arg1, %c0_i32_8 : i32
    %10 = arith.extui %9 : i1 to i32
    %c0_i32_9 = arith.constant 0 : i32
    %11 = arith.cmpi ne, %10, %c0_i32_9 : i32
    scf.if %11 {
      %c0_10 = arith.constant 0 : index
      %c0_11 = arith.constant 0 : index
      %12 = vector.load %arg6[%c0_10, %c0_11] : memref<128x128xf32, #tpu.memory_space<vmem>>, vector<128x128xf32>
      %c0_12 = arith.constant 0 : index
      %c0_13 = arith.constant 0 : index
      %13 = vector.load %arg4[%c0_12, %c0_13] : memref<1x128xf32, #tpu.memory_space<vmem>>, vector<1x128xf32>
      %14 = vector.broadcast %13 : vector<1x128xf32> to vector<128x128xf32>
      %15 = arith.addf %12, %14 : vector<128x128xf32>
      %cst_14 = arith.constant 0.000000e+00 : f32
      %16 = vector.broadcast %cst_14 : f32 to vector<128x128xf32>
      %17 = arith.maximumf %15, %16 : vector<128x128xf32>
      %cst_15 = arith.constant 6.000000e+00 : f32
      %18 = vector.broadcast %cst_15 : f32 to vector<128x128xf32>
      %19 = arith.minimumf %17, %18 : vector<128x128xf32>
      %20 = arith.truncf %19 : vector<128x128xf32> to vector<128x128xbf16>
      %c0_16 = arith.constant 0 : index
      %c0_17 = arith.constant 0 : index
      %21 = vector.load %arg5[%c0_16, %c0_17] : memref<128x128xbf16, #tpu.memory_space<vmem>>, vector<128x128xbf16>
      tpu.vector_store %arg5[%c0_16, %c0_17], %20 {strides = array<i32>} : memref<128x128xbf16, #tpu.memory_space<vmem>>, vector<128x128xbf16>,
    } else {
    }
    return
  }
  func.func @transform_0(%arg0: i32, %arg1: i32) -> (i32, i32) {
    %c0_i32 = arith.constant 0 : i32
    return %arg0, %arg1 : i32, i32
  }
  func.func @transform_1(%arg0: i32, %arg1: i32) -> (i32, i32) {
    %c0_i32 = arith.constant 0 : i32
    %c0_i32_0 = arith.constant 0 : i32
    return %arg1, %c0_i32 : i32, i32
  }
  func.func @transform_2(%arg0: i32, %arg1: i32) -> (i32, i32) {
    %c0_i32 = arith.constant 0 : i32
    %c0_i32_0 = arith.constant 0 : i32
    %c0_i32_1 = arith.constant 0 : i32
    return %c0_i32, %c0_i32_0 : i32, i32
  }
  func.func @transform_3(%arg0: i32, %arg1: i32) -> (i32, i32) {
    %c0_i32 = arith.constant 0 : i32
    %c0_i32_0 = arith.constant 0 : i32
    return %arg0, %c0_i32 : i32, i32
  }
}

module attributes {stable_mosaic.version = 11 : i64} {
  func.func @_matmul_kernel(%arg0: i32, %arg1: i32, %arg2: memref<32x128xbf16, #tpu.memory_space<vmem>>, %arg3: memref<128x64xbf16, #tpu.memory_space<vmem>>, %arg4: memref<1x64xf32, #tpu.memory_space<vmem>>, %arg5: memref<32x64xf32, #tpu.memory_space<vmem>>, %arg6: memref<32x64xf32, #tpu.memory_space<vmem>>) attributes {dimension_semantics = [#tpu.dimension_semantics<parallel>, #tpu.dimension_semantics<arbitrary>], iteration_bounds = array<i64: 1, 1>, scalar_prefetch = 0 : i64, scratch_operands = 1 : i64, tpu.core_type = #tpu.core_type<tc>, window_params = [{transform_indices = @transform_0, window_bounds = array<i64: 32, 128>}, {transform_indices = @transform_1, window_bounds = array<i64: 128, 64>}, {pipeline_mode = #tpu.pipeline_mode<synchronous>, transform_indices = @transform_2, window_bounds = array<i64: 1, 64>}, {transform_indices = @transform_3, window_bounds = array<i64: 32, 64>}]} {
    %c0_i32 = arith.constant 0 : i32
    %0 = arith.cmpi eq, %arg1, %c0_i32 : i32
    %1 = arith.extui %0 : i1 to i32
    %c0_i32_0 = arith.constant 0 : i32
    %2 = arith.cmpi ne, %1, %c0_i32_0 : i32
    scf.if %2 {
      %cst_10 = arith.constant 0.000000e+00 : f32
      %12 = vector.broadcast %cst_10 : f32 to vector<32x64xf32>
      %c0_11 = arith.constant 0 : index
      %c0_12 = arith.constant 0 : index
      %13 = vector.load %arg6[%c0_11, %c0_12] : memref<32x64xf32, #tpu.memory_space<vmem>>, vector<32x64xf32>
      tpu.vector_store %arg6[%c0_11, %c0_12], %12 {strides = array<i32>} : memref<32x64xf32, #tpu.memory_space<vmem>>, vector<32x64xf32>,
    } else {
    }
    %c0 = arith.constant 0 : index
    %c0_1 = arith.constant 0 : index
    %3 = vector.load %arg6[%c0, %c0_1] : memref<32x64xf32, #tpu.memory_space<vmem>>, vector<32x64xf32>
    %c0_2 = arith.constant 0 : index
    %c0_3 = arith.constant 0 : index
    %4 = vector.load %arg2[%c0_2, %c0_3] : memref<32x128xbf16, #tpu.memory_space<vmem>>, vector<32x128xbf16>
    %c0_4 = arith.constant 0 : index
    %c0_5 = arith.constant 0 : index
    %5 = vector.load %arg3[%c0_4, %c0_5] : memref<128x64xbf16, #tpu.memory_space<vmem>>, vector<128x64xbf16>
    %cst = arith.constant dense<0.000000e+00> : vector<32x64xf32>
    %6 = tpu.matmul %4, %5, %cst {dimension_numbers = #tpu.dot_dimension_numbers<[1], [0], [0], [1], [0, 0, 1, 1], [], []>} : vector<32x128xbf16>, vector<128x64xbf16>, vector<32x64xf32> -> vector<32x64xf32>
    %7 = arith.addf %3, %6 : vector<32x64xf32>
    %c0_6 = arith.constant 0 : index
    %c0_7 = arith.constant 0 : index
    %8 = vector.load %arg6[%c0_6, %c0_7] : memref<32x64xf32, #tpu.memory_space<vmem>>, vector<32x64xf32>
    tpu.vector_store %arg6[%c0_6, %c0_7], %7 {strides = array<i32>} : memref<32x64xf32, #tpu.memory_space<vmem>>, vector<32x64xf32>,
    %c0_i32_8 = arith.constant 0 : i32
    %9 = arith.cmpi eq, %arg1, %c0_i32_8 : i32
    %10 = arith.extui %9 : i1 to i32
    %c0_i32_9 = arith.constant 0 : i32
    %11 = arith.cmpi ne, %10, %c0_i32_9 : i32
    scf.if %11 {
      %c0_10 = arith.constant 0 : index
      %c0_11 = arith.constant 0 : index
      %12 = vector.load %arg6[%c0_10, %c0_11] : memref<32x64xf32, #tpu.memory_space<vmem>>, vector<32x64xf32>
      %c0_12 = arith.constant 0 : index
      %c0_13 = arith.constant 0 : index
      %13 = vector.load %arg4[%c0_12, %c0_13] : memref<1x64xf32, #tpu.memory_space<vmem>>, vector<1x64xf32>
      %14 = vector.broadcast %13 : vector<1x64xf32> to vector<32x64xf32>
      %15 = arith.addf %12, %14 : vector<32x64xf32>
      %c0_14 = arith.constant 0 : index
      %c0_15 = arith.constant 0 : index
      %16 = vector.load %arg5[%c0_14, %c0_15] : memref<32x64xf32, #tpu.memory_space<vmem>>, vector<32x64xf32>
      tpu.vector_store %arg5[%c0_14, %c0_15], %15 {strides = array<i32>} : memref<32x64xf32, #tpu.memory_space<vmem>>, vector<32x64xf32>,
    } else {
    }
    return
  }
  func.func @transform_0(%arg0: i32, %arg1: i32) -> (i32, i32) {
    %c0_i32 = arith.constant 0 : i32
    return %arg0, %arg1 : i32, i32
  }
  func.func @transform_1(%arg0: i32, %arg1: i32) -> (i32, i32) {
    %c0_i32 = arith.constant 0 : i32
    %c0_i32_0 = arith.constant 0 : i32
    return %arg1, %c0_i32 : i32, i32
  }
  func.func @transform_2(%arg0: i32, %arg1: i32) -> (i32, i32) {
    %c0_i32 = arith.constant 0 : i32
    %c0_i32_0 = arith.constant 0 : i32
    %c0_i32_1 = arith.constant 0 : i32
    return %c0_i32, %c0_i32_0 : i32, i32
  }
  func.func @transform_3(%arg0: i32, %arg1: i32) -> (i32, i32) {
    %c0_i32 = arith.constant 0 : i32
    %c0_i32_0 = arith.constant 0 : i32
    return %arg0, %c0_i32 : i32, i32
  }
}

module attributes {stable_mosaic.version = 11 : i64} {
  func.func @_matmul_kernel(%arg0: i32, %arg1: i32, %arg2: memref<32x64xbf16, #tpu.memory_space<vmem>>, %arg3: memref<64x192xbf16, #tpu.memory_space<vmem>>, %arg4: memref<1x192xf32, #tpu.memory_space<vmem>>, %arg5: memref<32x192xbf16, #tpu.memory_space<vmem>>, %arg6: memref<32x192xf32, #tpu.memory_space<vmem>>) attributes {dimension_semantics = [#tpu.dimension_semantics<parallel>, #tpu.dimension_semantics<arbitrary>], iteration_bounds = array<i64: 1, 1>, scalar_prefetch = 0 : i64, scratch_operands = 1 : i64, tpu.core_type = #tpu.core_type<tc>, window_params = [{transform_indices = @transform_0, window_bounds = array<i64: 32, 64>}, {transform_indices = @transform_1, window_bounds = array<i64: 64, 192>}, {pipeline_mode = #tpu.pipeline_mode<synchronous>, transform_indices = @transform_2, window_bounds = array<i64: 1, 192>}, {transform_indices = @transform_3, window_bounds = array<i64: 32, 192>}]} {
    %c0_i32 = arith.constant 0 : i32
    %0 = arith.cmpi eq, %arg1, %c0_i32 : i32
    %1 = arith.extui %0 : i1 to i32
    %c0_i32_0 = arith.constant 0 : i32
    %2 = arith.cmpi ne, %1, %c0_i32_0 : i32
    scf.if %2 {
      %cst_10 = arith.constant 0.000000e+00 : f32
      %12 = vector.broadcast %cst_10 : f32 to vector<32x192xf32>
      %c0_11 = arith.constant 0 : index
      %c0_12 = arith.constant 0 : index
      %13 = vector.load %arg6[%c0_11, %c0_12] : memref<32x192xf32, #tpu.memory_space<vmem>>, vector<32x192xf32>
      tpu.vector_store %arg6[%c0_11, %c0_12], %12 {strides = array<i32>} : memref<32x192xf32, #tpu.memory_space<vmem>>, vector<32x192xf32>,
    } else {
    }
    %c0 = arith.constant 0 : index
    %c0_1 = arith.constant 0 : index
    %3 = vector.load %arg6[%c0, %c0_1] : memref<32x192xf32, #tpu.memory_space<vmem>>, vector<32x192xf32>
    %c0_2 = arith.constant 0 : index
    %c0_3 = arith.constant 0 : index
    %4 = vector.load %arg2[%c0_2, %c0_3] : memref<32x64xbf16, #tpu.memory_space<vmem>>, vector<32x64xbf16>
    %c0_4 = arith.constant 0 : index
    %c0_5 = arith.constant 0 : index
    %5 = vector.load %arg3[%c0_4, %c0_5] : memref<64x192xbf16, #tpu.memory_space<vmem>>, vector<64x192xbf16>
    %cst = arith.constant dense<0.000000e+00> : vector<32x192xf32>
    %6 = tpu.matmul %4, %5, %cst {dimension_numbers = #tpu.dot_dimension_numbers<[1], [0], [0], [1], [0, 0, 1, 1], [], []>} : vector<32x64xbf16>, vector<64x192xbf16>, vector<32x192xf32> -> vector<32x192xf32>
    %7 = arith.addf %3, %6 : vector<32x192xf32>
    %c0_6 = arith.constant 0 : index
    %c0_7 = arith.constant 0 : index
    %8 = vector.load %arg6[%c0_6, %c0_7] : memref<32x192xf32, #tpu.memory_space<vmem>>, vector<32x192xf32>
    tpu.vector_store %arg6[%c0_6, %c0_7], %7 {strides = array<i32>} : memref<32x192xf32, #tpu.memory_space<vmem>>, vector<32x192xf32>,
    %c0_i32_8 = arith.constant 0 : i32
    %9 = arith.cmpi eq, %arg1, %c0_i32_8 : i32
    %10 = arith.extui %9 : i1 to i32
    %c0_i32_9 = arith.constant 0 : i32
    %11 = arith.cmpi ne, %10, %c0_i32_9 : i32
    scf.if %11 {
      %c0_10 = arith.constant 0 : index
      %c0_11 = arith.constant 0 : index
      %12 = vector.load %arg6[%c0_10, %c0_11] : memref<32x192xf32, #tpu.memory_space<vmem>>, vector<32x192xf32>
      %c0_12 = arith.constant 0 : index
      %c0_13 = arith.constant 0 : index
      %13 = vector.load %arg4[%c0_12, %c0_13] : memref<1x192xf32, #tpu.memory_space<vmem>>, vector<1x192xf32>
      %14 = vector.broadcast %13 : vector<1x192xf32> to vector<32x192xf32>
      %15 = arith.addf %12, %14 : vector<32x192xf32>
      %16 = arith.truncf %15 : vector<32x192xf32> to vector<32x192xbf16>
      %c0_14 = arith.constant 0 : index
      %c0_15 = arith.constant 0 : index
      %17 = vector.load %arg5[%c0_14, %c0_15] : memref<32x192xbf16, #tpu.memory_space<vmem>>, vector<32x192xbf16>
      tpu.vector_store %arg5[%c0_14, %c0_15], %16 {strides = array<i32>} : memref<32x192xbf16, #tpu.memory_space<vmem>>, vector<32x192xbf16>,
    } else {
    }
    return
  }
  func.func @transform_0(%arg0: i32, %arg1: i32) -> (i32, i32) {
    %c0_i32 = arith.constant 0 : i32
    return %arg0, %arg1 : i32, i32
  }
  func.func @transform_1(%arg0: i32, %arg1: i32) -> (i32, i32) {
    %c0_i32 = arith.constant 0 : i32
    %c0_i32_0 = arith.constant 0 : i32
    return %arg1, %c0_i32 : i32, i32
  }
  func.func @transform_2(%arg0: i32, %arg1: i32) -> (i32, i32) {
    %c0_i32 = arith.constant 0 : i32
    %c0_i32_0 = arith.constant 0 : i32
    %c0_i32_1 = arith.constant 0 : i32
    return %c0_i32, %c0_i32_0 : i32, i32
  }
  func.func @transform_3(%arg0: i32, %arg1: i32) -> (i32, i32) {
    %c0_i32 = arith.constant 0 : i32
    %c0_i32_0 = arith.constant 0 : i32
    return %arg0, %c0_i32 : i32, i32
  }
}

module attributes {stable_mosaic.version = 11 : i64} {
  func.func @_dwconv_kernel(%arg0: i32, %arg1: memref<4x32x64xf32, #tpu.memory_space<vmem>>, %arg2: memref<4x1x64xf32, #tpu.memory_space<vmem>>, %arg3: memref<32x64xf32, #tpu.memory_space<vmem>>, %arg4: memref<32x64xf32, #tpu.memory_space<vmem>>) attributes {dimension_semantics = [#tpu.dimension_semantics<parallel>], iteration_bounds = array<i64: 1>, scalar_prefetch = 0 : i64, scratch_operands = 0 : i64, tpu.core_type = #tpu.core_type<tc>, window_params = [{transform_indices = @transform_0, window_bounds = array<i64: 4, 32, 64>}, {pipeline_mode = #tpu.pipeline_mode<synchronous>, transform_indices = @transform_1, window_bounds = array<i64: 4, 1, 64>}, {transform_indices = @transform_2, window_bounds = array<i64: 32, 64>}, {transform_indices = @transform_3, window_bounds = array<i64: 32, 64>}]} {
    %c0 = arith.constant 0 : index
    %c0_0 = arith.constant 0 : index
    %0 = vector.load %arg3[%c0, %c0_0] : memref<32x64xf32, #tpu.memory_space<vmem>>, vector<32x64xf32>
    %c0_1 = arith.constant 0 : index
    %c0_2 = arith.constant 0 : index
    %c0_3 = arith.constant 0 : index
    %1 = vector.load %arg1[%c0_1, %c0_2, %c0_3] : memref<4x32x64xf32, #tpu.memory_space<vmem>>, vector<1x32x64xf32>
    %2 = vector.shape_cast %1 : vector<1x32x64xf32> to vector<32x64xf32>
    %c0_4 = arith.constant 0 : index
    %c0_5 = arith.constant 0 : index
    %c0_6 = arith.constant 0 : index
    %3 = vector.load %arg2[%c0_4, %c0_5, %c0_6] : memref<4x1x64xf32, #tpu.memory_space<vmem>>, vector<1x1x64xf32>
    %4 = vector.shape_cast %3 : vector<1x1x64xf32> to vector<1x64xf32>
    %5 = vector.broadcast %4 : vector<1x64xf32> to vector<32x64xf32>
    %6 = arith.mulf %2, %5 : vector<32x64xf32>
    %7 = arith.addf %0, %6 : vector<32x64xf32>
    %c1 = arith.constant 1 : index
    %c0_7 = arith.constant 0 : index
    %c0_8 = arith.constant 0 : index
    %8 = vector.load %arg1[%c1, %c0_7, %c0_8] : memref<4x32x64xf32, #tpu.memory_space<vmem>>, vector<1x32x64xf32>
    %9 = vector.shape_cast %8 : vector<1x32x64xf32> to vector<32x64xf32>
    %c1_9 = arith.constant 1 : index
    %c0_10 = arith.constant 0 : index
    %c0_11 = arith.constant 0 : index
    %10 = vector.load %arg2[%c1_9, %c0_10, %c0_11] : memref<4x1x64xf32, #tpu.memory_space<vmem>>, vector<1x1x64xf32>
    %11 = vector.shape_cast %10 : vector<1x1x64xf32> to vector<1x64xf32>
    %12 = vector.broadcast %11 : vector<1x64xf32> to vector<32x64xf32>
    %13 = arith.mulf %9, %12 : vector<32x64xf32>
    %14 = arith.addf %7, %13 : vector<32x64xf32>
    %c2 = arith.constant 2 : index
    %c0_12 = arith.constant 0 : index
    %c0_13 = arith.constant 0 : index
    %15 = vector.load %arg1[%c2, %c0_12, %c0_13] : memref<4x32x64xf32, #tpu.memory_space<vmem>>, vector<1x32x64xf32>
    %16 = vector.shape_cast %15 : vector<1x32x64xf32> to vector<32x64xf32>
    %c2_14 = arith.constant 2 : index
    %c0_15 = arith.constant 0 : index
    %c0_16 = arith.constant 0 : index
    %17 = vector.load %arg2[%c2_14, %c0_15, %c0_16] : memref<4x1x64xf32, #tpu.memory_space<vmem>>, vector<1x1x64xf32>
    %18 = vector.shape_cast %17 : vector<1x1x64xf32> to vector<1x64xf32>
    %19 = vector.broadcast %18 : vector<1x64xf32> to vector<32x64xf32>
    %20 = arith.mulf %16, %19 : vector<32x64xf32>
    %21 = arith.addf %14, %20 : vector<32x64xf32>
    %c3 = arith.constant 3 : index
    %c0_17 = arith.constant 0 : index
    %c0_18 = arith.constant 0 : index
    %22 = vector.load %arg1[%c3, %c0_17, %c0_18] : memref<4x32x64xf32, #tpu.memory_space<vmem>>, vector<1x32x64xf32>
    %23 = vector.shape_cast %22 : vector<1x32x64xf32> to vector<32x64xf32>
    %c3_19 = arith.constant 3 : index
    %c0_20 = arith.constant 0 : index
    %c0_21 = arith.constant 0 : index
    %24 = vector.load %arg2[%c3_19, %c0_20, %c0_21] : memref<4x1x64xf32, #tpu.memory_space<vmem>>, vector<1x1x64xf32>
    %25 = vector.shape_cast %24 : vector<1x1x64xf32> to vector<1x64xf32>
    %26 = vector.broadcast %25 : vector<1x64xf32> to vector<32x64xf32>
    %27 = arith.mulf %23, %26 : vector<32x64xf32>
    %28 = arith.addf %21, %27 : vector<32x64xf32>
    %c0_22 = arith.constant 0 : index
    %c0_23 = arith.constant 0 : index
    %29 = vector.load %arg4[%c0_22, %c0_23] : memref<32x64xf32, #tpu.memory_space<vmem>>, vector<32x64xf32>
    tpu.vector_store %arg4[%c0_22, %c0_23], %28 {strides = array<i32>} : memref<32x64xf32, #tpu.memory_space<vmem>>, vector<32x64xf32>,
    return
  }
  func.func @transform_0(%arg0: i32) -> (i32, i32, i32) {
    %c0_i32 = arith.constant 0 : i32
    %c0_i32_0 = arith.constant 0 : i32
    %c0_i32_1 = arith.constant 0 : i32
    return %c0_i32, %arg0, %c0_i32_0 : i32, i32, i32
  }
  func.func @transform_1(%arg0: i32) -> (i32, i32, i32) {
    %c0_i32 = arith.constant 0 : i32
    %c0_i32_0 = arith.constant 0 : i32
    %c0_i32_1 = arith.constant 0 : i32
    %c0_i32_2 = arith.constant 0 : i32
    return %c0_i32, %c0_i32_0, %c0_i32_1 : i32, i32, i32
  }
  func.func @transform_2(%arg0: i32) -> (i32, i32) {
    %c0_i32 = arith.constant 0 : i32
    %c0_i32_0 = arith.constant 0 : i32
    return %arg0, %c0_i32 : i32, i32
  }
  func.func @transform_3(%arg0: i32) -> (i32, i32) {
    %c0_i32 = arith.constant 0 : i32
    %c0_i32_0 = arith.constant 0 : i32
    return %arg0, %c0_i32 : i32, i32
  }
}

module attributes {stable_mosaic.version = 11 : i64} {
  func.func @_affine_kernel(%arg0: i32, %arg1: memref<32x64xf32, #tpu.memory_space<vmem>>, %arg2: memref<1x64xf32, #tpu.memory_space<vmem>>, %arg3: memref<1x64xf32, #tpu.memory_space<vmem>>, %arg4: memref<32x64xf32, #tpu.memory_space<vmem>>) attributes {dimension_semantics = [#tpu.dimension_semantics<parallel>], iteration_bounds = array<i64: 1>, scalar_prefetch = 0 : i64, scratch_operands = 0 : i64, tpu.core_type = #tpu.core_type<tc>, window_params = [{transform_indices = @transform_0, window_bounds = array<i64: 32, 64>}, {pipeline_mode = #tpu.pipeline_mode<synchronous>, transform_indices = @transform_1, window_bounds = array<i64: 1, 64>}, {pipeline_mode = #tpu.pipeline_mode<synchronous>, transform_indices = @transform_2, window_bounds = array<i64: 1, 64>}, {transform_indices = @transform_3, window_bounds = array<i64: 32, 64>}]} {
    %c0 = arith.constant 0 : index
    %c0_0 = arith.constant 0 : index
    %0 = vector.load %arg1[%c0, %c0_0] : memref<32x64xf32, #tpu.memory_space<vmem>>, vector<32x64xf32>
    %c0_1 = arith.constant 0 : index
    %c0_2 = arith.constant 0 : index
    %1 = vector.load %arg2[%c0_1, %c0_2] : memref<1x64xf32, #tpu.memory_space<vmem>>, vector<1x64xf32>
    %2 = vector.broadcast %1 : vector<1x64xf32> to vector<32x64xf32>
    %3 = arith.mulf %0, %2 : vector<32x64xf32>
    %c0_3 = arith.constant 0 : index
    %c0_4 = arith.constant 0 : index
    %4 = vector.load %arg3[%c0_3, %c0_4] : memref<1x64xf32, #tpu.memory_space<vmem>>, vector<1x64xf32>
    %5 = vector.broadcast %4 : vector<1x64xf32> to vector<32x64xf32>
    %6 = arith.addf %3, %5 : vector<32x64xf32>
    %c0_5 = arith.constant 0 : index
    %c0_6 = arith.constant 0 : index
    %7 = vector.load %arg4[%c0_5, %c0_6] : memref<32x64xf32, #tpu.memory_space<vmem>>, vector<32x64xf32>
    tpu.vector_store %arg4[%c0_5, %c0_6], %6 {strides = array<i32>} : memref<32x64xf32, #tpu.memory_space<vmem>>, vector<32x64xf32>,
    return
  }
  func.func @transform_0(%arg0: i32) -> (i32, i32) {
    %c0_i32 = arith.constant 0 : i32
    %c0_i32_0 = arith.constant 0 : i32
    return %arg0, %c0_i32 : i32, i32
  }
  func.func @transform_1(%arg0: i32) -> (i32, i32) {
    %c0_i32 = arith.constant 0 : i32
    %c0_i32_0 = arith.constant 0 : i32
    %c0_i32_1 = arith.constant 0 : i32
    return %c0_i32, %c0_i32_0 : i32, i32
  }
  func.func @transform_2(%arg0: i32) -> (i32, i32) {
    %c0_i32 = arith.constant 0 : i32
    %c0_i32_0 = arith.constant 0 : i32
    %c0_i32_1 = arith.constant 0 : i32
    return %c0_i32, %c0_i32_0 : i32, i32
  }
  func.func @transform_3(%arg0: i32) -> (i32, i32) {
    %c0_i32 = arith.constant 0 : i32
    %c0_i32_0 = arith.constant 0 : i32
    return %arg0, %c0_i32 : i32, i32
  }
}

module attributes {stable_mosaic.version = 11 : i64} {
  func.func @_attn_kernel(%arg0: i32, %arg1: i32, %arg2: memref<1x8x4x32xbf16, #tpu.memory_space<vmem>>, %arg3: memref<1x8x4x32xbf16, #tpu.memory_space<vmem>>, %arg4: memref<1x8x4x32xbf16, #tpu.memory_space<vmem>>, %arg5: memref<1x4x4xf32, #tpu.memory_space<vmem>>, %arg6: memref<1x8x4x32xbf16, #tpu.memory_space<vmem>>) attributes {dimension_semantics = [#tpu.dimension_semantics<parallel>, #tpu.dimension_semantics<parallel>], iteration_bounds = array<i64: 2, 1>, scalar_prefetch = 0 : i64, scratch_operands = 0 : i64, tpu.core_type = #tpu.core_type<tc>, window_params = [{transform_indices = @transform_0, window_bounds = array<i64: 1, 8, 4, 32>}, {transform_indices = @transform_1, window_bounds = array<i64: 1, 8, 4, 32>}, {transform_indices = @transform_2, window_bounds = array<i64: 1, 8, 4, 32>}, {transform_indices = @transform_3, window_bounds = array<i64: 1, 4, 4>}, {transform_indices = @transform_4, window_bounds = array<i64: 1, 8, 4, 32>}]} {
    %c0 = arith.constant 0 : index
    %c0_0 = arith.constant 0 : index
    %c0_1 = arith.constant 0 : index
    %c0_2 = arith.constant 0 : index
    %0 = vector.load %arg2[%c0, %c0_0, %c0_1, %c0_2] : memref<1x8x4x32xbf16, #tpu.memory_space<vmem>>, vector<1x8x4x32xbf16>
    %1 = vector.shape_cast %0 : vector<1x8x4x32xbf16> to vector<8x4x32xbf16>
    %c0_3 = arith.constant 0 : index
    %c0_4 = arith.constant 0 : index
    %c0_5 = arith.constant 0 : index
    %c0_6 = arith.constant 0 : index
    %2 = vector.load %arg3[%c0_3, %c0_4, %c0_5, %c0_6] : memref<1x8x4x32xbf16, #tpu.memory_space<vmem>>, vector<1x8x4x32xbf16>
    %3 = vector.shape_cast %2 : vector<1x8x4x32xbf16> to vector<8x4x32xbf16>
    %c0_7 = arith.constant 0 : index
    %c0_8 = arith.constant 0 : index
    %c0_9 = arith.constant 0 : index
    %c0_10 = arith.constant 0 : index
    %4 = vector.load %arg4[%c0_7, %c0_8, %c0_9, %c0_10] : memref<1x8x4x32xbf16, #tpu.memory_space<vmem>>, vector<1x8x4x32xbf16>
    %5 = vector.shape_cast %4 : vector<1x8x4x32xbf16> to vector<8x4x32xbf16>
    "tpu.trace_start"() <{level = 10 : i32, message = "wqd,wkd->wqk"}> : () -> ()
    %cst = arith.constant dense<0.000000e+00> : vector<8x4x4xf32>
    %6 = tpu.matmul %1, %3, %cst {dimension_numbers = #tpu.dot_dimension_numbers<[2], [2], [1], [1], [0, 0, 0, 1, 1, 1], [0], [0]>} : vector<8x4x32xbf16>, vector<8x4x32xbf16>, vector<8x4x4xf32> -> vector<8x4x4xf32>
    "tpu.trace_stop"() : () -> ()
    %cst_11 = arith.constant 0.176776692 : f32
    %7 = vector.broadcast %cst_11 : f32 to vector<8x4x4xf32>
    %8 = arith.mulf %6, %7 : vector<8x4x4xf32>
    %c0_12 = arith.constant 0 : index
    %c0_13 = arith.constant 0 : index
    %c0_14 = arith.constant 0 : index
    %9 = vector.load %arg5[%c0_12, %c0_13, %c0_14] : memref<1x4x4xf32, #tpu.memory_space<vmem>>, vector<1x4x4xf32>
    %10 = vector.broadcast %9 : vector<1x4x4xf32> to vector<8x4x4xf32>
    %11 = arith.addf %8, %10 : vector<8x4x4xf32>
    %cst_15 = arith.constant dense<0xFF800000> : vector<8x4xf32>
    %12 = vector.multi_reduction <maximumf>, %11, %cst_15 [2] : vector<8x4x4xf32> to vector<8x4xf32>
    %13 = vector.shape_cast %12 : vector<8x4xf32> to vector<8x4x1xf32>
    %14 = vector.broadcast %13 : vector<8x4x1xf32> to vector<8x4x4xf32>
    %15 = arith.subf %11, %14 : vector<8x4x4xf32>
    %16 = math.exp %15 : vector<8x4x4xf32>
    %cst_16 = arith.constant dense<0.000000e+00> : vector<8x4xf32>
    %17 = vector.multi_reduction <add>, %16, %cst_16 [2] : vector<8x4x4xf32> to vector<8x4xf32>
    %18 = vector.shape_cast %17 : vector<8x4xf32> to vector<8x4x1xf32>
    %19 = tpu.reciprocal %18 {approx = true} : vector<8x4x1xf32> -> vector<8x4x1xf32>
    %20 = vector.broadcast %19 : vector<8x4x1xf32> to vector<8x4x4xf32>
    %21 = arith.mulf %16, %20 : vector<8x4x4xf32>
    %22 = arith.truncf %21 : vector<8x4x4xf32> to vector<8x4x4xbf16>
    "tpu.trace_start"() <{level = 10 : i32, message = "wqk,wkd->wqd"}> : () -> ()
    %cst_17 = arith.constant dense<0.000000e+00> : vector<8x4x32xf32>
    %23 = tpu.matmul %22, %5, %cst_17 {dimension_numbers = #tpu.dot_dimension_numbers<[2], [1], [1], [2], [0, 0, 0, 1, 1, 2], [0], [0]>} : vector<8x4x4xbf16>, vector<8x4x32xbf16>, vector<8x4x32xf32> -> vector<8x4x32xf32>
    "tpu.trace_stop"() : () -> ()
    %24 = arith.truncf %23 : vector<8x4x32xf32> to vector<8x4x32xbf16>
    %c0_18 = arith.constant 0 : index
    %c0_19 = arith.constant 0 : index
    %c0_20 = arith.constant 0 : index
    %c0_21 = arith.constant 0 : index
    %25 = vector.load %arg6[%c0_18, %c0_19, %c0_20, %c0_21] : memref<1x8x4x32xbf16, #tpu.memory_space<vmem>>, vector<1x8x4x32xbf16>
    %26 = vector.shape_cast %25 : vector<1x8x4x32xbf16> to vector<8x4x32xbf16>
    %27 = vector.shape_cast %24 : vector<8x4x32xbf16> to vector<1x8x4x32xbf16>
    tpu.vector_store %arg6[%c0_18, %c0_19, %c0_20, %c0_21], %27 {strides = array<i32>} : memref<1x8x4x32xbf16, #tpu.memory_space<vmem>>, vector<1x8x4x32xbf16>,
    return
  }
  func.func @transform_0(%arg0: i32, %arg1: i32) -> (i32, i32, i32, i32) {
    %c0_i32 = arith.constant 0 : i32
    %c0_i32_0 = arith.constant 0 : i32
    %c0_i32_1 = arith.constant 0 : i32
    return %arg0, %arg1, %c0_i32, %c0_i32_0 : i32, i32, i32, i32
  }
  func.func @transform_1(%arg0: i32, %arg1: i32) -> (i32, i32, i32, i32) {
    %c0_i32 = arith.constant 0 : i32
    %c0_i32_0 = arith.constant 0 : i32
    %c0_i32_1 = arith.constant 0 : i32
    return %arg0, %arg1, %c0_i32, %c0_i32_0 : i32, i32, i32, i32
  }
  func.func @transform_2(%arg0: i32, %arg1: i32) -> (i32, i32, i32, i32) {
    %c0_i32 = arith.constant 0 : i32
    %c0_i32_0 = arith.constant 0 : i32
    %c0_i32_1 = arith.constant 0 : i32
    return %arg0, %arg1, %c0_i32, %c0_i32_0 : i32, i32, i32, i32
  }
  func.func @transform_3(%arg0: i32, %arg1: i32) -> (i32, i32, i32) {
    %c0_i32 = arith.constant 0 : i32
    %c0_i32_0 = arith.constant 0 : i32
    %c0_i32_1 = arith.constant 0 : i32
    return %arg0, %c0_i32, %c0_i32_0 : i32, i32, i32
  }
  func.func @transform_4(%arg0: i32, %arg1: i32) -> (i32, i32, i32, i32) {
    %c0_i32 = arith.constant 0 : i32
    %c0_i32_0 = arith.constant 0 : i32
    %c0_i32_1 = arith.constant 0 : i32
    return %arg0, %arg1, %c0_i32, %c0_i32_0 : i32, i32, i32, i32
  }
}

module attributes {stable_mosaic.version = 11 : i64} {
  func.func @_matmul_kernel(%arg0: i32, %arg1: i32, %arg2: memref<32x64xbf16, #tpu.memory_space<vmem>>, %arg3: memref<64x64xbf16, #tpu.memory_space<vmem>>, %arg4: memref<1x64xf32, #tpu.memory_space<vmem>>, %arg5: memref<32x64xf32, #tpu.memory_space<vmem>>, %arg6: memref<32x64xf32, #tpu.memory_space<vmem>>, %arg7: memref<32x64xf32, #tpu.memory_space<vmem>>) attributes {dimension_semantics = [#tpu.dimension_semantics<parallel>, #tpu.dimension_semantics<arbitrary>], iteration_bounds = array<i64: 1, 1>, scalar_prefetch = 0 : i64, scratch_operands = 1 : i64, tpu.core_type = #tpu.core_type<tc>, window_params = [{transform_indices = @transform_0, window_bounds = array<i64: 32, 64>}, {transform_indices = @transform_1, window_bounds = array<i64: 64, 64>}, {pipeline_mode = #tpu.pipeline_mode<synchronous>, transform_indices = @transform_2, window_bounds = array<i64: 1, 64>}, {transform_indices = @transform_3, window_bounds = array<i64: 32, 64>}, {transform_indices = @transform_4, window_bounds = array<i64: 32, 64>}]} {
    %c0_i32 = arith.constant 0 : i32
    %0 = arith.cmpi eq, %arg1, %c0_i32 : i32
    %1 = arith.extui %0 : i1 to i32
    %c0_i32_0 = arith.constant 0 : i32
    %2 = arith.cmpi ne, %1, %c0_i32_0 : i32
    scf.if %2 {
      %cst_10 = arith.constant 0.000000e+00 : f32
      %12 = vector.broadcast %cst_10 : f32 to vector<32x64xf32>
      %c0_11 = arith.constant 0 : index
      %c0_12 = arith.constant 0 : index
      %13 = vector.load %arg7[%c0_11, %c0_12] : memref<32x64xf32, #tpu.memory_space<vmem>>, vector<32x64xf32>
      tpu.vector_store %arg7[%c0_11, %c0_12], %12 {strides = array<i32>} : memref<32x64xf32, #tpu.memory_space<vmem>>, vector<32x64xf32>,
    } else {
    }
    %c0 = arith.constant 0 : index
    %c0_1 = arith.constant 0 : index
    %3 = vector.load %arg7[%c0, %c0_1] : memref<32x64xf32, #tpu.memory_space<vmem>>, vector<32x64xf32>
    %c0_2 = arith.constant 0 : index
    %c0_3 = arith.constant 0 : index
    %4 = vector.load %arg2[%c0_2, %c0_3] : memref<32x64xbf16, #tpu.memory_space<vmem>>, vector<32x64xbf16>
    %c0_4 = arith.constant 0 : index
    %c0_5 = arith.constant 0 : index
    %5 = vector.load %arg3[%c0_4, %c0_5] : memref<64x64xbf16, #tpu.memory_space<vmem>>, vector<64x64xbf16>
    %cst = arith.constant dense<0.000000e+00> : vector<32x64xf32>
    %6 = tpu.matmul %4, %5, %cst {dimension_numbers = #tpu.dot_dimension_numbers<[1], [0], [0], [1], [0, 0, 1, 1], [], []>} : vector<32x64xbf16>, vector<64x64xbf16>, vector<32x64xf32> -> vector<32x64xf32>
    %7 = arith.addf %3, %6 : vector<32x64xf32>
    %c0_6 = arith.constant 0 : index
    %c0_7 = arith.constant 0 : index
    %8 = vector.load %arg7[%c0_6, %c0_7] : memref<32x64xf32, #tpu.memory_space<vmem>>, vector<32x64xf32>
    tpu.vector_store %arg7[%c0_6, %c0_7], %7 {strides = array<i32>} : memref<32x64xf32, #tpu.memory_space<vmem>>, vector<32x64xf32>,
    %c0_i32_8 = arith.constant 0 : i32
    %9 = arith.cmpi eq, %arg1, %c0_i32_8 : i32
    %10 = arith.extui %9 : i1 to i32
    %c0_i32_9 = arith.constant 0 : i32
    %11 = arith.cmpi ne, %10, %c0_i32_9 : i32
    scf.if %11 {
      %c0_10 = arith.constant 0 : index
      %c0_11 = arith.constant 0 : index
      %12 = vector.load %arg7[%c0_10, %c0_11] : memref<32x64xf32, #tpu.memory_space<vmem>>, vector<32x64xf32>
      %c0_12 = arith.constant 0 : index
      %c0_13 = arith.constant 0 : index
      %13 = vector.load %arg4[%c0_12, %c0_13] : memref<1x64xf32, #tpu.memory_space<vmem>>, vector<1x64xf32>
      %14 = vector.broadcast %13 : vector<1x64xf32> to vector<32x64xf32>
      %15 = arith.addf %12, %14 : vector<32x64xf32>
      %c0_14 = arith.constant 0 : index
      %c0_15 = arith.constant 0 : index
      %16 = vector.load %arg5[%c0_14, %c0_15] : memref<32x64xf32, #tpu.memory_space<vmem>>, vector<32x64xf32>
      %17 = arith.addf %15, %16 : vector<32x64xf32>
      %c0_16 = arith.constant 0 : index
      %c0_17 = arith.constant 0 : index
      %18 = vector.load %arg6[%c0_16, %c0_17] : memref<32x64xf32, #tpu.memory_space<vmem>>, vector<32x64xf32>
      tpu.vector_store %arg6[%c0_16, %c0_17], %17 {strides = array<i32>} : memref<32x64xf32, #tpu.memory_space<vmem>>, vector<32x64xf32>,
    } else {
    }
    return
  }
  func.func @transform_0(%arg0: i32, %arg1: i32) -> (i32, i32) {
    %c0_i32 = arith.constant 0 : i32
    return %arg0, %arg1 : i32, i32
  }
  func.func @transform_1(%arg0: i32, %arg1: i32) -> (i32, i32) {
    %c0_i32 = arith.constant 0 : i32
    %c0_i32_0 = arith.constant 0 : i32
    return %arg1, %c0_i32 : i32, i32
  }
  func.func @transform_2(%arg0: i32, %arg1: i32) -> (i32, i32) {
    %c0_i32 = arith.constant 0 : i32
    %c0_i32_0 = arith.constant 0 : i32
    %c0_i32_1 = arith.constant 0 : i32
    return %c0_i32, %c0_i32_0 : i32, i32
  }
  func.func @transform_3(%arg0: i32, %arg1: i32) -> (i32, i32) {
    %c0_i32 = arith.constant 0 : i32
    %c0_i32_0 = arith.constant 0 : i32
    return %arg0, %c0_i32 : i32, i32
  }
  func.func @transform_4(%arg0: i32, %arg1: i32) -> (i32, i32) {
    %c0_i32 = arith.constant 0 : i32
    %c0_i32_0 = arith.constant 0 : i32
    return %arg0, %c0_i32 : i32, i32
  }
}

module attributes {stable_mosaic.version = 11 : i64} {
  func.func @_matmul_kernel(%arg0: i32, %arg1: i32, %arg2: memref<32x64xbf16, #tpu.memory_space<vmem>>, %arg3: memref<64x256xbf16, #tpu.memory_space<vmem>>, %arg4: memref<1x256xf32, #tpu.memory_space<vmem>>, %arg5: memref<32x256xbf16, #tpu.memory_space<vmem>>, %arg6: memref<32x256xf32, #tpu.memory_space<vmem>>) attributes {dimension_semantics = [#tpu.dimension_semantics<parallel>, #tpu.dimension_semantics<arbitrary>], iteration_bounds = array<i64: 1, 1>, scalar_prefetch = 0 : i64, scratch_operands = 1 : i64, tpu.core_type = #tpu.core_type<tc>, window_params = [{transform_indices = @transform_0, window_bounds = array<i64: 32, 64>}, {transform_indices = @transform_1, window_bounds = array<i64: 64, 256>}, {pipeline_mode = #tpu.pipeline_mode<synchronous>, transform_indices = @transform_2, window_bounds = array<i64: 1, 256>}, {transform_indices = @transform_3, window_bounds = array<i64: 32, 256>}]} {
    %c0_i32 = arith.constant 0 : i32
    %0 = arith.cmpi eq, %arg1, %c0_i32 : i32
    %1 = arith.extui %0 : i1 to i32
    %c0_i32_0 = arith.constant 0 : i32
    %2 = arith.cmpi ne, %1, %c0_i32_0 : i32
    scf.if %2 {
      %cst_10 = arith.constant 0.000000e+00 : f32
      %12 = vector.broadcast %cst_10 : f32 to vector<32x256xf32>
      %c0_11 = arith.constant 0 : index
      %c0_12 = arith.constant 0 : index
      %13 = vector.load %arg6[%c0_11, %c0_12] : memref<32x256xf32, #tpu.memory_space<vmem>>, vector<32x256xf32>
      tpu.vector_store %arg6[%c0_11, %c0_12], %12 {strides = array<i32>} : memref<32x256xf32, #tpu.memory_space<vmem>>, vector<32x256xf32>,
    } else {
    }
    %c0 = arith.constant 0 : index
    %c0_1 = arith.constant 0 : index
    %3 = vector.load %arg6[%c0, %c0_1] : memref<32x256xf32, #tpu.memory_space<vmem>>, vector<32x256xf32>
    %c0_2 = arith.constant 0 : index
    %c0_3 = arith.constant 0 : index
    %4 = vector.load %arg2[%c0_2, %c0_3] : memref<32x64xbf16, #tpu.memory_space<vmem>>, vector<32x64xbf16>
    %c0_4 = arith.constant 0 : index
    %c0_5 = arith.constant 0 : index
    %5 = vector.load %arg3[%c0_4, %c0_5] : memref<64x256xbf16, #tpu.memory_space<vmem>>, vector<64x256xbf16>
    %cst = arith.constant dense<0.000000e+00> : vector<32x256xf32>
    %6 = tpu.matmul %4, %5, %cst {dimension_numbers = #tpu.dot_dimension_numbers<[1], [0], [0], [1], [0, 0, 1, 1], [], []>} : vector<32x64xbf16>, vector<64x256xbf16>, vector<32x256xf32> -> vector<32x256xf32>
    %7 = arith.addf %3, %6 : vector<32x256xf32>
    %c0_6 = arith.constant 0 : index
    %c0_7 = arith.constant 0 : index
    %8 = vector.load %arg6[%c0_6, %c0_7] : memref<32x256xf32, #tpu.memory_space<vmem>>, vector<32x256xf32>
    tpu.vector_store %arg6[%c0_6, %c0_7], %7 {strides = array<i32>} : memref<32x256xf32, #tpu.memory_space<vmem>>, vector<32x256xf32>,
    %c0_i32_8 = arith.constant 0 : i32
    %9 = arith.cmpi eq, %arg1, %c0_i32_8 : i32
    %10 = arith.extui %9 : i1 to i32
    %c0_i32_9 = arith.constant 0 : i32
    %11 = arith.cmpi ne, %10, %c0_i32_9 : i32
    scf.if %11 {
      %c0_10 = arith.constant 0 : index
      %c0_11 = arith.constant 0 : index
      %12 = vector.load %arg6[%c0_10, %c0_11] : memref<32x256xf32, #tpu.memory_space<vmem>>, vector<32x256xf32>
      %c0_12 = arith.constant 0 : index
      %c0_13 = arith.constant 0 : index
      %13 = vector.load %arg4[%c0_12, %c0_13] : memref<1x256xf32, #tpu.memory_space<vmem>>, vector<1x256xf32>
      %14 = vector.broadcast %13 : vector<1x256xf32> to vector<32x256xf32>
      %15 = arith.addf %12, %14 : vector<32x256xf32>
      %cst_14 = arith.constant 0.000000e+00 : f32
      %16 = vector.broadcast %cst_14 : f32 to vector<32x256xf32>
      %17 = arith.maximumf %15, %16 : vector<32x256xf32>
      %cst_15 = arith.constant 6.000000e+00 : f32
      %18 = vector.broadcast %cst_15 : f32 to vector<32x256xf32>
      %19 = arith.minimumf %17, %18 : vector<32x256xf32>
      %20 = arith.truncf %19 : vector<32x256xf32> to vector<32x256xbf16>
      %c0_16 = arith.constant 0 : index
      %c0_17 = arith.constant 0 : index
      %21 = vector.load %arg5[%c0_16, %c0_17] : memref<32x256xbf16, #tpu.memory_space<vmem>>, vector<32x256xbf16>
      tpu.vector_store %arg5[%c0_16, %c0_17], %20 {strides = array<i32>} : memref<32x256xbf16, #tpu.memory_space<vmem>>, vector<32x256xbf16>,
    } else {
    }
    return
  }
  func.func @transform_0(%arg0: i32, %arg1: i32) -> (i32, i32) {
    %c0_i32 = arith.constant 0 : i32
    return %arg0, %arg1 : i32, i32
  }
  func.func @transform_1(%arg0: i32, %arg1: i32) -> (i32, i32) {
    %c0_i32 = arith.constant 0 : i32
    %c0_i32_0 = arith.constant 0 : i32
    return %arg1, %c0_i32 : i32, i32
  }
  func.func @transform_2(%arg0: i32, %arg1: i32) -> (i32, i32) {
    %c0_i32 = arith.constant 0 : i32
    %c0_i32_0 = arith.constant 0 : i32
    %c0_i32_1 = arith.constant 0 : i32
    return %c0_i32, %c0_i32_0 : i32, i32
  }
  func.func @transform_3(%arg0: i32, %arg1: i32) -> (i32, i32) {
    %c0_i32 = arith.constant 0 : i32
    %c0_i32_0 = arith.constant 0 : i32
    return %arg0, %c0_i32 : i32, i32
  }
}

module attributes {stable_mosaic.version = 11 : i64} {
  func.func @_matmul_kernel(%arg0: i32, %arg1: i32, %arg2: memref<32x256xbf16, #tpu.memory_space<vmem>>, %arg3: memref<256x64xbf16, #tpu.memory_space<vmem>>, %arg4: memref<1x64xf32, #tpu.memory_space<vmem>>, %arg5: memref<32x64xf32, #tpu.memory_space<vmem>>, %arg6: memref<32x64xf32, #tpu.memory_space<vmem>>, %arg7: memref<32x64xf32, #tpu.memory_space<vmem>>) attributes {dimension_semantics = [#tpu.dimension_semantics<parallel>, #tpu.dimension_semantics<arbitrary>], iteration_bounds = array<i64: 1, 1>, scalar_prefetch = 0 : i64, scratch_operands = 1 : i64, tpu.core_type = #tpu.core_type<tc>, window_params = [{transform_indices = @transform_0, window_bounds = array<i64: 32, 256>}, {transform_indices = @transform_1, window_bounds = array<i64: 256, 64>}, {pipeline_mode = #tpu.pipeline_mode<synchronous>, transform_indices = @transform_2, window_bounds = array<i64: 1, 64>}, {transform_indices = @transform_3, window_bounds = array<i64: 32, 64>}, {transform_indices = @transform_4, window_bounds = array<i64: 32, 64>}]} {
    %c0_i32 = arith.constant 0 : i32
    %0 = arith.cmpi eq, %arg1, %c0_i32 : i32
    %1 = arith.extui %0 : i1 to i32
    %c0_i32_0 = arith.constant 0 : i32
    %2 = arith.cmpi ne, %1, %c0_i32_0 : i32
    scf.if %2 {
      %cst_10 = arith.constant 0.000000e+00 : f32
      %12 = vector.broadcast %cst_10 : f32 to vector<32x64xf32>
      %c0_11 = arith.constant 0 : index
      %c0_12 = arith.constant 0 : index
      %13 = vector.load %arg7[%c0_11, %c0_12] : memref<32x64xf32, #tpu.memory_space<vmem>>, vector<32x64xf32>
      tpu.vector_store %arg7[%c0_11, %c0_12], %12 {strides = array<i32>} : memref<32x64xf32, #tpu.memory_space<vmem>>, vector<32x64xf32>,
    } else {
    }
    %c0 = arith.constant 0 : index
    %c0_1 = arith.constant 0 : index
    %3 = vector.load %arg7[%c0, %c0_1] : memref<32x64xf32, #tpu.memory_space<vmem>>, vector<32x64xf32>
    %c0_2 = arith.constant 0 : index
    %c0_3 = arith.constant 0 : index
    %4 = vector.load %arg2[%c0_2, %c0_3] : memref<32x256xbf16, #tpu.memory_space<vmem>>, vector<32x256xbf16>
    %c0_4 = arith.constant 0 : index
    %c0_5 = arith.constant 0 : index
    %5 = vector.load %arg3[%c0_4, %c0_5] : memref<256x64xbf16, #tpu.memory_space<vmem>>, vector<256x64xbf16>
    %cst = arith.constant dense<0.000000e+00> : vector<32x64xf32>
    %6 = tpu.matmul %4, %5, %cst {dimension_numbers = #tpu.dot_dimension_numbers<[1], [0], [0], [1], [0, 0, 1, 1], [], []>} : vector<32x256xbf16>, vector<256x64xbf16>, vector<32x64xf32> -> vector<32x64xf32>
    %7 = arith.addf %3, %6 : vector<32x64xf32>
    %c0_6 = arith.constant 0 : index
    %c0_7 = arith.constant 0 : index
    %8 = vector.load %arg7[%c0_6, %c0_7] : memref<32x64xf32, #tpu.memory_space<vmem>>, vector<32x64xf32>
    tpu.vector_store %arg7[%c0_6, %c0_7], %7 {strides = array<i32>} : memref<32x64xf32, #tpu.memory_space<vmem>>, vector<32x64xf32>,
    %c0_i32_8 = arith.constant 0 : i32
    %9 = arith.cmpi eq, %arg1, %c0_i32_8 : i32
    %10 = arith.extui %9 : i1 to i32
    %c0_i32_9 = arith.constant 0 : i32
    %11 = arith.cmpi ne, %10, %c0_i32_9 : i32
    scf.if %11 {
      %c0_10 = arith.constant 0 : index
      %c0_11 = arith.constant 0 : index
      %12 = vector.load %arg7[%c0_10, %c0_11] : memref<32x64xf32, #tpu.memory_space<vmem>>, vector<32x64xf32>
      %c0_12 = arith.constant 0 : index
      %c0_13 = arith.constant 0 : index
      %13 = vector.load %arg4[%c0_12, %c0_13] : memref<1x64xf32, #tpu.memory_space<vmem>>, vector<1x64xf32>
      %14 = vector.broadcast %13 : vector<1x64xf32> to vector<32x64xf32>
      %15 = arith.addf %12, %14 : vector<32x64xf32>
      %c0_14 = arith.constant 0 : index
      %c0_15 = arith.constant 0 : index
      %16 = vector.load %arg5[%c0_14, %c0_15] : memref<32x64xf32, #tpu.memory_space<vmem>>, vector<32x64xf32>
      %17 = arith.addf %15, %16 : vector<32x64xf32>
      %c0_16 = arith.constant 0 : index
      %c0_17 = arith.constant 0 : index
      %18 = vector.load %arg6[%c0_16, %c0_17] : memref<32x64xf32, #tpu.memory_space<vmem>>, vector<32x64xf32>
      tpu.vector_store %arg6[%c0_16, %c0_17], %17 {strides = array<i32>} : memref<32x64xf32, #tpu.memory_space<vmem>>, vector<32x64xf32>,
    } else {
    }
    return
  }
  func.func @transform_0(%arg0: i32, %arg1: i32) -> (i32, i32) {
    %c0_i32 = arith.constant 0 : i32
    return %arg0, %arg1 : i32, i32
  }
  func.func @transform_1(%arg0: i32, %arg1: i32) -> (i32, i32) {
    %c0_i32 = arith.constant 0 : i32
    %c0_i32_0 = arith.constant 0 : i32
    return %arg1, %c0_i32 : i32, i32
  }
  func.func @transform_2(%arg0: i32, %arg1: i32) -> (i32, i32) {
    %c0_i32 = arith.constant 0 : i32
    %c0_i32_0 = arith.constant 0 : i32
    %c0_i32_1 = arith.constant 0 : i32
    return %c0_i32, %c0_i32_0 : i32, i32
  }
  func.func @transform_3(%arg0: i32, %arg1: i32) -> (i32, i32) {
    %c0_i32 = arith.constant 0 : i32
    %c0_i32_0 = arith.constant 0 : i32
    return %arg0, %c0_i32 : i32, i32
  }
  func.func @transform_4(%arg0: i32, %arg1: i32) -> (i32, i32) {
    %c0_i32 = arith.constant 0 : i32
    %c0_i32_0 = arith.constant 0 : i32
    return %arg0, %c0_i32 : i32, i32
  }
}

module attributes {stable_mosaic.version = 11 : i64} {
  func.func @_matmul_kernel(%arg0: i32, %arg1: i32, %arg2: memref<8x256xbf16, #tpu.memory_space<vmem>>, %arg3: memref<256x128xbf16, #tpu.memory_space<vmem>>, %arg4: memref<1x128xf32, #tpu.memory_space<vmem>>, %arg5: memref<8x128xf32, #tpu.memory_space<vmem>>, %arg6: memref<8x128xf32, #tpu.memory_space<vmem>>) attributes {dimension_semantics = [#tpu.dimension_semantics<parallel>, #tpu.dimension_semantics<arbitrary>], iteration_bounds = array<i64: 1, 1>, scalar_prefetch = 0 : i64, scratch_operands = 1 : i64, tpu.core_type = #tpu.core_type<tc>, window_params = [{transform_indices = @transform_0, window_bounds = array<i64: 8, 256>}, {transform_indices = @transform_1, window_bounds = array<i64: 256, 128>}, {pipeline_mode = #tpu.pipeline_mode<synchronous>, transform_indices = @transform_2, window_bounds = array<i64: 1, 128>}, {transform_indices = @transform_3, window_bounds = array<i64: 8, 128>}]} {
    %c0_i32 = arith.constant 0 : i32
    %0 = arith.cmpi eq, %arg1, %c0_i32 : i32
    %1 = arith.extui %0 : i1 to i32
    %c0_i32_0 = arith.constant 0 : i32
    %2 = arith.cmpi ne, %1, %c0_i32_0 : i32
    scf.if %2 {
      %cst_10 = arith.constant 0.000000e+00 : f32
      %12 = vector.broadcast %cst_10 : f32 to vector<8x128xf32>
      %c0_11 = arith.constant 0 : index
      %c0_12 = arith.constant 0 : index
      %13 = vector.load %arg6[%c0_11, %c0_12] : memref<8x128xf32, #tpu.memory_space<vmem>>, vector<8x128xf32>
      tpu.vector_store %arg6[%c0_11, %c0_12], %12 {strides = array<i32>} : memref<8x128xf32, #tpu.memory_space<vmem>>, vector<8x128xf32>,
    } else {
    }
    %c0 = arith.constant 0 : index
    %c0_1 = arith.constant 0 : index
    %3 = vector.load %arg6[%c0, %c0_1] : memref<8x128xf32, #tpu.memory_space<vmem>>, vector<8x128xf32>
    %c0_2 = arith.constant 0 : index
    %c0_3 = arith.constant 0 : index
    %4 = vector.load %arg2[%c0_2, %c0_3] : memref<8x256xbf16, #tpu.memory_space<vmem>>, vector<8x256xbf16>
    %c0_4 = arith.constant 0 : index
    %c0_5 = arith.constant 0 : index
    %5 = vector.load %arg3[%c0_4, %c0_5] : memref<256x128xbf16, #tpu.memory_space<vmem>>, vector<256x128xbf16>
    %cst = arith.constant dense<0.000000e+00> : vector<8x128xf32>
    %6 = tpu.matmul %4, %5, %cst {dimension_numbers = #tpu.dot_dimension_numbers<[1], [0], [0], [1], [0, 0, 1, 1], [], []>} : vector<8x256xbf16>, vector<256x128xbf16>, vector<8x128xf32> -> vector<8x128xf32>
    %7 = arith.addf %3, %6 : vector<8x128xf32>
    %c0_6 = arith.constant 0 : index
    %c0_7 = arith.constant 0 : index
    %8 = vector.load %arg6[%c0_6, %c0_7] : memref<8x128xf32, #tpu.memory_space<vmem>>, vector<8x128xf32>
    tpu.vector_store %arg6[%c0_6, %c0_7], %7 {strides = array<i32>} : memref<8x128xf32, #tpu.memory_space<vmem>>, vector<8x128xf32>,
    %c0_i32_8 = arith.constant 0 : i32
    %9 = arith.cmpi eq, %arg1, %c0_i32_8 : i32
    %10 = arith.extui %9 : i1 to i32
    %c0_i32_9 = arith.constant 0 : i32
    %11 = arith.cmpi ne, %10, %c0_i32_9 : i32
    scf.if %11 {
      %c0_10 = arith.constant 0 : index
      %c0_11 = arith.constant 0 : index
      %12 = vector.load %arg6[%c0_10, %c0_11] : memref<8x128xf32, #tpu.memory_space<vmem>>, vector<8x128xf32>
      %c0_12 = arith.constant 0 : index
      %c0_13 = arith.constant 0 : index
      %13 = vector.load %arg4[%c0_12, %c0_13] : memref<1x128xf32, #tpu.memory_space<vmem>>, vector<1x128xf32>
      %14 = vector.broadcast %13 : vector<1x128xf32> to vector<8x128xf32>
      %15 = arith.addf %12, %14 : vector<8x128xf32>
      %c0_14 = arith.constant 0 : index
      %c0_15 = arith.constant 0 : index
      %16 = vector.load %arg5[%c0_14, %c0_15] : memref<8x128xf32, #tpu.memory_space<vmem>>, vector<8x128xf32>
      tpu.vector_store %arg5[%c0_14, %c0_15], %15 {strides = array<i32>} : memref<8x128xf32, #tpu.memory_space<vmem>>, vector<8x128xf32>,
    } else {
    }
    return
  }
  func.func @transform_0(%arg0: i32, %arg1: i32) -> (i32, i32) {
    %c0_i32 = arith.constant 0 : i32
    return %arg0, %arg1 : i32, i32
  }
  func.func @transform_1(%arg0: i32, %arg1: i32) -> (i32, i32) {
    %c0_i32 = arith.constant 0 : i32
    %c0_i32_0 = arith.constant 0 : i32
    return %arg1, %c0_i32 : i32, i32
  }
  func.func @transform_2(%arg0: i32, %arg1: i32) -> (i32, i32) {
    %c0_i32 = arith.constant 0 : i32
    %c0_i32_0 = arith.constant 0 : i32
    %c0_i32_1 = arith.constant 0 : i32
    return %c0_i32, %c0_i32_0 : i32, i32
  }
  func.func @transform_3(%arg0: i32, %arg1: i32) -> (i32, i32) {
    %c0_i32 = arith.constant 0 : i32
    %c0_i32_0 = arith.constant 0 : i32
    return %arg0, %c0_i32 : i32, i32
  }
}

module attributes {stable_mosaic.version = 11 : i64} {
  func.func @_matmul_kernel(%arg0: i32, %arg1: i32, %arg2: memref<8x128xbf16, #tpu.memory_space<vmem>>, %arg3: memref<128x384xbf16, #tpu.memory_space<vmem>>, %arg4: memref<1x384xf32, #tpu.memory_space<vmem>>, %arg5: memref<8x384xbf16, #tpu.memory_space<vmem>>, %arg6: memref<8x384xf32, #tpu.memory_space<vmem>>) attributes {dimension_semantics = [#tpu.dimension_semantics<parallel>, #tpu.dimension_semantics<arbitrary>], iteration_bounds = array<i64: 1, 1>, scalar_prefetch = 0 : i64, scratch_operands = 1 : i64, tpu.core_type = #tpu.core_type<tc>, window_params = [{transform_indices = @transform_0, window_bounds = array<i64: 8, 128>}, {transform_indices = @transform_1, window_bounds = array<i64: 128, 384>}, {pipeline_mode = #tpu.pipeline_mode<synchronous>, transform_indices = @transform_2, window_bounds = array<i64: 1, 384>}, {transform_indices = @transform_3, window_bounds = array<i64: 8, 384>}]} {
    %c0_i32 = arith.constant 0 : i32
    %0 = arith.cmpi eq, %arg1, %c0_i32 : i32
    %1 = arith.extui %0 : i1 to i32
    %c0_i32_0 = arith.constant 0 : i32
    %2 = arith.cmpi ne, %1, %c0_i32_0 : i32
    scf.if %2 {
      %cst_10 = arith.constant 0.000000e+00 : f32
      %12 = vector.broadcast %cst_10 : f32 to vector<8x384xf32>
      %c0_11 = arith.constant 0 : index
      %c0_12 = arith.constant 0 : index
      %13 = vector.load %arg6[%c0_11, %c0_12] : memref<8x384xf32, #tpu.memory_space<vmem>>, vector<8x384xf32>
      tpu.vector_store %arg6[%c0_11, %c0_12], %12 {strides = array<i32>} : memref<8x384xf32, #tpu.memory_space<vmem>>, vector<8x384xf32>,
    } else {
    }
    %c0 = arith.constant 0 : index
    %c0_1 = arith.constant 0 : index
    %3 = vector.load %arg6[%c0, %c0_1] : memref<8x384xf32, #tpu.memory_space<vmem>>, vector<8x384xf32>
    %c0_2 = arith.constant 0 : index
    %c0_3 = arith.constant 0 : index
    %4 = vector.load %arg2[%c0_2, %c0_3] : memref<8x128xbf16, #tpu.memory_space<vmem>>, vector<8x128xbf16>
    %c0_4 = arith.constant 0 : index
    %c0_5 = arith.constant 0 : index
    %5 = vector.load %arg3[%c0_4, %c0_5] : memref<128x384xbf16, #tpu.memory_space<vmem>>, vector<128x384xbf16>
    %cst = arith.constant dense<0.000000e+00> : vector<8x384xf32>
    %6 = tpu.matmul %4, %5, %cst {dimension_numbers = #tpu.dot_dimension_numbers<[1], [0], [0], [1], [0, 0, 1, 1], [], []>} : vector<8x128xbf16>, vector<128x384xbf16>, vector<8x384xf32> -> vector<8x384xf32>
    %7 = arith.addf %3, %6 : vector<8x384xf32>
    %c0_6 = arith.constant 0 : index
    %c0_7 = arith.constant 0 : index
    %8 = vector.load %arg6[%c0_6, %c0_7] : memref<8x384xf32, #tpu.memory_space<vmem>>, vector<8x384xf32>
    tpu.vector_store %arg6[%c0_6, %c0_7], %7 {strides = array<i32>} : memref<8x384xf32, #tpu.memory_space<vmem>>, vector<8x384xf32>,
    %c0_i32_8 = arith.constant 0 : i32
    %9 = arith.cmpi eq, %arg1, %c0_i32_8 : i32
    %10 = arith.extui %9 : i1 to i32
    %c0_i32_9 = arith.constant 0 : i32
    %11 = arith.cmpi ne, %10, %c0_i32_9 : i32
    scf.if %11 {
      %c0_10 = arith.constant 0 : index
      %c0_11 = arith.constant 0 : index
      %12 = vector.load %arg6[%c0_10, %c0_11] : memref<8x384xf32, #tpu.memory_space<vmem>>, vector<8x384xf32>
      %c0_12 = arith.constant 0 : index
      %c0_13 = arith.constant 0 : index
      %13 = vector.load %arg4[%c0_12, %c0_13] : memref<1x384xf32, #tpu.memory_space<vmem>>, vector<1x384xf32>
      %14 = vector.broadcast %13 : vector<1x384xf32> to vector<8x384xf32>
      %15 = arith.addf %12, %14 : vector<8x384xf32>
      %16 = arith.truncf %15 : vector<8x384xf32> to vector<8x384xbf16>
      %c0_14 = arith.constant 0 : index
      %c0_15 = arith.constant 0 : index
      %17 = vector.load %arg5[%c0_14, %c0_15] : memref<8x384xbf16, #tpu.memory_space<vmem>>, vector<8x384xbf16>
      tpu.vector_store %arg5[%c0_14, %c0_15], %16 {strides = array<i32>} : memref<8x384xbf16, #tpu.memory_space<vmem>>, vector<8x384xbf16>,
    } else {
    }
    return
  }
  func.func @transform_0(%arg0: i32, %arg1: i32) -> (i32, i32) {
    %c0_i32 = arith.constant 0 : i32
    return %arg0, %arg1 : i32, i32
  }
  func.func @transform_1(%arg0: i32, %arg1: i32) -> (i32, i32) {
    %c0_i32 = arith.constant 0 : i32
    %c0_i32_0 = arith.constant 0 : i32
    return %arg1, %c0_i32 : i32, i32
  }
  func.func @transform_2(%arg0: i32, %arg1: i32) -> (i32, i32) {
    %c0_i32 = arith.constant 0 : i32
    %c0_i32_0 = arith.constant 0 : i32
    %c0_i32_1 = arith.constant 0 : i32
    return %c0_i32, %c0_i32_0 : i32, i32
  }
  func.func @transform_3(%arg0: i32, %arg1: i32) -> (i32, i32) {
    %c0_i32 = arith.constant 0 : i32
    %c0_i32_0 = arith.constant 0 : i32
    return %arg0, %c0_i32 : i32, i32
  }
}

module attributes {stable_mosaic.version = 11 : i64} {
  func.func @_attn_kernel(%arg0: i32, %arg1: i32, %arg2: memref<1x2x4x32xbf16, #tpu.memory_space<vmem>>, %arg3: memref<1x2x4x32xbf16, #tpu.memory_space<vmem>>, %arg4: memref<1x2x4x32xbf16, #tpu.memory_space<vmem>>, %arg5: memref<1x4x4xf32, #tpu.memory_space<vmem>>, %arg6: memref<1x2x4x32xbf16, #tpu.memory_space<vmem>>) attributes {dimension_semantics = [#tpu.dimension_semantics<parallel>, #tpu.dimension_semantics<parallel>], iteration_bounds = array<i64: 4, 1>, scalar_prefetch = 0 : i64, scratch_operands = 0 : i64, tpu.core_type = #tpu.core_type<tc>, window_params = [{transform_indices = @transform_0, window_bounds = array<i64: 1, 2, 4, 32>}, {transform_indices = @transform_1, window_bounds = array<i64: 1, 2, 4, 32>}, {transform_indices = @transform_2, window_bounds = array<i64: 1, 2, 4, 32>}, {transform_indices = @transform_3, window_bounds = array<i64: 1, 4, 4>}, {transform_indices = @transform_4, window_bounds = array<i64: 1, 2, 4, 32>}]} {
    %c0 = arith.constant 0 : index
    %c0_0 = arith.constant 0 : index
    %c0_1 = arith.constant 0 : index
    %c0_2 = arith.constant 0 : index
    %0 = vector.load %arg2[%c0, %c0_0, %c0_1, %c0_2] : memref<1x2x4x32xbf16, #tpu.memory_space<vmem>>, vector<1x2x4x32xbf16>
    %1 = vector.shape_cast %0 : vector<1x2x4x32xbf16> to vector<2x4x32xbf16>
    %c0_3 = arith.constant 0 : index
    %c0_4 = arith.constant 0 : index
    %c0_5 = arith.constant 0 : index
    %c0_6 = arith.constant 0 : index
    %2 = vector.load %arg3[%c0_3, %c0_4, %c0_5, %c0_6] : memref<1x2x4x32xbf16, #tpu.memory_space<vmem>>, vector<1x2x4x32xbf16>
    %3 = vector.shape_cast %2 : vector<1x2x4x32xbf16> to vector<2x4x32xbf16>
    %c0_7 = arith.constant 0 : index
    %c0_8 = arith.constant 0 : index
    %c0_9 = arith.constant 0 : index
    %c0_10 = arith.constant 0 : index
    %4 = vector.load %arg4[%c0_7, %c0_8, %c0_9, %c0_10] : memref<1x2x4x32xbf16, #tpu.memory_space<vmem>>, vector<1x2x4x32xbf16>
    %5 = vector.shape_cast %4 : vector<1x2x4x32xbf16> to vector<2x4x32xbf16>
    "tpu.trace_start"() <{level = 10 : i32, message = "wqd,wkd->wqk"}> : () -> ()
    %cst = arith.constant dense<0.000000e+00> : vector<2x4x4xf32>
    %6 = tpu.matmul %1, %3, %cst {dimension_numbers = #tpu.dot_dimension_numbers<[2], [2], [1], [1], [0, 0, 0, 1, 1, 1], [0], [0]>} : vector<2x4x32xbf16>, vector<2x4x32xbf16>, vector<2x4x4xf32> -> vector<2x4x4xf32>
    "tpu.trace_stop"() : () -> ()
    %cst_11 = arith.constant 0.176776692 : f32
    %7 = vector.broadcast %cst_11 : f32 to vector<2x4x4xf32>
    %8 = arith.mulf %6, %7 : vector<2x4x4xf32>
    %c0_12 = arith.constant 0 : index
    %c0_13 = arith.constant 0 : index
    %c0_14 = arith.constant 0 : index
    %9 = vector.load %arg5[%c0_12, %c0_13, %c0_14] : memref<1x4x4xf32, #tpu.memory_space<vmem>>, vector<1x4x4xf32>
    %10 = vector.broadcast %9 : vector<1x4x4xf32> to vector<2x4x4xf32>
    %11 = arith.addf %8, %10 : vector<2x4x4xf32>
    %cst_15 = arith.constant dense<0xFF800000> : vector<2x4xf32>
    %12 = vector.multi_reduction <maximumf>, %11, %cst_15 [2] : vector<2x4x4xf32> to vector<2x4xf32>
    %13 = vector.shape_cast %12 : vector<2x4xf32> to vector<2x4x1xf32>
    %14 = vector.broadcast %13 : vector<2x4x1xf32> to vector<2x4x4xf32>
    %15 = arith.subf %11, %14 : vector<2x4x4xf32>
    %16 = math.exp %15 : vector<2x4x4xf32>
    %cst_16 = arith.constant dense<0.000000e+00> : vector<2x4xf32>
    %17 = vector.multi_reduction <add>, %16, %cst_16 [2] : vector<2x4x4xf32> to vector<2x4xf32>
    %18 = vector.shape_cast %17 : vector<2x4xf32> to vector<2x4x1xf32>
    %19 = tpu.reciprocal %18 {approx = true} : vector<2x4x1xf32> -> vector<2x4x1xf32>
    %20 = vector.broadcast %19 : vector<2x4x1xf32> to vector<2x4x4xf32>
    %21 = arith.mulf %16, %20 : vector<2x4x4xf32>
    %22 = arith.truncf %21 : vector<2x4x4xf32> to vector<2x4x4xbf16>
    "tpu.trace_start"() <{level = 10 : i32, message = "wqk,wkd->wqd"}> : () -> ()
    %cst_17 = arith.constant dense<0.000000e+00> : vector<2x4x32xf32>
    %23 = tpu.matmul %22, %5, %cst_17 {dimension_numbers = #tpu.dot_dimension_numbers<[2], [1], [1], [2], [0, 0, 0, 1, 1, 2], [0], [0]>} : vector<2x4x4xbf16>, vector<2x4x32xbf16>, vector<2x4x32xf32> -> vector<2x4x32xf32>
    "tpu.trace_stop"() : () -> ()
    %24 = arith.truncf %23 : vector<2x4x32xf32> to vector<2x4x32xbf16>
    %c0_18 = arith.constant 0 : index
    %c0_19 = arith.constant 0 : index
    %c0_20 = arith.constant 0 : index
    %c0_21 = arith.constant 0 : index
    %25 = vector.load %arg6[%c0_18, %c0_19, %c0_20, %c0_21] : memref<1x2x4x32xbf16, #tpu.memory_space<vmem>>, vector<1x2x4x32xbf16>
    %26 = vector.shape_cast %25 : vector<1x2x4x32xbf16> to vector<2x4x32xbf16>
    %27 = vector.shape_cast %24 : vector<2x4x32xbf16> to vector<1x2x4x32xbf16>
    tpu.vector_store %arg6[%c0_18, %c0_19, %c0_20, %c0_21], %27 {strides = array<i32>} : memref<1x2x4x32xbf16, #tpu.memory_space<vmem>>, vector<1x2x4x32xbf16>,
    return
  }
  func.func @transform_0(%arg0: i32, %arg1: i32) -> (i32, i32, i32, i32) {
    %c0_i32 = arith.constant 0 : i32
    %c0_i32_0 = arith.constant 0 : i32
    %c0_i32_1 = arith.constant 0 : i32
    return %arg0, %arg1, %c0_i32, %c0_i32_0 : i32, i32, i32, i32
  }
  func.func @transform_1(%arg0: i32, %arg1: i32) -> (i32, i32, i32, i32) {
    %c0_i32 = arith.constant 0 : i32
    %c0_i32_0 = arith.constant 0 : i32
    %c0_i32_1 = arith.constant 0 : i32
    return %arg0, %arg1, %c0_i32, %c0_i32_0 : i32, i32, i32, i32
  }
  func.func @transform_2(%arg0: i32, %arg1: i32) -> (i32, i32, i32, i32) {
    %c0_i32 = arith.constant 0 : i32
    %c0_i32_0 = arith.constant 0 : i32
    %c0_i32_1 = arith.constant 0 : i32
    return %arg0, %arg1, %c0_i32, %c0_i32_0 : i32, i32, i32, i32
  }
  func.func @transform_3(%arg0: i32, %arg1: i32) -> (i32, i32, i32) {
    %c0_i32 = arith.constant 0 : i32
    %c0_i32_0 = arith.constant 0 : i32
    %c0_i32_1 = arith.constant 0 : i32
    return %arg0, %c0_i32, %c0_i32_0 : i32, i32, i32
  }
  func.func @transform_4(%arg0: i32, %arg1: i32) -> (i32, i32, i32, i32) {
    %c0_i32 = arith.constant 0 : i32
    %c0_i32_0 = arith.constant 0 : i32
    %c0_i32_1 = arith.constant 0 : i32
    return %arg0, %arg1, %c0_i32, %c0_i32_0 : i32, i32, i32, i32
  }
}

module attributes {stable_mosaic.version = 11 : i64} {
  func.func @_affine_kernel(%arg0: i32, %arg1: memref<8x128xf32, #tpu.memory_space<vmem>>, %arg2: memref<1x128xf32, #tpu.memory_space<vmem>>, %arg3: memref<1x128xf32, #tpu.memory_space<vmem>>, %arg4: memref<8x128xf32, #tpu.memory_space<vmem>>) attributes {dimension_semantics = [#tpu.dimension_semantics<parallel>], iteration_bounds = array<i64: 1>, scalar_prefetch = 0 : i64, scratch_operands = 0 : i64, tpu.core_type = #tpu.core_type<tc>, window_params = [{transform_indices = @transform_0, window_bounds = array<i64: 8, 128>}, {pipeline_mode = #tpu.pipeline_mode<synchronous>, transform_indices = @transform_1, window_bounds = array<i64: 1, 128>}, {pipeline_mode = #tpu.pipeline_mode<synchronous>, transform_indices = @transform_2, window_bounds = array<i64: 1, 128>}, {transform_indices = @transform_3, window_bounds = array<i64: 8, 128>}]} {
    %c0 = arith.constant 0 : index
    %c0_0 = arith.constant 0 : index
    %0 = vector.load %arg1[%c0, %c0_0] : memref<8x128xf32, #tpu.memory_space<vmem>>, vector<8x128xf32>
    %c0_1 = arith.constant 0 : index
    %c0_2 = arith.constant 0 : index
    %1 = vector.load %arg2[%c0_1, %c0_2] : memref<1x128xf32, #tpu.memory_space<vmem>>, vector<1x128xf32>
    %2 = vector.broadcast %1 : vector<1x128xf32> to vector<8x128xf32>
    %3 = arith.mulf %0, %2 : vector<8x128xf32>
    %c0_3 = arith.constant 0 : index
    %c0_4 = arith.constant 0 : index
    %4 = vector.load %arg3[%c0_3, %c0_4] : memref<1x128xf32, #tpu.memory_space<vmem>>, vector<1x128xf32>
    %5 = vector.broadcast %4 : vector<1x128xf32> to vector<8x128xf32>
    %6 = arith.addf %3, %5 : vector<8x128xf32>
    %c0_5 = arith.constant 0 : index
    %c0_6 = arith.constant 0 : index
    %7 = vector.load %arg4[%c0_5, %c0_6] : memref<8x128xf32, #tpu.memory_space<vmem>>, vector<8x128xf32>
    tpu.vector_store %arg4[%c0_5, %c0_6], %6 {strides = array<i32>} : memref<8x128xf32, #tpu.memory_space<vmem>>, vector<8x128xf32>,
    return
  }
  func.func @transform_0(%arg0: i32) -> (i32, i32) {
    %c0_i32 = arith.constant 0 : i32
    %c0_i32_0 = arith.constant 0 : i32
    return %arg0, %c0_i32 : i32, i32
  }
  func.func @transform_1(%arg0: i32) -> (i32, i32) {
    %c0_i32 = arith.constant 0 : i32
    %c0_i32_0 = arith.constant 0 : i32
    %c0_i32_1 = arith.constant 0 : i32
    return %c0_i32, %c0_i32_0 : i32, i32
  }
  func.func @transform_2(%arg0: i32) -> (i32, i32) {
    %c0_i32 = arith.constant 0 : i32
    %c0_i32_0 = arith.constant 0 : i32
    %c0_i32_1 = arith.constant 0 : i32
    return %c0_i32, %c0_i32_0 : i32, i32
  }
  func.func @transform_3(%arg0: i32) -> (i32, i32) {
    %c0_i32 = arith.constant 0 : i32
    %c0_i32_0 = arith.constant 0 : i32
    return %arg0, %c0_i32 : i32, i32
  }
}

module attributes {stable_mosaic.version = 11 : i64} {
  func.func @_matmul_kernel(%arg0: i32, %arg1: i32, %arg2: memref<8x128xbf16, #tpu.memory_space<vmem>>, %arg3: memref<128x128xbf16, #tpu.memory_space<vmem>>, %arg4: memref<1x128xf32, #tpu.memory_space<vmem>>, %arg5: memref<8x128xf32, #tpu.memory_space<vmem>>, %arg6: memref<8x128xf32, #tpu.memory_space<vmem>>, %arg7: memref<8x128xf32, #tpu.memory_space<vmem>>) attributes {dimension_semantics = [#tpu.dimension_semantics<parallel>, #tpu.dimension_semantics<arbitrary>], iteration_bounds = array<i64: 1, 1>, scalar_prefetch = 0 : i64, scratch_operands = 1 : i64, tpu.core_type = #tpu.core_type<tc>, window_params = [{transform_indices = @transform_0, window_bounds = array<i64: 8, 128>}, {transform_indices = @transform_1, window_bounds = array<i64: 128, 128>}, {pipeline_mode = #tpu.pipeline_mode<synchronous>, transform_indices = @transform_2, window_bounds = array<i64: 1, 128>}, {transform_indices = @transform_3, window_bounds = array<i64: 8, 128>}, {transform_indices = @transform_4, window_bounds = array<i64: 8, 128>}]} {
    %c0_i32 = arith.constant 0 : i32
    %0 = arith.cmpi eq, %arg1, %c0_i32 : i32
    %1 = arith.extui %0 : i1 to i32
    %c0_i32_0 = arith.constant 0 : i32
    %2 = arith.cmpi ne, %1, %c0_i32_0 : i32
    scf.if %2 {
      %cst_10 = arith.constant 0.000000e+00 : f32
      %12 = vector.broadcast %cst_10 : f32 to vector<8x128xf32>
      %c0_11 = arith.constant 0 : index
      %c0_12 = arith.constant 0 : index
      %13 = vector.load %arg7[%c0_11, %c0_12] : memref<8x128xf32, #tpu.memory_space<vmem>>, vector<8x128xf32>
      tpu.vector_store %arg7[%c0_11, %c0_12], %12 {strides = array<i32>} : memref<8x128xf32, #tpu.memory_space<vmem>>, vector<8x128xf32>,
    } else {
    }
    %c0 = arith.constant 0 : index
    %c0_1 = arith.constant 0 : index
    %3 = vector.load %arg7[%c0, %c0_1] : memref<8x128xf32, #tpu.memory_space<vmem>>, vector<8x128xf32>
    %c0_2 = arith.constant 0 : index
    %c0_3 = arith.constant 0 : index
    %4 = vector.load %arg2[%c0_2, %c0_3] : memref<8x128xbf16, #tpu.memory_space<vmem>>, vector<8x128xbf16>
    %c0_4 = arith.constant 0 : index
    %c0_5 = arith.constant 0 : index
    %5 = vector.load %arg3[%c0_4, %c0_5] : memref<128x128xbf16, #tpu.memory_space<vmem>>, vector<128x128xbf16>
    %cst = arith.constant dense<0.000000e+00> : vector<8x128xf32>
    %6 = tpu.matmul %4, %5, %cst {dimension_numbers = #tpu.dot_dimension_numbers<[1], [0], [0], [1], [0, 0, 1, 1], [], []>} : vector<8x128xbf16>, vector<128x128xbf16>, vector<8x128xf32> -> vector<8x128xf32>
    %7 = arith.addf %3, %6 : vector<8x128xf32>
    %c0_6 = arith.constant 0 : index
    %c0_7 = arith.constant 0 : index
    %8 = vector.load %arg7[%c0_6, %c0_7] : memref<8x128xf32, #tpu.memory_space<vmem>>, vector<8x128xf32>
    tpu.vector_store %arg7[%c0_6, %c0_7], %7 {strides = array<i32>} : memref<8x128xf32, #tpu.memory_space<vmem>>, vector<8x128xf32>,
    %c0_i32_8 = arith.constant 0 : i32
    %9 = arith.cmpi eq, %arg1, %c0_i32_8 : i32
    %10 = arith.extui %9 : i1 to i32
    %c0_i32_9 = arith.constant 0 : i32
    %11 = arith.cmpi ne, %10, %c0_i32_9 : i32
    scf.if %11 {
      %c0_10 = arith.constant 0 : index
      %c0_11 = arith.constant 0 : index
      %12 = vector.load %arg7[%c0_10, %c0_11] : memref<8x128xf32, #tpu.memory_space<vmem>>, vector<8x128xf32>
      %c0_12 = arith.constant 0 : index
      %c0_13 = arith.constant 0 : index
      %13 = vector.load %arg4[%c0_12, %c0_13] : memref<1x128xf32, #tpu.memory_space<vmem>>, vector<1x128xf32>
      %14 = vector.broadcast %13 : vector<1x128xf32> to vector<8x128xf32>
      %15 = arith.addf %12, %14 : vector<8x128xf32>
      %c0_14 = arith.constant 0 : index
      %c0_15 = arith.constant 0 : index
      %16 = vector.load %arg5[%c0_14, %c0_15] : memref<8x128xf32, #tpu.memory_space<vmem>>, vector<8x128xf32>
      %17 = arith.addf %15, %16 : vector<8x128xf32>
      %c0_16 = arith.constant 0 : index
      %c0_17 = arith.constant 0 : index
      %18 = vector.load %arg6[%c0_16, %c0_17] : memref<8x128xf32, #tpu.memory_space<vmem>>, vector<8x128xf32>
      tpu.vector_store %arg6[%c0_16, %c0_17], %17 {strides = array<i32>} : memref<8x128xf32, #tpu.memory_space<vmem>>, vector<8x128xf32>,
    } else {
    }
    return
  }
  func.func @transform_0(%arg0: i32, %arg1: i32) -> (i32, i32) {
    %c0_i32 = arith.constant 0 : i32
    return %arg0, %arg1 : i32, i32
  }
  func.func @transform_1(%arg0: i32, %arg1: i32) -> (i32, i32) {
    %c0_i32 = arith.constant 0 : i32
    %c0_i32_0 = arith.constant 0 : i32
    return %arg1, %c0_i32 : i32, i32
  }
  func.func @transform_2(%arg0: i32, %arg1: i32) -> (i32, i32) {
    %c0_i32 = arith.constant 0 : i32
    %c0_i32_0 = arith.constant 0 : i32
    %c0_i32_1 = arith.constant 0 : i32
    return %c0_i32, %c0_i32_0 : i32, i32
  }
  func.func @transform_3(%arg0: i32, %arg1: i32) -> (i32, i32) {
    %c0_i32 = arith.constant 0 : i32
    %c0_i32_0 = arith.constant 0 : i32
    return %arg0, %c0_i32 : i32, i32
  }
  func.func @transform_4(%arg0: i32, %arg1: i32) -> (i32, i32) {
    %c0_i32 = arith.constant 0 : i32
    %c0_i32_0 = arith.constant 0 : i32
    return %arg0, %c0_i32 : i32, i32
  }
}

module attributes {stable_mosaic.version = 11 : i64} {
  func.func @_dwconv_kernel(%arg0: i32, %arg1: memref<4x8x128xf32, #tpu.memory_space<vmem>>, %arg2: memref<4x1x128xf32, #tpu.memory_space<vmem>>, %arg3: memref<8x128xf32, #tpu.memory_space<vmem>>, %arg4: memref<8x128xf32, #tpu.memory_space<vmem>>) attributes {dimension_semantics = [#tpu.dimension_semantics<parallel>], iteration_bounds = array<i64: 1>, scalar_prefetch = 0 : i64, scratch_operands = 0 : i64, tpu.core_type = #tpu.core_type<tc>, window_params = [{transform_indices = @transform_0, window_bounds = array<i64: 4, 8, 128>}, {pipeline_mode = #tpu.pipeline_mode<synchronous>, transform_indices = @transform_1, window_bounds = array<i64: 4, 1, 128>}, {transform_indices = @transform_2, window_bounds = array<i64: 8, 128>}, {transform_indices = @transform_3, window_bounds = array<i64: 8, 128>}]} {
    %c0 = arith.constant 0 : index
    %c0_0 = arith.constant 0 : index
    %0 = vector.load %arg3[%c0, %c0_0] : memref<8x128xf32, #tpu.memory_space<vmem>>, vector<8x128xf32>
    %c0_1 = arith.constant 0 : index
    %c0_2 = arith.constant 0 : index
    %c0_3 = arith.constant 0 : index
    %1 = vector.load %arg1[%c0_1, %c0_2, %c0_3] : memref<4x8x128xf32, #tpu.memory_space<vmem>>, vector<1x8x128xf32>
    %2 = vector.shape_cast %1 : vector<1x8x128xf32> to vector<8x128xf32>
    %c0_4 = arith.constant 0 : index
    %c0_5 = arith.constant 0 : index
    %c0_6 = arith.constant 0 : index
    %3 = vector.load %arg2[%c0_4, %c0_5, %c0_6] : memref<4x1x128xf32, #tpu.memory_space<vmem>>, vector<1x1x128xf32>
    %4 = vector.shape_cast %3 : vector<1x1x128xf32> to vector<1x128xf32>
    %5 = vector.broadcast %4 : vector<1x128xf32> to vector<8x128xf32>
    %6 = arith.mulf %2, %5 : vector<8x128xf32>
    %7 = arith.addf %0, %6 : vector<8x128xf32>
    %c1 = arith.constant 1 : index
    %c0_7 = arith.constant 0 : index
    %c0_8 = arith.constant 0 : index
    %8 = vector.load %arg1[%c1, %c0_7, %c0_8] : memref<4x8x128xf32, #tpu.memory_space<vmem>>, vector<1x8x128xf32>
    %9 = vector.shape_cast %8 : vector<1x8x128xf32> to vector<8x128xf32>
    %c1_9 = arith.constant 1 : index
    %c0_10 = arith.constant 0 : index
    %c0_11 = arith.constant 0 : index
    %10 = vector.load %arg2[%c1_9, %c0_10, %c0_11] : memref<4x1x128xf32, #tpu.memory_space<vmem>>, vector<1x1x128xf32>
    %11 = vector.shape_cast %10 : vector<1x1x128xf32> to vector<1x128xf32>
    %12 = vector.broadcast %11 : vector<1x128xf32> to vector<8x128xf32>
    %13 = arith.mulf %9, %12 : vector<8x128xf32>
    %14 = arith.addf %7, %13 : vector<8x128xf32>
    %c2 = arith.constant 2 : index
    %c0_12 = arith.constant 0 : index
    %c0_13 = arith.constant 0 : index
    %15 = vector.load %arg1[%c2, %c0_12, %c0_13] : memref<4x8x128xf32, #tpu.memory_space<vmem>>, vector<1x8x128xf32>
    %16 = vector.shape_cast %15 : vector<1x8x128xf32> to vector<8x128xf32>
    %c2_14 = arith.constant 2 : index
    %c0_15 = arith.constant 0 : index
    %c0_16 = arith.constant 0 : index
    %17 = vector.load %arg2[%c2_14, %c0_15, %c0_16] : memref<4x1x128xf32, #tpu.memory_space<vmem>>, vector<1x1x128xf32>
    %18 = vector.shape_cast %17 : vector<1x1x128xf32> to vector<1x128xf32>
    %19 = vector.broadcast %18 : vector<1x128xf32> to vector<8x128xf32>
    %20 = arith.mulf %16, %19 : vector<8x128xf32>
    %21 = arith.addf %14, %20 : vector<8x128xf32>
    %c3 = arith.constant 3 : index
    %c0_17 = arith.constant 0 : index
    %c0_18 = arith.constant 0 : index
    %22 = vector.load %arg1[%c3, %c0_17, %c0_18] : memref<4x8x128xf32, #tpu.memory_space<vmem>>, vector<1x8x128xf32>
    %23 = vector.shape_cast %22 : vector<1x8x128xf32> to vector<8x128xf32>
    %c3_19 = arith.constant 3 : index
    %c0_20 = arith.constant 0 : index
    %c0_21 = arith.constant 0 : index
    %24 = vector.load %arg2[%c3_19, %c0_20, %c0_21] : memref<4x1x128xf32, #tpu.memory_space<vmem>>, vector<1x1x128xf32>
    %25 = vector.shape_cast %24 : vector<1x1x128xf32> to vector<1x128xf32>
    %26 = vector.broadcast %25 : vector<1x128xf32> to vector<8x128xf32>
    %27 = arith.mulf %23, %26 : vector<8x128xf32>
    %28 = arith.addf %21, %27 : vector<8x128xf32>
    %c0_22 = arith.constant 0 : index
    %c0_23 = arith.constant 0 : index
    %29 = vector.load %arg4[%c0_22, %c0_23] : memref<8x128xf32, #tpu.memory_space<vmem>>, vector<8x128xf32>
    tpu.vector_store %arg4[%c0_22, %c0_23], %28 {strides = array<i32>} : memref<8x128xf32, #tpu.memory_space<vmem>>, vector<8x128xf32>,
    return
  }
  func.func @transform_0(%arg0: i32) -> (i32, i32, i32) {
    %c0_i32 = arith.constant 0 : i32
    %c0_i32_0 = arith.constant 0 : i32
    %c0_i32_1 = arith.constant 0 : i32
    return %c0_i32, %arg0, %c0_i32_0 : i32, i32, i32
  }
  func.func @transform_1(%arg0: i32) -> (i32, i32, i32) {
    %c0_i32 = arith.constant 0 : i32
    %c0_i32_0 = arith.constant 0 : i32
    %c0_i32_1 = arith.constant 0 : i32
    %c0_i32_2 = arith.constant 0 : i32
    return %c0_i32, %c0_i32_0, %c0_i32_1 : i32, i32, i32
  }
  func.func @transform_2(%arg0: i32) -> (i32, i32) {
    %c0_i32 = arith.constant 0 : i32
    %c0_i32_0 = arith.constant 0 : i32
    return %arg0, %c0_i32 : i32, i32
  }
  func.func @transform_3(%arg0: i32) -> (i32, i32) {
    %c0_i32 = arith.constant 0 : i32
    %c0_i32_0 = arith.constant 0 : i32
    return %arg0, %c0_i32 : i32, i32
  }
}

module attributes {stable_mosaic.version = 11 : i64} {
  func.func @_matmul_kernel(%arg0: i32, %arg1: i32, %arg2: memref<8x128xbf16, #tpu.memory_space<vmem>>, %arg3: memref<128x512xbf16, #tpu.memory_space<vmem>>, %arg4: memref<1x512xf32, #tpu.memory_space<vmem>>, %arg5: memref<8x512xbf16, #tpu.memory_space<vmem>>, %arg6: memref<8x512xf32, #tpu.memory_space<vmem>>) attributes {dimension_semantics = [#tpu.dimension_semantics<parallel>, #tpu.dimension_semantics<arbitrary>], iteration_bounds = array<i64: 1, 1>, scalar_prefetch = 0 : i64, scratch_operands = 1 : i64, tpu.core_type = #tpu.core_type<tc>, window_params = [{transform_indices = @transform_0, window_bounds = array<i64: 8, 128>}, {transform_indices = @transform_1, window_bounds = array<i64: 128, 512>}, {pipeline_mode = #tpu.pipeline_mode<synchronous>, transform_indices = @transform_2, window_bounds = array<i64: 1, 512>}, {transform_indices = @transform_3, window_bounds = array<i64: 8, 512>}]} {
    %c0_i32 = arith.constant 0 : i32
    %0 = arith.cmpi eq, %arg1, %c0_i32 : i32
    %1 = arith.extui %0 : i1 to i32
    %c0_i32_0 = arith.constant 0 : i32
    %2 = arith.cmpi ne, %1, %c0_i32_0 : i32
    scf.if %2 {
      %cst_10 = arith.constant 0.000000e+00 : f32
      %12 = vector.broadcast %cst_10 : f32 to vector<8x512xf32>
      %c0_11 = arith.constant 0 : index
      %c0_12 = arith.constant 0 : index
      %13 = vector.load %arg6[%c0_11, %c0_12] : memref<8x512xf32, #tpu.memory_space<vmem>>, vector<8x512xf32>
      tpu.vector_store %arg6[%c0_11, %c0_12], %12 {strides = array<i32>} : memref<8x512xf32, #tpu.memory_space<vmem>>, vector<8x512xf32>,
    } else {
    }
    %c0 = arith.constant 0 : index
    %c0_1 = arith.constant 0 : index
    %3 = vector.load %arg6[%c0, %c0_1] : memref<8x512xf32, #tpu.memory_space<vmem>>, vector<8x512xf32>
    %c0_2 = arith.constant 0 : index
    %c0_3 = arith.constant 0 : index
    %4 = vector.load %arg2[%c0_2, %c0_3] : memref<8x128xbf16, #tpu.memory_space<vmem>>, vector<8x128xbf16>
    %c0_4 = arith.constant 0 : index
    %c0_5 = arith.constant 0 : index
    %5 = vector.load %arg3[%c0_4, %c0_5] : memref<128x512xbf16, #tpu.memory_space<vmem>>, vector<128x512xbf16>
    %cst = arith.constant dense<0.000000e+00> : vector<8x512xf32>
    %6 = tpu.matmul %4, %5, %cst {dimension_numbers = #tpu.dot_dimension_numbers<[1], [0], [0], [1], [0, 0, 1, 1], [], []>} : vector<8x128xbf16>, vector<128x512xbf16>, vector<8x512xf32> -> vector<8x512xf32>
    %7 = arith.addf %3, %6 : vector<8x512xf32>
    %c0_6 = arith.constant 0 : index
    %c0_7 = arith.constant 0 : index
    %8 = vector.load %arg6[%c0_6, %c0_7] : memref<8x512xf32, #tpu.memory_space<vmem>>, vector<8x512xf32>
    tpu.vector_store %arg6[%c0_6, %c0_7], %7 {strides = array<i32>} : memref<8x512xf32, #tpu.memory_space<vmem>>, vector<8x512xf32>,
    %c0_i32_8 = arith.constant 0 : i32
    %9 = arith.cmpi eq, %arg1, %c0_i32_8 : i32
    %10 = arith.extui %9 : i1 to i32
    %c0_i32_9 = arith.constant 0 : i32
    %11 = arith.cmpi ne, %10, %c0_i32_9 : i32
    scf.if %11 {
      %c0_10 = arith.constant 0 : index
      %c0_11 = arith.constant 0 : index
      %12 = vector.load %arg6[%c0_10, %c0_11] : memref<8x512xf32, #tpu.memory_space<vmem>>, vector<8x512xf32>
      %c0_12 = arith.constant 0 : index
      %c0_13 = arith.constant 0 : index
      %13 = vector.load %arg4[%c0_12, %c0_13] : memref<1x512xf32, #tpu.memory_space<vmem>>, vector<1x512xf32>
      %14 = vector.broadcast %13 : vector<1x512xf32> to vector<8x512xf32>
      %15 = arith.addf %12, %14 : vector<8x512xf32>
      %cst_14 = arith.constant 0.000000e+00 : f32
      %16 = vector.broadcast %cst_14 : f32 to vector<8x512xf32>
      %17 = arith.maximumf %15, %16 : vector<8x512xf32>
      %cst_15 = arith.constant 6.000000e+00 : f32
      %18 = vector.broadcast %cst_15 : f32 to vector<8x512xf32>
      %19 = arith.minimumf %17, %18 : vector<8x512xf32>
      %20 = arith.truncf %19 : vector<8x512xf32> to vector<8x512xbf16>
      %c0_16 = arith.constant 0 : index
      %c0_17 = arith.constant 0 : index
      %21 = vector.load %arg5[%c0_16, %c0_17] : memref<8x512xbf16, #tpu.memory_space<vmem>>, vector<8x512xbf16>
      tpu.vector_store %arg5[%c0_16, %c0_17], %20 {strides = array<i32>} : memref<8x512xbf16, #tpu.memory_space<vmem>>, vector<8x512xbf16>,
    } else {
    }
    return
  }
  func.func @transform_0(%arg0: i32, %arg1: i32) -> (i32, i32) {
    %c0_i32 = arith.constant 0 : i32
    return %arg0, %arg1 : i32, i32
  }
  func.func @transform_1(%arg0: i32, %arg1: i32) -> (i32, i32) {
    %c0_i32 = arith.constant 0 : i32
    %c0_i32_0 = arith.constant 0 : i32
    return %arg1, %c0_i32 : i32, i32
  }
  func.func @transform_2(%arg0: i32, %arg1: i32) -> (i32, i32) {
    %c0_i32 = arith.constant 0 : i32
    %c0_i32_0 = arith.constant 0 : i32
    %c0_i32_1 = arith.constant 0 : i32
    return %c0_i32, %c0_i32_0 : i32, i32
  }
  func.func @transform_3(%arg0: i32, %arg1: i32) -> (i32, i32) {
    %c0_i32 = arith.constant 0 : i32
    %c0_i32_0 = arith.constant 0 : i32
    return %arg0, %c0_i32 : i32, i32
  }
}

module attributes {stable_mosaic.version = 11 : i64} {
  func.func @_matmul_kernel(%arg0: i32, %arg1: i32, %arg2: memref<8x128xbf16, #tpu.memory_space<vmem>>, %arg3: memref<128x10xbf16, #tpu.memory_space<vmem>>, %arg4: memref<1x10xf32, #tpu.memory_space<vmem>>, %arg5: memref<8x10xf32, #tpu.memory_space<vmem>>, %arg6: memref<8x10xf32, #tpu.memory_space<vmem>>) attributes {dimension_semantics = [#tpu.dimension_semantics<parallel>, #tpu.dimension_semantics<arbitrary>], iteration_bounds = array<i64: 1, 1>, scalar_prefetch = 0 : i64, scratch_operands = 1 : i64, tpu.core_type = #tpu.core_type<tc>, window_params = [{transform_indices = @transform_0, window_bounds = array<i64: 8, 128>}, {transform_indices = @transform_1, window_bounds = array<i64: 128, 10>}, {pipeline_mode = #tpu.pipeline_mode<synchronous>, transform_indices = @transform_2, window_bounds = array<i64: 1, 10>}, {transform_indices = @transform_3, window_bounds = array<i64: 8, 10>}]} {
    %c0_i32 = arith.constant 0 : i32
    %0 = arith.cmpi eq, %arg1, %c0_i32 : i32
    %1 = arith.extui %0 : i1 to i32
    %c0_i32_0 = arith.constant 0 : i32
    %2 = arith.cmpi ne, %1, %c0_i32_0 : i32
    scf.if %2 {
      %cst_10 = arith.constant 0.000000e+00 : f32
      %12 = vector.broadcast %cst_10 : f32 to vector<8x10xf32>
      %c0_11 = arith.constant 0 : index
      %c0_12 = arith.constant 0 : index
      %13 = vector.load %arg6[%c0_11, %c0_12] : memref<8x10xf32, #tpu.memory_space<vmem>>, vector<8x10xf32>
      tpu.vector_store %arg6[%c0_11, %c0_12], %12 {strides = array<i32>} : memref<8x10xf32, #tpu.memory_space<vmem>>, vector<8x10xf32>,
    } else {
    }
    %c0 = arith.constant 0 : index
    %c0_1 = arith.constant 0 : index
    %3 = vector.load %arg6[%c0, %c0_1] : memref<8x10xf32, #tpu.memory_space<vmem>>, vector<8x10xf32>
    %c0_2 = arith.constant 0 : index
    %c0_3 = arith.constant 0 : index
    %4 = vector.load %arg2[%c0_2, %c0_3] : memref<8x128xbf16, #tpu.memory_space<vmem>>, vector<8x128xbf16>
    %c0_4 = arith.constant 0 : index
    %c0_5 = arith.constant 0 : index
    %5 = vector.load %arg3[%c0_4, %c0_5] : memref<128x10xbf16, #tpu.memory_space<vmem>>, vector<128x10xbf16>
    %cst = arith.constant dense<0.000000e+00> : vector<8x10xf32>
    %6 = tpu.matmul %4, %5, %cst {dimension_numbers = #tpu.dot_dimension_numbers<[1], [0], [0], [1], [0, 0, 1, 1], [], []>} : vector<8x128xbf16>, vector<128x10xbf16>, vector<8x10xf32> -> vector<8x10xf32>
    %7 = arith.addf %3, %6 : vector<8x10xf32>
    %c0_6 = arith.constant 0 : index
    %c0_7 = arith.constant 0 : index
    %8 = vector.load %arg6[%c0_6, %c0_7] : memref<8x10xf32, #tpu.memory_space<vmem>>, vector<8x10xf32>
    tpu.vector_store %arg6[%c0_6, %c0_7], %7 {strides = array<i32>} : memref<8x10xf32, #tpu.memory_space<vmem>>, vector<8x10xf32>,
    %c0_i32_8 = arith.constant 0 : i32
    %9 = arith.cmpi eq, %arg1, %c0_i32_8 : i32
    %10 = arith.extui %9 : i1 to i32
    %c0_i32_9 = arith.constant 0 : i32
    %11 = arith.cmpi ne, %10, %c0_i32_9 : i32
    scf.if %11 {
      %c0_10 = arith.constant 0 : index
      %c0_11 = arith.constant 0 : index
      %12 = vector.load %arg6[%c0_10, %c0_11] : memref<8x10xf32, #tpu.memory_space<vmem>>, vector<8x10xf32>
      %c0_12 = arith.constant 0 : index
      %c0_13 = arith.constant 0 : index
      %13 = vector.load %arg4[%c0_12, %c0_13] : memref<1x10xf32, #tpu.memory_space<vmem>>, vector<1x10xf32>
      %14 = vector.broadcast %13 : vector<1x10xf32> to vector<8x10xf32>
      %15 = arith.addf %12, %14 : vector<8x10xf32>
      %c0_14 = arith.constant 0 : index
      %c0_15 = arith.constant 0 : index
      %16 = vector.load %arg5[%c0_14, %c0_15] : memref<8x10xf32, #tpu.memory_space<vmem>>, vector<8x10xf32>
      tpu.vector_store %arg5[%c0_14, %c0_15], %15 {strides = array<i32>} : memref<8x10xf32, #tpu.memory_space<vmem>>, vector<8x10xf32>,
    } else {
    }
    return
  }
  func.func @transform_0(%arg0: i32, %arg1: i32) -> (i32, i32) {
    %c0_i32 = arith.constant 0 : i32
    return %arg0, %arg1 : i32, i32
  }
  func.func @transform_1(%arg0: i32, %arg1: i32) -> (i32, i32) {
    %c0_i32 = arith.constant 0 : i32
    %c0_i32_0 = arith.constant 0 : i32
    return %arg1, %c0_i32 : i32, i32
  }
  func.func @transform_2(%arg0: i32, %arg1: i32) -> (i32, i32) {
    %c0_i32 = arith.constant 0 : i32
    %c0_i32_0 = arith.constant 0 : i32
    %c0_i32_1 = arith.constant 0 : i32
    return %c0_i32, %c0_i32_0 : i32, i32
  }
  func.func @transform_3(%arg0: i32, %arg1: i32) -> (i32, i32) {
    %c0_i32 = arith.constant 0 : i32
    %c0_i32_0 = arith.constant 0 : i32
    return %arg0, %c0_i32 : i32, i32
  }
}

module attributes {stable_mosaic.version = 11 : i64} {
  func.func @_matmul_kernel(%arg0: i32, %arg1: i32, %arg2: memref<8x256xbf16, #tpu.memory_space<vmem>>, %arg3: memref<256x128xbf16, #tpu.memory_space<vmem>>, %arg4: memref<1x128xf32, #tpu.memory_space<vmem>>, %arg5: memref<8x128xf32, #tpu.memory_space<vmem>>, %arg6: memref<8x128xf32, #tpu.memory_space<vmem>>, %arg7: memref<8x128xf32, #tpu.memory_space<vmem>>) attributes {dimension_semantics = [#tpu.dimension_semantics<parallel>, #tpu.dimension_semantics<arbitrary>], iteration_bounds = array<i64: 1, 2>, scalar_prefetch = 0 : i64, scratch_operands = 1 : i64, tpu.core_type = #tpu.core_type<tc>, window_params = [{transform_indices = @transform_0, window_bounds = array<i64: 8, 256>}, {transform_indices = @transform_1, window_bounds = array<i64: 256, 128>}, {pipeline_mode = #tpu.pipeline_mode<synchronous>, transform_indices = @transform_2, window_bounds = array<i64: 1, 128>}, {transform_indices = @transform_3, window_bounds = array<i64: 8, 128>}, {transform_indices = @transform_4, window_bounds = array<i64: 8, 128>}]} {
    %c0_i32 = arith.constant 0 : i32
    %0 = arith.cmpi eq, %arg1, %c0_i32 : i32
    %1 = arith.extui %0 : i1 to i32
    %c0_i32_0 = arith.constant 0 : i32
    %2 = arith.cmpi ne, %1, %c0_i32_0 : i32
    scf.if %2 {
      %cst_9 = arith.constant 0.000000e+00 : f32
      %12 = vector.broadcast %cst_9 : f32 to vector<8x128xf32>
      %c0_10 = arith.constant 0 : index
      %c0_11 = arith.constant 0 : index
      %13 = vector.load %arg7[%c0_10, %c0_11] : memref<8x128xf32, #tpu.memory_space<vmem>>, vector<8x128xf32>
      tpu.vector_store %arg7[%c0_10, %c0_11], %12 {strides = array<i32>} : memref<8x128xf32, #tpu.memory_space<vmem>>, vector<8x128xf32>,
    } else {
    }
    %c0 = arith.constant 0 : index
    %c0_1 = arith.constant 0 : index
    %3 = vector.load %arg7[%c0, %c0_1] : memref<8x128xf32, #tpu.memory_space<vmem>>, vector<8x128xf32>
    %c0_2 = arith.constant 0 : index
    %c0_3 = arith.constant 0 : index
    %4 = vector.load %arg2[%c0_2, %c0_3] : memref<8x256xbf16, #tpu.memory_space<vmem>>, vector<8x256xbf16>
    %c0_4 = arith.constant 0 : index
    %c0_5 = arith.constant 0 : index
    %5 = vector.load %arg3[%c0_4, %c0_5] : memref<256x128xbf16, #tpu.memory_space<vmem>>, vector<256x128xbf16>
    %cst = arith.constant dense<0.000000e+00> : vector<8x128xf32>
    %6 = tpu.matmul %4, %5, %cst {dimension_numbers = #tpu.dot_dimension_numbers<[1], [0], [0], [1], [0, 0, 1, 1], [], []>} : vector<8x256xbf16>, vector<256x128xbf16>, vector<8x128xf32> -> vector<8x128xf32>
    %7 = arith.addf %3, %6 : vector<8x128xf32>
    %c0_6 = arith.constant 0 : index
    %c0_7 = arith.constant 0 : index
    %8 = vector.load %arg7[%c0_6, %c0_7] : memref<8x128xf32, #tpu.memory_space<vmem>>, vector<8x128xf32>
    tpu.vector_store %arg7[%c0_6, %c0_7], %7 {strides = array<i32>} : memref<8x128xf32, #tpu.memory_space<vmem>>, vector<8x128xf32>,
    %c1_i32 = arith.constant 1 : i32
    %9 = arith.cmpi eq, %arg1, %c1_i32 : i32
    %10 = arith.extui %9 : i1 to i32
    %c0_i32_8 = arith.constant 0 : i32
    %11 = arith.cmpi ne, %10, %c0_i32_8 : i32
    scf.if %11 {
      %c0_9 = arith.constant 0 : index
      %c0_10 = arith.constant 0 : index
      %12 = vector.load %arg7[%c0_9, %c0_10] : memref<8x128xf32, #tpu.memory_space<vmem>>, vector<8x128xf32>
      %c0_11 = arith.constant 0 : index
      %c0_12 = arith.constant 0 : index
      %13 = vector.load %arg4[%c0_11, %c0_12] : memref<1x128xf32, #tpu.memory_space<vmem>>, vector<1x128xf32>
      %14 = vector.broadcast %13 : vector<1x128xf32> to vector<8x128xf32>
      %15 = arith.addf %12, %14 : vector<8x128xf32>
      %c0_13 = arith.constant 0 : index
      %c0_14 = arith.constant 0 : index
      %16 = vector.load %arg5[%c0_13, %c0_14] : memref<8x128xf32, #tpu.memory_space<vmem>>, vector<8x128xf32>
      %17 = arith.addf %15, %16 : vector<8x128xf32>
      %c0_15 = arith.constant 0 : index
      %c0_16 = arith.constant 0 : index
      %18 = vector.load %arg6[%c0_15, %c0_16] : memref<8x128xf32, #tpu.memory_space<vmem>>, vector<8x128xf32>
      tpu.vector_store %arg6[%c0_15, %c0_16], %17 {strides = array<i32>} : memref<8x128xf32, #tpu.memory_space<vmem>>, vector<8x128xf32>,
    } else {
    }
    return
  }
  func.func @transform_0(%arg0: i32, %arg1: i32) -> (i32, i32) {
    %c0_i32 = arith.constant 0 : i32
    return %arg0, %arg1 : i32, i32
  }
  func.func @transform_1(%arg0: i32, %arg1: i32) -> (i32, i32) {
    %c0_i32 = arith.constant 0 : i32
    %c0_i32_0 = arith.constant 0 : i32
    return %arg1, %c0_i32 : i32, i32
  }
  func.func @transform_2(%arg0: i32, %arg1: i32) -> (i32, i32) {
    %c0_i32 = arith.constant 0 : i32
    %c0_i32_0 = arith.constant 0 : i32
    %c0_i32_1 = arith.constant 0 : i32
    return %c0_i32, %c0_i32_0 : i32, i32
  }
  func.func @transform_3(%arg0: i32, %arg1: i32) -> (i32, i32) {
    %c0_i32 = arith.constant 0 : i32
    %c0_i32_0 = arith.constant 0 : i32
    return %arg0, %c0_i32 : i32, i32
  }
  func.func @transform_4(%arg0: i32, %arg1: i32) -> (i32, i32) {
    %c0_i32 = arith.constant 0 : i32
    %c0_i32_0 = arith.constant 0 : i32
    return %arg0, %c0_i32 : i32, i32
  }
}

</mosaic_0001>

<bundles_post_ra>
// kernel: _lambda_.63
= control target key start
LH: loop header
LB: loop body
LE: loop exit
PB: predicated region body
PF: predicated region fallthrough
CT: control target
= control target key end

     0   :  { %vm19_vm0 = vcmask 261120   ;;  %v484_v1 = vmov 0.0   ;;  %vm144_vm1 = vcmask 588800   ;;  %vm169_vm2 = vcmask 1043456   ;;  %s669_s1 = inlined_call_operand.vmem [shape: bf16[72,32], index: 1, kind: input, shape index: {}]   ;;  %s670_s0 = inlined_call_operand.vmem [shape: bf16[128,72], index: 0, kind: input, shape index: {}]   ;;  %s671_s2 = inlined_call_operand.vmem [shape: f32[1,32], index: 2, kind: input, shape index: {}]   ;;  %s672_s3 = inlined_call_operand.vmem [shape: f32[128,32], index: 3, kind: output, shape index: {}]  }
   0x1   :  { %v471_v0 = vld [vmem:[%s669_s1] sm:$0xff]   ;;  %22 = vst.msk [vmem:[#allocation2 + $0x10] sm:$0xff] %vm19_vm0, %v484_v1  ;;  %20 = vst.msk [vmem:[#allocation2] sm:$0xff] %vm19_vm0, %v484_v1  ;;  %v472_v2 = vld [vmem:[%s669_s1 + $0x8] sm:$0xff]  }
   0x2   :  { %21 = vst.msk [vmem:[#allocation2 + $0x8] sm:$0xff] %vm19_vm0, %v484_v1  ;;  %23 = vst.msk [vmem:[#allocation2 + $0x18] sm:$0xff] %vm19_vm0, %v484_v1  ;;  %432 = vmatprep.subr.bf16.mxu0 %v471_v0  ;;  %458 = vmatprep.subr.bf16.mxu1 %v471_v0  ;;  %v473_v3 = vld [vmem:[%s669_s1 + $0x10] sm:$0xff]   ;;  %v476_v4 = vld [vmem:[%s670_s0] sm:$0xff]  }
   0x3   :  { %24 = vst.msk [vmem:[#allocation2 + $0x20] sm:$0xff] %vm19_vm0, %v484_v1  ;;  %25 = vst.msk [vmem:[#allocation2 + $0x28] sm:$0xff] %vm19_vm0, %v484_v1  ;;  %433 = vmatpush3.bf16.msra.mxu0 %v471_v0  ;;  %463 = vmatpush3.bf16.msra.mxu1 %v471_v0  ;;  %v477_v5 = vld [vmem:[%s670_s0 + $0x20] sm:$0xff]   ;;  %v474_v6 = vld [vmem:[%s669_s1 + $0x18] sm:$0xff]  }
   0x4   :  { %26 = vst.msk [vmem:[#allocation2 + $0x30] sm:$0xff] %vm19_vm0, %v484_v1  ;;  %27 = vst.msk [vmem:[#allocation2 + $0x38] sm:$0xff] %vm19_vm0, %v484_v1  ;;  %434 = vmatprep.subr.bf16.mxu0 %v472_v2  ;;  %459 = vmatprep.subr.bf16.mxu1 %v472_v2  ;;  %v475_v7 = vld [vmem:[%s669_s1 + $0x20] ss:$0 sps:$4 sm:$0xff]   ;;  %v478_v9 = vld [vmem:[%s670_s0 + $0x8] sm:$0xff]  }
   0x5   :  { %28 = vst.msk [vmem:[#allocation2 + $0x40] sm:$0xff] %vm19_vm0, %v484_v1  ;;  %29 = vst.msk [vmem:[#allocation2 + $0x48] sm:$0xff] %vm19_vm0, %v484_v1  ;;  %442 = vmatprep.mubr.msk.bf16.mxu0 %vm144_vm1, %v476_v4  ;;  %450 = vmatprep.mubr.msk.bf16.mxu1 %vm144_vm1, %v477_v5  ;;  %v171_v8 = vsel %vm169_vm2, %v475_v7, 0  ;;  %v479_v10 = vld [vmem:[%s670_s0 + $0x28] sm:$0xff]   ;;  %v480_v11 = vld [vmem:[%s670_s0 + $0x10] sm:$0xff]  }
   0x6   :  { %30 = vst.msk [vmem:[#allocation2 + $0x50] sm:$0xff] %vm19_vm0, %v484_v1  ;;  %31 = vst.msk [vmem:[#allocation2 + $0x58] sm:$0xff] %vm19_vm0, %v484_v1  ;;  %v481_v12 = vld [vmem:[%s670_s0 + $0x30] sm:$0xff]   ;;  %v482_v13 = vld [vmem:[%s670_s0 + $0x18] sm:$0xff]  }
   0x7   :  { %32 = vst.msk [vmem:[#allocation2 + $0x60] sm:$0xff] %vm19_vm0, %v484_v1  ;;  %33 = vst.msk [vmem:[#allocation2 + $0x68] sm:$0xff] %vm19_vm0, %v484_v1  ;;  %435 = vmatpush3.bf16.msra.mxu0 %v472_v2  ;;  %464 = vmatpush3.bf16.msra.mxu1 %v472_v2  ;;  %v483_v14 = vld [vmem:[%s670_s0 + $0x38] sm:$0xff]   ;;  %v579_v43 = vld [vmem:[%s671_s2] ss:$0 sm:$0xff] }
   0x8   :  { %34 = vst.msk [vmem:[#allocation2 + $0x70] sm:$0xff] %vm19_vm0, %v484_v1  ;;  %35 = vst.msk [vmem:[#allocation2 + $0x78] sm:$0xff] %vm19_vm0, %v484_v1  ;;  %436 = vmatprep.subr.bf16.mxu0 %v473_v3  ;;  %460 = vmatprep.subr.bf16.mxu1 %v473_v3  ;;  %v38_v15 = vld [vmem:[#allocation2 + $0x10] sm:$0xff]  ;;  %v36_v17 = vld [vmem:[#allocation2] sm:$0xff] }
   0x9   :  { %v39_v21 = vld [vmem:[#allocation2 + $0x18] sm:$0xff]  ;;  %v37_v27 = vld [vmem:[#allocation2 + $0x8] sm:$0xff] }
   0xa   :  { %v40_v41 = vld [vmem:[#allocation2 + $0x20] sm:$0xff]  ;;  %v41_v52 = vld [vmem:[#allocation2 + $0x28] sm:$0xff] }
   0xb   :  { %437 = vmatpush3.bf16.msra.mxu0 %v473_v3  ;;  %465 = vmatpush3.bf16.msra.mxu1 %v473_v3  ;;  %v42_v39 = vld [vmem:[#allocation2 + $0x30] sm:$0xff]  ;;  %v43_v46 = vld [vmem:[#allocation2 + $0x38] sm:$0xff] }
   0xc   :  { %438 = vmatprep.subr.bf16.mxu0 %v474_v6  ;;  %461 = vmatprep.subr.bf16.mxu1 %v474_v6  ;;  %v44_v18 = vld [vmem:[#allocation2 + $0x40] sm:$0xff]  ;;  %v45_v28 = vld [vmem:[#allocation2 + $0x48] sm:$0xff] }
   0xd   :  { %v46_v16 = vld [vmem:[#allocation2 + $0x50] sm:$0xff]  ;;  %v47_v22 = vld [vmem:[#allocation2 + $0x58] sm:$0xff] }
   0xe   :  { %v48_v42 = vld [vmem:[#allocation2 + $0x60] sm:$0xff]  ;;  %v49_v53 = vld [vmem:[#allocation2 + $0x68] sm:$0xff] }
   0xf   :  { %439 = vmatpush3.bf16.msra.mxu0 %v474_v6  ;;  %466 = vmatpush3.bf16.msra.mxu1 %v474_v6  ;;  %v50_v40 = vld [vmem:[#allocation2 + $0x70] sm:$0xff]  ;;  %v51_v47 = vld [vmem:[#allocation2 + $0x78] sm:$0xff] }
  0x10   :  { %468 = vmatprep.subr.msk.bf16.mxu0 %vm169_vm2, %v475_v7  ;;  %469 = vmatprep.subr.msk.bf16.mxu1 %vm169_vm2, %v475_v7 }
  0x13   :  { %441 = vmatpush3.bf16.msra.mxu0 %v171_v8  ;;  %467 = vmatpush3.bf16.msra.mxu1 %v171_v8 }
  0x16   :  { %443 = vmatmul.mubr.msk.bf16.vlgmr.msra.gmra.mrb[0].mxu0 %vm144_vm1, %v478_v9  ;;  %451 = vmatmul.mubr.msk.bf16.vlgmr.msra.gmra.mrb[0].mxu1 %vm144_vm1, %v479_v10 }
  0x17   :  { %446 = vmatprep.mubr.msk.bf16.mxu0 %vm144_vm1, %v480_v11  ;;  %454 = vmatprep.mubr.msk.bf16.mxu1 %vm144_vm1, %v481_v12 }
  0x1e   :  { %447 = vmatmul.mubr.msk.bf16.gmra.mrb[4].mxu0 %vm144_vm1, %v482_v13  ;;  %455 = vmatmul.mubr.msk.bf16.gmra.mrb[4].mxu1 %vm144_vm1, %v483_v14 }
  0xe9   :  { %v444_v19 = vpop.f32.mrb[0].mxu0  ;;  %v452_v20 = vpop.f32.mrb[0].mxu1 }
  0xea   :  { %v272_v23 = vadd.f32 %v444_v19, %v38_v15  ;;  %v280_v24 = vadd.f32 %v452_v20, %v46_v16  ;;  %v207_v25 = vpop.f32.mrb[1].mxu0  ;;  %v239_v26 = vpop.f32.mrb[1].mxu1 }
  0xeb   :  { %v270_v29 = vadd.f32 %v207_v25, %v36_v17  ;;  %v278_v30 = vadd.f32 %v239_v26, %v44_v18  ;;  %v445_v31 = vpop.f32.mrb[2].mxu0  ;;  %v453_v32 = vpop.f32.mrb[2].mxu1 }
  0xec   :  { %289 = vst.msk [vmem:[#allocation2 + $0x10] sm:$0xff] %vm19_vm0, %v272_v23  ;;  %297 = vst.msk [vmem:[#allocation2 + $0x50] sm:$0xff] %vm19_vm0, %v280_v24  ;;  %v273_v33 = vadd.f32 %v445_v31, %v39_v21  ;;  %v281_v34 = vadd.f32 %v453_v32, %v47_v22  ;;  %v210_v35 = vpop.f32.mrb[3].mxu0  ;;  %v242_v36 = vpop.f32.mrb[3].mxu1 }
  0xed   :  { %287 = vst.msk [vmem:[#allocation2] sm:$0xff] %vm19_vm0, %v270_v29  ;;  %295 = vst.msk [vmem:[#allocation2 + $0x40] sm:$0xff] %vm19_vm0, %v278_v30  ;;  %v271_v37 = vadd.f32 %v210_v35, %v37_v27  ;;  %v279_v38 = vadd.f32 %v242_v36, %v45_v28 }
  0xee   :  { %290 = vst.msk [vmem:[#allocation2 + $0x18] sm:$0xff] %vm19_vm0, %v273_v33  ;;  %298 = vst.msk [vmem:[#allocation2 + $0x58] sm:$0xff] %vm19_vm0, %v281_v34 }
  0xef   :  { %288 = vst.msk [vmem:[#allocation2 + $0x8] sm:$0xff] %vm19_vm0, %v271_v37  ;;  %296 = vst.msk [vmem:[#allocation2 + $0x48] sm:$0xff] %vm19_vm0, %v279_v38 }
  0xf1   :  { %v448_v44 = vpop.f32.mrb[4].mxu0  ;;  %v456_v45 = vpop.f32.mrb[4].mxu1 }
  0xf2   :  { %v276_v48 = vadd.f32 %v448_v44, %v42_v39  ;;  %v284_v49 = vadd.f32 %v456_v45, %v50_v40  ;;  %v223_v50 = vpop.f32.mrb[5].mxu0  ;;  %v255_v51 = vpop.f32.mrb[5].mxu1 }
  0xf3   :  { %v308_v54 = vld [vmem:[#allocation2 + $0x10] sm:$0xff]  ;;  %v274_v56 = vadd.f32 %v223_v50, %v40_v41  ;;  %v282_v57 = vadd.f32 %v255_v51, %v48_v42  ;;  %v449_v58 = vpop.f32.mrb[6].mxu0  ;;  %v457_v59 = vpop.f32.mrb[6].mxu1 }
  0xf4   :  { %v316_v55 = vld [vmem:[#allocation2 + $0x50] sm:$0xff]  ;;  %v331_v60 = vadd.f32 %v579_v43, %v308_v54  ;;  %v306_v62 = vld [vmem:[#allocation2] sm:$0xff]  ;;  %293 = vst.msk [vmem:[#allocation2 + $0x30] sm:$0xff] %vm19_vm0, %v276_v48  ;;  %301 = vst.msk [vmem:[#allocation2 + $0x70] sm:$0xff] %vm19_vm0, %v284_v49  ;;  %v277_v0 = vadd.f32 %v449_v58, %v43_v46  ;;  %v285_v1 = vadd.f32 %v457_v59, %v51_v47  ;;  %v226_v2 = vpop.f32.mrb[7].mxu0  ;;  %v258_v3 = vpop.f32.mrb[7].mxu1 }
  0xf5   :  { %v339_v61 = vadd.f32 %v579_v43, %v316_v55  ;;  %v314_v63 = vld [vmem:[#allocation2 + $0x40] sm:$0xff]  ;;  %v329_v4 = vadd.f32 %v579_v43, %v306_v62  ;;  %v309_v6 = vld [vmem:[#allocation2 + $0x18] sm:$0xff]  ;;  %291 = vst.msk [vmem:[#allocation2 + $0x20] sm:$0xff] %vm19_vm0, %v274_v56  ;;  %299 = vst.msk [vmem:[#allocation2 + $0x60] sm:$0xff] %vm19_vm0, %v282_v57  ;;  %v275_v8 = vadd.f32 %v226_v2, %v41_v52 }
  0xf6   :  { %v337_v5 = vadd.f32 %v579_v43, %v314_v63  ;;  %v317_v7 = vld [vmem:[#allocation2 + $0x58] sm:$0xff]  ;;  %v283_v9 = vadd.f32 %v258_v3, %v49_v53  ;;  %v347_v10 = vmax.f32 %v331_v60, 0.0  ;;  %v332_v12 = vadd.f32 %v579_v43, %v309_v6  ;;  %v307_v14 = vld [vmem:[#allocation2 + $0x8] sm:$0xff]  ;;  %294 = vst.msk [vmem:[#allocation2 + $0x38] sm:$0xff] %vm19_vm0, %v277_v0  ;;  %302 = vst.msk [vmem:[#allocation2 + $0x78] sm:$0xff] %vm19_vm0, %v285_v1 }
  0xf7   :  { %v355_v11 = vmax.f32 %v339_v61, 0.0  ;;  %v340_v13 = vadd.f32 %v579_v43, %v317_v7  ;;  %v315_v15 = vld [vmem:[#allocation2 + $0x48] sm:$0xff]  ;;  %v345_v16 = vmax.f32 %v329_v4, 0.0  ;;  %v330_v18 = vadd.f32 %v579_v43, %v307_v14  ;;  %292 = vst.msk [vmem:[#allocation2 + $0x28] sm:$0xff] %vm19_vm0, %v275_v8 }
  0xf8   :  { %v353_v17 = vmax.f32 %v337_v5, 0.0  ;;  %v338_v19 = vadd.f32 %v579_v43, %v315_v15  ;;  %300 = vst.msk [vmem:[#allocation2 + $0x68] sm:$0xff] %vm19_vm0, %v283_v9  ;;  %v363_v20 = vmin.f32 %v347_v10, 6.0  ;;  %v348_v22 = vmax.f32 %v332_v12, 0.0 }
  0xf9   :  { %v371_v21 = vmin.f32 %v355_v11, 6.0  ;;  %v356_v23 = vmax.f32 %v340_v13, 0.0  ;;  %v361_v24 = vmin.f32 %v345_v16, 6.0  ;;  %v346_v26 = vmax.f32 %v330_v18, 0.0 }
  0xfa   :  { %v369_v25 = vmin.f32 %v353_v17, 6.0  ;;  %v354_v27 = vmax.f32 %v338_v19, 0.0  ;;  %379 = vst.msk [vmem:[%s672_s3 + $0x10] sm:$0xff] %vm19_vm0, %v363_v20  ;;  %v364_v28 = vmin.f32 %v348_v22, 6.0 }
  0xfb   :  { %387 = vst.msk [vmem:[%s672_s3 + $0x50] sm:$0xff] %vm19_vm0, %v371_v21  ;;  %v372_v29 = vmin.f32 %v356_v23, 6.0  ;;  %377 = vst.msk [vmem:[%s672_s3] sm:$0xff] %vm19_vm0, %v361_v24  ;;  %v362_v30 = vmin.f32 %v346_v26, 6.0  ;;  %v312_v32 = vld [vmem:[#allocation2 + $0x30] sm:$0xff] }
  0xfc   :  { %385 = vst.msk [vmem:[%s672_s3 + $0x40] sm:$0xff] %vm19_vm0, %v369_v25  ;;  %v370_v31 = vmin.f32 %v354_v27, 6.0  ;;  %v320_v33 = vld [vmem:[#allocation2 + $0x70] sm:$0xff]  ;;  %380 = vst.msk [vmem:[%s672_s3 + $0x18] sm:$0xff] %vm19_vm0, %v364_v28  ;;  %v335_v34 = vadd.f32 %v579_v43, %v312_v32  ;;  %v310_v36 = vld [vmem:[#allocation2 + $0x20] sm:$0xff] }
  0xfd   :  { %388 = vst.msk [vmem:[%s672_s3 + $0x58] sm:$0xff] %vm19_vm0, %v372_v29  ;;  %v343_v35 = vadd.f32 %v579_v43, %v320_v33  ;;  %v318_v37 = vld [vmem:[#allocation2 + $0x60] sm:$0xff]  ;;  %378 = vst.msk [vmem:[%s672_s3 + $0x8] sm:$0xff] %vm19_vm0, %v362_v30  ;;  %v333_v38 = vadd.f32 %v579_v43, %v310_v36  ;;  %v313_v40 = vld [vmem:[#allocation2 + $0x38] sm:$0xff] }
  0xfe   :  { %386 = vst.msk [vmem:[%s672_s3 + $0x48] sm:$0xff] %vm19_vm0, %v370_v31  ;;  %v341_v39 = vadd.f32 %v579_v43, %v318_v37  ;;  %v321_v41 = vld [vmem:[#allocation2 + $0x78] sm:$0xff]  ;;  %v351_v42 = vmax.f32 %v335_v34, 0.0  ;;  %v336_v45 = vadd.f32 %v579_v43, %v313_v40  ;;  %v311_v47 = vld [vmem:[#allocation2 + $0x28] sm:$0xff] }
  0xff   :  { %v359_v44 = vmax.f32 %v343_v35, 0.0  ;;  %v344_v46 = vadd.f32 %v579_v43, %v321_v41  ;;  %v319_v48 = vld [vmem:[#allocation2 + $0x68] sm:$0xff]  ;;  %v349_v49 = vmax.f32 %v333_v38, 0.0  ;;  %v334_v51 = vadd.f32 %v579_v43, %v311_v47 }
 0x100   :  { %v357_v50 = vmax.f32 %v341_v39, 0.0  ;;  %v342_v52 = vadd.f32 %v579_v43, %v319_v48  ;;  %v367_v53 = vmin.f32 %v351_v42, 6.0  ;;  %v352_v55 = vmax.f32 %v336_v45, 0.0 }
 0x101   :  { %v375_v54 = vmin.f32 %v359_v44, 6.0  ;;  %v360_v56 = vmax.f32 %v344_v46, 0.0  ;;  %v365_v57 = vmin.f32 %v349_v49, 6.0  ;;  %v350_v59 = vmax.f32 %v334_v51, 0.0 }
 0x102   :  { %v373_v58 = vmin.f32 %v357_v50, 6.0  ;;  %v358_v60 = vmax.f32 %v342_v52, 0.0  ;;  %383 = vst.msk [vmem:[%s672_s3 + $0x30] sm:$0xff] %vm19_vm0, %v367_v53  ;;  %v368_v61 = vmin.f32 %v352_v55, 6.0 }
 0x103   :  { %391 = vst.msk [vmem:[%s672_s3 + $0x70] sm:$0xff] %vm19_vm0, %v375_v54  ;;  %v376_v43 = vmin.f32 %v360_v56, 6.0  ;;  %381 = vst.msk [vmem:[%s672_s3 + $0x20] sm:$0xff] %vm19_vm0, %v365_v57  ;;  %v366_v62 = vmin.f32 %v350_v59, 6.0 }
 0x104   :  { %389 = vst.msk [vmem:[%s672_s3 + $0x60] sm:$0xff] %vm19_vm0, %v373_v58  ;;  %v374_v63 = vmin.f32 %v358_v60, 6.0  ;;  %384 = vst.msk [vmem:[%s672_s3 + $0x38] sm:$0xff] %vm19_vm0, %v368_v61 }
 0x105   :  { %392 = vst.msk [vmem:[%s672_s3 + $0x78] sm:$0xff] %vm19_vm0, %v376_v43  ;;  %382 = vst.msk [vmem:[%s672_s3 + $0x28] sm:$0xff] %vm19_vm0, %v366_v62 }
 0x106   :  { %390 = vst.msk [vmem:[%s672_s3 + $0x68] sm:$0xff] %vm19_vm0, %v374_v63 }

// kernel: _lambda_.62
= control target key start
LH: loop header
LB: loop body
LE: loop exit
PB: predicated region body
PF: predicated region fallthrough
CT: control target
= control target key end

     0   :  { %vm484_vm0 = vcmask 1044480   ;;  %vm485_vm1 = vcmask 1045504   ;;  %vm387_vm2 = vcmask 220160   ;;  %v1453_v1 = vmov 65535   ;;  %s2140_s1 = inlined_call_operand.vmem [shape: bf16[27,8], index: 1, kind: input, shape index: {}]   ;;  %s2141_s0 = inlined_call_operand.vmem [shape: bf16[512,27], index: 0, kind: input, shape index: {}]   ;;  %s2142_s2 = inlined_call_operand.vmem [shape: f32[1,8], index: 2, kind: input, shape index: {}]   ;;  %s2143_s3 = inlined_call_operand.vmem [shape: f32[512,8], index: 3, kind: output, shape index: {}]  }
   0x1   :  { %v1418_v0 = vld [vmem:[%s2140_s1] sm:$0xff]   ;;  %v486_v2 = vsel %vm484_vm0, 4294967295, %v1453_v1  ;;  %v1419_v3 = vld [vmem:[%s2140_s1 + $0x8] sm:$0x3f]   ;;  %vm19_vm3 = vcmask 64512   ;;  %v1454_v10 = vmov 0.0  }
   0x2   :  { %1344 = vmatprep.subr.bf16.mxu0 %v1418_v0  ;;  %1412 = vmatprep.subr.bf16.mxu1 %v1418_v0  ;;  %v487_v4 = vsel %vm485_vm1, %v486_v2, 0  ;;  %v1420_v5 = vld [vmem:[%s2141_s0] sm:$0xff]   ;;  %v1495_v8 = vld [vmem:[%s2141_s0 + $0x8] sm:$0xff]   ;;  %22 = vst.msk [vmem:[#allocation2 + $0x10] sm:$0xff] %vm19_vm3, %v1454_v10  ;;  %20 = vst.msk [vmem:[#allocation2] sm:$0xff] %vm19_vm3, %v1454_v10 }
   0x3   :  { %1345 = vmatpush3.bf16.msra.mxu0 %v1418_v0  ;;  %1414 = vmatpush3.bf16.msra.mxu1 %v1418_v0  ;;  %v1484_v6 = vand.u32 %v1419_v3, %v487_v4  ;;  %v1489_v7 = vld [vmem:[%s2141_s0 + $0x80] sm:$0xff]   ;;  %v1502_v9 = vld [vmem:[%s2141_s0 + $0x88] sm:$0xff]   ;;  %21 = vst.msk [vmem:[#allocation2 + $0x8] sm:$0xff] %vm19_vm3, %v1454_v10  ;;  %23 = vst.msk [vmem:[#allocation2 + $0x18] sm:$0xff] %vm19_vm3, %v1454_v10 }
   0x4   :  { %1348 = vmatprep.mubr.msk.bf16.mxu0 %vm387_vm2, %v1420_v5  ;;  %24 = vst.msk [vmem:[#allocation2 + $0x20] sm:$0xff] %vm19_vm3, %v1454_v10  ;;  %25 = vst.msk [vmem:[#allocation2 + $0x28] sm:$0xff] %vm19_vm3, %v1454_v10  ;;  %1380 = vmatprep.mubr.msk.bf16.mxu1 %vm387_vm2, %v1489_v7  ;;  %v1424_v11 = vld [vmem:[%s2141_s0 + $0x10] sm:$0xff]   ;;  %v1426_v13 = vld [vmem:[%s2141_s0 + $0x18] sm:$0xff]  }
   0x5   :  { %1346 = vmatprep.subr.bf16.mxu0 %v1484_v6  ;;  %1413 = vmatprep.subr.bf16.mxu1 %v1484_v6  ;;  %26 = vst.msk [vmem:[#allocation2 + $0x30] sm:$0xff] %vm19_vm3, %v1454_v10  ;;  %27 = vst.msk [vmem:[#allocation2 + $0x38] sm:$0xff] %vm19_vm3, %v1454_v10  ;;  %v1425_v12 = vld [vmem:[%s2141_s0 + $0x90] sm:$0xff]   ;;  %v1427_v14 = vld [vmem:[%s2141_s0 + $0x98] sm:$0xff]  }
   0x6   :  { %28 = vst.msk [vmem:[#allocation2 + $0x40] sm:$0xff] %vm19_vm3, %v1454_v10  ;;  %29 = vst.msk [vmem:[#allocation2 + $0x48] sm:$0xff] %vm19_vm3, %v1454_v10  ;;  %v1428_v15 = vld [vmem:[%s2141_s0 + $0x20] sm:$0xff]   ;;  %v1430_v17 = vld [vmem:[%s2141_s0 + $0x28] sm:$0xff]  }
   0x7   :  { %30 = vst.msk [vmem:[#allocation2 + $0x50] sm:$0xff] %vm19_vm3, %v1454_v10  ;;  %31 = vst.msk [vmem:[#allocation2 + $0x58] sm:$0xff] %vm19_vm3, %v1454_v10  ;;  %1347 = vmatpush3.bf16.msra.mxu0 %v1484_v6  ;;  %1415 = vmatpush3.bf16.msra.mxu1 %v1484_v6  ;;  %v1429_v16 = vld [vmem:[%s2141_s0 + $0xa0] sm:$0xff]   ;;  %v1431_v18 = vld [vmem:[%s2141_s0 + $0xa8] sm:$0xff]  }
   0x8   :  { %32 = vst.msk [vmem:[#allocation2 + $0x60] sm:$0xff] %vm19_vm3, %v1454_v10  ;;  %33 = vst.msk [vmem:[#allocation2 + $0x68] sm:$0xff] %vm19_vm3, %v1454_v10  ;;  %v1432_v19 = vld [vmem:[%s2141_s0 + $0x30] sm:$0xff]   ;;  %v1434_v21 = vld [vmem:[%s2141_s0 + $0x38] sm:$0xff]  }
   0x9   :  { %34 = vst.msk [vmem:[#allocation2 + $0x70] sm:$0xff] %vm19_vm3, %v1454_v10  ;;  %35 = vst.msk [vmem:[#allocation2 + $0x78] sm:$0xff] %vm19_vm3, %v1454_v10  ;;  %v1433_v20 = vld [vmem:[%s2141_s0 + $0xb0] sm:$0xff]   ;;  %v1435_v22 = vld [vmem:[%s2141_s0 + $0xb8] sm:$0xff]  }
   0xa   :  { %36 = vst.msk [vmem:[#allocation2 + $0x80] sm:$0xff] %vm19_vm3, %v1454_v10  ;;  %37 = vst.msk [vmem:[#allocation2 + $0x88] sm:$0xff] %vm19_vm3, %v1454_v10  ;;  %1349 = vmatmul.mubr.msk.bf16.vlgmr.msra.gmra.mrb[0].mxu0 %vm387_vm2, %v1495_v8  ;;  %1381 = vmatmul.mubr.msk.bf16.vlgmr.msra.gmra.mrb[0].mxu1 %vm387_vm2, %v1502_v9  ;;  %v1436_v23 = vld [vmem:[%s2141_s0 + $0x40] sm:$0xff]   ;;  %v1438_v25 = vld [vmem:[%s2141_s0 + $0x48] sm:$0xff]  }
   0xb   :  { %38 = vst.msk [vmem:[#allocation2 + $0x90] sm:$0xff] %vm19_vm3, %v1454_v10  ;;  %39 = vst.msk [vmem:[#allocation2 + $0x98] sm:$0xff] %vm19_vm3, %v1454_v10  ;;  %1352 = vmatprep.mubr.msk.bf16.mxu0 %vm387_vm2, %v1424_v11  ;;  %1384 = vmatprep.mubr.msk.bf16.mxu1 %vm387_vm2, %v1425_v12  ;;  %v1437_v24 = vld [vmem:[%s2141_s0 + $0xc0] sm:$0xff]   ;;  %v1439_v26 = vld [vmem:[%s2141_s0 + $0xc8] sm:$0xff]  }
   0xc   :  { %40 = vst.msk [vmem:[#allocation2 + $0xa0] sm:$0xff] %vm19_vm3, %v1454_v10  ;;  %41 = vst.msk [vmem:[#allocation2 + $0xa8] sm:$0xff] %vm19_vm3, %v1454_v10  ;;  %v1440_v27 = vld [vmem:[%s2141_s0 + $0x50] sm:$0xff]   ;;  %v1442_v29 = vld [vmem:[%s2141_s0 + $0x58] sm:$0xff]  }
   0xd   :  { %42 = vst.msk [vmem:[#allocation2 + $0xb0] sm:$0xff] %vm19_vm3, %v1454_v10  ;;  %43 = vst.msk [vmem:[#allocation2 + $0xb8] sm:$0xff] %vm19_vm3, %v1454_v10  ;;  %v1441_v28 = vld [vmem:[%s2141_s0 + $0xd0] sm:$0xff]   ;;  %v1443_v30 = vld [vmem:[%s2141_s0 + $0xd8] sm:$0xff]  }
   0xe   :  { %44 = vst.msk [vmem:[#allocation2 + $0xc0] sm:$0xff] %vm19_vm3, %v1454_v10  ;;  %45 = vst.msk [vmem:[#allocation2 + $0xc8] sm:$0xff] %vm19_vm3, %v1454_v10  ;;  %v1444_v31 = vld [vmem:[%s2141_s0 + $0x60] sm:$0xff]   ;;  %v1446_v33 = vld [vmem:[%s2141_s0 + $0x68] sm:$0xff]  }
   0xf   :  { %46 = vst.msk [vmem:[#allocation2 + $0xd0] sm:$0xff] %vm19_vm3, %v1454_v10  ;;  %47 = vst.msk [vmem:[#allocation2 + $0xd8] sm:$0xff] %vm19_vm3, %v1454_v10  ;;  %v1445_v32 = vld [vmem:[%s2141_s0 + $0xe0] sm:$0xff]   ;;  %v1447_v34 = vld [vmem:[%s2141_s0 + $0xe8] sm:$0xff]  }
  0x10   :  { %48 = vst.msk [vmem:[#allocation2 + $0xe0] sm:$0xff] %vm19_vm3, %v1454_v10  ;;  %49 = vst.msk [vmem:[#allocation2 + $0xe8] sm:$0xff] %vm19_vm3, %v1454_v10  ;;  %v1448_v35 = vld [vmem:[%s2141_s0 + $0x70] sm:$0xff]   ;;  %v1450_v37 = vld [vmem:[%s2141_s0 + $0x78] sm:$0xff]  }
  0x11   :  { %50 = vst.msk [vmem:[#allocation2 + $0xf0] sm:$0xff] %vm19_vm3, %v1454_v10  ;;  %51 = vst.msk [vmem:[#allocation2 + $0xf8] sm:$0xff] %vm19_vm3, %v1454_v10  ;;  %v1449_v36 = vld [vmem:[%s2141_s0 + $0xf0] sm:$0xff]   ;;  %v1451_v38 = vld [vmem:[%s2141_s0 + $0xf8] sm:$0xff]  }
  0x12   :  { %52 = vst.msk [vmem:[#allocation2 + $0x100] sm:$0xff] %vm19_vm3, %v1454_v10  ;;  %53 = vst.msk [vmem:[#allocation2 + $0x108] sm:$0xff] %vm19_vm3, %v1454_v10  ;;  %1353 = vmatmul.mubr.msk.bf16.gmra.mrb[4].mxu0 %vm387_vm2, %v1426_v13  ;;  %1385 = vmatmul.mubr.msk.bf16.gmra.mrb[4].mxu1 %vm387_vm2, %v1427_v14  ;;  %v86_v39 = vld [vmem:[#allocation2 + $0x10] sm:$0xff]  ;;  %v84_v41 = vld [vmem:[#allocation2] sm:$0xff] }
  0x13   :  { %54 = vst.msk [vmem:[#allocation2 + $0x110] sm:$0xff] %vm19_vm3, %v1454_v10  ;;  %55 = vst.msk [vmem:[#allocation2 + $0x118] sm:$0xff] %vm19_vm3, %v1454_v10  ;;  %1356 = vmatprep.mubr.msk.bf16.mxu0 %vm387_vm2, %v1428_v15  ;;  %1388 = vmatprep.mubr.msk.bf16.mxu1 %vm387_vm2, %v1429_v16  ;;  %v87_v45 = vld [vmem:[#allocation2 + $0x18] sm:$0xff]  ;;  %v85_v51 = vld [vmem:[#allocation2 + $0x8] sm:$0xff] }
  0x14   :  { %56 = vst.msk [vmem:[#allocation2 + $0x120] sm:$0xff] %vm19_vm3, %v1454_v10  ;;  %57 = vst.msk [vmem:[#allocation2 + $0x128] sm:$0xff] %vm19_vm3, %v1454_v10  ;;  %v90_v63 = vld [vmem:[#allocation2 + $0x30] sm:$0xff]  ;;  %v88_v1 = vld [vmem:[#allocation2 + $0x20] sm:$0xff] }
  0x15   :  { %58 = vst.msk [vmem:[#allocation2 + $0x130] sm:$0xff] %vm19_vm3, %v1454_v10  ;;  %59 = vst.msk [vmem:[#allocation2 + $0x138] sm:$0xff] %vm19_vm3, %v1454_v10  ;;  %v1763_v3 = vld [vmem:[%s2142_s2] ss:$0 sm:$0xff]  ;;  %v91_v6 = vld [vmem:[#allocation2 + $0x38] sm:$0xff] }
  0x16   :  { %60 = vst.msk [vmem:[#allocation2 + $0x140] sm:$0xff] %vm19_vm3, %v1454_v10  ;;  %61 = vst.msk [vmem:[#allocation2 + $0x148] sm:$0xff] %vm19_vm3, %v1454_v10  ;;  %v89_v12 = vld [vmem:[#allocation2 + $0x28] sm:$0xff] }
  0x17   :  { %62 = vst.msk [vmem:[#allocation2 + $0x150] sm:$0xff] %vm19_vm3, %v1454_v10  ;;  %63 = vst.msk [vmem:[#allocation2 + $0x158] sm:$0xff] %vm19_vm3, %v1454_v10 }
  0x18   :  { %64 = vst.msk [vmem:[#allocation2 + $0x160] sm:$0xff] %vm19_vm3, %v1454_v10  ;;  %65 = vst.msk [vmem:[#allocation2 + $0x168] sm:$0xff] %vm19_vm3, %v1454_v10 }
  0x19   :  { %66 = vst.msk [vmem:[#allocation2 + $0x170] sm:$0xff] %vm19_vm3, %v1454_v10  ;;  %67 = vst.msk [vmem:[#allocation2 + $0x178] sm:$0xff] %vm19_vm3, %v1454_v10  ;;  %v116_v42 = vld [vmem:[#allocation2 + $0x100] sm:$0xff]  ;;  %v117_v52 = vld [vmem:[#allocation2 + $0x108] sm:$0xff] }
  0x1a   :  { %68 = vst.msk [vmem:[#allocation2 + $0x180] sm:$0xff] %vm19_vm3, %v1454_v10  ;;  %69 = vst.msk [vmem:[#allocation2 + $0x188] sm:$0xff] %vm19_vm3, %v1454_v10  ;;  %1357 = vmatmul.mubr.msk.bf16.gmra.mrb[8].mxu0 %vm387_vm2, %v1430_v17  ;;  %1389 = vmatmul.mubr.msk.bf16.gmra.mrb[8].mxu1 %vm387_vm2, %v1431_v18  ;;  %v118_v40 = vld [vmem:[#allocation2 + $0x110] sm:$0xff]  ;;  %v119_v46 = vld [vmem:[#allocation2 + $0x118] sm:$0xff] }
  0x1b   :  { %70 = vst.msk [vmem:[#allocation2 + $0x190] sm:$0xff] %vm19_vm3, %v1454_v10  ;;  %71 = vst.msk [vmem:[#allocation2 + $0x198] sm:$0xff] %vm19_vm3, %v1454_v10  ;;  %1360 = vmatprep.mubr.msk.bf16.mxu0 %vm387_vm2, %v1432_v19  ;;  %1392 = vmatprep.mubr.msk.bf16.mxu1 %vm387_vm2, %v1433_v20  ;;  %v120_v2 = vld [vmem:[#allocation2 + $0x120] sm:$0xff]  ;;  %v121_v13 = vld [vmem:[#allocation2 + $0x128] sm:$0xff] }
  0x1c   :  { %72 = vst.msk [vmem:[#allocation2 + $0x1a0] sm:$0xff] %vm19_vm3, %v1454_v10  ;;  %73 = vst.msk [vmem:[#allocation2 + $0x1a8] sm:$0xff] %vm19_vm3, %v1454_v10  ;;  %v122_v0 = vld [vmem:[#allocation2 + $0x130] sm:$0xff]  ;;  %v123_v7 = vld [vmem:[#allocation2 + $0x138] sm:$0xff] }
  0x1d   :  { %74 = vst.msk [vmem:[#allocation2 + $0x1b0] sm:$0xff] %vm19_vm3, %v1454_v10  ;;  %75 = vst.msk [vmem:[#allocation2 + $0x1b8] sm:$0xff] %vm19_vm3, %v1454_v10 }
  0x1e   :  { %76 = vst.msk [vmem:[#allocation2 + $0x1c0] sm:$0xff] %vm19_vm3, %v1454_v10  ;;  %77 = vst.msk [vmem:[#allocation2 + $0x1c8] sm:$0xff] %vm19_vm3, %v1454_v10 }
  0x1f   :  { %78 = vst.msk [vmem:[#allocation2 + $0x1d0] sm:$0xff] %vm19_vm3, %v1454_v10  ;;  %79 = vst.msk [vmem:[#allocation2 + $0x1d8] sm:$0xff] %vm19_vm3, %v1454_v10 }
  0x20   :  { %80 = vst.msk [vmem:[#allocation2 + $0x1e0] sm:$0xff] %vm19_vm3, %v1454_v10  ;;  %81 = vst.msk [vmem:[#allocation2 + $0x1e8] sm:$0xff] %vm19_vm3, %v1454_v10 }
  0x21   :  { %82 = vst.msk [vmem:[#allocation2 + $0x1f0] sm:$0xff] %vm19_vm3, %v1454_v10  ;;  %83 = vst.msk [vmem:[#allocation2 + $0x1f8] sm:$0xff] %vm19_vm3, %v1454_v10 }
  0x22   :  { %1361 = vmatmul.mubr.msk.bf16.gmra.mrb[12].mxu0 %vm387_vm2, %v1434_v21  ;;  %1393 = vmatmul.mubr.msk.bf16.gmra.mrb[12].mxu1 %vm387_vm2, %v1435_v22 }
  0x23   :  { %1364 = vmatprep.mubr.msk.bf16.mxu0 %vm387_vm2, %v1436_v23  ;;  %1396 = vmatprep.mubr.msk.bf16.mxu1 %vm387_vm2, %v1437_v24 }
  0x2a   :  { %1365 = vmatmul.mubr.msk.bf16.gmra.mrb[16].mxu0 %vm387_vm2, %v1438_v25  ;;  %1397 = vmatmul.mubr.msk.bf16.gmra.mrb[16].mxu1 %vm387_vm2, %v1439_v26 }
  0x2b   :  { %1368 = vmatprep.mubr.msk.bf16.mxu0 %vm387_vm2, %v1440_v27  ;;  %1400 = vmatprep.mubr.msk.bf16.mxu1 %vm387_vm2, %v1441_v28 }
  0x32   :  { %1369 = vmatmul.mubr.msk.bf16.gmra.mrb[20].mxu0 %vm387_vm2, %v1442_v29  ;;  %1401 = vmatmul.mubr.msk.bf16.gmra.mrb[20].mxu1 %vm387_vm2, %v1443_v30 }
  0x33   :  { %1372 = vmatprep.mubr.msk.bf16.mxu0 %vm387_vm2, %v1444_v31  ;;  %1404 = vmatprep.mubr.msk.bf16.mxu1 %vm387_vm2, %v1445_v32 }
  0x3a   :  { %1373 = vmatmul.mubr.msk.bf16.gmra.mrb[24].mxu0 %vm387_vm2, %v1446_v33  ;;  %1405 = vmatmul.mubr.msk.bf16.gmra.mrb[24].mxu1 %vm387_vm2, %v1447_v34 }
  0x3b   :  { %1376 = vmatprep.mubr.msk.bf16.mxu0 %vm387_vm2, %v1448_v35  ;;  %1408 = vmatprep.mubr.msk.bf16.mxu1 %vm387_vm2, %v1449_v36 }
  0x42   :  { %1377 = vmatmul.mubr.msk.bf16.gmra.mrb[28].mxu0 %vm387_vm2, %v1450_v37  ;;  %1409 = vmatmul.mubr.msk.bf16.gmra.mrb[28].mxu1 %vm387_vm2, %v1451_v38 }
  0xdd   :  { %v1350_v43 = vpop.f32.mrb[0].mxu0  ;;  %v1382_v44 = vpop.f32.mrb[0].mxu1 }
  0xde   :  { %v782_v47 = vadd.f32 %v1350_v43, %v86_v39  ;;  %v814_v48 = vadd.f32 %v1382_v44, %v118_v40  ;;  %v525_v49 = vpop.f32.mrb[1].mxu0  ;;  %v653_v50 = vpop.f32.mrb[1].mxu1  ;;  %v94_v40 = vld [vmem:[#allocation2 + $0x50] sm:$0xff] }
  0xdf   :  { %v780_v53 = vadd.f32 %v525_v49, %v84_v41  ;;  %v812_v54 = vadd.f32 %v653_v50, %v116_v42  ;;  %v1351_v55 = vpop.f32.mrb[2].mxu0  ;;  %v1383_v56 = vpop.f32.mrb[2].mxu1 }
  0xe0   :  { %847 = vst.msk [vmem:[#allocation2 + $0x10] sm:$0xff] %vm19_vm3, %v782_v47  ;;  %879 = vst.msk [vmem:[#allocation2 + $0x110] sm:$0xff] %vm19_vm3, %v814_v48  ;;  %v783_v57 = vadd.f32 %v1351_v55, %v87_v45  ;;  %v815_v58 = vadd.f32 %v1383_v56, %v119_v46  ;;  %v528_v59 = vpop.f32.mrb[3].mxu0  ;;  %v656_v60 = vpop.f32.mrb[3].mxu1  ;;  %v126_v45 = vld [vmem:[#allocation2 + $0x150] sm:$0xff]  ;;  %v92_v46 = vld [vmem:[#allocation2 + $0x40] sm:$0xff] }
  0xe1   :  { %845 = vst.msk [vmem:[#allocation2] sm:$0xff] %vm19_vm3, %v780_v53  ;;  %877 = vst.msk [vmem:[#allocation2 + $0x100] sm:$0xff] %vm19_vm3, %v812_v54  ;;  %v781_v61 = vadd.f32 %v528_v59, %v85_v51  ;;  %v813_v62 = vadd.f32 %v656_v60, %v117_v52  ;;  %v124_v47 = vld [vmem:[#allocation2 + $0x140] sm:$0xff]  ;;  %v95_v52 = vld [vmem:[#allocation2 + $0x58] sm:$0xff] }
  0xe2   :  { %848 = vst.msk [vmem:[#allocation2 + $0x18] sm:$0xff] %vm19_vm3, %v783_v57  ;;  %880 = vst.msk [vmem:[#allocation2 + $0x118] sm:$0xff] %vm19_vm3, %v815_v58  ;;  %v127_v53 = vld [vmem:[#allocation2 + $0x158] sm:$0xff] }
  0xe3   :  { %846 = vst.msk [vmem:[#allocation2 + $0x8] sm:$0xff] %vm19_vm3, %v781_v61  ;;  %878 = vst.msk [vmem:[#allocation2 + $0x108] sm:$0xff] %vm19_vm3, %v813_v62 }
  0xe5   :  { %v1354_v4 = vpop.f32.mrb[4].mxu0  ;;  %v1386_v5 = vpop.f32.mrb[4].mxu1 }
  0xe6   :  { %v786_v8 = vadd.f32 %v1354_v4, %v90_v63  ;;  %v818_v9 = vadd.f32 %v1386_v5, %v122_v0  ;;  %v541_v10 = vpop.f32.mrb[5].mxu0  ;;  %v669_v11 = vpop.f32.mrb[5].mxu1  ;;  %v125_v4 = vld [vmem:[#allocation2 + $0x148] sm:$0xff] }
  0xe7   :  { %v914_v14 = vld [vmem:[#allocation2 + $0x10] sm:$0xff]  ;;  %v784_v16 = vadd.f32 %v541_v10, %v88_v1  ;;  %v816_v17 = vadd.f32 %v669_v11, %v120_v2  ;;  %v1355_v18 = vpop.f32.mrb[6].mxu0  ;;  %v1387_v19 = vpop.f32.mrb[6].mxu1  ;;  %v93_v2 = vld [vmem:[#allocation2 + $0x48] sm:$0xff] }
  0xe8   :  { %v946_v15 = vld [vmem:[#allocation2 + $0x110] sm:$0xff]  ;;  %v985_v20 = vadd.f32 %v1763_v3, %v914_v14  ;;  %v912_v22 = vld [vmem:[#allocation2] sm:$0xff]  ;;  %851 = vst.msk [vmem:[#allocation2 + $0x30] sm:$0xff] %vm19_vm3, %v786_v8  ;;  %883 = vst.msk [vmem:[#allocation2 + $0x130] sm:$0xff] %vm19_vm3, %v818_v9  ;;  %v787_v24 = vadd.f32 %v1355_v18, %v91_v6  ;;  %v819_v25 = vadd.f32 %v1387_v19, %v123_v7  ;;  %v544_v26 = vpop.f32.mrb[7].mxu0  ;;  %v672_v27 = vpop.f32.mrb[7].mxu1 }
  0xe9   :  { %v1017_v21 = vadd.f32 %v1763_v3, %v946_v15  ;;  %v944_v23 = vld [vmem:[#allocation2 + $0x100] sm:$0xff]  ;;  %v983_v28 = vadd.f32 %v1763_v3, %v912_v22  ;;  %v915_v30 = vld [vmem:[#allocation2 + $0x18] sm:$0xff]  ;;  %849 = vst.msk [vmem:[#allocation2 + $0x20] sm:$0xff] %vm19_vm3, %v784_v16  ;;  %881 = vst.msk [vmem:[#allocation2 + $0x120] sm:$0xff] %vm19_vm3, %v816_v17  ;;  %v785_v32 = vadd.f32 %v544_v26, %v89_v12 }
  0xea   :  { %v1015_v29 = vadd.f32 %v1763_v3, %v944_v23  ;;  %v947_v31 = vld [vmem:[#allocation2 + $0x118] sm:$0xff]  ;;  %v817_v33 = vadd.f32 %v672_v27, %v121_v13  ;;  %v1049_v34 = vmax.f32 %v985_v20, 0.0  ;;  %v986_v36 = vadd.f32 %v1763_v3, %v915_v30  ;;  %v913_v38 = vld [vmem:[#allocation2 + $0x8] sm:$0xff]  ;;  %852 = vst.msk [vmem:[#allocation2 + $0x38] sm:$0xff] %vm19_vm3, %v787_v24  ;;  %884 = vst.msk [vmem:[#allocation2 + $0x138] sm:$0xff] %vm19_vm3, %v819_v25 }
  0xeb   :  { %v1081_v35 = vmax.f32 %v1017_v21, 0.0  ;;  %v1018_v37 = vadd.f32 %v1763_v3, %v947_v31  ;;  %v945_v39 = vld [vmem:[#allocation2 + $0x108] sm:$0xff]  ;;  %v1047_v41 = vmax.f32 %v983_v28, 0.0  ;;  %v984_v43 = vadd.f32 %v1763_v3, %v913_v38  ;;  %850 = vst.msk [vmem:[#allocation2 + $0x28] sm:$0xff] %vm19_vm3, %v785_v32  ;;  %v130_v38 = vld [vmem:[#allocation2 + $0x170] sm:$0xff] }
  0xec   :  { %v1079_v42 = vmax.f32 %v1015_v29, 0.0  ;;  %v1016_v44 = vadd.f32 %v1763_v3, %v945_v39  ;;  %882 = vst.msk [vmem:[#allocation2 + $0x128] sm:$0xff] %vm19_vm3, %v817_v33  ;;  %v1113_v48 = vmin.f32 %v1049_v34, 6.0  ;;  %v1050_v50 = vmax.f32 %v986_v36, 0.0  ;;  %v98_v33 = vld [vmem:[#allocation2 + $0x70] sm:$0xff]  ;;  %v96_v39 = vld [vmem:[#allocation2 + $0x60] sm:$0xff] }
  0xed   :  { %v1145_v49 = vmin.f32 %v1081_v35, 6.0  ;;  %v1082_v51 = vmax.f32 %v1018_v37, 0.0  ;;  %v1111_v54 = vmin.f32 %v1047_v41, 6.0  ;;  %v1048_v56 = vmax.f32 %v984_v43, 0.0  ;;  %v1358_v58 = vpop.f32.mrb[8].mxu0  ;;  %v1390_v59 = vpop.f32.mrb[8].mxu1 }
  0xee   :  { %v1143_v55 = vmin.f32 %v1079_v42, 6.0  ;;  %v1080_v57 = vmax.f32 %v1016_v44, 0.0  ;;  %1177 = vst.msk [vmem:[%s2143_s3 + $0x10] sm:$0xff] %vm19_vm3, %v1113_v48  ;;  %v1114_v60 = vmin.f32 %v1050_v50, 6.0  ;;  %v790_v62 = vadd.f32 %v1358_v58, %v94_v40  ;;  %v557_v0 = vpop.f32.mrb[9].mxu0  ;;  %v685_v1 = vpop.f32.mrb[9].mxu1 }
  0xef   :  { %1209 = vst.msk [vmem:[%s2143_s3 + $0x110] sm:$0xff] %vm19_vm3, %v1145_v49  ;;  %v1146_v61 = vmin.f32 %v1082_v51, 6.0  ;;  %v822_v63 = vadd.f32 %v1390_v59, %v126_v45  ;;  %1175 = vst.msk [vmem:[%s2143_s3] sm:$0xff] %vm19_vm3, %v1111_v54  ;;  %v1112_v5 = vmin.f32 %v1048_v56, 6.0  ;;  %v918_v7 = vld [vmem:[#allocation2 + $0x30] sm:$0xff]  ;;  %v788_v9 = vadd.f32 %v557_v0, %v92_v46  ;;  %v1359_v11 = vpop.f32.mrb[10].mxu0 }
  0xf0   :  { %1207 = vst.msk [vmem:[%s2143_s3 + $0x100] sm:$0xff] %vm19_vm3, %v1143_v55  ;;  %v1144_v6 = vmin.f32 %v1080_v57, 6.0  ;;  %v950_v8 = vld [vmem:[#allocation2 + $0x130] sm:$0xff]  ;;  %v820_v10 = vadd.f32 %v685_v1, %v124_v47  ;;  %v1391_v12 = vpop.f32.mrb[10].mxu1  ;;  %1178 = vst.msk [vmem:[%s2143_s3 + $0x18] sm:$0xff] %vm19_vm3, %v1114_v60  ;;  %v989_v13 = vadd.f32 %v1763_v3, %v918_v7  ;;  %v916_v15 = vld [vmem:[#allocation2 + $0x20] sm:$0xff]  ;;  %v791_v17 = vadd.f32 %v1359_v11, %v95_v52 }
  0xf1   :  { %1210 = vst.msk [vmem:[%s2143_s3 + $0x118] sm:$0xff] %vm19_vm3, %v1146_v61  ;;  %v1021_v14 = vadd.f32 %v1763_v3, %v950_v8  ;;  %v948_v16 = vld [vmem:[#allocation2 + $0x120] sm:$0xff]  ;;  %855 = vst.msk [vmem:[#allocation2 + $0x50] sm:$0xff] %vm19_vm3, %v790_v62  ;;  %v823_v18 = vadd.f32 %v1391_v12, %v127_v53  ;;  %v560_v19 = vpop.f32.mrb[11].mxu0  ;;  %v688_v20 = vpop.f32.mrb[11].mxu1  ;;  %v987_v21 = vadd.f32 %v1763_v3, %v916_v15  ;;  %v919_v23 = vld [vmem:[#allocation2 + $0x38] sm:$0xff] }
  0xf2   :  { %887 = vst.msk [vmem:[#allocation2 + $0x150] sm:$0xff] %vm19_vm3, %v822_v63  ;;  %1176 = vst.msk [vmem:[%s2143_s3 + $0x8] sm:$0xff] %vm19_vm3, %v1112_v5  ;;  %v1019_v22 = vadd.f32 %v1763_v3, %v948_v16  ;;  %v951_v24 = vld [vmem:[#allocation2 + $0x138] sm:$0xff]  ;;  %v789_v25 = vadd.f32 %v560_v19, %v93_v2  ;;  %v821_v26 = vadd.f32 %v688_v20, %v125_v4  ;;  %v1053_v27 = vmax.f32 %v989_v13, 0.0  ;;  %v917_v31 = vld [vmem:[#allocation2 + $0x28] sm:$0xff] }
  0xf3   :  { %1208 = vst.msk [vmem:[%s2143_s3 + $0x108] sm:$0xff] %vm19_vm3, %v1144_v6  ;;  %853 = vst.msk [vmem:[#allocation2 + $0x40] sm:$0xff] %vm19_vm3, %v788_v9  ;;  %v1085_v28 = vmax.f32 %v1021_v14, 0.0  ;;  %v990_v29 = vadd.f32 %v1763_v3, %v919_v23  ;;  %v1022_v30 = vadd.f32 %v1763_v3, %v951_v24  ;;  %v949_v32 = vld [vmem:[#allocation2 + $0x128] sm:$0xff]  ;;  %v1051_v34 = vmax.f32 %v987_v21, 0.0  ;;  %v128_v40 = vld [vmem:[#allocation2 + $0x160] sm:$0xff] }
  0xf4   :  { %885 = vst.msk [vmem:[#allocation2 + $0x140] sm:$0xff] %vm19_vm3, %v820_v10  ;;  %856 = vst.msk [vmem:[#allocation2 + $0x58] sm:$0xff] %vm19_vm3, %v791_v17  ;;  %v1083_v35 = vmax.f32 %v1019_v22, 0.0  ;;  %v988_v36 = vadd.f32 %v1763_v3, %v917_v31  ;;  %v1020_v37 = vadd.f32 %v1763_v3, %v949_v32  ;;  %v1117_v41 = vmin.f32 %v1053_v27, 6.0  ;;  %v99_v45 = vld [vmem:[#allocation2 + $0x78] sm:$0xff]  ;;  %v97_v59 = vld [vmem:[#allocation2 + $0x68] sm:$0xff] }
  0xf5   :  { %888 = vst.msk [vmem:[#allocation2 + $0x158] sm:$0xff] %vm19_vm3, %v823_v18  ;;  %854 = vst.msk [vmem:[#allocation2 + $0x48] sm:$0xff] %vm19_vm3, %v789_v25  ;;  %v1149_v42 = vmin.f32 %v1085_v28, 6.0  ;;  %v1054_v43 = vmax.f32 %v990_v29, 0.0  ;;  %v1086_v44 = vmax.f32 %v1022_v30, 0.0  ;;  %v131_v46 = vld [vmem:[#allocation2 + $0x178] sm:$0xff] }
  0xf6   :  { %886 = vst.msk [vmem:[#allocation2 + $0x148] sm:$0xff] %vm19_vm3, %v821_v26  ;;  %v1115_v47 = vmin.f32 %v1051_v34, 6.0  ;;  %v1147_v48 = vmin.f32 %v1083_v35, 6.0  ;;  %v1052_v49 = vmax.f32 %v988_v36, 0.0  ;;  %v1084_v50 = vmax.f32 %v1020_v37, 0.0  ;;  %v1362_v51 = vpop.f32.mrb[12].mxu0 }
  0xf7   :  { %v1394_v52 = vpop.f32.mrb[12].mxu1  ;;  %1181 = vst.msk [vmem:[%s2143_s3 + $0x30] sm:$0xff] %vm19_vm3, %v1117_v41  ;;  %1213 = vst.msk [vmem:[%s2143_s3 + $0x130] sm:$0xff] %vm19_vm3, %v1149_v42  ;;  %v1118_v53 = vmin.f32 %v1054_v43, 6.0  ;;  %v1150_v54 = vmin.f32 %v1086_v44, 6.0  ;;  %v794_v55 = vadd.f32 %v1362_v51, %v98_v33  ;;  %v573_v57 = vpop.f32.mrb[13].mxu0 }
  0xf8   :  { %v826_v56 = vadd.f32 %v1394_v52, %v130_v38  ;;  %v701_v58 = vpop.f32.mrb[13].mxu1  ;;  %v129_v60 = vld [vmem:[#allocation2 + $0x168] sm:$0xff]  ;;  %1179 = vst.msk [vmem:[%s2143_s3 + $0x20] sm:$0xff] %vm19_vm3, %v1115_v47  ;;  %1211 = vst.msk [vmem:[%s2143_s3 + $0x120] sm:$0xff] %vm19_vm3, %v1147_v48  ;;  %v1116_v61 = vmin.f32 %v1052_v49, 6.0  ;;  %v1148_v62 = vmin.f32 %v1084_v50, 6.0  ;;  %v792_v1 = vadd.f32 %v573_v57, %v96_v39 }
  0xf9   :  { %v922_v63 = vld [vmem:[#allocation2 + $0x50] sm:$0xff]  ;;  %v824_v2 = vadd.f32 %v701_v58, %v128_v40  ;;  %v1363_v4 = vpop.f32.mrb[14].mxu0  ;;  %v1395_v5 = vpop.f32.mrb[14].mxu1  ;;  %1182 = vst.msk [vmem:[%s2143_s3 + $0x38] sm:$0xff] %vm19_vm3, %v1118_v53  ;;  %1214 = vst.msk [vmem:[%s2143_s3 + $0x138] sm:$0xff] %vm19_vm3, %v1150_v54  ;;  %v100_v32 = vld [vmem:[#allocation2 + $0x80] sm:$0xff] }
  0xfa   :  { %v954_v0 = vld [vmem:[#allocation2 + $0x150] sm:$0xff]  ;;  %v993_v6 = vadd.f32 %v1763_v3, %v922_v63  ;;  %v920_v8 = vld [vmem:[#allocation2 + $0x40] sm:$0xff]  ;;  %859 = vst.msk [vmem:[#allocation2 + $0x70] sm:$0xff] %vm19_vm3, %v794_v55  ;;  %891 = vst.msk [vmem:[#allocation2 + $0x170] sm:$0xff] %vm19_vm3, %v826_v56  ;;  %v795_v10 = vadd.f32 %v1363_v4, %v99_v45  ;;  %v827_v11 = vadd.f32 %v1395_v5, %v131_v46  ;;  %v576_v12 = vpop.f32.mrb[15].mxu0  ;;  %v704_v13 = vpop.f32.mrb[15].mxu1 }
  0xfb   :  { %v1025_v7 = vadd.f32 %v1763_v3, %v954_v0  ;;  %v952_v9 = vld [vmem:[#allocation2 + $0x140] sm:$0xff]  ;;  %1180 = vst.msk [vmem:[%s2143_s3 + $0x28] sm:$0xff] %vm19_vm3, %v1116_v61  ;;  %1212 = vst.msk [vmem:[%s2143_s3 + $0x128] sm:$0xff] %vm19_vm3, %v1148_v62  ;;  %v991_v14 = vadd.f32 %v1763_v3, %v920_v8  ;;  %v923_v16 = vld [vmem:[#allocation2 + $0x58] sm:$0xff]  ;;  %v793_v18 = vadd.f32 %v576_v12, %v97_v59 }
  0xfc   :  { %v1023_v15 = vadd.f32 %v1763_v3, %v952_v9  ;;  %v955_v17 = vld [vmem:[#allocation2 + $0x158] sm:$0xff]  ;;  %857 = vst.msk [vmem:[#allocation2 + $0x60] sm:$0xff] %vm19_vm3, %v792_v1  ;;  %889 = vst.msk [vmem:[#allocation2 + $0x160] sm:$0xff] %vm19_vm3, %v824_v2  ;;  %v825_v19 = vadd.f32 %v704_v13, %v129_v60  ;;  %v1057_v20 = vmax.f32 %v993_v6, 0.0  ;;  %v994_v22 = vadd.f32 %v1763_v3, %v923_v16  ;;  %v921_v24 = vld [vmem:[#allocation2 + $0x48] sm:$0xff] }
  0xfd   :  { %v1089_v21 = vmax.f32 %v1025_v7, 0.0  ;;  %v1026_v23 = vadd.f32 %v1763_v3, %v955_v17  ;;  %v953_v25 = vld [vmem:[#allocation2 + $0x148] sm:$0xff]  ;;  %860 = vst.msk [vmem:[#allocation2 + $0x78] sm:$0xff] %vm19_vm3, %v795_v10  ;;  %892 = vst.msk [vmem:[#allocation2 + $0x178] sm:$0xff] %vm19_vm3, %v827_v11  ;;  %v102_v26 = vld [vmem:[#allocation2 + $0x90] sm:$0xff]  ;;  %v1055_v27 = vmax.f32 %v991_v14, 0.0  ;;  %v992_v29 = vadd.f32 %v1763_v3, %v921_v24 }
  0xfe   :  { %v1087_v28 = vmax.f32 %v1023_v15, 0.0  ;;  %v1024_v30 = vadd.f32 %v1763_v3, %v953_v25  ;;  %858 = vst.msk [vmem:[#allocation2 + $0x68] sm:$0xff] %vm19_vm3, %v793_v18  ;;  %890 = vst.msk [vmem:[#allocation2 + $0x168] sm:$0xff] %vm19_vm3, %v825_v19  ;;  %v134_v31 = vld [vmem:[#allocation2 + $0x190] sm:$0xff]  ;;  %v132_v33 = vld [vmem:[#allocation2 + $0x180] sm:$0xff]  ;;  %v1121_v34 = vmin.f32 %v1057_v20, 6.0 }
  0xff   :  { %v1153_v35 = vmin.f32 %v1089_v21, 6.0  ;;  %v1058_v36 = vmax.f32 %v994_v22, 0.0  ;;  %v1090_v37 = vmax.f32 %v1026_v23, 0.0  ;;  %v103_v38 = vld [vmem:[#allocation2 + $0x98] sm:$0xff]  ;;  %v1119_v40 = vmin.f32 %v1055_v27, 6.0  ;;  %v1366_v44 = vpop.f32.mrb[16].mxu0 }
 0x100   :  { %v135_v39 = vld [vmem:[#allocation2 + $0x198] sm:$0xff]  ;;  %v1151_v41 = vmin.f32 %v1087_v28, 6.0  ;;  %v1056_v42 = vmax.f32 %v992_v29, 0.0  ;;  %v1088_v43 = vmax.f32 %v1024_v30, 0.0  ;;  %v1398_v45 = vpop.f32.mrb[16].mxu1  ;;  %1185 = vst.msk [vmem:[%s2143_s3 + $0x50] sm:$0xff] %vm19_vm3, %v1121_v34  ;;  %v798_v48 = vadd.f32 %v1366_v44, %v102_v26 }
 0x101   :  { %1217 = vst.msk [vmem:[%s2143_s3 + $0x150] sm:$0xff] %vm19_vm3, %v1153_v35  ;;  %v1122_v46 = vmin.f32 %v1058_v36, 6.0  ;;  %v1154_v47 = vmin.f32 %v1090_v37, 6.0  ;;  %v830_v49 = vadd.f32 %v1398_v45, %v134_v31  ;;  %v589_v50 = vpop.f32.mrb[17].mxu0  ;;  %v717_v51 = vpop.f32.mrb[17].mxu1  ;;  %v101_v52 = vld [vmem:[#allocation2 + $0x88] sm:$0xff] }
 0x102   :  { %v133_v53 = vld [vmem:[#allocation2 + $0x188] sm:$0xff]  ;;  %1183 = vst.msk [vmem:[%s2143_s3 + $0x40] sm:$0xff] %vm19_vm3, %v1119_v40  ;;  %1215 = vst.msk [vmem:[%s2143_s3 + $0x140] sm:$0xff] %vm19_vm3, %v1151_v41  ;;  %v1120_v54 = vmin.f32 %v1056_v42, 6.0  ;;  %v1152_v55 = vmin.f32 %v1088_v43, 6.0  ;;  %v926_v56 = vld [vmem:[#allocation2 + $0x70] sm:$0xff]  ;;  %v796_v58 = vadd.f32 %v589_v50, %v100_v32  ;;  %v828_v59 = vadd.f32 %v717_v51, %v132_v33 }
 0x103   :  { %v958_v57 = vld [vmem:[#allocation2 + $0x170] sm:$0xff]  ;;  %v1367_v60 = vpop.f32.mrb[18].mxu0  ;;  %v1399_v61 = vpop.f32.mrb[18].mxu1  ;;  %1186 = vst.msk [vmem:[%s2143_s3 + $0x58] sm:$0xff] %vm19_vm3, %v1122_v46  ;;  %1218 = vst.msk [vmem:[%s2143_s3 + $0x158] sm:$0xff] %vm19_vm3, %v1154_v47  ;;  %v997_v62 = vadd.f32 %v1763_v3, %v926_v56  ;;  %v924_v0 = vld [vmem:[#allocation2 + $0x60] sm:$0xff] }
 0x104   :  { %v1029_v63 = vadd.f32 %v1763_v3, %v958_v57  ;;  %v956_v1 = vld [vmem:[#allocation2 + $0x160] sm:$0xff]  ;;  %863 = vst.msk [vmem:[#allocation2 + $0x90] sm:$0xff] %vm19_vm3, %v798_v48  ;;  %895 = vst.msk [vmem:[#allocation2 + $0x190] sm:$0xff] %vm19_vm3, %v830_v49  ;;  %v799_v2 = vadd.f32 %v1367_v60, %v103_v38  ;;  %v831_v4 = vadd.f32 %v1399_v61, %v135_v39  ;;  %v592_v5 = vpop.f32.mrb[19].mxu0  ;;  %v720_v6 = vpop.f32.mrb[19].mxu1  ;;  %v927_v9 = vld [vmem:[#allocation2 + $0x78] sm:$0xff] }
 0x105   :  { %1184 = vst.msk [vmem:[%s2143_s3 + $0x48] sm:$0xff] %vm19_vm3, %v1120_v54  ;;  %1216 = vst.msk [vmem:[%s2143_s3 + $0x148] sm:$0xff] %vm19_vm3, %v1152_v55  ;;  %v995_v7 = vadd.f32 %v1763_v3, %v924_v0  ;;  %v1027_v8 = vadd.f32 %v1763_v3, %v956_v1  ;;  %v959_v10 = vld [vmem:[#allocation2 + $0x178] sm:$0xff]  ;;  %v797_v11 = vadd.f32 %v592_v5, %v101_v52  ;;  %v1061_v13 = vmax.f32 %v997_v62, 0.0  ;;  %v925_v17 = vld [vmem:[#allocation2 + $0x68] sm:$0xff]  ;;  %v1370_v37 = vpop.f32.mrb[20].mxu0 }
 0x106   :  { %861 = vst.msk [vmem:[#allocation2 + $0x80] sm:$0xff] %vm19_vm3, %v796_v58  ;;  %893 = vst.msk [vmem:[#allocation2 + $0x180] sm:$0xff] %vm19_vm3, %v828_v59  ;;  %v829_v12 = vadd.f32 %v720_v6, %v133_v53  ;;  %v1093_v14 = vmax.f32 %v1029_v63, 0.0  ;;  %v998_v15 = vadd.f32 %v1763_v3, %v927_v9  ;;  %v1030_v16 = vadd.f32 %v1763_v3, %v959_v10  ;;  %v957_v18 = vld [vmem:[#allocation2 + $0x168] sm:$0xff]  ;;  %v106_v19 = vld [vmem:[#allocation2 + $0xb0] sm:$0xff]  ;;  %v1402_v38 = vpop.f32.mrb[20].mxu1 }
 0x107   :  { %864 = vst.msk [vmem:[#allocation2 + $0x98] sm:$0xff] %vm19_vm3, %v799_v2  ;;  %896 = vst.msk [vmem:[#allocation2 + $0x198] sm:$0xff] %vm19_vm3, %v831_v4  ;;  %v1059_v20 = vmax.f32 %v995_v7, 0.0  ;;  %v1091_v21 = vmax.f32 %v1027_v8, 0.0  ;;  %v996_v22 = vadd.f32 %v1763_v3, %v925_v17  ;;  %v1028_v23 = vadd.f32 %v1763_v3, %v957_v18  ;;  %v138_v24 = vld [vmem:[#allocation2 + $0x1b0] sm:$0xff]  ;;  %v104_v25 = vld [vmem:[#allocation2 + $0xa0] sm:$0xff] }
 0x108   :  { %862 = vst.msk [vmem:[#allocation2 + $0x88] sm:$0xff] %vm19_vm3, %v797_v11  ;;  %894 = vst.msk [vmem:[#allocation2 + $0x188] sm:$0xff] %vm19_vm3, %v829_v12  ;;  %v136_v26 = vld [vmem:[#allocation2 + $0x1a0] sm:$0xff]  ;;  %v1125_v27 = vmin.f32 %v1061_v13, 6.0  ;;  %v1157_v28 = vmin.f32 %v1093_v14, 6.0  ;;  %v1062_v29 = vmax.f32 %v998_v15, 0.0  ;;  %v802_v41 = vadd.f32 %v1370_v37, %v106_v19 }
 0x109   :  { %v1094_v30 = vmax.f32 %v1030_v16, 0.0  ;;  %v107_v31 = vld [vmem:[#allocation2 + $0xb8] sm:$0xff]  ;;  %v1123_v33 = vmin.f32 %v1059_v20, 6.0  ;;  %v1155_v34 = vmin.f32 %v1091_v21, 6.0  ;;  %v1060_v35 = vmax.f32 %v996_v22, 0.0  ;;  %v605_v43 = vpop.f32.mrb[21].mxu0 }
 0x10a   :  { %v139_v32 = vld [vmem:[#allocation2 + $0x1b8] sm:$0xff]  ;;  %v1092_v36 = vmax.f32 %v1028_v23, 0.0  ;;  %1189 = vst.msk [vmem:[%s2143_s3 + $0x70] sm:$0xff] %vm19_vm3, %v1125_v27  ;;  %1221 = vst.msk [vmem:[%s2143_s3 + $0x170] sm:$0xff] %vm19_vm3, %v1157_v28  ;;  %v1126_v39 = vmin.f32 %v1062_v29, 6.0  ;;  %v834_v42 = vadd.f32 %v1402_v38, %v138_v24  ;;  %v733_v44 = vpop.f32.mrb[21].mxu1  ;;  %v800_v51 = vadd.f32 %v605_v43, %v104_v25 }
 0x10b   :  { %v1158_v40 = vmin.f32 %v1094_v30, 6.0  ;;  %v105_v45 = vld [vmem:[#allocation2 + $0xa8] sm:$0xff]  ;;  %1187 = vst.msk [vmem:[%s2143_s3 + $0x60] sm:$0xff] %vm19_vm3, %v1123_v33  ;;  %1219 = vst.msk [vmem:[%s2143_s3 + $0x160] sm:$0xff] %vm19_vm3, %v1155_v34  ;;  %v1124_v47 = vmin.f32 %v1060_v35, 6.0  ;;  %v930_v49 = vld [vmem:[#allocation2 + $0x90] sm:$0xff]  ;;  %v832_v52 = vadd.f32 %v733_v44, %v136_v26 }
 0x10c   :  { %v137_v46 = vld [vmem:[#allocation2 + $0x1a8] sm:$0xff]  ;;  %v1156_v48 = vmin.f32 %v1092_v36, 6.0  ;;  %v962_v50 = vld [vmem:[#allocation2 + $0x190] sm:$0xff]  ;;  %v1371_v53 = vpop.f32.mrb[22].mxu0  ;;  %v1403_v54 = vpop.f32.mrb[22].mxu1  ;;  %1190 = vst.msk [vmem:[%s2143_s3 + $0x78] sm:$0xff] %vm19_vm3, %v1126_v39  ;;  %v1001_v55 = vadd.f32 %v1763_v3, %v930_v49 }
 0x10d   :  { %1222 = vst.msk [vmem:[%s2143_s3 + $0x178] sm:$0xff] %vm19_vm3, %v1158_v40  ;;  %v1033_v56 = vadd.f32 %v1763_v3, %v962_v50  ;;  %v928_v57 = vld [vmem:[#allocation2 + $0x80] sm:$0xff]  ;;  %867 = vst.msk [vmem:[#allocation2 + $0xb0] sm:$0xff] %vm19_vm3, %v802_v41  ;;  %v803_v59 = vadd.f32 %v1371_v53, %v107_v31  ;;  %v835_v60 = vadd.f32 %v1403_v54, %v139_v32  ;;  %v608_v61 = vpop.f32.mrb[23].mxu0  ;;  %v736_v62 = vpop.f32.mrb[23].mxu1  ;;  %v110_v12 = vld [vmem:[#allocation2 + $0xd0] sm:$0xff] }
 0x10e   :  { %v960_v58 = vld [vmem:[#allocation2 + $0x180] sm:$0xff]  ;;  %899 = vst.msk [vmem:[#allocation2 + $0x1b0] sm:$0xff] %vm19_vm3, %v834_v42  ;;  %1188 = vst.msk [vmem:[%s2143_s3 + $0x68] sm:$0xff] %vm19_vm3, %v1124_v47  ;;  %v999_v63 = vadd.f32 %v1763_v3, %v928_v57  ;;  %v931_v1 = vld [vmem:[#allocation2 + $0x98] sm:$0xff]  ;;  %v801_v4 = vadd.f32 %v608_v61, %v105_v45  ;;  %v833_v5 = vadd.f32 %v736_v62, %v137_v46  ;;  %v1065_v6 = vmax.f32 %v1001_v55, 0.0  ;;  %v1374_v30 = vpop.f32.mrb[24].mxu0 }
 0x10f   :  { %1220 = vst.msk [vmem:[%s2143_s3 + $0x168] sm:$0xff] %vm19_vm3, %v1156_v48  ;;  %v1031_v0 = vadd.f32 %v1763_v3, %v960_v58  ;;  %v963_v2 = vld [vmem:[#allocation2 + $0x198] sm:$0xff]  ;;  %865 = vst.msk [vmem:[#allocation2 + $0xa0] sm:$0xff] %vm19_vm3, %v800_v51  ;;  %v1097_v7 = vmax.f32 %v1033_v56, 0.0  ;;  %v1002_v8 = vadd.f32 %v1763_v3, %v931_v1  ;;  %v929_v10 = vld [vmem:[#allocation2 + $0x88] sm:$0xff]  ;;  %v1406_v31 = vpop.f32.mrb[24].mxu1  ;;  %v806_v34 = vadd.f32 %v1374_v30, %v110_v12 }
 0x110   :  { %897 = vst.msk [vmem:[#allocation2 + $0x1a0] sm:$0xff] %vm19_vm3, %v832_v52  ;;  %v1034_v9 = vadd.f32 %v1763_v3, %v963_v2  ;;  %v961_v11 = vld [vmem:[#allocation2 + $0x188] sm:$0xff]  ;;  %868 = vst.msk [vmem:[#allocation2 + $0xb8] sm:$0xff] %vm19_vm3, %v803_v59  ;;  %v1063_v13 = vmax.f32 %v999_v63, 0.0  ;;  %v1000_v15 = vadd.f32 %v1763_v3, %v929_v10  ;;  %v142_v17 = vld [vmem:[#allocation2 + $0x1d0] sm:$0xff]  ;;  %v1129_v20 = vmin.f32 %v1065_v6, 6.0 }
 0x111   :  { %900 = vst.msk [vmem:[#allocation2 + $0x1b8] sm:$0xff] %vm19_vm3, %v835_v60  ;;  %v1095_v14 = vmax.f32 %v1031_v0, 0.0  ;;  %v1032_v16 = vadd.f32 %v1763_v3, %v961_v11  ;;  %866 = vst.msk [vmem:[#allocation2 + $0xa8] sm:$0xff] %vm19_vm3, %v801_v4  ;;  %v108_v18 = vld [vmem:[#allocation2 + $0xc0] sm:$0xff]  ;;  %v1161_v21 = vmin.f32 %v1097_v7, 6.0  ;;  %v1066_v22 = vmax.f32 %v1002_v8, 0.0 }
 0x112   :  { %898 = vst.msk [vmem:[#allocation2 + $0x1a8] sm:$0xff] %vm19_vm3, %v833_v5  ;;  %v140_v19 = vld [vmem:[#allocation2 + $0x1c0] sm:$0xff]  ;;  %v1098_v23 = vmax.f32 %v1034_v9, 0.0  ;;  %v111_v24 = vld [vmem:[#allocation2 + $0xd8] sm:$0xff]  ;;  %v1127_v26 = vmin.f32 %v1063_v13, 6.0  ;;  %v1064_v28 = vmax.f32 %v1000_v15, 0.0  ;;  %v838_v35 = vadd.f32 %v1406_v31, %v142_v17 }
 0x113   :  { %v143_v25 = vld [vmem:[#allocation2 + $0x1d8] sm:$0xff]  ;;  %v1159_v27 = vmin.f32 %v1095_v14, 6.0  ;;  %v1096_v29 = vmax.f32 %v1032_v16, 0.0  ;;  %1193 = vst.msk [vmem:[%s2143_s3 + $0x90] sm:$0xff] %vm19_vm3, %v1129_v20  ;;  %1225 = vst.msk [vmem:[%s2143_s3 + $0x190] sm:$0xff] %vm19_vm3, %v1161_v21  ;;  %v1130_v32 = vmin.f32 %v1066_v22, 6.0 }
 0x114   :  { %v1162_v33 = vmin.f32 %v1098_v23, 6.0  ;;  %v621_v36 = vpop.f32.mrb[25].mxu0  ;;  %v749_v37 = vpop.f32.mrb[25].mxu1  ;;  %v109_v38 = vld [vmem:[#allocation2 + $0xc8] sm:$0xff]  ;;  %1191 = vst.msk [vmem:[%s2143_s3 + $0x80] sm:$0xff] %vm19_vm3, %v1127_v26  ;;  %v1128_v40 = vmin.f32 %v1064_v28, 6.0 }
 0x115   :  { %v141_v39 = vld [vmem:[#allocation2 + $0x1c8] sm:$0xff]  ;;  %1223 = vst.msk [vmem:[%s2143_s3 + $0x180] sm:$0xff] %vm19_vm3, %v1159_v27  ;;  %v1160_v41 = vmin.f32 %v1096_v29, 6.0  ;;  %v934_v42 = vld [vmem:[#allocation2 + $0xb0] sm:$0xff]  ;;  %v804_v44 = vadd.f32 %v621_v36, %v108_v18  ;;  %v836_v45 = vadd.f32 %v749_v37, %v140_v19  ;;  %v1375_v46 = vpop.f32.mrb[26].mxu0  ;;  %v1407_v47 = vpop.f32.mrb[26].mxu1 }
 0x116   :  { %v966_v43 = vld [vmem:[#allocation2 + $0x1b0] sm:$0xff]  ;;  %1194 = vst.msk [vmem:[%s2143_s3 + $0x98] sm:$0xff] %vm19_vm3, %v1130_v32  ;;  %1226 = vst.msk [vmem:[%s2143_s3 + $0x198] sm:$0xff] %vm19_vm3, %v1162_v33  ;;  %v1005_v48 = vadd.f32 %v1763_v3, %v934_v42  ;;  %v932_v50 = vld [vmem:[#allocation2 + $0xa0] sm:$0xff]  ;;  %v807_v52 = vadd.f32 %v1375_v46, %v111_v24  ;;  %v839_v53 = vadd.f32 %v1407_v47, %v143_v25  ;;  %v624_v54 = vpop.f32.mrb[27].mxu0  ;;  %v752_v55 = vpop.f32.mrb[27].mxu1 }
 0x117   :  { %v1037_v49 = vadd.f32 %v1763_v3, %v966_v43  ;;  %v964_v51 = vld [vmem:[#allocation2 + $0x1a0] sm:$0xff]  ;;  %871 = vst.msk [vmem:[#allocation2 + $0xd0] sm:$0xff] %vm19_vm3, %v806_v34  ;;  %903 = vst.msk [vmem:[#allocation2 + $0x1d0] sm:$0xff] %vm19_vm3, %v838_v35  ;;  %v1003_v56 = vadd.f32 %v1763_v3, %v932_v50  ;;  %v935_v58 = vld [vmem:[#allocation2 + $0xb8] sm:$0xff]  ;;  %v805_v60 = vadd.f32 %v624_v54, %v109_v38  ;;  %v1378_v23 = vpop.f32.mrb[28].mxu0  ;;  %v1410_v24 = vpop.f32.mrb[28].mxu1 }
 0x118   :  { %1192 = vst.msk [vmem:[%s2143_s3 + $0x88] sm:$0xff] %vm19_vm3, %v1128_v40  ;;  %1224 = vst.msk [vmem:[%s2143_s3 + $0x188] sm:$0xff] %vm19_vm3, %v1160_v41  ;;  %v1035_v57 = vadd.f32 %v1763_v3, %v964_v51  ;;  %v967_v59 = vld [vmem:[#allocation2 + $0x1b8] sm:$0xff]  ;;  %v837_v61 = vadd.f32 %v752_v55, %v141_v39  ;;  %v1069_v62 = vmax.f32 %v1005_v48, 0.0  ;;  %v1006_v0 = vadd.f32 %v1763_v3, %v935_v58  ;;  %v933_v2 = vld [vmem:[#allocation2 + $0xa8] sm:$0xff]  ;;  %v637_v29 = vpop.f32.mrb[29].mxu0 }
 0x119   :  { %869 = vst.msk [vmem:[#allocation2 + $0xc0] sm:$0xff] %vm19_vm3, %v804_v44  ;;  %901 = vst.msk [vmem:[#allocation2 + $0x1c0] sm:$0xff] %vm19_vm3, %v836_v45  ;;  %v1101_v63 = vmax.f32 %v1037_v49, 0.0  ;;  %v1038_v1 = vadd.f32 %v1763_v3, %v967_v59  ;;  %v965_v4 = vld [vmem:[#allocation2 + $0x1a8] sm:$0xff]  ;;  %v114_v5 = vld [vmem:[#allocation2 + $0xf0] sm:$0xff]  ;;  %v1067_v6 = vmax.f32 %v1003_v56, 0.0  ;;  %v1004_v8 = vadd.f32 %v1763_v3, %v933_v2 }
 0x11a   :  { %872 = vst.msk [vmem:[#allocation2 + $0xd8] sm:$0xff] %vm19_vm3, %v807_v52  ;;  %904 = vst.msk [vmem:[#allocation2 + $0x1d8] sm:$0xff] %vm19_vm3, %v839_v53  ;;  %v1099_v7 = vmax.f32 %v1035_v57, 0.0  ;;  %v1036_v9 = vadd.f32 %v1763_v3, %v965_v4  ;;  %v146_v10 = vld [vmem:[#allocation2 + $0x1f0] sm:$0xff]  ;;  %v112_v11 = vld [vmem:[#allocation2 + $0xe0] sm:$0xff]  ;;  %v1133_v13 = vmin.f32 %v1069_v62, 6.0  ;;  %v810_v27 = vadd.f32 %v1378_v23, %v114_v5 }
 0x11b   :  { %870 = vst.msk [vmem:[#allocation2 + $0xc8] sm:$0xff] %vm19_vm3, %v805_v60  ;;  %902 = vst.msk [vmem:[#allocation2 + $0x1c8] sm:$0xff] %vm19_vm3, %v837_v61  ;;  %v144_v12 = vld [vmem:[#allocation2 + $0x1e0] sm:$0xff]  ;;  %v1165_v14 = vmin.f32 %v1101_v63, 6.0  ;;  %v1070_v15 = vmax.f32 %v1006_v0, 0.0  ;;  %v1102_v16 = vmax.f32 %v1038_v1, 0.0  ;;  %v842_v28 = vadd.f32 %v1410_v24, %v146_v10 }
 0x11c   :  { %v115_v17 = vld [vmem:[#allocation2 + $0xf8] sm:$0xff]  ;;  %v1131_v19 = vmin.f32 %v1067_v6, 6.0  ;;  %v1163_v20 = vmin.f32 %v1099_v7, 6.0  ;;  %v1068_v21 = vmax.f32 %v1004_v8, 0.0  ;;  %v1100_v22 = vmax.f32 %v1036_v9, 0.0  ;;  %1197 = vst.msk [vmem:[%s2143_s3 + $0xb0] sm:$0xff] %vm19_vm3, %v1133_v13 }
 0x11d   :  { %v147_v18 = vld [vmem:[#allocation2 + $0x1f8] sm:$0xff]  ;;  %1229 = vst.msk [vmem:[%s2143_s3 + $0x1b0] sm:$0xff] %vm19_vm3, %v1165_v14  ;;  %v1134_v25 = vmin.f32 %v1070_v15, 6.0  ;;  %v1166_v26 = vmin.f32 %v1102_v16, 6.0  ;;  %v765_v30 = vpop.f32.mrb[29].mxu1  ;;  %v113_v31 = vld [vmem:[#allocation2 + $0xe8] sm:$0xff]  ;;  %v808_v37 = vadd.f32 %v637_v29, %v112_v11 }
 0x11e   :  { %v145_v32 = vld [vmem:[#allocation2 + $0x1e8] sm:$0xff]  ;;  %1195 = vst.msk [vmem:[%s2143_s3 + $0xa0] sm:$0xff] %vm19_vm3, %v1131_v19  ;;  %1227 = vst.msk [vmem:[%s2143_s3 + $0x1a0] sm:$0xff] %vm19_vm3, %v1163_v20  ;;  %v1132_v33 = vmin.f32 %v1068_v21, 6.0  ;;  %v1164_v34 = vmin.f32 %v1100_v22, 6.0  ;;  %v938_v35 = vld [vmem:[#allocation2 + $0xd0] sm:$0xff]  ;;  %v840_v38 = vadd.f32 %v765_v30, %v144_v12 }
 0x11f   :  { %v970_v36 = vld [vmem:[#allocation2 + $0x1d0] sm:$0xff]  ;;  %v1379_v39 = vpop.f32.mrb[30].mxu0  ;;  %v1411_v40 = vpop.f32.mrb[30].mxu1  ;;  %1198 = vst.msk [vmem:[%s2143_s3 + $0xb8] sm:$0xff] %vm19_vm3, %v1134_v25  ;;  %1230 = vst.msk [vmem:[%s2143_s3 + $0x1b8] sm:$0xff] %vm19_vm3, %v1166_v26  ;;  %v1009_v41 = vadd.f32 %v1763_v3, %v938_v35 }
 0x120   :  { %v1041_v42 = vadd.f32 %v1763_v3, %v970_v36  ;;  %v936_v43 = vld [vmem:[#allocation2 + $0xc0] sm:$0xff]  ;;  %875 = vst.msk [vmem:[#allocation2 + $0xf0] sm:$0xff] %vm19_vm3, %v810_v27  ;;  %907 = vst.msk [vmem:[#allocation2 + $0x1f0] sm:$0xff] %vm19_vm3, %v842_v28  ;;  %v811_v45 = vadd.f32 %v1379_v39, %v115_v17  ;;  %v843_v46 = vadd.f32 %v1411_v40, %v147_v18  ;;  %v640_v47 = vpop.f32.mrb[31].mxu0  ;;  %v768_v48 = vpop.f32.mrb[31].mxu1 }
 0x121   :  { %v968_v44 = vld [vmem:[#allocation2 + $0x1c0] sm:$0xff]  ;;  %1196 = vst.msk [vmem:[%s2143_s3 + $0xa8] sm:$0xff] %vm19_vm3, %v1132_v33  ;;  %1228 = vst.msk [vmem:[%s2143_s3 + $0x1a8] sm:$0xff] %vm19_vm3, %v1164_v34  ;;  %v1007_v49 = vadd.f32 %v1763_v3, %v936_v43  ;;  %v939_v51 = vld [vmem:[#allocation2 + $0xd8] sm:$0xff]  ;;  %v809_v53 = vadd.f32 %v640_v47, %v113_v31  ;;  %v841_v54 = vadd.f32 %v768_v48, %v145_v32  ;;  %v1073_v55 = vmax.f32 %v1009_v41, 0.0 }
 0x122   :  { %v1039_v50 = vadd.f32 %v1763_v3, %v968_v44  ;;  %v971_v52 = vld [vmem:[#allocation2 + $0x1d8] sm:$0xff]  ;;  %873 = vst.msk [vmem:[#allocation2 + $0xe0] sm:$0xff] %vm19_vm3, %v808_v37  ;;  %905 = vst.msk [vmem:[#allocation2 + $0x1e0] sm:$0xff] %vm19_vm3, %v840_v38  ;;  %v1105_v56 = vmax.f32 %v1041_v42, 0.0  ;;  %v1010_v57 = vadd.f32 %v1763_v3, %v939_v51  ;;  %v937_v59 = vld [vmem:[#allocation2 + $0xc8] sm:$0xff] }
 0x123   :  { %v1042_v58 = vadd.f32 %v1763_v3, %v971_v52  ;;  %v969_v60 = vld [vmem:[#allocation2 + $0x1c8] sm:$0xff]  ;;  %876 = vst.msk [vmem:[#allocation2 + $0xf8] sm:$0xff] %vm19_vm3, %v811_v45  ;;  %908 = vst.msk [vmem:[#allocation2 + $0x1f8] sm:$0xff] %vm19_vm3, %v843_v46  ;;  %v1071_v61 = vmax.f32 %v1007_v49, 0.0  ;;  %v1008_v63 = vadd.f32 %v1763_v3, %v937_v59  ;;  %v1137_v1 = vmin.f32 %v1073_v55, 6.0 }
 0x124   :  { %v1103_v62 = vmax.f32 %v1039_v50, 0.0  ;;  %v1040_v0 = vadd.f32 %v1763_v3, %v969_v60  ;;  %874 = vst.msk [vmem:[#allocation2 + $0xe8] sm:$0xff] %vm19_vm3, %v809_v53  ;;  %906 = vst.msk [vmem:[#allocation2 + $0x1e8] sm:$0xff] %vm19_vm3, %v841_v54  ;;  %v1169_v2 = vmin.f32 %v1105_v56, 6.0  ;;  %v1074_v4 = vmax.f32 %v1010_v57, 0.0 }
 0x125   :  { %v1106_v5 = vmax.f32 %v1042_v58, 0.0  ;;  %v1135_v6 = vmin.f32 %v1071_v61, 6.0  ;;  %v1072_v8 = vmax.f32 %v1008_v63, 0.0  ;;  %1201 = vst.msk [vmem:[%s2143_s3 + $0xd0] sm:$0xff] %vm19_vm3, %v1137_v1  ;;  %v1452_v26 = vld [vmem:[%s2142_s2] ss:$0 sm:$0xff] }
 0x126   :  { %v1167_v7 = vmin.f32 %v1103_v62, 6.0  ;;  %v1104_v9 = vmax.f32 %v1040_v0, 0.0  ;;  %1233 = vst.msk [vmem:[%s2143_s3 + $0x1d0] sm:$0xff] %vm19_vm3, %v1169_v2  ;;  %v1138_v10 = vmin.f32 %v1074_v4, 6.0 }
 0x127   :  { %v1170_v11 = vmin.f32 %v1106_v5, 6.0  ;;  %1199 = vst.msk [vmem:[%s2143_s3 + $0xc0] sm:$0xff] %vm19_vm3, %v1135_v6  ;;  %v1136_v12 = vmin.f32 %v1072_v8, 6.0  ;;  %v942_v14 = vld [vmem:[#allocation2 + $0xf0] sm:$0xff] }
 0x128   :  { %1231 = vst.msk [vmem:[%s2143_s3 + $0x1c0] sm:$0xff] %vm19_vm3, %v1167_v7  ;;  %v1168_v13 = vmin.f32 %v1104_v9, 6.0  ;;  %v974_v15 = vld [vmem:[#allocation2 + $0x1f0] sm:$0xff]  ;;  %1202 = vst.msk [vmem:[%s2143_s3 + $0xd8] sm:$0xff] %vm19_vm3, %v1138_v10  ;;  %v1013_v16 = vadd.f32 %v1763_v3, %v942_v14 }
 0x129   :  { %1234 = vst.msk [vmem:[%s2143_s3 + $0x1d8] sm:$0xff] %vm19_vm3, %v1170_v11  ;;  %v1045_v17 = vadd.f32 %v1763_v3, %v974_v15  ;;  %v940_v18 = vld [vmem:[#allocation2 + $0xe0] sm:$0xff]  ;;  %1200 = vst.msk [vmem:[%s2143_s3 + $0xc8] sm:$0xff] %vm19_vm3, %v1136_v12 }
 0x12a   :  { %v972_v19 = vld [vmem:[#allocation2 + $0x1e0] sm:$0xff]  ;;  %1232 = vst.msk [vmem:[%s2143_s3 + $0x1c8] sm:$0xff] %vm19_vm3, %v1168_v13  ;;  %v1011_v20 = vadd.f32 %v1763_v3, %v940_v18  ;;  %v943_v22 = vld [vmem:[#allocation2 + $0xf8] sm:$0xff]  ;;  %v1077_v24 = vmax.f32 %v1013_v16, 0.0 }
 0x12b   :  { %v1043_v21 = vadd.f32 %v1763_v3, %v972_v19  ;;  %v975_v23 = vld [vmem:[#allocation2 + $0x1f8] sm:$0xff]  ;;  %v1109_v25 = vmax.f32 %v1045_v17, 0.0  ;;  %v1014_v27 = vadd.f32 %v1452_v26, %v943_v22  ;;  %v941_v29 = vld [vmem:[#allocation2 + $0xe8] sm:$0xff] }
 0x12c   :  { %v1046_v28 = vadd.f32 %v1452_v26, %v975_v23  ;;  %v973_v30 = vld [vmem:[#allocation2 + $0x1e8] sm:$0xff]  ;;  %v1075_v31 = vmax.f32 %v1011_v20, 0.0  ;;  %v1012_v33 = vadd.f32 %v1452_v26, %v941_v29  ;;  %v1141_v35 = vmin.f32 %v1077_v24, 6.0 }
 0x12d   :  { %v1107_v32 = vmax.f32 %v1043_v21, 0.0  ;;  %v1044_v34 = vadd.f32 %v1452_v26, %v973_v30  ;;  %v1173_v36 = vmin.f32 %v1109_v25, 6.0  ;;  %v1078_v37 = vmax.f32 %v1014_v27, 0.0 }
 0x12e   :  { %v1110_v3 = vmax.f32 %v1046_v28, 0.0  ;;  %v1139_v38 = vmin.f32 %v1075_v31, 6.0  ;;  %v1076_v40 = vmax.f32 %v1012_v33, 0.0  ;;  %1205 = vst.msk [vmem:[%s2143_s3 + $0xf0] sm:$0xff] %vm19_vm3, %v1141_v35 }
 0x12f   :  { %v1171_v39 = vmin.f32 %v1107_v32, 6.0  ;;  %v1108_v41 = vmax.f32 %v1044_v34, 0.0  ;;  %1237 = vst.msk [vmem:[%s2143_s3 + $0x1f0] sm:$0xff] %vm19_vm3, %v1173_v36  ;;  %v1142_v42 = vmin.f32 %v1078_v37, 6.0 }
 0x130   :  { %v1174_v43 = vmin.f32 %v1110_v3, 6.0  ;;  %1203 = vst.msk [vmem:[%s2143_s3 + $0xe0] sm:$0xff] %vm19_vm3, %v1139_v38  ;;  %v1140_v44 = vmin.f32 %v1076_v40, 6.0 }
 0x131   :  { %1235 = vst.msk [vmem:[%s2143_s3 + $0x1e0] sm:$0xff] %vm19_vm3, %v1171_v39  ;;  %v1172_v45 = vmin.f32 %v1108_v41, 6.0  ;;  %1206 = vst.msk [vmem:[%s2143_s3 + $0xf8] sm:$0xff] %vm19_vm3, %v1142_v42 }
 0x132   :  { %1238 = vst.msk [vmem:[%s2143_s3 + $0x1f8] sm:$0xff] %vm19_vm3, %v1174_v43  ;;  %1204 = vst.msk [vmem:[%s2143_s3 + $0xe8] sm:$0xff] %vm19_vm3, %v1140_v44 }
 0x133   :  { %1236 = vst.msk [vmem:[%s2143_s3 + $0x1e8] sm:$0xff] %vm19_vm3, %v1172_v45 }

// kernel: _lambda_.65
= control target key start
LH: loop header
LB: loop body
LE: loop exit
PB: predicated region body
PF: predicated region fallthrough
CT: control target
= control target key end

     0   :  { %vm19_vm0 = vcmask 785408   ;;  %v502_v1 = vmov 0.0   ;;  %vm124_vm1 = vcmask 261120   ;;  %vm385_vm2 = vcmask 781312   ;;  %s678_s1 = inlined_call_operand.vmem [shape: bf16[32,96], index: 1, kind: input, shape index: {}]   ;;  %s679_s0 = inlined_call_operand.vmem [shape: bf16[128,32], index: 0, kind: input, shape index: {}]   ;;  %s680_s2 = inlined_call_operand.vmem [shape: f32[1,96], index: 2, kind: input, shape index: {}]   ;;  %s681_s3 = inlined_call_operand.vmem [shape: bf16[128,96], index: 3, kind: output, shape index: {}]  }
   0x1   :  { %v492_v0 = vld [vmem:[%s678_s1] sm:$0xff]   ;;  %22 = vst.msk [vmem:[#allocation2 + $0x10] sm:$0xff] %vm19_vm0, %v502_v1  ;;  %20 = vst.msk [vmem:[#allocation2] sm:$0xff] %vm19_vm0, %v502_v1  ;;  %v493_v2 = vld [vmem:[%s678_s1 + $0x8] sm:$0xff]  }
   0x2   :  { %21 = vst.msk [vmem:[#allocation2 + $0x8] sm:$0xff] %vm19_vm0, %v502_v1  ;;  %23 = vst.msk [vmem:[#allocation2 + $0x18] sm:$0xff] %vm19_vm0, %v502_v1  ;;  %467 = vmatprep.subr.bf16.mxu0 %v492_v0  ;;  %487 = vmatprep.subr.bf16.mxu1 %v492_v0  ;;  %v494_v3 = vld [vmem:[%s679_s0] sm:$0xff]   ;;  %v496_v5 = vld [vmem:[%s679_s0 + $0x8] sm:$0xff]  }
   0x3   :  { %24 = vst.msk [vmem:[#allocation2 + $0x20] sm:$0xff] %vm19_vm0, %v502_v1  ;;  %25 = vst.msk [vmem:[#allocation2 + $0x28] sm:$0xff] %vm19_vm0, %v502_v1  ;;  %468 = vmatpush3.bf16.msra.mxu0 %v492_v0  ;;  %489 = vmatpush3.bf16.msra.mxu1 %v492_v0  ;;  %v495_v4 = vld [vmem:[%s679_s0 + $0x20] sm:$0xff]   ;;  %v497_v6 = vld [vmem:[%s679_s0 + $0x28] sm:$0xff]  }
   0x4   :  { %26 = vst.msk [vmem:[#allocation2 + $0x30] sm:$0xff] %vm19_vm0, %v502_v1  ;;  %27 = vst.msk [vmem:[#allocation2 + $0x38] sm:$0xff] %vm19_vm0, %v502_v1  ;;  %469 = vmatprep.subr.bf16.mxu0 %v493_v2  ;;  %488 = vmatprep.subr.bf16.mxu1 %v493_v2  ;;  %v498_v7 = vld [vmem:[%s679_s0 + $0x10] sm:$0xff]   ;;  %v500_v9 = vld [vmem:[%s679_s0 + $0x18] sm:$0xff]  }
   0x5   :  { %28 = vst.msk [vmem:[#allocation2 + $0x40] sm:$0xff] %vm19_vm0, %v502_v1  ;;  %29 = vst.msk [vmem:[#allocation2 + $0x48] sm:$0xff] %vm19_vm0, %v502_v1  ;;  %471 = vmatprep.mubr.msk.bf16.mxu0 %vm124_vm1, %v494_v3  ;;  %479 = vmatprep.mubr.msk.bf16.mxu1 %vm124_vm1, %v495_v4  ;;  %v499_v8 = vld [vmem:[%s679_s0 + $0x30] sm:$0xff]   ;;  %v501_v10 = vld [vmem:[%s679_s0 + $0x38] sm:$0xff]  }
   0x6   :  { %30 = vst.msk [vmem:[#allocation2 + $0x50] sm:$0xff] %vm19_vm0, %v502_v1  ;;  %31 = vst.msk [vmem:[#allocation2 + $0x58] sm:$0xff] %vm19_vm0, %v502_v1  ;;  %v588_v39 = vld [vmem:[%s680_s2] ss:$0 sm:$0xff] }
   0x7   :  { %32 = vst.msk [vmem:[#allocation2 + $0x60] sm:$0xff] %vm19_vm0, %v502_v1  ;;  %33 = vst.msk [vmem:[#allocation2 + $0x68] sm:$0xff] %vm19_vm0, %v502_v1  ;;  %470 = vmatpush3.bf16.msra.mxu0 %v493_v2  ;;  %490 = vmatpush3.bf16.msra.mxu1 %v493_v2 }
   0x8   :  { %34 = vst.msk [vmem:[#allocation2 + $0x70] sm:$0xff] %vm19_vm0, %v502_v1  ;;  %35 = vst.msk [vmem:[#allocation2 + $0x78] sm:$0xff] %vm19_vm0, %v502_v1  ;;  %v38_v11 = vld [vmem:[#allocation2 + $0x10] sm:$0xff]  ;;  %v36_v13 = vld [vmem:[#allocation2] sm:$0xff] }
   0x9   :  { %v39_v17 = vld [vmem:[#allocation2 + $0x18] sm:$0xff]  ;;  %v37_v23 = vld [vmem:[#allocation2 + $0x8] sm:$0xff] }
   0xa   :  { %472 = vmatmul.mubr.msk.bf16.vlgmr.msra.gmra.mrb[0].mxu0 %vm124_vm1, %v496_v5  ;;  %480 = vmatmul.mubr.msk.bf16.vlgmr.msra.gmra.mrb[0].mxu1 %vm124_vm1, %v497_v6  ;;  %v40_v37 = vld [vmem:[#allocation2 + $0x20] sm:$0xff]  ;;  %v41_v48 = vld [vmem:[#allocation2 + $0x28] sm:$0xff] }
   0xb   :  { %475 = vmatprep.mubr.msk.bf16.mxu0 %vm124_vm1, %v498_v7  ;;  %483 = vmatprep.mubr.msk.bf16.mxu1 %vm124_vm1, %v499_v8  ;;  %v42_v35 = vld [vmem:[#allocation2 + $0x30] sm:$0xff]  ;;  %v43_v42 = vld [vmem:[#allocation2 + $0x38] sm:$0xff] }
   0xc   :  { %v44_v14 = vld [vmem:[#allocation2 + $0x40] sm:$0xff]  ;;  %v45_v24 = vld [vmem:[#allocation2 + $0x48] sm:$0xff] }
   0xd   :  { %v46_v12 = vld [vmem:[#allocation2 + $0x50] sm:$0xff]  ;;  %v47_v18 = vld [vmem:[#allocation2 + $0x58] sm:$0xff] }
   0xe   :  { %v48_v38 = vld [vmem:[#allocation2 + $0x60] sm:$0xff]  ;;  %v49_v49 = vld [vmem:[#allocation2 + $0x68] sm:$0xff] }
   0xf   :  { %v50_v36 = vld [vmem:[#allocation2 + $0x70] sm:$0xff]  ;;  %v51_v43 = vld [vmem:[#allocation2 + $0x78] sm:$0xff] }
  0x12   :  { %476 = vmatmul.mubr.msk.bf16.gmra.mrb[4].mxu0 %vm124_vm1, %v500_v9  ;;  %484 = vmatmul.mubr.msk.bf16.gmra.mrb[4].mxu1 %vm124_vm1, %v501_v10 }
  0xdd   :  { %v473_v15 = vpop.f32.mrb[0].mxu0  ;;  %v481_v16 = vpop.f32.mrb[0].mxu1 }
  0xde   :  { %v248_v19 = vadd.f32 %v473_v15, %v38_v11  ;;  %v256_v20 = vadd.f32 %v481_v16, %v46_v12  ;;  %v183_v21 = vpop.f32.mrb[1].mxu0  ;;  %v215_v22 = vpop.f32.mrb[1].mxu1 }
  0xdf   :  { %v246_v25 = vadd.f32 %v183_v21, %v36_v13  ;;  %v254_v26 = vadd.f32 %v215_v22, %v44_v14  ;;  %v474_v27 = vpop.f32.mrb[2].mxu0  ;;  %v482_v28 = vpop.f32.mrb[2].mxu1 }
  0xe0   :  { %265 = vst.msk [vmem:[#allocation2 + $0x10] sm:$0xff] %vm19_vm0, %v248_v19  ;;  %273 = vst.msk [vmem:[#allocation2 + $0x50] sm:$0xff] %vm19_vm0, %v256_v20  ;;  %v249_v29 = vadd.f32 %v474_v27, %v39_v17  ;;  %v257_v30 = vadd.f32 %v482_v28, %v47_v18  ;;  %v186_v31 = vpop.f32.mrb[3].mxu0  ;;  %v218_v32 = vpop.f32.mrb[3].mxu1 }
  0xe1   :  { %263 = vst.msk [vmem:[#allocation2] sm:$0xff] %vm19_vm0, %v246_v25  ;;  %271 = vst.msk [vmem:[#allocation2 + $0x40] sm:$0xff] %vm19_vm0, %v254_v26  ;;  %v247_v33 = vadd.f32 %v186_v31, %v37_v23  ;;  %v255_v34 = vadd.f32 %v218_v32, %v45_v24 }
  0xe2   :  { %266 = vst.msk [vmem:[#allocation2 + $0x18] sm:$0xff] %vm19_vm0, %v249_v29  ;;  %274 = vst.msk [vmem:[#allocation2 + $0x58] sm:$0xff] %vm19_vm0, %v257_v30 }
  0xe3   :  { %264 = vst.msk [vmem:[#allocation2 + $0x8] sm:$0xff] %vm19_vm0, %v247_v33  ;;  %272 = vst.msk [vmem:[#allocation2 + $0x48] sm:$0xff] %vm19_vm0, %v255_v34 }
  0xe5   :  { %v477_v40 = vpop.f32.mrb[4].mxu0  ;;  %v485_v41 = vpop.f32.mrb[4].mxu1 }
  0xe6   :  { %v252_v44 = vadd.f32 %v477_v40, %v42_v35  ;;  %v260_v45 = vadd.f32 %v485_v41, %v50_v36  ;;  %v199_v46 = vpop.f32.mrb[5].mxu0  ;;  %v231_v47 = vpop.f32.mrb[5].mxu1 }
  0xe7   :  { %v284_v50 = vld [vmem:[#allocation2 + $0x10] sm:$0xff]  ;;  %v250_v52 = vadd.f32 %v199_v46, %v40_v37  ;;  %v258_v53 = vadd.f32 %v231_v47, %v48_v38  ;;  %v478_v54 = vpop.f32.mrb[6].mxu0  ;;  %v486_v55 = vpop.f32.mrb[6].mxu1 }
  0xe8   :  { %v292_v51 = vld [vmem:[#allocation2 + $0x50] sm:$0xff]  ;;  %v307_v56 = vadd.f32 %v588_v39, %v284_v50  ;;  %v282_v58 = vld [vmem:[#allocation2] sm:$0xff]  ;;  %269 = vst.msk [vmem:[#allocation2 + $0x30] sm:$0xff] %vm19_vm0, %v252_v44  ;;  %277 = vst.msk [vmem:[#allocation2 + $0x70] sm:$0xff] %vm19_vm0, %v260_v45  ;;  %v253_v60 = vadd.f32 %v478_v54, %v43_v42  ;;  %v261_v61 = vadd.f32 %v486_v55, %v51_v43  ;;  %v202_v62 = vpop.f32.mrb[7].mxu0  ;;  %v234_v63 = vpop.f32.mrb[7].mxu1 }
  0xe9   :  { %v315_v57 = vadd.f32 %v588_v39, %v292_v51  ;;  %v290_v59 = vld [vmem:[#allocation2 + $0x40] sm:$0xff]  ;;  %v305_v0 = vadd.f32 %v588_v39, %v282_v58  ;;  %v285_v2 = vld [vmem:[#allocation2 + $0x18] sm:$0xff]  ;;  %267 = vst.msk [vmem:[#allocation2 + $0x20] sm:$0xff] %vm19_vm0, %v250_v52  ;;  %275 = vst.msk [vmem:[#allocation2 + $0x60] sm:$0xff] %vm19_vm0, %v258_v53  ;;  %v251_v4 = vadd.f32 %v202_v62, %v41_v48 }
  0xea   :  { %v313_v1 = vadd.f32 %v588_v39, %v290_v59  ;;  %v293_v3 = vld [vmem:[#allocation2 + $0x58] sm:$0xff]  ;;  %v259_v5 = vadd.f32 %v234_v63, %v49_v49  ;;  %v443_v6 = vpack.c.bf16 %v307_v56, %v307_v56  ;;  %v308_v8 = vadd.f32 %v588_v39, %v285_v2  ;;  %v283_v10 = vld [vmem:[#allocation2 + $0x8] sm:$0xff]  ;;  %270 = vst.msk [vmem:[#allocation2 + $0x38] sm:$0xff] %vm19_vm0, %v253_v60 }
  0xeb   :  { %v451_v7 = vpack.c.bf16 %v315_v57, %v315_v57  ;;  %v316_v9 = vadd.f32 %v588_v39, %v293_v3  ;;  %v291_v11 = vld [vmem:[#allocation2 + $0x48] sm:$0xff]  ;;  %278 = vst.msk [vmem:[#allocation2 + $0x78] sm:$0xff] %vm19_vm0, %v261_v61  ;;  %v441_v12 = vpack.c.bf16 %v305_v0, %v305_v0  ;;  %v306_v14 = vadd.f32 %v588_v39, %v283_v10 }
  0xec   :  { %v449_v13 = vpack.c.bf16 %v313_v1, %v313_v1  ;;  %v314_v15 = vadd.f32 %v588_v39, %v291_v11  ;;  %268 = vst.msk [vmem:[#allocation2 + $0x28] sm:$0xff] %vm19_vm0, %v251_v4  ;;  %276 = vst.msk [vmem:[#allocation2 + $0x68] sm:$0xff] %vm19_vm0, %v259_v5  ;;  %v444_v16 = vpack.c.bf16 %v308_v8, %v308_v8 }
  0xed   :  { %388 = vst.msk [vmem:[%s681_s3 + $0x8] sm:$0xf] %vm385_vm2, %v443_v6  ;;  %396 = vst.msk [vmem:[%s681_s3 + $0x28] sm:$0xf] %vm385_vm2, %v451_v7  ;;  %v452_v17 = vpack.c.bf16 %v316_v9, %v316_v9  ;;  %v442_v18 = vpack.c.bf16 %v306_v14, %v306_v14 }
  0xee   :  { %386 = vst.msk [vmem:[%s681_s3] sm:$0xf] %vm385_vm2, %v441_v12  ;;  %394 = vst.msk [vmem:[%s681_s3 + $0x20] sm:$0xf] %vm385_vm2, %v449_v13  ;;  %v450_v19 = vpack.c.bf16 %v314_v15, %v314_v15 }
  0xef   :  { %389 = vst.msk [vmem:[%s681_s3 + $0xc] sm:$0xf] %vm385_vm2, %v444_v16  ;;  %397 = vst.msk [vmem:[%s681_s3 + $0x2c] sm:$0xf] %vm385_vm2, %v452_v17  ;;  %v288_v20 = vld [vmem:[#allocation2 + $0x30] sm:$0xff] }
  0xf0   :  { %387 = vst.msk [vmem:[%s681_s3 + $0x4] sm:$0xf] %vm385_vm2, %v442_v18  ;;  %395 = vst.msk [vmem:[%s681_s3 + $0x24] sm:$0xf] %vm385_vm2, %v450_v19  ;;  %v296_v21 = vld [vmem:[#allocation2 + $0x70] sm:$0xff]  ;;  %v311_v22 = vadd.f32 %v588_v39, %v288_v20  ;;  %v286_v24 = vld [vmem:[#allocation2 + $0x20] sm:$0xff] }
  0xf1   :  { %v319_v23 = vadd.f32 %v588_v39, %v296_v21  ;;  %v294_v25 = vld [vmem:[#allocation2 + $0x60] sm:$0xff]  ;;  %v309_v26 = vadd.f32 %v588_v39, %v286_v24  ;;  %v289_v28 = vld [vmem:[#allocation2 + $0x38] sm:$0xff] }
  0xf2   :  { %v317_v27 = vadd.f32 %v588_v39, %v294_v25  ;;  %v297_v29 = vld [vmem:[#allocation2 + $0x78] sm:$0xff]  ;;  %v447_v30 = vpack.c.bf16 %v311_v22, %v311_v22  ;;  %v312_v32 = vadd.f32 %v588_v39, %v289_v28 }
  0xf3   :  { %v455_v31 = vpack.c.bf16 %v319_v23, %v319_v23  ;;  %v320_v33 = vadd.f32 %v588_v39, %v297_v29  ;;  %v287_v34 = vld [vmem:[#allocation2 + $0x28] sm:$0xff]  ;;  %v445_v36 = vpack.c.bf16 %v309_v26, %v309_v26 }
  0xf4   :  { %v295_v35 = vld [vmem:[#allocation2 + $0x68] sm:$0xff]  ;;  %v453_v37 = vpack.c.bf16 %v317_v27, %v317_v27  ;;  %v310_v38 = vadd.f32 %v588_v39, %v287_v34  ;;  %392 = vst.msk [vmem:[%s681_s3 + $0x18] sm:$0xf] %vm385_vm2, %v447_v30  ;;  %v448_v41 = vpack.c.bf16 %v312_v32, %v312_v32 }
  0xf5   :  { %v318_v40 = vadd.f32 %v588_v39, %v295_v35  ;;  %400 = vst.msk [vmem:[%s681_s3 + $0x38] sm:$0xf] %vm385_vm2, %v455_v31  ;;  %v456_v42 = vpack.c.bf16 %v320_v33, %v320_v33  ;;  %390 = vst.msk [vmem:[%s681_s3 + $0x10] sm:$0xf] %vm385_vm2, %v445_v36 }
  0xf6   :  { %398 = vst.msk [vmem:[%s681_s3 + $0x30] sm:$0xf] %vm385_vm2, %v453_v37  ;;  %v446_v39 = vpack.c.bf16 %v310_v38, %v310_v38  ;;  %393 = vst.msk [vmem:[%s681_s3 + $0x1c] sm:$0xf] %vm385_vm2, %v448_v41 }
  0xf7   :  { %v454_v43 = vpack.c.bf16 %v318_v40, %v318_v40  ;;  %401 = vst.msk [vmem:[%s681_s3 + $0x3c] sm:$0xf] %vm385_vm2, %v456_v42 }
  0xf8   :  { %391 = vst.msk [vmem:[%s681_s3 + $0x14] sm:$0xf] %vm385_vm2, %v446_v39 }
  0xf9   :  { %399 = vst.msk [vmem:[%s681_s3 + $0x34] sm:$0xf] %vm385_vm2, %v454_v43 }

// kernel: _lambda_.64
= control target key start
LH: loop header
LB: loop body
LE: loop exit
PB: predicated region body
PF: predicated region fallthrough
CT: control target
= control target key end

     0   :  { %vm19_vm0 = vcmask 261120   ;;  %v404_v1 = vmov 0.0   ;;  %s580_s1 = inlined_call_operand.vmem [shape: bf16[32,32], index: 1, kind: input, shape index: {}]   ;;  %s581_s0 = inlined_call_operand.vmem [shape: bf16[128,32], index: 0, kind: input, shape index: {}]   ;;  %s582_s2 = inlined_call_operand.vmem [shape: f32[1,32], index: 2, kind: input, shape index: {}]   ;;  %s583_s3 = inlined_call_operand.vmem [shape: f32[128,32], index: 3, kind: output, shape index: {}]  }
   0x1   :  { %v394_v0 = vld [vmem:[%s580_s1] sm:$0xff]   ;;  %22 = vst.msk [vmem:[#allocation2 + $0x10] sm:$0xff] %vm19_vm0, %v404_v1  ;;  %20 = vst.msk [vmem:[#allocation2] sm:$0xff] %vm19_vm0, %v404_v1  ;;  %v395_v2 = vld [vmem:[%s580_s1 + $0x8] sm:$0xff]  }
   0x2   :  { %21 = vst.msk [vmem:[#allocation2 + $0x8] sm:$0xff] %vm19_vm0, %v404_v1  ;;  %23 = vst.msk [vmem:[#allocation2 + $0x18] sm:$0xff] %vm19_vm0, %v404_v1  ;;  %369 = vmatprep.subr.bf16.mxu0 %v394_v0  ;;  %389 = vmatprep.subr.bf16.mxu1 %v394_v0  ;;  %v396_v3 = vld [vmem:[%s581_s0] sm:$0xff]   ;;  %v398_v5 = vld [vmem:[%s581_s0 + $0x8] sm:$0xff]  }
   0x3   :  { %24 = vst.msk [vmem:[#allocation2 + $0x20] sm:$0xff] %vm19_vm0, %v404_v1  ;;  %25 = vst.msk [vmem:[#allocation2 + $0x28] sm:$0xff] %vm19_vm0, %v404_v1  ;;  %370 = vmatpush3.bf16.msra.mxu0 %v394_v0  ;;  %391 = vmatpush3.bf16.msra.mxu1 %v394_v0  ;;  %v397_v4 = vld [vmem:[%s581_s0 + $0x20] sm:$0xff]   ;;  %v399_v6 = vld [vmem:[%s581_s0 + $0x28] sm:$0xff]  }
   0x4   :  { %26 = vst.msk [vmem:[#allocation2 + $0x30] sm:$0xff] %vm19_vm0, %v404_v1  ;;  %27 = vst.msk [vmem:[#allocation2 + $0x38] sm:$0xff] %vm19_vm0, %v404_v1  ;;  %371 = vmatprep.subr.bf16.mxu0 %v395_v2  ;;  %390 = vmatprep.subr.bf16.mxu1 %v395_v2  ;;  %v400_v7 = vld [vmem:[%s581_s0 + $0x10] sm:$0xff]   ;;  %v402_v9 = vld [vmem:[%s581_s0 + $0x18] sm:$0xff]  }
   0x5   :  { %28 = vst.msk [vmem:[#allocation2 + $0x40] sm:$0xff] %vm19_vm0, %v404_v1  ;;  %29 = vst.msk [vmem:[#allocation2 + $0x48] sm:$0xff] %vm19_vm0, %v404_v1  ;;  %373 = vmatprep.mubr.msk.bf16.mxu0 %vm19_vm0, %v396_v3  ;;  %381 = vmatprep.mubr.msk.bf16.mxu1 %vm19_vm0, %v397_v4  ;;  %v401_v8 = vld [vmem:[%s581_s0 + $0x30] sm:$0xff]   ;;  %v403_v10 = vld [vmem:[%s581_s0 + $0x38] sm:$0xff]  }
   0x6   :  { %30 = vst.msk [vmem:[#allocation2 + $0x50] sm:$0xff] %vm19_vm0, %v404_v1  ;;  %31 = vst.msk [vmem:[#allocation2 + $0x58] sm:$0xff] %vm19_vm0, %v404_v1  ;;  %v490_v39 = vld [vmem:[%s582_s2] ss:$0 sm:$0xff] }
   0x7   :  { %32 = vst.msk [vmem:[#allocation2 + $0x60] sm:$0xff] %vm19_vm0, %v404_v1  ;;  %33 = vst.msk [vmem:[#allocation2 + $0x68] sm:$0xff] %vm19_vm0, %v404_v1  ;;  %372 = vmatpush3.bf16.msra.mxu0 %v395_v2  ;;  %392 = vmatpush3.bf16.msra.mxu1 %v395_v2 }
   0x8   :  { %34 = vst.msk [vmem:[#allocation2 + $0x70] sm:$0xff] %vm19_vm0, %v404_v1  ;;  %35 = vst.msk [vmem:[#allocation2 + $0x78] sm:$0xff] %vm19_vm0, %v404_v1  ;;  %v38_v11 = vld [vmem:[#allocation2 + $0x10] sm:$0xff]  ;;  %v36_v13 = vld [vmem:[#allocation2] sm:$0xff] }
   0x9   :  { %v39_v17 = vld [vmem:[#allocation2 + $0x18] sm:$0xff]  ;;  %v37_v23 = vld [vmem:[#allocation2 + $0x8] sm:$0xff] }
   0xa   :  { %374 = vmatmul.mubr.msk.bf16.vlgmr.msra.gmra.mrb[0].mxu0 %vm19_vm0, %v398_v5  ;;  %382 = vmatmul.mubr.msk.bf16.vlgmr.msra.gmra.mrb[0].mxu1 %vm19_vm0, %v399_v6  ;;  %v40_v37 = vld [vmem:[#allocation2 + $0x20] sm:$0xff]  ;;  %v41_v48 = vld [vmem:[#allocation2 + $0x28] sm:$0xff] }
   0xb   :  { %377 = vmatprep.mubr.msk.bf16.mxu0 %vm19_vm0, %v400_v7  ;;  %385 = vmatprep.mubr.msk.bf16.mxu1 %vm19_vm0, %v401_v8  ;;  %v42_v35 = vld [vmem:[#allocation2 + $0x30] sm:$0xff]  ;;  %v43_v42 = vld [vmem:[#allocation2 + $0x38] sm:$0xff] }
   0xc   :  { %v44_v14 = vld [vmem:[#allocation2 + $0x40] sm:$0xff]  ;;  %v45_v24 = vld [vmem:[#allocation2 + $0x48] sm:$0xff] }
   0xd   :  { %v46_v12 = vld [vmem:[#allocation2 + $0x50] sm:$0xff]  ;;  %v47_v18 = vld [vmem:[#allocation2 + $0x58] sm:$0xff] }
   0xe   :  { %v48_v38 = vld [vmem:[#allocation2 + $0x60] sm:$0xff]  ;;  %v49_v49 = vld [vmem:[#allocation2 + $0x68] sm:$0xff] }
   0xf   :  { %v50_v36 = vld [vmem:[#allocation2 + $0x70] sm:$0xff]  ;;  %v51_v43 = vld [vmem:[#allocation2 + $0x78] sm:$0xff] }
  0x12   :  { %378 = vmatmul.mubr.msk.bf16.gmra.mrb[4].mxu0 %vm19_vm0, %v402_v9  ;;  %386 = vmatmul.mubr.msk.bf16.gmra.mrb[4].mxu1 %vm19_vm0, %v403_v10 }
  0xdd   :  { %v375_v15 = vpop.f32.mrb[0].mxu0  ;;  %v383_v16 = vpop.f32.mrb[0].mxu1 }
  0xde   :  { %v248_v19 = vadd.f32 %v375_v15, %v38_v11  ;;  %v256_v20 = vadd.f32 %v383_v16, %v46_v12  ;;  %v183_v21 = vpop.f32.mrb[1].mxu0  ;;  %v215_v22 = vpop.f32.mrb[1].mxu1 }
  0xdf   :  { %v246_v25 = vadd.f32 %v183_v21, %v36_v13  ;;  %v254_v26 = vadd.f32 %v215_v22, %v44_v14  ;;  %v376_v27 = vpop.f32.mrb[2].mxu0  ;;  %v384_v28 = vpop.f32.mrb[2].mxu1 }
  0xe0   :  { %264 = vst.msk [vmem:[#allocation2 + $0x10] sm:$0xff] %vm19_vm0, %v248_v19  ;;  %272 = vst.msk [vmem:[#allocation2 + $0x50] sm:$0xff] %vm19_vm0, %v256_v20  ;;  %v249_v29 = vadd.f32 %v376_v27, %v39_v17  ;;  %v257_v30 = vadd.f32 %v384_v28, %v47_v18  ;;  %v186_v31 = vpop.f32.mrb[3].mxu0  ;;  %v218_v32 = vpop.f32.mrb[3].mxu1 }
  0xe1   :  { %262 = vst.msk [vmem:[#allocation2] sm:$0xff] %vm19_vm0, %v246_v25  ;;  %270 = vst.msk [vmem:[#allocation2 + $0x40] sm:$0xff] %vm19_vm0, %v254_v26  ;;  %v247_v33 = vadd.f32 %v186_v31, %v37_v23  ;;  %v255_v34 = vadd.f32 %v218_v32, %v45_v24 }
  0xe2   :  { %265 = vst.msk [vmem:[#allocation2 + $0x18] sm:$0xff] %vm19_vm0, %v249_v29  ;;  %273 = vst.msk [vmem:[#allocation2 + $0x58] sm:$0xff] %vm19_vm0, %v257_v30 }
  0xe3   :  { %263 = vst.msk [vmem:[#allocation2 + $0x8] sm:$0xff] %vm19_vm0, %v247_v33  ;;  %271 = vst.msk [vmem:[#allocation2 + $0x48] sm:$0xff] %vm19_vm0, %v255_v34 }
  0xe5   :  { %v379_v40 = vpop.f32.mrb[4].mxu0  ;;  %v387_v41 = vpop.f32.mrb[4].mxu1 }
  0xe6   :  { %v252_v44 = vadd.f32 %v379_v40, %v42_v35  ;;  %v260_v45 = vadd.f32 %v387_v41, %v50_v36  ;;  %v199_v46 = vpop.f32.mrb[5].mxu0  ;;  %v231_v47 = vpop.f32.mrb[5].mxu1 }
  0xe7   :  { %v283_v50 = vld [vmem:[#allocation2 + $0x10] sm:$0xff]  ;;  %v250_v52 = vadd.f32 %v199_v46, %v40_v37  ;;  %v258_v53 = vadd.f32 %v231_v47, %v48_v38  ;;  %v380_v54 = vpop.f32.mrb[6].mxu0  ;;  %v388_v55 = vpop.f32.mrb[6].mxu1 }
  0xe8   :  { %v291_v51 = vld [vmem:[#allocation2 + $0x50] sm:$0xff]  ;;  %v306_v56 = vadd.f32 %v490_v39, %v283_v50  ;;  %v281_v58 = vld [vmem:[#allocation2] sm:$0xff]  ;;  %268 = vst.msk [vmem:[#allocation2 + $0x30] sm:$0xff] %vm19_vm0, %v252_v44  ;;  %276 = vst.msk [vmem:[#allocation2 + $0x70] sm:$0xff] %vm19_vm0, %v260_v45  ;;  %v253_v60 = vadd.f32 %v380_v54, %v43_v42  ;;  %v261_v61 = vadd.f32 %v388_v55, %v51_v43  ;;  %v202_v62 = vpop.f32.mrb[7].mxu0  ;;  %v234_v63 = vpop.f32.mrb[7].mxu1 }
  0xe9   :  { %v314_v57 = vadd.f32 %v490_v39, %v291_v51  ;;  %v289_v59 = vld [vmem:[#allocation2 + $0x40] sm:$0xff]  ;;  %v304_v0 = vadd.f32 %v490_v39, %v281_v58  ;;  %v284_v2 = vld [vmem:[#allocation2 + $0x18] sm:$0xff]  ;;  %266 = vst.msk [vmem:[#allocation2 + $0x20] sm:$0xff] %vm19_vm0, %v250_v52  ;;  %274 = vst.msk [vmem:[#allocation2 + $0x60] sm:$0xff] %vm19_vm0, %v258_v53  ;;  %v251_v4 = vadd.f32 %v202_v62, %v41_v48 }
  0xea   :  { %v312_v1 = vadd.f32 %v490_v39, %v289_v59  ;;  %v292_v3 = vld [vmem:[#allocation2 + $0x58] sm:$0xff]  ;;  %v259_v5 = vadd.f32 %v234_v63, %v49_v49  ;;  %322 = vst.msk [vmem:[%s583_s3 + $0x10] sm:$0xff] %vm19_vm0, %v306_v56  ;;  %v307_v6 = vadd.f32 %v490_v39, %v284_v2  ;;  %v282_v8 = vld [vmem:[#allocation2 + $0x8] sm:$0xff]  ;;  %269 = vst.msk [vmem:[#allocation2 + $0x38] sm:$0xff] %vm19_vm0, %v253_v60 }
  0xeb   :  { %330 = vst.msk [vmem:[%s583_s3 + $0x50] sm:$0xff] %vm19_vm0, %v314_v57  ;;  %v315_v7 = vadd.f32 %v490_v39, %v292_v3  ;;  %v290_v9 = vld [vmem:[#allocation2 + $0x48] sm:$0xff]  ;;  %277 = vst.msk [vmem:[#allocation2 + $0x78] sm:$0xff] %vm19_vm0, %v261_v61  ;;  %v305_v10 = vadd.f32 %v490_v39, %v282_v8 }
  0xec   :  { %320 = vst.msk [vmem:[%s583_s3] sm:$0xff] %vm19_vm0, %v304_v0  ;;  %328 = vst.msk [vmem:[%s583_s3 + $0x40] sm:$0xff] %vm19_vm0, %v312_v1  ;;  %v313_v11 = vadd.f32 %v490_v39, %v290_v9 }
  0xed   :  { %267 = vst.msk [vmem:[#allocation2 + $0x28] sm:$0xff] %vm19_vm0, %v251_v4  ;;  %275 = vst.msk [vmem:[#allocation2 + $0x68] sm:$0xff] %vm19_vm0, %v259_v5 }
  0xee   :  { %323 = vst.msk [vmem:[%s583_s3 + $0x18] sm:$0xff] %vm19_vm0, %v307_v6  ;;  %331 = vst.msk [vmem:[%s583_s3 + $0x58] sm:$0xff] %vm19_vm0, %v315_v7 }
  0xef   :  { %321 = vst.msk [vmem:[%s583_s3 + $0x8] sm:$0xff] %vm19_vm0, %v305_v10  ;;  %329 = vst.msk [vmem:[%s583_s3 + $0x48] sm:$0xff] %vm19_vm0, %v313_v11  ;;  %v287_v12 = vld [vmem:[#allocation2 + $0x30] sm:$0xff] }
  0xf0   :  { %v295_v13 = vld [vmem:[#allocation2 + $0x70] sm:$0xff]  ;;  %v310_v14 = vadd.f32 %v490_v39, %v287_v12  ;;  %v285_v16 = vld [vmem:[#allocation2 + $0x20] sm:$0xff] }
  0xf1   :  { %v318_v15 = vadd.f32 %v490_v39, %v295_v13  ;;  %v293_v17 = vld [vmem:[#allocation2 + $0x60] sm:$0xff]  ;;  %v308_v18 = vadd.f32 %v490_v39, %v285_v16  ;;  %v288_v20 = vld [vmem:[#allocation2 + $0x38] sm:$0xff] }
  0xf2   :  { %v316_v19 = vadd.f32 %v490_v39, %v293_v17  ;;  %v296_v21 = vld [vmem:[#allocation2 + $0x78] sm:$0xff]  ;;  %326 = vst.msk [vmem:[%s583_s3 + $0x30] sm:$0xff] %vm19_vm0, %v310_v14  ;;  %v311_v22 = vadd.f32 %v490_v39, %v288_v20 }
  0xf3   :  { %334 = vst.msk [vmem:[%s583_s3 + $0x70] sm:$0xff] %vm19_vm0, %v318_v15  ;;  %v319_v23 = vadd.f32 %v490_v39, %v296_v21  ;;  %324 = vst.msk [vmem:[%s583_s3 + $0x20] sm:$0xff] %vm19_vm0, %v308_v18 }
  0xf4   :  { %v286_v24 = vld [vmem:[#allocation2 + $0x28] sm:$0xff]  ;;  %332 = vst.msk [vmem:[%s583_s3 + $0x60] sm:$0xff] %vm19_vm0, %v316_v19  ;;  %327 = vst.msk [vmem:[%s583_s3 + $0x38] sm:$0xff] %vm19_vm0, %v311_v22 }
  0xf5   :  { %v294_v25 = vld [vmem:[#allocation2 + $0x68] sm:$0xff]  ;;  %v309_v26 = vadd.f32 %v490_v39, %v286_v24  ;;  %335 = vst.msk [vmem:[%s583_s3 + $0x78] sm:$0xff] %vm19_vm0, %v319_v23 }
  0xf6   :  { %v317_v27 = vadd.f32 %v490_v39, %v294_v25 }
  0xf7   :  { %325 = vst.msk [vmem:[%s583_s3 + $0x28] sm:$0xff] %vm19_vm0, %v309_v26 }
  0xf8   :  { %333 = vst.msk [vmem:[%s583_s3 + $0x68] sm:$0xff] %vm19_vm0, %v317_v27 }

// kernel: _lambda_.67
= control target key start
LH: loop header
LB: loop body
LE: loop exit
PB: predicated region body
PF: predicated region fallthrough
CT: control target
= control target key end

     0   :  { %vm22_vm0 = vcmask 261120   ;;  %v439_v1 = vmov 0.0   ;;  %s668_s1 = inlined_call_operand.vmem [shape: bf16[32,32], index: 1, kind: input, shape index: {}]   ;;  %s669_s0 = inlined_call_operand.vmem [shape: bf16[128,32], index: 0, kind: input, shape index: {}]   ;;  %s670_s2 = inlined_call_operand.vmem [shape: f32[1,32], index: 2, kind: input, shape index: {}]   ;;  %s671_s3 = inlined_call_operand.vmem [shape: f32[128,32], index: 3, kind: input, shape index: {}]   ;;  %s672_s4 = inlined_call_operand.vmem [shape: f32[128,32], index: 4, kind: output, shape index: {}]  }
   0x1   :  { %v429_v0 = vld [vmem:[%s668_s1] sm:$0xff]   ;;  %25 = vst.msk [vmem:[#allocation2 + $0x10] sm:$0xff] %vm22_vm0, %v439_v1  ;;  %23 = vst.msk [vmem:[#allocation2] sm:$0xff] %vm22_vm0, %v439_v1  ;;  %v430_v2 = vld [vmem:[%s668_s1 + $0x8] sm:$0xff]  }
   0x2   :  { %24 = vst.msk [vmem:[#allocation2 + $0x8] sm:$0xff] %vm22_vm0, %v439_v1  ;;  %26 = vst.msk [vmem:[#allocation2 + $0x18] sm:$0xff] %vm22_vm0, %v439_v1  ;;  %404 = vmatprep.subr.bf16.mxu0 %v429_v0  ;;  %424 = vmatprep.subr.bf16.mxu1 %v429_v0  ;;  %v431_v3 = vld [vmem:[%s669_s0] sm:$0xff]   ;;  %v433_v5 = vld [vmem:[%s669_s0 + $0x8] sm:$0xff]  }
   0x3   :  { %27 = vst.msk [vmem:[#allocation2 + $0x20] sm:$0xff] %vm22_vm0, %v439_v1  ;;  %28 = vst.msk [vmem:[#allocation2 + $0x28] sm:$0xff] %vm22_vm0, %v439_v1  ;;  %405 = vmatpush3.bf16.msra.mxu0 %v429_v0  ;;  %426 = vmatpush3.bf16.msra.mxu1 %v429_v0  ;;  %v432_v4 = vld [vmem:[%s669_s0 + $0x20] sm:$0xff]   ;;  %v434_v6 = vld [vmem:[%s669_s0 + $0x28] sm:$0xff]  }
   0x4   :  { %29 = vst.msk [vmem:[#allocation2 + $0x30] sm:$0xff] %vm22_vm0, %v439_v1  ;;  %30 = vst.msk [vmem:[#allocation2 + $0x38] sm:$0xff] %vm22_vm0, %v439_v1  ;;  %406 = vmatprep.subr.bf16.mxu0 %v430_v2  ;;  %425 = vmatprep.subr.bf16.mxu1 %v430_v2  ;;  %v435_v7 = vld [vmem:[%s669_s0 + $0x10] sm:$0xff]   ;;  %v437_v9 = vld [vmem:[%s669_s0 + $0x18] sm:$0xff]  }
   0x5   :  { %31 = vst.msk [vmem:[#allocation2 + $0x40] sm:$0xff] %vm22_vm0, %v439_v1  ;;  %32 = vst.msk [vmem:[#allocation2 + $0x48] sm:$0xff] %vm22_vm0, %v439_v1  ;;  %408 = vmatprep.mubr.msk.bf16.mxu0 %vm22_vm0, %v431_v3  ;;  %416 = vmatprep.mubr.msk.bf16.mxu1 %vm22_vm0, %v432_v4  ;;  %v436_v8 = vld [vmem:[%s669_s0 + $0x30] sm:$0xff]   ;;  %v438_v10 = vld [vmem:[%s669_s0 + $0x38] sm:$0xff]  }
   0x6   :  { %33 = vst.msk [vmem:[#allocation2 + $0x50] sm:$0xff] %vm22_vm0, %v439_v1  ;;  %34 = vst.msk [vmem:[#allocation2 + $0x58] sm:$0xff] %vm22_vm0, %v439_v1  ;;  %v530_v39 = vld [vmem:[%s670_s2] ss:$0 sm:$0xff]  ;;  %v325_v42 = vld [vmem:[%s671_s3 + $0x10] sm:$0xff] }
   0x7   :  { %35 = vst.msk [vmem:[#allocation2 + $0x60] sm:$0xff] %vm22_vm0, %v439_v1  ;;  %36 = vst.msk [vmem:[#allocation2 + $0x68] sm:$0xff] %vm22_vm0, %v439_v1  ;;  %407 = vmatpush3.bf16.msra.mxu0 %v430_v2  ;;  %427 = vmatpush3.bf16.msra.mxu1 %v430_v2  ;;  %v333_v47 = vld [vmem:[%s671_s3 + $0x50] sm:$0xff]  ;;  %v323_v48 = vld [vmem:[%s671_s3] sm:$0xff] }
   0x8   :  { %37 = vst.msk [vmem:[#allocation2 + $0x70] sm:$0xff] %vm22_vm0, %v439_v1  ;;  %38 = vst.msk [vmem:[#allocation2 + $0x78] sm:$0xff] %vm22_vm0, %v439_v1  ;;  %v41_v11 = vld [vmem:[#allocation2 + $0x10] sm:$0xff]  ;;  %v39_v13 = vld [vmem:[#allocation2] sm:$0xff] }
   0x9   :  { %v42_v17 = vld [vmem:[#allocation2 + $0x18] sm:$0xff]  ;;  %v40_v23 = vld [vmem:[#allocation2 + $0x8] sm:$0xff]  ;;  %v331_v49 = vld [vmem:[%s671_s3 + $0x40] sm:$0xff] }
   0xa   :  { %409 = vmatmul.mubr.msk.bf16.vlgmr.msra.gmra.mrb[0].mxu0 %vm22_vm0, %v433_v5  ;;  %417 = vmatmul.mubr.msk.bf16.vlgmr.msra.gmra.mrb[0].mxu1 %vm22_vm0, %v434_v6  ;;  %v43_v37 = vld [vmem:[#allocation2 + $0x20] sm:$0xff]  ;;  %v44_v45 = vld [vmem:[#allocation2 + $0x28] sm:$0xff]  ;;  %v326_v56 = vld [vmem:[%s671_s3 + $0x18] sm:$0xff] }
   0xb   :  { %412 = vmatprep.mubr.msk.bf16.mxu0 %vm22_vm0, %v435_v7  ;;  %420 = vmatprep.mubr.msk.bf16.mxu1 %vm22_vm0, %v436_v8  ;;  %v45_v35 = vld [vmem:[#allocation2 + $0x30] sm:$0xff]  ;;  %v46_v40 = vld [vmem:[#allocation2 + $0x38] sm:$0xff] }
   0xc   :  { %v47_v14 = vld [vmem:[#allocation2 + $0x40] sm:$0xff]  ;;  %v48_v24 = vld [vmem:[#allocation2 + $0x48] sm:$0xff]  ;;  %v334_v1 = vld [vmem:[%s671_s3 + $0x58] sm:$0xff] }
   0xd   :  { %v49_v12 = vld [vmem:[#allocation2 + $0x50] sm:$0xff]  ;;  %v50_v18 = vld [vmem:[#allocation2 + $0x58] sm:$0xff] }
   0xe   :  { %v51_v38 = vld [vmem:[#allocation2 + $0x60] sm:$0xff]  ;;  %v52_v46 = vld [vmem:[#allocation2 + $0x68] sm:$0xff] }
   0xf   :  { %v53_v36 = vld [vmem:[#allocation2 + $0x70] sm:$0xff]  ;;  %v54_v41 = vld [vmem:[#allocation2 + $0x78] sm:$0xff] }
  0x12   :  { %413 = vmatmul.mubr.msk.bf16.gmra.mrb[4].mxu0 %vm22_vm0, %v437_v9  ;;  %421 = vmatmul.mubr.msk.bf16.gmra.mrb[4].mxu1 %vm22_vm0, %v438_v10  ;;  %v324_v10 = vld [vmem:[%s671_s3 + $0x8] sm:$0xff] }
  0xdd   :  { %v410_v15 = vpop.f32.mrb[0].mxu0  ;;  %v418_v16 = vpop.f32.mrb[0].mxu1 }
  0xde   :  { %v251_v19 = vadd.f32 %v410_v15, %v41_v11  ;;  %v259_v20 = vadd.f32 %v418_v16, %v49_v12  ;;  %v186_v21 = vpop.f32.mrb[1].mxu0  ;;  %v218_v22 = vpop.f32.mrb[1].mxu1 }
  0xdf   :  { %v249_v25 = vadd.f32 %v186_v21, %v39_v13  ;;  %v257_v26 = vadd.f32 %v218_v22, %v47_v14  ;;  %v411_v27 = vpop.f32.mrb[2].mxu0  ;;  %v419_v28 = vpop.f32.mrb[2].mxu1 }
  0xe0   :  { %267 = vst.msk [vmem:[#allocation2 + $0x10] sm:$0xff] %vm22_vm0, %v251_v19  ;;  %275 = vst.msk [vmem:[#allocation2 + $0x50] sm:$0xff] %vm22_vm0, %v259_v20  ;;  %v252_v29 = vadd.f32 %v411_v27, %v42_v17  ;;  %v260_v30 = vadd.f32 %v419_v28, %v50_v18  ;;  %v189_v31 = vpop.f32.mrb[3].mxu0  ;;  %v221_v32 = vpop.f32.mrb[3].mxu1  ;;  %v332_v19 = vld [vmem:[%s671_s3 + $0x48] sm:$0xff]  ;;  %v329_v28 = vld [vmem:[%s671_s3 + $0x30] sm:$0xff] }
  0xe1   :  { %265 = vst.msk [vmem:[#allocation2] sm:$0xff] %vm22_vm0, %v249_v25  ;;  %273 = vst.msk [vmem:[#allocation2 + $0x40] sm:$0xff] %vm22_vm0, %v257_v26  ;;  %v250_v33 = vadd.f32 %v189_v31, %v40_v23  ;;  %v258_v34 = vadd.f32 %v221_v32, %v48_v24  ;;  %v335_v31 = vld [vmem:[%s671_s3 + $0x60] sm:$0xff] }
  0xe2   :  { %268 = vst.msk [vmem:[#allocation2 + $0x18] sm:$0xff] %vm22_vm0, %v252_v29  ;;  %276 = vst.msk [vmem:[#allocation2 + $0x58] sm:$0xff] %vm22_vm0, %v260_v30  ;;  %v337_v29 = vld [vmem:[%s671_s3 + $0x70] sm:$0xff]  ;;  %v327_v30 = vld [vmem:[%s671_s3 + $0x20] sm:$0xff] }
  0xe3   :  { %266 = vst.msk [vmem:[#allocation2 + $0x8] sm:$0xff] %vm22_vm0, %v250_v33  ;;  %274 = vst.msk [vmem:[#allocation2 + $0x48] sm:$0xff] %vm22_vm0, %v258_v34  ;;  %v330_v34 = vld [vmem:[%s671_s3 + $0x38] sm:$0xff] }
  0xe5   :  { %v414_v43 = vpop.f32.mrb[4].mxu0  ;;  %v422_v44 = vpop.f32.mrb[4].mxu1 }
  0xe6   :  { %v255_v50 = vadd.f32 %v414_v43, %v45_v35  ;;  %v263_v51 = vadd.f32 %v422_v44, %v53_v36  ;;  %v202_v52 = vpop.f32.mrb[5].mxu0  ;;  %v234_v53 = vpop.f32.mrb[5].mxu1 }
  0xe7   :  { %v286_v54 = vld [vmem:[#allocation2 + $0x10] sm:$0xff]  ;;  %v253_v57 = vadd.f32 %v202_v52, %v43_v37  ;;  %v261_v58 = vadd.f32 %v234_v53, %v51_v38  ;;  %v415_v59 = vpop.f32.mrb[6].mxu0  ;;  %v423_v60 = vpop.f32.mrb[6].mxu1  ;;  %v336_v52 = vld [vmem:[%s671_s3 + $0x68] sm:$0xff] }
  0xe8   :  { %v294_v55 = vld [vmem:[#allocation2 + $0x50] sm:$0xff]  ;;  %v309_v61 = vadd.f32 %v530_v39, %v286_v54  ;;  %v284_v63 = vld [vmem:[#allocation2] sm:$0xff]  ;;  %271 = vst.msk [vmem:[#allocation2 + $0x30] sm:$0xff] %vm22_vm0, %v255_v50  ;;  %279 = vst.msk [vmem:[#allocation2 + $0x70] sm:$0xff] %vm22_vm0, %v263_v51  ;;  %v256_v2 = vadd.f32 %v415_v59, %v46_v40  ;;  %v264_v3 = vadd.f32 %v423_v60, %v54_v41  ;;  %v205_v4 = vpop.f32.mrb[7].mxu0  ;;  %v237_v5 = vpop.f32.mrb[7].mxu1 }
  0xe9   :  { %v317_v62 = vadd.f32 %v530_v39, %v294_v55  ;;  %v292_v0 = vld [vmem:[#allocation2 + $0x40] sm:$0xff]  ;;  %v307_v6 = vadd.f32 %v530_v39, %v284_v63  ;;  %v287_v8 = vld [vmem:[#allocation2 + $0x18] sm:$0xff]  ;;  %269 = vst.msk [vmem:[#allocation2 + $0x20] sm:$0xff] %vm22_vm0, %v253_v57  ;;  %277 = vst.msk [vmem:[#allocation2 + $0x60] sm:$0xff] %vm22_vm0, %v261_v58  ;;  %v254_v11 = vadd.f32 %v205_v4, %v44_v45 }
  0xea   :  { %v315_v7 = vadd.f32 %v530_v39, %v292_v0  ;;  %v295_v9 = vld [vmem:[#allocation2 + $0x58] sm:$0xff]  ;;  %v262_v12 = vadd.f32 %v237_v5, %v52_v46  ;;  %v341_v13 = vadd.f32 %v325_v42, %v309_v61  ;;  %v310_v15 = vadd.f32 %v530_v39, %v287_v8  ;;  %v285_v17 = vld [vmem:[#allocation2 + $0x8] sm:$0xff]  ;;  %272 = vst.msk [vmem:[#allocation2 + $0x38] sm:$0xff] %vm22_vm0, %v256_v2 }
  0xeb   :  { %v349_v14 = vadd.f32 %v333_v47, %v317_v62  ;;  %v318_v16 = vadd.f32 %v530_v39, %v295_v9  ;;  %v293_v18 = vld [vmem:[#allocation2 + $0x48] sm:$0xff]  ;;  %280 = vst.msk [vmem:[#allocation2 + $0x78] sm:$0xff] %vm22_vm0, %v264_v3  ;;  %v339_v20 = vadd.f32 %v323_v48, %v307_v6  ;;  %v308_v22 = vadd.f32 %v530_v39, %v285_v17  ;;  %v338_v40 = vld [vmem:[%s671_s3 + $0x78] sm:$0xff] }
  0xec   :  { %v347_v21 = vadd.f32 %v331_v49, %v315_v7  ;;  %v316_v23 = vadd.f32 %v530_v39, %v293_v18  ;;  %270 = vst.msk [vmem:[#allocation2 + $0x28] sm:$0xff] %vm22_vm0, %v254_v11  ;;  %278 = vst.msk [vmem:[#allocation2 + $0x68] sm:$0xff] %vm22_vm0, %v262_v12  ;;  %v342_v24 = vadd.f32 %v326_v56, %v310_v15  ;;  %v328_v45 = vld [vmem:[%s671_s3 + $0x28] sm:$0xff] }
  0xed   :  { %357 = vst.msk [vmem:[%s672_s4 + $0x10] sm:$0xff] %vm22_vm0, %v341_v13  ;;  %365 = vst.msk [vmem:[%s672_s4 + $0x50] sm:$0xff] %vm22_vm0, %v349_v14  ;;  %v350_v25 = vadd.f32 %v334_v1, %v318_v16  ;;  %v340_v26 = vadd.f32 %v324_v10, %v308_v22 }
  0xee   :  { %355 = vst.msk [vmem:[%s672_s4] sm:$0xff] %vm22_vm0, %v339_v20  ;;  %363 = vst.msk [vmem:[%s672_s4 + $0x40] sm:$0xff] %vm22_vm0, %v347_v21  ;;  %v348_v27 = vadd.f32 %v332_v19, %v316_v23 }
  0xef   :  { %358 = vst.msk [vmem:[%s672_s4 + $0x18] sm:$0xff] %vm22_vm0, %v342_v24  ;;  %366 = vst.msk [vmem:[%s672_s4 + $0x58] sm:$0xff] %vm22_vm0, %v350_v25  ;;  %v290_v32 = vld [vmem:[#allocation2 + $0x30] sm:$0xff] }
  0xf0   :  { %356 = vst.msk [vmem:[%s672_s4 + $0x8] sm:$0xff] %vm22_vm0, %v340_v26  ;;  %364 = vst.msk [vmem:[%s672_s4 + $0x48] sm:$0xff] %vm22_vm0, %v348_v27  ;;  %v298_v33 = vld [vmem:[#allocation2 + $0x70] sm:$0xff]  ;;  %v313_v35 = vadd.f32 %v530_v39, %v290_v32  ;;  %v288_v37 = vld [vmem:[#allocation2 + $0x20] sm:$0xff] }
  0xf1   :  { %v321_v36 = vadd.f32 %v530_v39, %v298_v33  ;;  %v296_v38 = vld [vmem:[#allocation2 + $0x60] sm:$0xff]  ;;  %v311_v41 = vadd.f32 %v530_v39, %v288_v37  ;;  %v291_v43 = vld [vmem:[#allocation2 + $0x38] sm:$0xff] }
  0xf2   :  { %v319_v42 = vadd.f32 %v530_v39, %v296_v38  ;;  %v299_v44 = vld [vmem:[#allocation2 + $0x78] sm:$0xff]  ;;  %v345_v46 = vadd.f32 %v329_v28, %v313_v35  ;;  %v314_v48 = vadd.f32 %v530_v39, %v291_v43 }
  0xf3   :  { %v353_v47 = vadd.f32 %v337_v29, %v321_v36  ;;  %v322_v49 = vadd.f32 %v530_v39, %v299_v44  ;;  %v289_v50 = vld [vmem:[#allocation2 + $0x28] sm:$0xff]  ;;  %v343_v53 = vadd.f32 %v327_v30, %v311_v41 }
  0xf4   :  { %v297_v51 = vld [vmem:[#allocation2 + $0x68] sm:$0xff]  ;;  %v351_v54 = vadd.f32 %v335_v31, %v319_v42  ;;  %v312_v55 = vadd.f32 %v530_v39, %v289_v50  ;;  %361 = vst.msk [vmem:[%s672_s4 + $0x30] sm:$0xff] %vm22_vm0, %v345_v46  ;;  %v346_v57 = vadd.f32 %v330_v34, %v314_v48 }
  0xf5   :  { %v320_v56 = vadd.f32 %v530_v39, %v297_v51  ;;  %369 = vst.msk [vmem:[%s672_s4 + $0x70] sm:$0xff] %vm22_vm0, %v353_v47  ;;  %v354_v58 = vadd.f32 %v338_v40, %v322_v49  ;;  %359 = vst.msk [vmem:[%s672_s4 + $0x20] sm:$0xff] %vm22_vm0, %v343_v53 }
  0xf6   :  { %367 = vst.msk [vmem:[%s672_s4 + $0x60] sm:$0xff] %vm22_vm0, %v351_v54  ;;  %v344_v39 = vadd.f32 %v328_v45, %v312_v55  ;;  %362 = vst.msk [vmem:[%s672_s4 + $0x38] sm:$0xff] %vm22_vm0, %v346_v57 }
  0xf7   :  { %v352_v59 = vadd.f32 %v336_v52, %v320_v56  ;;  %370 = vst.msk [vmem:[%s672_s4 + $0x78] sm:$0xff] %vm22_vm0, %v354_v58 }
  0xf8   :  { %360 = vst.msk [vmem:[%s672_s4 + $0x28] sm:$0xff] %vm22_vm0, %v344_v39 }
  0xf9   :  { %368 = vst.msk [vmem:[%s672_s4 + $0x68] sm:$0xff] %vm22_vm0, %v352_v59 }

// kernel: _lambda_.68
= control target key start
LH: loop header
LB: loop body
LE: loop exit
PB: predicated region body
PF: predicated region fallthrough
CT: control target
= control target key end

     0   :  { %vm76_vm0 = vcmask 261120   ;;  %s237_s0 = inlined_call_operand.vmem [shape: f32[128,32], index: 0, kind: input, shape index: {}]   ;;  %s238_s1 = inlined_call_operand.vmem [shape: f32[1,32], index: 1, kind: input, shape index: {}]   ;;  %s239_s2 = inlined_call_operand.vmem [shape: f32[1,32], index: 2, kind: input, shape index: {}]   ;;  %s240_s3 = inlined_call_operand.vmem [shape: f32[128,32], index: 3, kind: output, shape index: {}]  }
   0x1   :  { %v14_v0 = vld [vmem:[%s237_s0] sm:$0xff]  ;;  %v15_v4 = vld [vmem:[%s237_s0 + $0x8] sm:$0xff]  ;;  %v16_v5 = vld [vmem:[%s237_s0 + $0x10] sm:$0xff] }
   0x2   :  { %v97_v1 = vld [vmem:[%s238_s1] ss:$0 sm:$0xff]  ;;  %v17_v6 = vld [vmem:[%s237_s0 + $0x18] sm:$0xff]  ;;  %v19_v11 = vld [vmem:[%s237_s0 + $0x28] sm:$0xff] }
   0x3   :  { %v98_v2 = vld [vmem:[%s239_s2] ss:$0 sm:$0xff]  ;;  %v37_v3 = vmul.f32 %v97_v1, %v14_v0  ;;  %v38_v7 = vmul.f32 %v97_v1, %v15_v4  ;;  %v39_v8 = vmul.f32 %v97_v1, %v16_v5  ;;  %v40_v9 = vmul.f32 %v97_v1, %v17_v6  ;;  %v20_v12 = vld [vmem:[%s237_s0 + $0x30] sm:$0xff]  ;;  %v21_v17 = vld [vmem:[%s237_s0 + $0x38] sm:$0xff] }
   0x4   :  { %v18_v10 = vld [vmem:[%s237_s0 + $0x20] sm:$0xff]  ;;  %v42_v15 = vmul.f32 %v97_v1, %v19_v11  ;;  %v43_v16 = vmul.f32 %v97_v1, %v20_v12  ;;  %v23_v19 = vld [vmem:[%s237_s0 + $0x48] sm:$0xff]  ;;  %v44_v23 = vmul.f32 %v97_v1, %v21_v17  ;;  %v24_v24 = vld [vmem:[%s237_s0 + $0x50] sm:$0xff] }
   0x5   :  { %v60_v13 = vadd.f32 %v98_v2, %v37_v3  ;;  %v41_v14 = vmul.f32 %v97_v1, %v18_v10  ;;  %v22_v18 = vld [vmem:[%s237_s0 + $0x40] sm:$0xff]  ;;  %v61_v20 = vadd.f32 %v98_v2, %v38_v7  ;;  %v62_v21 = vadd.f32 %v98_v2, %v39_v8  ;;  %v25_v25 = vld [vmem:[%s237_s0 + $0x58] sm:$0xff]  ;;  %v27_v31 = vld [vmem:[%s237_s0 + $0x68] sm:$0xff] }
   0x6   :  { %v63_v22 = vadd.f32 %v98_v2, %v40_v9  ;;  %v26_v26 = vld [vmem:[%s237_s0 + $0x60] sm:$0xff]  ;;  %v65_v28 = vadd.f32 %v98_v2, %v42_v15  ;;  %v66_v29 = vadd.f32 %v98_v2, %v43_v16  ;;  %v45_v30 = vmul.f32 %v97_v1, %v22_v18  ;;  %v28_v32 = vld [vmem:[%s237_s0 + $0x70] sm:$0xff]  ;;  %v29_v33 = vld [vmem:[%s237_s0 + $0x78] sm:$0xff] }
   0x7   :  { %77 = vst.msk [vmem:[%s240_s3] sm:$0xff] %vm76_vm0, %v60_v13  ;;  %v64_v27 = vadd.f32 %v98_v2, %v41_v14  ;;  %78 = vst.msk [vmem:[%s240_s3 + $0x8] sm:$0xff] %vm76_vm0, %v61_v20  ;;  %v67_v34 = vadd.f32 %v98_v2, %v44_v23  ;;  %v46_v35 = vmul.f32 %v97_v1, %v23_v19 }
   0x8   :  { %79 = vst.msk [vmem:[%s240_s3 + $0x10] sm:$0xff] %vm76_vm0, %v62_v21  ;;  %80 = vst.msk [vmem:[%s240_s3 + $0x18] sm:$0xff] %vm76_vm0, %v63_v22  ;;  %v47_v36 = vmul.f32 %v97_v1, %v24_v24  ;;  %v48_v37 = vmul.f32 %v97_v1, %v25_v25  ;;  %v68_v38 = vadd.f32 %v98_v2, %v45_v30 }
   0x9   :  { %81 = vst.msk [vmem:[%s240_s3 + $0x20] sm:$0xff] %vm76_vm0, %v64_v27  ;;  %82 = vst.msk [vmem:[%s240_s3 + $0x28] sm:$0xff] %vm76_vm0, %v65_v28  ;;  %v49_v39 = vmul.f32 %v97_v1, %v26_v26  ;;  %v50_v40 = vmul.f32 %v97_v1, %v27_v31  ;;  %v51_v41 = vmul.f32 %v97_v1, %v28_v32 }
   0xa   :  { %83 = vst.msk [vmem:[%s240_s3 + $0x30] sm:$0xff] %vm76_vm0, %v66_v29  ;;  %84 = vst.msk [vmem:[%s240_s3 + $0x38] sm:$0xff] %vm76_vm0, %v67_v34  ;;  %v69_v42 = vadd.f32 %v98_v2, %v46_v35  ;;  %v70_v43 = vadd.f32 %v98_v2, %v47_v36  ;;  %v71_v44 = vadd.f32 %v98_v2, %v48_v37 }
   0xb   :  { %v52_v45 = vmul.f32 %v97_v1, %v29_v33  ;;  %85 = vst.msk [vmem:[%s240_s3 + $0x40] sm:$0xff] %vm76_vm0, %v68_v38  ;;  %v72_v46 = vadd.f32 %v98_v2, %v49_v39  ;;  %v73_v47 = vadd.f32 %v98_v2, %v50_v40  ;;  %v74_v48 = vadd.f32 %v98_v2, %v51_v41 }
   0xc   :  { %86 = vst.msk [vmem:[%s240_s3 + $0x48] sm:$0xff] %vm76_vm0, %v69_v42  ;;  %87 = vst.msk [vmem:[%s240_s3 + $0x50] sm:$0xff] %vm76_vm0, %v70_v43 }
   0xd   :  { %88 = vst.msk [vmem:[%s240_s3 + $0x58] sm:$0xff] %vm76_vm0, %v71_v44  ;;  %v75_v49 = vadd.f32 %v98_v2, %v52_v45  ;;  %89 = vst.msk [vmem:[%s240_s3 + $0x60] sm:$0xff] %vm76_vm0, %v72_v46 }
   0xe   :  { %90 = vst.msk [vmem:[%s240_s3 + $0x68] sm:$0xff] %vm76_vm0, %v73_v47  ;;  %91 = vst.msk [vmem:[%s240_s3 + $0x70] sm:$0xff] %vm76_vm0, %v74_v48 }
   0xf   :  { %92 = vst.msk [vmem:[%s240_s3 + $0x78] sm:$0xff] %vm76_vm0, %v75_v49 }

// kernel: _lambda_.69
= control target key start
LH: loop header
LB: loop body
LE: loop exit
PB: predicated region body
PF: predicated region fallthrough
CT: control target
= control target key end

     0   :  { %vm256_vm0 = vcmask 261120   ;;  %s740_s0 = inlined_call_operand.vmem [shape: f32[4,128,32], index: 0, kind: input, shape index: {}]   ;;  %s741_s1 = inlined_call_operand.vmem [shape: f32[4,1,32], index: 1, kind: input, shape index: {}]   ;;  %s742_s2 = inlined_call_operand.vmem [shape: f32[128,32], index: 2, kind: input, shape index: {}]   ;;  %s743_s3 = inlined_call_operand.vmem [shape: f32[128,32], index: 3, kind: output, shape index: {}]  }
   0x1   :  { %v14_v0 = vld [vmem:[%s742_s2] sm:$0xff]  ;;  %v15_v13 = vld [vmem:[%s742_s2 + $0x8] sm:$0xff]  ;;  %v16_v20 = vld [vmem:[%s742_s2 + $0x10] sm:$0xff] }
   0x2   :  { %v30_v1 = vld [vmem:[%s740_s0] sm:$0xff]  ;;  %v31_v14 = vld [vmem:[%s740_s0 + $0x8] sm:$0xff]  ;;  %v32_v23 = vld [vmem:[%s740_s0 + $0x10] sm:$0xff] }
   0x3   :  { %v361_v2 = vld [vmem:[%s741_s1] ss:$0 sm:$0xff]  ;;  %v370_v5 = vld [vmem:[%s741_s1 + $0x1] ss:$0 sm:$0xff]  ;;  %v379_v8 = vld [vmem:[%s741_s1 + $0x2] ss:$0 sm:$0xff] }
   0x4   :  { %v53_v3 = vmul.f32 %v361_v2, %v30_v1  ;;  %v278_v4 = vld [vmem:[%s740_s0 + $0x80] sm:$0xff]  ;;  %v279_v15 = vld [vmem:[%s740_s0 + $0x88] sm:$0xff]  ;;  %v54_v16 = vmul.f32 %v361_v2, %v31_v14  ;;  %v280_v24 = vld [vmem:[%s740_s0 + $0x90] sm:$0xff]  ;;  %v55_v28 = vmul.f32 %v361_v2, %v32_v23 }
   0x5   :  { %v296_v6 = vld [vmem:[%s740_s0 + $0x100] sm:$0xff]  ;;  %v110_v7 = vmul.f32 %v370_v5, %v278_v4  ;;  %v111_v17 = vmul.f32 %v370_v5, %v279_v15  ;;  %v297_v18 = vld [vmem:[%s740_s0 + $0x108] sm:$0xff]  ;;  %v298_v25 = vld [vmem:[%s740_s0 + $0x110] sm:$0xff]  ;;  %v112_v29 = vmul.f32 %v370_v5, %v280_v24 }
   0x6   :  { %v314_v9 = vld [vmem:[%s740_s0 + $0x180] sm:$0xff]  ;;  %v69_v11 = vadd.f32 %v53_v3, %v14_v0  ;;  %v167_v12 = vmul.f32 %v379_v8, %v296_v6  ;;  %v315_v19 = vld [vmem:[%s740_s0 + $0x188] sm:$0xff]  ;;  %v70_v26 = vadd.f32 %v54_v16, %v15_v13  ;;  %v168_v27 = vmul.f32 %v379_v8, %v297_v18  ;;  %v316_v30 = vld [vmem:[%s740_s0 + $0x190] sm:$0xff] }
   0x7   :  { %v387_v10 = vld [vmem:[%s741_s1 + $0x3] ss:$0 sm:$0xff]  ;;  %v17_v31 = vld [vmem:[%s742_s2 + $0x18] sm:$0xff]  ;;  %v169_v35 = vmul.f32 %v379_v8, %v298_v25  ;;  %v71_v41 = vadd.f32 %v55_v28, %v16_v20  ;;  %v19_v53 = vld [vmem:[%s742_s2 + $0x28] sm:$0xff] }
   0x8   :  { %v126_v21 = vadd.f32 %v110_v7, %v69_v11  ;;  %v224_v22 = vmul.f32 %v387_v10, %v314_v9  ;;  %v33_v32 = vld [vmem:[%s740_s0 + $0x18] sm:$0xff]  ;;  %v225_v34 = vmul.f32 %v387_v10, %v315_v19  ;;  %v127_v40 = vadd.f32 %v111_v17, %v70_v26  ;;  %v18_v44 = vld [vmem:[%s742_s2 + $0x20] sm:$0xff]  ;;  %v35_v58 = vld [vmem:[%s740_s0 + $0x28] sm:$0xff] }
   0x9   :  { %v56_v36 = vmul.f32 %v361_v2, %v33_v32  ;;  %v281_v37 = vld [vmem:[%s740_s0 + $0x98] sm:$0xff]  ;;  %v226_v42 = vmul.f32 %v387_v10, %v316_v30  ;;  %v34_v45 = vld [vmem:[%s740_s0 + $0x20] sm:$0xff]  ;;  %v128_v55 = vadd.f32 %v112_v29, %v71_v41  ;;  %v283_v59 = vld [vmem:[%s740_s0 + $0xa8] sm:$0xff]  ;;  %v58_v0 = vmul.f32 %v361_v2, %v35_v58 }
   0xa   :  { %v183_v33 = vadd.f32 %v167_v12, %v126_v21  ;;  %v299_v38 = vld [vmem:[%s740_s0 + $0x118] sm:$0xff]  ;;  %v113_v43 = vmul.f32 %v370_v5, %v281_v37  ;;  %v282_v46 = vld [vmem:[%s740_s0 + $0xa0] sm:$0xff]  ;;  %v57_v50 = vmul.f32 %v361_v2, %v34_v45  ;;  %v184_v54 = vadd.f32 %v168_v27, %v127_v40  ;;  %v301_v60 = vld [vmem:[%s740_s0 + $0x128] sm:$0xff] }
   0xb   :  { %v317_v39 = vld [vmem:[%s740_s0 + $0x198] sm:$0xff]  ;;  %v72_v48 = vadd.f32 %v56_v36, %v17_v31  ;;  %v170_v49 = vmul.f32 %v379_v8, %v299_v38  ;;  %v300_v51 = vld [vmem:[%s740_s0 + $0x120] sm:$0xff]  ;;  %v114_v57 = vmul.f32 %v370_v5, %v282_v46  ;;  %v319_v1 = vld [vmem:[%s740_s0 + $0x1a8] sm:$0xff]  ;;  %v185_v6 = vadd.f32 %v169_v35, %v128_v55 }
   0xc   :  { %v240_v47 = vadd.f32 %v224_v22, %v183_v33  ;;  %v318_v52 = vld [vmem:[%s740_s0 + $0x1a0] sm:$0xff]  ;;  %v227_v56 = vmul.f32 %v387_v10, %v317_v39  ;;  %v73_v62 = vadd.f32 %v57_v50, %v18_v44  ;;  %v171_v63 = vmul.f32 %v379_v8, %v300_v51  ;;  %v36_v3 = vld [vmem:[%s740_s0 + $0x30] sm:$0xff]  ;;  %v37_v19 = vld [vmem:[%s740_s0 + $0x38] sm:$0xff] }
   0xd   :  { %v129_v61 = vadd.f32 %v113_v43, %v72_v48  ;;  %v241_v4 = vadd.f32 %v225_v34, %v184_v54  ;;  %v228_v7 = vmul.f32 %v387_v10, %v318_v52  ;;  %v115_v9 = vmul.f32 %v370_v5, %v283_v59  ;;  %v20_v11 = vld [vmem:[%s742_s2 + $0x30] sm:$0xff]  ;;  %v285_v20 = vld [vmem:[%s740_s0 + $0xb8] sm:$0xff]  ;;  %v38_v32 = vld [vmem:[%s740_s0 + $0x40] sm:$0xff] }
   0xe   :  { %257 = vst.msk [vmem:[%s743_s3] sm:$0xff] %vm256_vm0, %v240_v47  ;;  %v284_v12 = vld [vmem:[%s740_s0 + $0xb0] sm:$0xff]  ;;  %v130_v15 = vadd.f32 %v114_v57, %v73_v62  ;;  %v74_v16 = vadd.f32 %v58_v0, %v19_v53  ;;  %v172_v17 = vmul.f32 %v379_v8, %v301_v60  ;;  %v242_v21 = vadd.f32 %v226_v42, %v185_v6  ;;  %v21_v25 = vld [vmem:[%s742_s2 + $0x38] sm:$0xff]  ;;  %v286_v33 = vld [vmem:[%s740_s0 + $0xc0] sm:$0xff] }
   0xf   :  { %v302_v13 = vld [vmem:[%s740_s0 + $0x130] sm:$0xff]  ;;  %v186_v14 = vadd.f32 %v170_v49, %v129_v61  ;;  %258 = vst.msk [vmem:[%s743_s3 + $0x8] sm:$0xff] %vm256_vm0, %v241_v4  ;;  %v229_v22 = vmul.f32 %v387_v10, %v319_v1  ;;  %v59_v23 = vmul.f32 %v361_v2, %v36_v3  ;;  %v116_v24 = vmul.f32 %v370_v5, %v284_v12  ;;  %v303_v26 = vld [vmem:[%s740_s0 + $0x138] sm:$0xff]  ;;  %v22_v38 = vld [vmem:[%s742_s2 + $0x40] sm:$0xff] }
  0x10   :  { %v320_v18 = vld [vmem:[%s740_s0 + $0x1b0] sm:$0xff]  ;;  %v187_v28 = vadd.f32 %v171_v63, %v130_v15  ;;  %v131_v29 = vadd.f32 %v115_v9, %v74_v16  ;;  %v173_v30 = vmul.f32 %v379_v8, %v302_v13  ;;  %v321_v31 = vld [vmem:[%s740_s0 + $0x1b8] sm:$0xff]  ;;  %259 = vst.msk [vmem:[%s743_s3 + $0x10] sm:$0xff] %vm256_vm0, %v242_v21  ;;  %v60_v36 = vmul.f32 %v361_v2, %v37_v19  ;;  %v304_v39 = vld [vmem:[%s740_s0 + $0x140] sm:$0xff] }
  0x11   :  { %v243_v27 = vadd.f32 %v227_v56, %v186_v14  ;;  %v75_v34 = vadd.f32 %v59_v23, %v20_v11  ;;  %v230_v35 = vmul.f32 %v387_v10, %v320_v18  ;;  %v117_v37 = vmul.f32 %v370_v5, %v285_v20  ;;  %v39_v40 = vld [vmem:[%s740_s0 + $0x48] sm:$0xff]  ;;  %v322_v45 = vld [vmem:[%s740_s0 + $0x1c0] sm:$0xff]  ;;  %v40_v53 = vld [vmem:[%s740_s0 + $0x50] sm:$0xff] }
  0x12   :  { %v244_v41 = vadd.f32 %v228_v7, %v187_v28  ;;  %v188_v42 = vadd.f32 %v172_v17, %v131_v29  ;;  %v174_v43 = vmul.f32 %v379_v8, %v303_v26  ;;  %v61_v44 = vmul.f32 %v361_v2, %v38_v32  ;;  %v287_v46 = vld [vmem:[%s740_s0 + $0xc8] sm:$0xff]  ;;  %v288_v59 = vld [vmem:[%s740_s0 + $0xd0] sm:$0xff]  ;;  %v41_v11 = vld [vmem:[%s740_s0 + $0x58] sm:$0xff] }
  0x13   :  { %260 = vst.msk [vmem:[%s743_s3 + $0x18] sm:$0xff] %vm256_vm0, %v243_v27  ;;  %v132_v47 = vadd.f32 %v116_v24, %v75_v34  ;;  %v76_v48 = vadd.f32 %v60_v36, %v21_v25  ;;  %v231_v49 = vmul.f32 %v387_v10, %v321_v31  ;;  %v118_v50 = vmul.f32 %v370_v5, %v286_v33  ;;  %v23_v51 = vld [vmem:[%s742_s2 + $0x48] sm:$0xff]  ;;  %v24_v0 = vld [vmem:[%s742_s2 + $0x50] sm:$0xff]  ;;  %v289_v12 = vld [vmem:[%s740_s0 + $0xd8] sm:$0xff] }
  0x14   :  { %v305_v52 = vld [vmem:[%s740_s0 + $0x148] sm:$0xff]  ;;  %261 = vst.msk [vmem:[%s743_s3 + $0x20] sm:$0xff] %vm256_vm0, %v244_v41  ;;  %v245_v54 = vadd.f32 %v229_v22, %v188_v42  ;;  %v77_v55 = vadd.f32 %v61_v44, %v22_v38  ;;  %v175_v56 = vmul.f32 %v379_v8, %v304_v39  ;;  %v62_v57 = vmul.f32 %v361_v2, %v39_v40  ;;  %v306_v1 = vld [vmem:[%s740_s0 + $0x150] sm:$0xff]  ;;  %v25_v17 = vld [vmem:[%s742_s2 + $0x58] sm:$0xff] }
  0x15   :  { %v323_v58 = vld [vmem:[%s740_s0 + $0x1c8] sm:$0xff]  ;;  %v189_v60 = vadd.f32 %v173_v30, %v132_v47  ;;  %v133_v61 = vadd.f32 %v117_v37, %v76_v48  ;;  %v232_v62 = vmul.f32 %v387_v10, %v322_v45  ;;  %v119_v63 = vmul.f32 %v370_v5, %v287_v46  ;;  %v324_v9 = vld [vmem:[%s740_s0 + $0x1d0] sm:$0xff]  ;;  %v307_v18 = vld [vmem:[%s740_s0 + $0x158] sm:$0xff] }
  0x16   :  { %262 = vst.msk [vmem:[%s743_s3 + $0x28] sm:$0xff] %vm256_vm0, %v245_v54  ;;  %v134_v3 = vadd.f32 %v118_v50, %v77_v55  ;;  %v78_v4 = vadd.f32 %v62_v57, %v23_v51  ;;  %v176_v6 = vmul.f32 %v379_v8, %v305_v52  ;;  %v63_v7 = vmul.f32 %v361_v2, %v40_v53  ;;  %v325_v23 = vld [vmem:[%s740_s0 + $0x1d8] sm:$0xff]  ;;  %v42_v24 = vld [vmem:[%s740_s0 + $0x60] sm:$0xff]  ;;  %v43_v31 = vld [vmem:[%s740_s0 + $0x68] sm:$0xff] }
  0x17   :  { %v246_v13 = vadd.f32 %v230_v35, %v189_v60  ;;  %v190_v14 = vadd.f32 %v174_v43, %v133_v61  ;;  %v233_v15 = vmul.f32 %v387_v10, %v323_v58  ;;  %v120_v16 = vmul.f32 %v370_v5, %v288_v59  ;;  %v290_v25 = vld [vmem:[%s740_s0 + $0xe0] sm:$0xff]  ;;  %v291_v38 = vld [vmem:[%s740_s0 + $0xe8] sm:$0xff]  ;;  %v44_v45 = vld [vmem:[%s740_s0 + $0x70] sm:$0xff] }
  0x18   :  { %v191_v19 = vadd.f32 %v175_v56, %v134_v3  ;;  %v135_v20 = vadd.f32 %v119_v63, %v78_v4  ;;  %v79_v21 = vadd.f32 %v63_v7, %v24_v0  ;;  %v177_v22 = vmul.f32 %v379_v8, %v306_v1  ;;  %v308_v30 = vld [vmem:[%s740_s0 + $0x160] sm:$0xff]  ;;  %v27_v43 = vld [vmem:[%s742_s2 + $0x68] sm:$0xff]  ;;  %v292_v51 = vld [vmem:[%s740_s0 + $0xf0] sm:$0xff] }
  0x19   :  { %263 = vst.msk [vmem:[%s743_s3 + $0x30] sm:$0xff] %vm256_vm0, %v246_v13  ;;  %v247_v26 = vadd.f32 %v231_v49, %v190_v14  ;;  %v234_v27 = vmul.f32 %v387_v10, %v324_v9  ;;  %v64_v28 = vmul.f32 %v361_v2, %v41_v11  ;;  %v121_v29 = vmul.f32 %v370_v5, %v289_v12  ;;  %v26_v36 = vld [vmem:[%s742_s2 + $0x60] sm:$0xff]  ;;  %v309_v44 = vld [vmem:[%s740_s0 + $0x168] sm:$0xff]  ;;  %v28_v56 = vld [vmem:[%s742_s2 + $0x70] sm:$0xff] }
  0x1a   :  { %v248_v32 = vadd.f32 %v232_v62, %v191_v19  ;;  %v192_v33 = vadd.f32 %v176_v6, %v135_v20  ;;  %v136_v34 = vadd.f32 %v120_v16, %v79_v21  ;;  %v178_v35 = vmul.f32 %v379_v8, %v307_v18  ;;  %v326_v37 = vld [vmem:[%s740_s0 + $0x1e0] sm:$0xff]  ;;  %v327_v50 = vld [vmem:[%s740_s0 + $0x1e8] sm:$0xff]  ;;  %v310_v57 = vld [vmem:[%s740_s0 + $0x170] sm:$0xff] }
  0x1b   :  { %264 = vst.msk [vmem:[%s743_s3 + $0x38] sm:$0xff] %vm256_vm0, %v247_v26  ;;  %v80_v39 = vadd.f32 %v64_v28, %v25_v17  ;;  %v235_v40 = vmul.f32 %v387_v10, %v325_v23  ;;  %v65_v41 = vmul.f32 %v361_v2, %v42_v24  ;;  %v122_v42 = vmul.f32 %v370_v5, %v290_v25  ;;  %v45_v58 = vld [vmem:[%s740_s0 + $0x78] sm:$0xff]  ;;  %v328_v63 = vld [vmem:[%s740_s0 + $0x1f0] sm:$0xff] }
  0x1c   :  { %265 = vst.msk [vmem:[%s743_s3 + $0x40] sm:$0xff] %vm256_vm0, %v248_v32  ;;  %v249_v46 = vadd.f32 %v233_v15, %v192_v33  ;;  %v193_v47 = vadd.f32 %v177_v22, %v136_v34  ;;  %v179_v48 = vmul.f32 %v379_v8, %v308_v30  ;;  %v66_v49 = vmul.f32 %v361_v2, %v43_v31  ;;  %v293_v0 = vld [vmem:[%s740_s0 + $0xf8] sm:$0xff] }
  0x1d   :  { %v137_v52 = vadd.f32 %v121_v29, %v80_v39  ;;  %v81_v53 = vadd.f32 %v65_v41, %v26_v36  ;;  %v236_v54 = vmul.f32 %v387_v10, %v326_v37  ;;  %v123_v55 = vmul.f32 %v370_v5, %v291_v38  ;;  %v29_v7 = vld [vmem:[%s742_s2 + $0x78] sm:$0xff] }
  0x1e   :  { %266 = vst.msk [vmem:[%s743_s3 + $0x48] sm:$0xff] %vm256_vm0, %v249_v46  ;;  %v250_v59 = vadd.f32 %v234_v27, %v193_v47  ;;  %v82_v60 = vadd.f32 %v66_v49, %v27_v43  ;;  %v180_v61 = vmul.f32 %v379_v8, %v309_v44  ;;  %v67_v62 = vmul.f32 %v361_v2, %v44_v45  ;;  %v311_v9 = vld [vmem:[%s740_s0 + $0x178] sm:$0xff] }
  0x1f   :  { %v194_v1 = vadd.f32 %v178_v35, %v137_v52  ;;  %v138_v3 = vadd.f32 %v122_v42, %v81_v53  ;;  %v237_v4 = vmul.f32 %v387_v10, %v327_v50  ;;  %v124_v6 = vmul.f32 %v370_v5, %v292_v51  ;;  %v329_v19 = vld [vmem:[%s740_s0 + $0x1f8] sm:$0xff] }
  0x20   :  { %267 = vst.msk [vmem:[%s743_s3 + $0x50] sm:$0xff] %vm256_vm0, %v250_v59  ;;  %v139_v11 = vadd.f32 %v123_v55, %v82_v60  ;;  %v83_v12 = vadd.f32 %v67_v62, %v28_v56  ;;  %v181_v13 = vmul.f32 %v379_v8, %v310_v57  ;;  %v68_v14 = vmul.f32 %v361_v2, %v45_v58 }
  0x21   :  { %v251_v15 = vadd.f32 %v235_v40, %v194_v1  ;;  %v195_v16 = vadd.f32 %v179_v48, %v138_v3  ;;  %v238_v17 = vmul.f32 %v387_v10, %v328_v63  ;;  %v125_v18 = vmul.f32 %v370_v5, %v293_v0 }
  0x22   :  { %v196_v20 = vadd.f32 %v180_v61, %v139_v11  ;;  %v140_v21 = vadd.f32 %v124_v6, %v83_v12  ;;  %v84_v22 = vadd.f32 %v68_v14, %v29_v7  ;;  %v182_v23 = vmul.f32 %v379_v8, %v311_v9 }
  0x23   :  { %268 = vst.msk [vmem:[%s743_s3 + $0x58] sm:$0xff] %vm256_vm0, %v251_v15  ;;  %v252_v2 = vadd.f32 %v236_v54, %v195_v16  ;;  %v239_v5 = vmul.f32 %v387_v10, %v329_v19 }
  0x24   :  { %v253_v24 = vadd.f32 %v237_v4, %v196_v20  ;;  %v197_v25 = vadd.f32 %v181_v13, %v140_v21  ;;  %v141_v26 = vadd.f32 %v125_v18, %v84_v22 }
  0x25   :  { %269 = vst.msk [vmem:[%s743_s3 + $0x60] sm:$0xff] %vm256_vm0, %v252_v2 }
  0x26   :  { %270 = vst.msk [vmem:[%s743_s3 + $0x68] sm:$0xff] %vm256_vm0, %v253_v24  ;;  %v254_v8 = vadd.f32 %v238_v17, %v197_v25  ;;  %v198_v27 = vadd.f32 %v182_v23, %v141_v26 }
  0x28   :  { %271 = vst.msk [vmem:[%s743_s3 + $0x70] sm:$0xff] %vm256_vm0, %v254_v8  ;;  %v255_v28 = vadd.f32 %v239_v5, %v198_v27 }
  0x2a   :  { %272 = vst.msk [vmem:[%s743_s3 + $0x78] sm:$0xff] %vm256_vm0, %v255_v28 }

// kernel: _lambda_.71
= control target key start
LH: loop header
LB: loop body
LE: loop exit
PB: predicated region body
PF: predicated region fallthrough
CT: control target
= control target key end

     0   :  { %vm22_vm0 = vcmask 261120   ;;  %v505_v1 = vmov 0.0   ;;  %s744_s1 = inlined_call_operand.vmem [shape: bf16[128,32], index: 1, kind: input, shape index: {}]   ;;  %s745_s0 = inlined_call_operand.vmem [shape: bf16[128,128], index: 0, kind: input, shape index: {}]   ;;  %s746_s2 = inlined_call_operand.vmem [shape: f32[1,32], index: 2, kind: input, shape index: {}]   ;;  %s747_s3 = inlined_call_operand.vmem [shape: f32[128,32], index: 3, kind: input, shape index: {}]   ;;  %s748_s4 = inlined_call_operand.vmem [shape: f32[128,32], index: 4, kind: output, shape index: {}]  }
   0x1   :  { %v489_v0 = vld [vmem:[%s744_s1] sm:$0xff]   ;;  %25 = vst.msk [vmem:[#allocation2 + $0x10] sm:$0xff] %vm22_vm0, %v505_v1  ;;  %23 = vst.msk [vmem:[#allocation2] sm:$0xff] %vm22_vm0, %v505_v1  ;;  %v490_v2 = vld [vmem:[%s744_s1 + $0x8] sm:$0xff]  }
   0x2   :  { %24 = vst.msk [vmem:[#allocation2 + $0x8] sm:$0xff] %vm22_vm0, %v505_v1  ;;  %26 = vst.msk [vmem:[#allocation2 + $0x18] sm:$0xff] %vm22_vm0, %v505_v1  ;;  %440 = vmatprep.subr.bf16.mxu0 %v489_v0  ;;  %472 = vmatprep.subr.bf16.mxu1 %v489_v0  ;;  %v491_v3 = vld [vmem:[%s744_s1 + $0x10] sm:$0xff]   ;;  %v492_v4 = vld [vmem:[%s744_s1 + $0x18] sm:$0xff]  }
   0x3   :  { %27 = vst.msk [vmem:[#allocation2 + $0x20] sm:$0xff] %vm22_vm0, %v505_v1  ;;  %28 = vst.msk [vmem:[#allocation2 + $0x28] sm:$0xff] %vm22_vm0, %v505_v1  ;;  %441 = vmatpush3.bf16.msra.mxu0 %v489_v0  ;;  %480 = vmatpush3.bf16.msra.mxu1 %v489_v0  ;;  %v497_v5 = vld [vmem:[%s745_s0] sm:$0xff]   ;;  %v494_v8 = vld [vmem:[%s744_s1 + $0x28] sm:$0xff]  }
   0x4   :  { %29 = vst.msk [vmem:[#allocation2 + $0x30] sm:$0xff] %vm22_vm0, %v505_v1  ;;  %30 = vst.msk [vmem:[#allocation2 + $0x38] sm:$0xff] %vm22_vm0, %v505_v1  ;;  %442 = vmatprep.subr.bf16.mxu0 %v490_v2  ;;  %473 = vmatprep.subr.bf16.mxu1 %v490_v2  ;;  %v498_v6 = vld [vmem:[%s745_s0 + $0x20] sm:$0xff]   ;;  %v495_v9 = vld [vmem:[%s744_s1 + $0x30] sm:$0xff]  }
   0x5   :  { %31 = vst.msk [vmem:[#allocation2 + $0x40] sm:$0xff] %vm22_vm0, %v505_v1  ;;  %32 = vst.msk [vmem:[#allocation2 + $0x48] sm:$0xff] %vm22_vm0, %v505_v1  ;;  %456 = vmatprep.mubr.bf16.mxu0 %v497_v5  ;;  %v493_v7 = vld [vmem:[%s744_s1 + $0x20] sm:$0xff]   ;;  %464 = vmatprep.mubr.bf16.mxu1 %v498_v6  ;;  %v496_v10 = vld [vmem:[%s744_s1 + $0x38] sm:$0xff]  }
   0x6   :  { %33 = vst.msk [vmem:[#allocation2 + $0x50] sm:$0xff] %vm22_vm0, %v505_v1  ;;  %34 = vst.msk [vmem:[#allocation2 + $0x58] sm:$0xff] %vm22_vm0, %v505_v1  ;;  %v499_v11 = vld [vmem:[%s745_s0 + $0x8] sm:$0xff]   ;;  %v501_v13 = vld [vmem:[%s745_s0 + $0x10] sm:$0xff]  }
   0x7   :  { %35 = vst.msk [vmem:[#allocation2 + $0x60] sm:$0xff] %vm22_vm0, %v505_v1  ;;  %36 = vst.msk [vmem:[#allocation2 + $0x68] sm:$0xff] %vm22_vm0, %v505_v1  ;;  %443 = vmatpush3.bf16.msra.mxu0 %v490_v2  ;;  %481 = vmatpush3.bf16.msra.mxu1 %v490_v2  ;;  %v500_v12 = vld [vmem:[%s745_s0 + $0x28] sm:$0xff]   ;;  %v502_v14 = vld [vmem:[%s745_s0 + $0x30] sm:$0xff]  }
   0x8   :  { %37 = vst.msk [vmem:[#allocation2 + $0x70] sm:$0xff] %vm22_vm0, %v505_v1  ;;  %38 = vst.msk [vmem:[#allocation2 + $0x78] sm:$0xff] %vm22_vm0, %v505_v1  ;;  %444 = vmatprep.subr.bf16.mxu0 %v491_v3  ;;  %474 = vmatprep.subr.bf16.mxu1 %v491_v3  ;;  %v503_v15 = vld [vmem:[%s745_s0 + $0x18] sm:$0xff]   ;;  %v41_v17 = vld [vmem:[#allocation2 + $0x10] sm:$0xff] }
   0x9   :  { %v504_v16 = vld [vmem:[%s745_s0 + $0x38] sm:$0xff]   ;;  %v39_v19 = vld [vmem:[#allocation2] sm:$0xff]  ;;  %v40_v29 = vld [vmem:[#allocation2 + $0x8] sm:$0xff] }
   0xa   :  { %v42_v23 = vld [vmem:[#allocation2 + $0x18] sm:$0xff]  ;;  %v43_v43 = vld [vmem:[#allocation2 + $0x20] sm:$0xff]  ;;  %v357_v48 = vld [vmem:[%s747_s3 + $0x10] sm:$0xff] }
   0xb   :  { %445 = vmatpush3.bf16.msra.mxu0 %v491_v3  ;;  %482 = vmatpush3.bf16.msra.mxu1 %v491_v3  ;;  %v45_v41 = vld [vmem:[#allocation2 + $0x30] sm:$0xff]  ;;  %v606_v45 = vld [vmem:[%s746_s2] ss:$0 sm:$0xff]  ;;  %v46_v46 = vld [vmem:[#allocation2 + $0x38] sm:$0xff] }
   0xc   :  { %446 = vmatprep.subr.bf16.mxu0 %v492_v4  ;;  %475 = vmatprep.subr.bf16.mxu1 %v492_v4  ;;  %v47_v20 = vld [vmem:[#allocation2 + $0x40] sm:$0xff]  ;;  %v48_v30 = vld [vmem:[#allocation2 + $0x48] sm:$0xff]  ;;  %v365_v53 = vld [vmem:[%s747_s3 + $0x50] sm:$0xff] }
   0xd   :  { %v49_v18 = vld [vmem:[#allocation2 + $0x50] sm:$0xff]  ;;  %v50_v24 = vld [vmem:[#allocation2 + $0x58] sm:$0xff]  ;;  %v44_v51 = vld [vmem:[#allocation2 + $0x28] sm:$0xff] }
   0xe   :  { %v51_v44 = vld [vmem:[#allocation2 + $0x60] sm:$0xff]  ;;  %v52_v52 = vld [vmem:[#allocation2 + $0x68] sm:$0xff]  ;;  %v358_v62 = vld [vmem:[%s747_s3 + $0x18] sm:$0xff] }
   0xf   :  { %447 = vmatpush3.bf16.msra.mxu0 %v492_v4  ;;  %483 = vmatpush3.bf16.msra.mxu1 %v492_v4  ;;  %v53_v42 = vld [vmem:[#allocation2 + $0x70] sm:$0xff]  ;;  %v54_v47 = vld [vmem:[#allocation2 + $0x78] sm:$0xff]  ;;  %v355_v54 = vld [vmem:[%s747_s3] sm:$0xff] }
  0x10   :  { %448 = vmatprep.subr.bf16.mxu0 %v493_v7  ;;  %476 = vmatprep.subr.bf16.mxu1 %v493_v7  ;;  %v363_v55 = vld [vmem:[%s747_s3 + $0x40] sm:$0xff] }
  0x13   :  { %449 = vmatpush3.bf16.msra.mxu0 %v493_v7  ;;  %484 = vmatpush3.bf16.msra.mxu1 %v493_v7  ;;  %v366_v7 = vld [vmem:[%s747_s3 + $0x58] sm:$0xff] }
  0x14   :  { %450 = vmatprep.subr.bf16.mxu0 %v494_v8  ;;  %477 = vmatprep.subr.bf16.mxu1 %v494_v8 }
  0x17   :  { %451 = vmatpush3.bf16.msra.mxu0 %v494_v8  ;;  %485 = vmatpush3.bf16.msra.mxu1 %v494_v8 }
  0x18   :  { %452 = vmatprep.subr.bf16.mxu0 %v495_v9  ;;  %478 = vmatprep.subr.bf16.mxu1 %v495_v9 }
  0x1b   :  { %453 = vmatpush3.bf16.msra.mxu0 %v495_v9  ;;  %486 = vmatpush3.bf16.msra.mxu1 %v495_v9 }
  0x1c   :  { %454 = vmatprep.subr.bf16.mxu0 %v496_v10  ;;  %479 = vmatprep.subr.bf16.mxu1 %v496_v10 }
  0x1f   :  { %455 = vmatpush3.bf16.msra.mxu0 %v496_v10  ;;  %487 = vmatpush3.bf16.msra.mxu1 %v496_v10 }
  0x22   :  { %457 = vmatmul.mubr.bf16.vlgmr.msra.gmra.mrb[0].mxu0 %v499_v11  ;;  %465 = vmatmul.mubr.bf16.vlgmr.msra.gmra.mrb[0].mxu1 %v500_v12 }
  0x23   :  { %460 = vmatprep.mubr.bf16.mxu0 %v501_v13  ;;  %468 = vmatprep.mubr.bf16.mxu1 %v502_v14 }
  0x2a   :  { %461 = vmatmul.mubr.bf16.gmra.mrb[4].mxu0 %v503_v15  ;;  %469 = vmatmul.mubr.bf16.gmra.mrb[4].mxu1 %v504_v16  ;;  %v356_v16 = vld [vmem:[%s747_s3 + $0x8] sm:$0xff] }
  0xf5   :  { %v458_v21 = vpop.f32.mrb[0].mxu0  ;;  %v466_v22 = vpop.f32.mrb[0].mxu1 }
  0xf6   :  { %v282_v25 = vadd.f32 %v458_v21, %v41_v17  ;;  %v290_v26 = vadd.f32 %v466_v22, %v49_v18  ;;  %v217_v27 = vpop.f32.mrb[1].mxu0  ;;  %v249_v28 = vpop.f32.mrb[1].mxu1 }
  0xf7   :  { %v280_v31 = vadd.f32 %v217_v27, %v39_v19  ;;  %v288_v32 = vadd.f32 %v249_v28, %v47_v20  ;;  %v459_v33 = vpop.f32.mrb[2].mxu0  ;;  %v467_v34 = vpop.f32.mrb[2].mxu1 }
  0xf8   :  { %299 = vst.msk [vmem:[#allocation2 + $0x10] sm:$0xff] %vm22_vm0, %v282_v25  ;;  %307 = vst.msk [vmem:[#allocation2 + $0x50] sm:$0xff] %vm22_vm0, %v290_v26  ;;  %v283_v35 = vadd.f32 %v459_v33, %v42_v23  ;;  %v291_v36 = vadd.f32 %v467_v34, %v50_v24  ;;  %v220_v37 = vpop.f32.mrb[3].mxu0  ;;  %v252_v38 = vpop.f32.mrb[3].mxu1  ;;  %v364_v25 = vld [vmem:[%s747_s3 + $0x48] sm:$0xff]  ;;  %v361_v34 = vld [vmem:[%s747_s3 + $0x30] sm:$0xff] }
  0xf9   :  { %297 = vst.msk [vmem:[#allocation2] sm:$0xff] %vm22_vm0, %v280_v31  ;;  %305 = vst.msk [vmem:[#allocation2 + $0x40] sm:$0xff] %vm22_vm0, %v288_v32  ;;  %v281_v39 = vadd.f32 %v220_v37, %v40_v29  ;;  %v289_v40 = vadd.f32 %v252_v38, %v48_v30  ;;  %v367_v37 = vld [vmem:[%s747_s3 + $0x60] sm:$0xff] }
  0xfa   :  { %300 = vst.msk [vmem:[#allocation2 + $0x18] sm:$0xff] %vm22_vm0, %v283_v35  ;;  %308 = vst.msk [vmem:[#allocation2 + $0x58] sm:$0xff] %vm22_vm0, %v291_v36  ;;  %v369_v35 = vld [vmem:[%s747_s3 + $0x70] sm:$0xff]  ;;  %v359_v36 = vld [vmem:[%s747_s3 + $0x20] sm:$0xff] }
  0xfb   :  { %298 = vst.msk [vmem:[#allocation2 + $0x8] sm:$0xff] %vm22_vm0, %v281_v39  ;;  %306 = vst.msk [vmem:[#allocation2 + $0x48] sm:$0xff] %vm22_vm0, %v289_v40  ;;  %v362_v40 = vld [vmem:[%s747_s3 + $0x38] sm:$0xff] }
  0xfd   :  { %v462_v49 = vpop.f32.mrb[4].mxu0  ;;  %v470_v50 = vpop.f32.mrb[4].mxu1 }
  0xfe   :  { %v286_v56 = vadd.f32 %v462_v49, %v45_v41  ;;  %v294_v57 = vadd.f32 %v470_v50, %v53_v42  ;;  %v233_v58 = vpop.f32.mrb[5].mxu0  ;;  %v265_v59 = vpop.f32.mrb[5].mxu1 }
  0xff   :  { %v318_v60 = vld [vmem:[#allocation2 + $0x10] sm:$0xff]  ;;  %v284_v63 = vadd.f32 %v233_v58, %v43_v43  ;;  %v292_v0 = vadd.f32 %v265_v59, %v51_v44  ;;  %v463_v1 = vpop.f32.mrb[6].mxu0  ;;  %v471_v2 = vpop.f32.mrb[6].mxu1  ;;  %v368_v58 = vld [vmem:[%s747_s3 + $0x68] sm:$0xff] }
 0x100   :  { %v326_v61 = vld [vmem:[#allocation2 + $0x50] sm:$0xff]  ;;  %v341_v3 = vadd.f32 %v606_v45, %v318_v60  ;;  %v316_v5 = vld [vmem:[#allocation2] sm:$0xff]  ;;  %303 = vst.msk [vmem:[#allocation2 + $0x30] sm:$0xff] %vm22_vm0, %v286_v56  ;;  %311 = vst.msk [vmem:[#allocation2 + $0x70] sm:$0xff] %vm22_vm0, %v294_v57  ;;  %v287_v8 = vadd.f32 %v463_v1, %v46_v46  ;;  %v295_v9 = vadd.f32 %v471_v2, %v54_v47  ;;  %v236_v10 = vpop.f32.mrb[7].mxu0  ;;  %v268_v11 = vpop.f32.mrb[7].mxu1 }
 0x101   :  { %v349_v4 = vadd.f32 %v606_v45, %v326_v61  ;;  %v324_v6 = vld [vmem:[#allocation2 + $0x40] sm:$0xff]  ;;  %v339_v12 = vadd.f32 %v606_v45, %v316_v5  ;;  %v319_v14 = vld [vmem:[#allocation2 + $0x18] sm:$0xff]  ;;  %301 = vst.msk [vmem:[#allocation2 + $0x20] sm:$0xff] %vm22_vm0, %v284_v63  ;;  %309 = vst.msk [vmem:[#allocation2 + $0x60] sm:$0xff] %vm22_vm0, %v292_v0  ;;  %v285_v17 = vadd.f32 %v236_v10, %v44_v51 }
 0x102   :  { %v347_v13 = vadd.f32 %v606_v45, %v324_v6  ;;  %v327_v15 = vld [vmem:[#allocation2 + $0x58] sm:$0xff]  ;;  %v293_v18 = vadd.f32 %v268_v11, %v52_v52  ;;  %v373_v19 = vadd.f32 %v357_v48, %v341_v3  ;;  %v342_v21 = vadd.f32 %v606_v45, %v319_v14  ;;  %v317_v23 = vld [vmem:[#allocation2 + $0x8] sm:$0xff]  ;;  %304 = vst.msk [vmem:[#allocation2 + $0x38] sm:$0xff] %vm22_vm0, %v287_v8 }
 0x103   :  { %v381_v20 = vadd.f32 %v365_v53, %v349_v4  ;;  %v350_v22 = vadd.f32 %v606_v45, %v327_v15  ;;  %v325_v24 = vld [vmem:[#allocation2 + $0x48] sm:$0xff]  ;;  %312 = vst.msk [vmem:[#allocation2 + $0x78] sm:$0xff] %vm22_vm0, %v295_v9  ;;  %v371_v26 = vadd.f32 %v355_v54, %v339_v12  ;;  %v340_v28 = vadd.f32 %v606_v45, %v317_v23  ;;  %v370_v46 = vld [vmem:[%s747_s3 + $0x78] sm:$0xff] }
 0x104   :  { %v379_v27 = vadd.f32 %v363_v55, %v347_v13  ;;  %v348_v29 = vadd.f32 %v606_v45, %v325_v24  ;;  %302 = vst.msk [vmem:[#allocation2 + $0x28] sm:$0xff] %vm22_vm0, %v285_v17  ;;  %310 = vst.msk [vmem:[#allocation2 + $0x68] sm:$0xff] %vm22_vm0, %v293_v18  ;;  %v374_v30 = vadd.f32 %v358_v62, %v342_v21  ;;  %v360_v51 = vld [vmem:[%s747_s3 + $0x28] sm:$0xff] }
 0x105   :  { %389 = vst.msk [vmem:[%s748_s4 + $0x10] sm:$0xff] %vm22_vm0, %v373_v19  ;;  %397 = vst.msk [vmem:[%s748_s4 + $0x50] sm:$0xff] %vm22_vm0, %v381_v20  ;;  %v382_v31 = vadd.f32 %v366_v7, %v350_v22  ;;  %v372_v32 = vadd.f32 %v356_v16, %v340_v28 }
 0x106   :  { %387 = vst.msk [vmem:[%s748_s4] sm:$0xff] %vm22_vm0, %v371_v26  ;;  %395 = vst.msk [vmem:[%s748_s4 + $0x40] sm:$0xff] %vm22_vm0, %v379_v27  ;;  %v380_v33 = vadd.f32 %v364_v25, %v348_v29 }
 0x107   :  { %390 = vst.msk [vmem:[%s748_s4 + $0x18] sm:$0xff] %vm22_vm0, %v374_v30  ;;  %398 = vst.msk [vmem:[%s748_s4 + $0x58] sm:$0xff] %vm22_vm0, %v382_v31  ;;  %v322_v38 = vld [vmem:[#allocation2 + $0x30] sm:$0xff] }
 0x108   :  { %388 = vst.msk [vmem:[%s748_s4 + $0x8] sm:$0xff] %vm22_vm0, %v372_v32  ;;  %396 = vst.msk [vmem:[%s748_s4 + $0x48] sm:$0xff] %vm22_vm0, %v380_v33  ;;  %v330_v39 = vld [vmem:[#allocation2 + $0x70] sm:$0xff]  ;;  %v345_v41 = vadd.f32 %v606_v45, %v322_v38  ;;  %v320_v43 = vld [vmem:[#allocation2 + $0x20] sm:$0xff] }
 0x109   :  { %v353_v42 = vadd.f32 %v606_v45, %v330_v39  ;;  %v328_v44 = vld [vmem:[#allocation2 + $0x60] sm:$0xff]  ;;  %v343_v47 = vadd.f32 %v606_v45, %v320_v43  ;;  %v323_v49 = vld [vmem:[#allocation2 + $0x38] sm:$0xff] }
 0x10a   :  { %v351_v48 = vadd.f32 %v606_v45, %v328_v44  ;;  %v331_v50 = vld [vmem:[#allocation2 + $0x78] sm:$0xff]  ;;  %v377_v52 = vadd.f32 %v361_v34, %v345_v41  ;;  %v346_v54 = vadd.f32 %v606_v45, %v323_v49 }
 0x10b   :  { %v385_v53 = vadd.f32 %v369_v35, %v353_v42  ;;  %v354_v55 = vadd.f32 %v606_v45, %v331_v50  ;;  %v321_v56 = vld [vmem:[#allocation2 + $0x28] sm:$0xff]  ;;  %v375_v59 = vadd.f32 %v359_v36, %v343_v47 }
 0x10c   :  { %v329_v57 = vld [vmem:[#allocation2 + $0x68] sm:$0xff]  ;;  %v383_v60 = vadd.f32 %v367_v37, %v351_v48  ;;  %v344_v61 = vadd.f32 %v606_v45, %v321_v56  ;;  %393 = vst.msk [vmem:[%s748_s4 + $0x30] sm:$0xff] %vm22_vm0, %v377_v52  ;;  %v378_v63 = vadd.f32 %v362_v40, %v346_v54 }
 0x10d   :  { %v352_v62 = vadd.f32 %v606_v45, %v329_v57  ;;  %401 = vst.msk [vmem:[%s748_s4 + $0x70] sm:$0xff] %vm22_vm0, %v385_v53  ;;  %v386_v0 = vadd.f32 %v370_v46, %v354_v55  ;;  %391 = vst.msk [vmem:[%s748_s4 + $0x20] sm:$0xff] %vm22_vm0, %v375_v59 }
 0x10e   :  { %399 = vst.msk [vmem:[%s748_s4 + $0x60] sm:$0xff] %vm22_vm0, %v383_v60  ;;  %v376_v45 = vadd.f32 %v360_v51, %v344_v61  ;;  %394 = vst.msk [vmem:[%s748_s4 + $0x38] sm:$0xff] %vm22_vm0, %v378_v63 }
 0x10f   :  { %v384_v1 = vadd.f32 %v368_v58, %v352_v62  ;;  %402 = vst.msk [vmem:[%s748_s4 + $0x78] sm:$0xff] %vm22_vm0, %v386_v0 }
 0x110   :  { %392 = vst.msk [vmem:[%s748_s4 + $0x28] sm:$0xff] %vm22_vm0, %v376_v45 }
 0x111   :  { %400 = vst.msk [vmem:[%s748_s4 + $0x68] sm:$0xff] %vm22_vm0, %v384_v1 }

// kernel: _lambda_.70
= control target key start
LH: loop header
LB: loop body
LE: loop exit
PB: predicated region body
PF: predicated region fallthrough
CT: control target
= control target key end

     0   :  { %vm123_vm0 = vcmask 261120   ;;  %s662_s1 = inlined_call_operand.vmem [shape: bf16[32,128], index: 1, kind: input, shape index: {}]   ;;  %s663_s0 = inlined_call_operand.vmem [shape: bf16[128,32], index: 0, kind: input, shape index: {}]   ;;  %s664_s2 = inlined_call_operand.vmem [shape: f32[1,128], index: 2, kind: input, shape index: {}]   ;;  %s665_s3 = inlined_call_operand.vmem [shape: bf16[128,128], index: 3, kind: output, shape index: {}]  }
   0x1   :  { %v567_v0 = vld [vmem:[%s662_s1] sm:$0xff]   ;;  %v568_v1 = vld [vmem:[%s662_s1 + $0x8] sm:$0xff]   ;;  %v573_v6 = vld [vmem:[%s663_s0 + $0x10] sm:$0xff]  }
   0x2   :  { %543 = vmatprep.subr.bf16.mxu0 %v567_v0  ;;  %563 = vmatprep.subr.bf16.mxu1 %v567_v0  ;;  %v569_v2 = vld [vmem:[%s663_s0] sm:$0xff]   ;;  %v571_v4 = vld [vmem:[%s663_s0 + $0x8] sm:$0xff]   ;;  %v574_v7 = vld [vmem:[%s663_s0 + $0x30] sm:$0xff]  }
   0x3   :  { %544 = vmatpush3.bf16.msra.mxu0 %v567_v0  ;;  %565 = vmatpush3.bf16.msra.mxu1 %v567_v0  ;;  %v570_v3 = vld [vmem:[%s663_s0 + $0x20] sm:$0xff]   ;;  %v572_v5 = vld [vmem:[%s663_s0 + $0x28] sm:$0xff]   ;;  %v575_v8 = vld [vmem:[%s663_s0 + $0x18] sm:$0xff]  }
   0x4   :  { %545 = vmatprep.subr.bf16.mxu0 %v568_v1  ;;  %564 = vmatprep.subr.bf16.mxu1 %v568_v1  ;;  %v576_v9 = vld [vmem:[%s663_s0 + $0x38] sm:$0xff]   ;;  %v453_v10 = vld [vmem:[%s664_s2] ss:$0 sm:$0xff] }
   0x5   :  { %547 = vmatprep.mubr.msk.bf16.mxu0 %vm123_vm0, %v569_v2  ;;  %555 = vmatprep.mubr.msk.bf16.mxu1 %vm123_vm0, %v570_v3 }
   0x7   :  { %546 = vmatpush3.bf16.msra.mxu0 %v568_v1  ;;  %566 = vmatpush3.bf16.msra.mxu1 %v568_v1 }
   0xa   :  { %548 = vmatmul.mubr.msk.bf16.vlgmr.msra.gmra.mrb[0].mxu0 %vm123_vm0, %v571_v4  ;;  %556 = vmatmul.mubr.msk.bf16.vlgmr.msra.gmra.mrb[0].mxu1 %vm123_vm0, %v572_v5 }
   0xb   :  { %551 = vmatprep.mubr.msk.bf16.mxu0 %vm123_vm0, %v573_v6  ;;  %559 = vmatprep.mubr.msk.bf16.mxu1 %vm123_vm0, %v574_v7 }
  0x12   :  { %552 = vmatmul.mubr.msk.bf16.gmra.mrb[4].mxu0 %vm123_vm0, %v575_v8  ;;  %560 = vmatmul.mubr.msk.bf16.gmra.mrb[4].mxu1 %vm123_vm0, %v576_v9 }
  0xdd   :  { %v549_v11 = vpop.f32.mrb[0].mxu0  ;;  %v557_v12 = vpop.f32.mrb[0].mxu1 }
  0xde   :  { %v305_v13 = vadd.f32 %v549_v11, %v453_v10  ;;  %v313_v14 = vadd.f32 %v557_v12, %v453_v10  ;;  %v182_v15 = vpop.f32.mrb[1].mxu0  ;;  %v214_v16 = vpop.f32.mrb[1].mxu1 }
  0xdf   :  { %v303_v17 = vadd.f32 %v453_v10, %v182_v15  ;;  %v311_v18 = vadd.f32 %v453_v10, %v214_v16  ;;  %v550_v19 = vpop.f32.mrb[2].mxu0  ;;  %v558_v20 = vpop.f32.mrb[2].mxu1 }
  0xe0   :  { %v321_v21 = vmax.f32 %v305_v13, 0.0  ;;  %v329_v22 = vmax.f32 %v313_v14, 0.0  ;;  %v306_v23 = vadd.f32 %v550_v19, %v453_v10  ;;  %v314_v24 = vadd.f32 %v558_v20, %v453_v10  ;;  %v185_v25 = vpop.f32.mrb[3].mxu0  ;;  %v217_v26 = vpop.f32.mrb[3].mxu1 }
  0xe1   :  { %v319_v27 = vmax.f32 %v303_v17, 0.0  ;;  %v327_v28 = vmax.f32 %v311_v18, 0.0  ;;  %v304_v29 = vadd.f32 %v453_v10, %v185_v25  ;;  %v312_v30 = vadd.f32 %v453_v10, %v217_v26 }
  0xe2   :  { %v322_v31 = vmax.f32 %v306_v23, 0.0  ;;  %v330_v32 = vmax.f32 %v314_v24, 0.0  ;;  %v337_v35 = vmin.f32 %v321_v21, 6.0  ;;  %v345_v36 = vmin.f32 %v329_v22, 6.0 }
  0xe3   :  { %v320_v33 = vmax.f32 %v304_v29, 0.0  ;;  %v328_v34 = vmax.f32 %v312_v30, 0.0  ;;  %v335_v39 = vmin.f32 %v319_v27, 6.0  ;;  %v343_v40 = vmin.f32 %v327_v28, 6.0 }
  0xe4   :  { %v338_v37 = vmin.f32 %v322_v31, 6.0  ;;  %v346_v38 = vmin.f32 %v330_v32, 6.0 }
  0xe5   :  { %v336_v41 = vmin.f32 %v320_v33, 6.0  ;;  %v344_v42 = vmin.f32 %v328_v34, 6.0  ;;  %v553_v43 = vpop.f32.mrb[4].mxu0  ;;  %v561_v44 = vpop.f32.mrb[4].mxu1 }
  0xe6   :  { %v494_v45 = vpack.c.bf16 %v338_v37, %v337_v35  ;;  %v514_v46 = vpack.c.bf16 %v346_v38, %v345_v36  ;;  %v309_v47 = vadd.f32 %v553_v43, %v453_v10  ;;  %v317_v48 = vadd.f32 %v561_v44, %v453_v10  ;;  %v198_v49 = vpop.f32.mrb[5].mxu0  ;;  %v230_v50 = vpop.f32.mrb[5].mxu1 }
  0xe7   :  { %v489_v51 = vpack.c.bf16 %v336_v41, %v335_v39  ;;  %v509_v52 = vpack.c.bf16 %v344_v42, %v343_v40  ;;  %v307_v53 = vadd.f32 %v453_v10, %v198_v49  ;;  %v315_v54 = vadd.f32 %v453_v10, %v230_v50  ;;  %v554_v55 = vpop.f32.mrb[6].mxu0  ;;  %v562_v56 = vpop.f32.mrb[6].mxu1 }
  0xe8   :  { %526 = vst [vmem:[%s665_s3 + $0x8] sm:$0xff] %v494_v45   ;;  %530 = vst [vmem:[%s665_s3 + $0x28] sm:$0xff] %v514_v46   ;;  %v325_v57 = vmax.f32 %v309_v47, 0.0  ;;  %v333_v58 = vmax.f32 %v317_v48, 0.0  ;;  %v310_v59 = vadd.f32 %v554_v55, %v453_v10  ;;  %v318_v60 = vadd.f32 %v562_v56, %v453_v10  ;;  %v201_v61 = vpop.f32.mrb[7].mxu0  ;;  %v233_v62 = vpop.f32.mrb[7].mxu1 }
  0xe9   :  { %490 = vst [vmem:[%s665_s3] sm:$0xff] %v489_v51   ;;  %529 = vst [vmem:[%s665_s3 + $0x20] sm:$0xff] %v509_v52   ;;  %v323_v63 = vmax.f32 %v307_v53, 0.0  ;;  %v331_v0 = vmax.f32 %v315_v54, 0.0  ;;  %v308_v1 = vadd.f32 %v453_v10, %v201_v61  ;;  %v316_v2 = vadd.f32 %v453_v10, %v233_v62 }
  0xea   :  { %v326_v3 = vmax.f32 %v310_v59, 0.0  ;;  %v334_v4 = vmax.f32 %v318_v60, 0.0  ;;  %v341_v7 = vmin.f32 %v325_v57, 6.0  ;;  %v349_v8 = vmin.f32 %v333_v58, 6.0 }
  0xeb   :  { %v324_v5 = vmax.f32 %v308_v1, 0.0  ;;  %v332_v6 = vmax.f32 %v316_v2, 0.0  ;;  %v339_v12 = vmin.f32 %v323_v63, 6.0  ;;  %v347_v13 = vmin.f32 %v331_v0, 6.0 }
  0xec   :  { %v342_v9 = vmin.f32 %v326_v3, 6.0  ;;  %v350_v11 = vmin.f32 %v334_v4, 6.0 }
  0xed   :  { %v340_v14 = vmin.f32 %v324_v5, 6.0  ;;  %v348_v15 = vmin.f32 %v332_v6, 6.0 }
  0xee   :  { %v504_v16 = vpack.c.bf16 %v342_v9, %v341_v7  ;;  %v524_v17 = vpack.c.bf16 %v350_v11, %v349_v8 }
  0xef   :  { %v499_v18 = vpack.c.bf16 %v340_v14, %v339_v12  ;;  %v519_v19 = vpack.c.bf16 %v348_v15, %v347_v13 }
  0xf0   :  { %528 = vst [vmem:[%s665_s3 + $0x18] sm:$0xff] %v504_v16   ;;  %532 = vst [vmem:[%s665_s3 + $0x38] sm:$0xff] %v524_v17  }
  0xf1   :  { %527 = vst [vmem:[%s665_s3 + $0x10] sm:$0xff] %v499_v18   ;;  %531 = vst [vmem:[%s665_s3 + $0x30] sm:$0xff] %v519_v19  }

// kernel: tile.23
= control target key start
LH: loop header
LB: loop body
LE: loop exit
PB: predicated region body
PF: predicated region fallthrough
CT: control target
= control target key end

     0   :  { %s22_s0 = inlined_call_operand.vmem [shape: f32[32], index: 0, kind: input, shape index: {}]   ;;  %s23_s1 = inlined_call_operand.vmem [shape: f32[4,32], index: 1, kind: output, shape index: {}]  }
   0x1   :  { %v4_v0 = vld [vmem:[%s22_s0] ss:$0 sm:$0xff] }
   0x2   :  { %5 = vst [vmem:[%s23_s1] sm:$0xf] %v4_v0 }

// kernel: mul.146
= control target key start
LH: loop header
LB: loop body
LE: loop exit
PB: predicated region body
PF: predicated region fallthrough
CT: control target
= control target key end

     0   :  { %vm7_vm0 = vcmask 261120   ;;  %s37_s8 = smov 32   ;;  %s38_s9 = smov 64   ;;  %vm13_vm1 = vcmask 1048320   ;;  %vm19_vm2 = vcmask 785920   ;;  %vm25_vm3 = vcmask 523520   ;;  %s55_s0 = inlined_call_operand.vmem [shape: f32[4,32], index: 0, kind: input, shape index: {}]   ;;  %s56_s1 = inlined_call_operand.vmem [shape: f32[128], index: 1, kind: output, shape index: {}]  }
   0x1   :  { %v4_v0 = vld [vmem:[%s55_s0] sm:$0xf]  ;;  %s36_s0 = smov 96  }
   0x2   :  { %5 = vst [vmem:[#allocation1] sm:$0xf] %v4_v0 }
   0x9   :  { %v10_v1 = vld [vmem:[#allocation1 + $0x3] sm:$0x1]   ;;  %v22_v2 = vld [vmem:[#allocation1 + $0x1] sm:$0x1]   ;;  %v6_v3 = vld [vmem:[#allocation1] sm:$0x1]  }
   0xa   :  { %11 = vrot.lane.b32.xlu0 %v10_v1, %s36_s0  ;;  %23 = vrot.lane.b32.xlu1 %v22_v2, %s37_s8  ;;  %v16_v4 = vld [vmem:[#allocation1 + $0x2] sm:$0x1]   ;;  %8 = vst.msk [vmem:[#allocation0] sm:$0x1] %vm7_vm0, %v6_v3  }
   0xe   :  { %17 = vrot.lane.b32.xlu0 %v16_v4, %s38_s9 }
  0x7c   :  { %v12_v5 = vpop.permute.xlu0 %11   ;;  %v24_v6 = vpop.permute.xlu1 %23  }
  0x7d   :  { %14 = vst.msk [vmem:[#allocation0] sm:$0x1] %vm13_vm1, %v12_v5  }
  0x80   :  { %v18_v7 = vpop.permute.xlu0 %17  }
  0x81   :  { %20 = vst.msk [vmem:[#allocation0] sm:$0x1] %vm19_vm2, %v18_v7  }
  0x82   :  { %26 = vst.msk [vmem:[#allocation0] sm:$0x1] %vm25_vm3, %v24_v6  }
  0x89   :  { %v30_v8 = vld [vmem:[#allocation0] sm:$0x1] }
  0x8a   :  { %32 = vst [vmem:[%s56_s1] sm:$0x1] %v30_v8 }

// kernel: _lambda_.66
= control target key start
LH: loop header
LB: loop body
LE: loop exit
PB: predicated region body
PF: predicated region fallthrough
CT: control target
= control target key end

     0   :  { %vm114_vm0 = vcmask 261120   ;;  %v4286_v0 = vmov 0.0   ;;  %vm4287_vm1 = vmmov 0   ;;  %vm1652_vm2 = vcmask 27648   ;;  %s5418_s1 = inlined_call_operand.vmem [shape: bf16[1,32,4,32], index: 1, kind: input, shape index: {}]   ;;  %s5419_s0 = inlined_call_operand.vmem [shape: bf16[1,32,4,32], index: 0, kind: input, shape index: {}]   ;;  %s5420_s3 = inlined_call_operand.vmem [shape: f32[1,4,4], index: 3, kind: input, shape index: {}]   ;;  %s5421_s2 = inlined_call_operand.vmem [shape: bf16[1,32,4,32], index: 2, kind: input, shape index: {}]   ;;  %s5422_s4 = inlined_call_operand.vmem [shape: bf16[1,32,4,32], index: 4, kind: output, shape index: {}]  }
   0x1   :  { %3772 = vmatprep.subr.bf16.mxu0 %v4286_v0  ;;  %3778 = vmatprep.subr.bf16.mxu1 %v4286_v0  ;;  %v50_v1 = vld [vmem:[%s5418_s1] sm:$0x3]  ;;  %v51_v2 = vld [vmem:[%s5418_s1 + $0x2] sm:$0x3]  ;;  %v52_v5 = vld [vmem:[%s5418_s1 + $0x4] sm:$0x3] }
   0x2   :  { %v119_v3 = vsel %vm114_vm0, %v50_v1, 0  ;;  %v165_v4 = vsel %vm114_vm0, %v51_v2, 0  ;;  %3774 = vmatprep.mubr.msk.bf16.mxu0 %vm4287_vm1, %v4286_v0  ;;  %3780 = vmatprep.mubr.msk.bf16.mxu1 %vm4287_vm1, %v4286_v0  ;;  %v53_v6 = vld [vmem:[%s5418_s1 + $0x6] sm:$0x3]  ;;  %v18_v7 = vld [vmem:[%s5419_s0] sm:$0x3] }
   0x3   :  { %3773 = vmatpush3.bf16.xpose.msra.mxu0 %v119_v3  ;;  %3779 = vmatpush3.bf16.xpose.msra.mxu1 %v165_v4  ;;  %v19_v8 = vld [vmem:[%s5419_s0 + $0x2] sm:$0x3]  ;;  %v211_v9 = vsel %vm114_vm0, %v52_v5, 0  ;;  %v257_v10 = vsel %vm114_vm0, %v53_v6, 0  ;;  %v54_v11 = vld [vmem:[%s5418_s1 + $0x8] sm:$0x3] }
   0x4   :  { %3784 = vmatprep.subr.bf16.mxu0 %v4286_v0  ;;  %3790 = vmatprep.subr.bf16.mxu1 %v4286_v0  ;;  %v55_v12 = vld [vmem:[%s5418_s1 + $0xa] sm:$0x3]  ;;  %v20_v13 = vld [vmem:[%s5419_s0 + $0x4] sm:$0x3]  ;;  %v21_v14 = vld [vmem:[%s5419_s0 + $0x6] sm:$0x3] }
   0x5   :  { %v303_v15 = vsel %vm114_vm0, %v54_v11, 0  ;;  %v349_v16 = vsel %vm114_vm0, %v55_v12, 0  ;;  %v56_v17 = vld [vmem:[%s5418_s1 + $0xc] sm:$0x3]  ;;  %v57_v18 = vld [vmem:[%s5418_s1 + $0xe] sm:$0x3] }
   0x6   :  { %v22_v19 = vld [vmem:[%s5419_s0 + $0x8] sm:$0x3]  ;;  %v23_v20 = vld [vmem:[%s5419_s0 + $0xa] sm:$0x3]  ;;  %v395_v21 = vsel %vm114_vm0, %v56_v17, 0  ;;  %v441_v22 = vsel %vm114_vm0, %v57_v18, 0 }
   0x7   :  { %v58_v23 = vld [vmem:[%s5418_s1 + $0x10] sm:$0x3]  ;;  %v59_v24 = vld [vmem:[%s5418_s1 + $0x12] sm:$0x3]  ;;  %v24_v25 = vld [vmem:[%s5419_s0 + $0xc] sm:$0x3] }
   0x8   :  { %v25_v26 = vld [vmem:[%s5419_s0 + $0xe] sm:$0x3]  ;;  %v487_v27 = vsel %vm114_vm0, %v58_v23, 0  ;;  %v533_v28 = vsel %vm114_vm0, %v59_v24, 0  ;;  %v60_v29 = vld [vmem:[%s5418_s1 + $0x14] sm:$0x3] }
   0x9   :  { %v61_v30 = vld [vmem:[%s5418_s1 + $0x16] sm:$0x3]  ;;  %v26_v31 = vld [vmem:[%s5419_s0 + $0x10] sm:$0x3]  ;;  %v27_v32 = vld [vmem:[%s5419_s0 + $0x12] sm:$0x3] }
   0xa   :  { %3775 = vmatmul.mubr.msk.bf16.vlgmr.msra.gmra.mrb[0].mxu0 %vm114_vm0, %v18_v7  ;;  %3781 = vmatmul.mubr.msk.bf16.vlgmr.msra.gmra.mrb[0].mxu1 %vm114_vm0, %v19_v8  ;;  %v579_v33 = vsel %vm114_vm0, %v60_v29, 0  ;;  %v625_v34 = vsel %vm114_vm0, %v61_v30, 0  ;;  %v62_v35 = vld [vmem:[%s5418_s1 + $0x18] sm:$0x3]  ;;  %v63_v36 = vld [vmem:[%s5418_s1 + $0x1a] sm:$0x3] }
   0xb   :  { %3785 = vmatpush3.bf16.xpose.msra.mxu0 %v211_v9  ;;  %3791 = vmatpush3.bf16.xpose.msra.mxu1 %v257_v10  ;;  %v28_v37 = vld [vmem:[%s5419_s0 + $0x14] sm:$0x3]  ;;  %v29_v38 = vld [vmem:[%s5419_s0 + $0x16] sm:$0x3]  ;;  %v671_v39 = vsel %vm114_vm0, %v62_v35, 0  ;;  %v717_v40 = vsel %vm114_vm0, %v63_v36, 0 }
   0xc   :  { %3786 = vmatprep.mubr.msk.bf16.mxu0 %vm4287_vm1, %v4286_v0  ;;  %3792 = vmatprep.mubr.msk.bf16.mxu1 %vm4287_vm1, %v4286_v0  ;;  %v64_v41 = vld [vmem:[%s5418_s1 + $0x1c] sm:$0x3]  ;;  %v65_v42 = vld [vmem:[%s5418_s1 + $0x1e] sm:$0x3]  ;;  %v30_v43 = vld [vmem:[%s5419_s0 + $0x18] sm:$0x3] }
   0xd   :  { %3796 = vmatprep.subr.bf16.mxu0 %v4286_v0  ;;  %3802 = vmatprep.subr.bf16.mxu1 %v4286_v0  ;;  %v31_v44 = vld [vmem:[%s5419_s0 + $0x1a] sm:$0x3]  ;;  %v763_v45 = vsel %vm114_vm0, %v64_v41, 0  ;;  %v809_v46 = vsel %vm114_vm0, %v65_v42, 0  ;;  %v66_v47 = vld [vmem:[%s5418_s1 + $0x20] sm:$0x3] }
   0xe   :  { %v67_v48 = vld [vmem:[%s5418_s1 + $0x22] sm:$0x3]  ;;  %v32_v49 = vld [vmem:[%s5419_s0 + $0x1c] sm:$0x3]  ;;  %v33_v50 = vld [vmem:[%s5419_s0 + $0x1e] sm:$0x3] }
   0xf   :  { %v855_v51 = vsel %vm114_vm0, %v66_v47, 0  ;;  %v901_v52 = vsel %vm114_vm0, %v67_v48, 0  ;;  %v68_v53 = vld [vmem:[%s5418_s1 + $0x24] sm:$0x3]  ;;  %v69_v54 = vld [vmem:[%s5418_s1 + $0x26] sm:$0x3] }
  0x10   :  { %v34_v55 = vld [vmem:[%s5419_s0 + $0x20] sm:$0x3]  ;;  %v35_v56 = vld [vmem:[%s5419_s0 + $0x22] sm:$0x3]  ;;  %v947_v57 = vsel %vm114_vm0, %v68_v53, 0  ;;  %v993_v58 = vsel %vm114_vm0, %v69_v54, 0 }
  0x11   :  { %v70_v59 = vld [vmem:[%s5418_s1 + $0x28] sm:$0x3]  ;;  %v71_v60 = vld [vmem:[%s5418_s1 + $0x2a] sm:$0x3]  ;;  %v36_v61 = vld [vmem:[%s5419_s0 + $0x24] sm:$0x3] }
  0x12   :  { %3787 = vmatmul.mubr.msk.bf16.vlgmr.msra.gmra.mrb[4].mxu0 %vm114_vm0, %v20_v13  ;;  %3793 = vmatmul.mubr.msk.bf16.vlgmr.msra.gmra.mrb[4].mxu1 %vm114_vm0, %v21_v14  ;;  %v37_v62 = vld [vmem:[%s5419_s0 + $0x26] sm:$0x3]  ;;  %v1039_v63 = vsel %vm114_vm0, %v70_v59, 0  ;;  %v1085_v1 = vsel %vm114_vm0, %v71_v60, 0  ;;  %v72_v2 = vld [vmem:[%s5418_s1 + $0x2c] sm:$0x3] }
  0x13   :  { %3797 = vmatpush3.bf16.xpose.msra.mxu0 %v303_v15  ;;  %3803 = vmatpush3.bf16.xpose.msra.mxu1 %v349_v16  ;;  %v73_v3 = vld [vmem:[%s5418_s1 + $0x2e] sm:$0x3]  ;;  %v38_v4 = vld [vmem:[%s5419_s0 + $0x28] sm:$0x3]  ;;  %v39_v5 = vld [vmem:[%s5419_s0 + $0x2a] sm:$0x3] }
  0x14   :  { %3798 = vmatprep.mubr.msk.bf16.mxu0 %vm4287_vm1, %v4286_v0  ;;  %3804 = vmatprep.mubr.msk.bf16.mxu1 %vm4287_vm1, %v4286_v0  ;;  %v1131_v6 = vsel %vm114_vm0, %v72_v2, 0  ;;  %v1177_v7 = vsel %vm114_vm0, %v73_v3, 0  ;;  %v74_v8 = vld [vmem:[%s5418_s1 + $0x30] sm:$0x3]  ;;  %v75_v9 = vld [vmem:[%s5418_s1 + $0x32] sm:$0x3] }
  0x15   :  { %3808 = vmatprep.subr.bf16.mxu0 %v4286_v0  ;;  %3814 = vmatprep.subr.bf16.mxu1 %v4286_v0  ;;  %v40_v10 = vld [vmem:[%s5419_s0 + $0x2c] sm:$0x3]  ;;  %v41_v11 = vld [vmem:[%s5419_s0 + $0x2e] sm:$0x3]  ;;  %v1223_v12 = vsel %vm114_vm0, %v74_v8, 0  ;;  %v1269_v13 = vsel %vm114_vm0, %v75_v9, 0 }
  0x16   :  { %v76_v14 = vld [vmem:[%s5418_s1 + $0x34] sm:$0x3]  ;;  %v77_v15 = vld [vmem:[%s5418_s1 + $0x36] sm:$0x3]  ;;  %v42_v16 = vld [vmem:[%s5419_s0 + $0x30] sm:$0x3] }
  0x17   :  { %v43_v17 = vld [vmem:[%s5419_s0 + $0x32] sm:$0x3]  ;;  %v1315_v18 = vsel %vm114_vm0, %v76_v14, 0  ;;  %v45_v23 = vld [vmem:[%s5419_s0 + $0x36] sm:$0x3]  ;;  %vm2041_vm3 = vcmask 1041408  }
  0x18   :  { %v47_v29 = vld [vmem:[%s5419_s0 + $0x3a] sm:$0x3]  ;;  %v4674_v36 = vld [vmem:[%s5420_s3] sm:$0xf]  ;;  %vm2037_vm4 = vcmask 31744   ;;  %vm3543_vm5 = vcmask 254976  }
  0x1a   :  { %3799 = vmatmul.mubr.msk.bf16.vlgmr.msra.gmra.mrb[8].mxu0 %vm114_vm0, %v22_v19  ;;  %3805 = vmatmul.mubr.msk.bf16.vlgmr.msra.gmra.mrb[8].mxu1 %vm114_vm0, %v23_v20  ;;  %v1361_v19 = vsel %vm114_vm0, %v77_v15, 0  ;;  %v78_v20 = vld [vmem:[%s5418_s1 + $0x38] sm:$0x3] }
  0x1b   :  { %3809 = vmatpush3.bf16.xpose.msra.mxu0 %v395_v21  ;;  %3815 = vmatpush3.bf16.xpose.msra.mxu1 %v441_v22  ;;  %v79_v21 = vld [vmem:[%s5418_s1 + $0x3a] sm:$0x3]  ;;  %v44_v22 = vld [vmem:[%s5419_s0 + $0x34] sm:$0x3]  ;;  %v1407_v24 = vsel %vm114_vm0, %v78_v20, 0 }
  0x1c   :  { %3810 = vmatprep.mubr.msk.bf16.mxu0 %vm4287_vm1, %v4286_v0  ;;  %3816 = vmatprep.mubr.msk.bf16.mxu1 %vm4287_vm1, %v4286_v0 }
  0x1d   :  { %3820 = vmatprep.subr.bf16.mxu0 %v4286_v0  ;;  %3826 = vmatprep.subr.bf16.mxu1 %v4286_v0 }
  0x22   :  { %3811 = vmatmul.mubr.msk.bf16.vlgmr.msra.gmra.mrb[12].mxu0 %vm114_vm0, %v24_v25  ;;  %3817 = vmatmul.mubr.msk.bf16.vlgmr.msra.gmra.mrb[12].mxu1 %vm114_vm0, %v25_v26  ;;  %v1453_v25 = vsel %vm114_vm0, %v79_v21, 0  ;;  %v80_v26 = vld [vmem:[%s5418_s1 + $0x3c] sm:$0x3] }
  0x23   :  { %3821 = vmatpush3.bf16.xpose.msra.mxu0 %v487_v27  ;;  %3827 = vmatpush3.bf16.xpose.msra.mxu1 %v533_v28  ;;  %v81_v27 = vld [vmem:[%s5418_s1 + $0x3e] sm:$0x3]  ;;  %v46_v28 = vld [vmem:[%s5419_s0 + $0x38] sm:$0x3]  ;;  %v1499_v30 = vsel %vm114_vm0, %v80_v26, 0 }
  0x24   :  { %3822 = vmatprep.mubr.msk.bf16.mxu0 %vm4287_vm1, %v4286_v0  ;;  %3828 = vmatprep.mubr.msk.bf16.mxu1 %vm4287_vm1, %v4286_v0 }
  0x25   :  { %3832 = vmatprep.subr.bf16.mxu0 %v4286_v0  ;;  %3838 = vmatprep.subr.bf16.mxu1 %v4286_v0 }
  0x2a   :  { %3823 = vmatmul.mubr.msk.bf16.vlgmr.msra.gmra.mrb[16].mxu0 %vm114_vm0, %v26_v31  ;;  %3829 = vmatmul.mubr.msk.bf16.vlgmr.msra.gmra.mrb[16].mxu1 %vm114_vm0, %v27_v32  ;;  %v1545_v31 = vsel %vm114_vm0, %v81_v27, 0  ;;  %v48_v32 = vld [vmem:[%s5419_s0 + $0x3c] sm:$0x3] }
  0x2b   :  { %3833 = vmatpush3.bf16.xpose.msra.mxu0 %v579_v33  ;;  %3839 = vmatpush3.bf16.xpose.msra.mxu1 %v625_v34  ;;  %v49_v33 = vld [vmem:[%s5419_s0 + $0x3e] sm:$0x3] }
  0x2c   :  { %3834 = vmatprep.mubr.msk.bf16.mxu0 %vm4287_vm1, %v4286_v0  ;;  %3840 = vmatprep.mubr.msk.bf16.mxu1 %vm4287_vm1, %v4286_v0 }
  0x2d   :  { %3844 = vmatprep.subr.bf16.mxu0 %v4286_v0  ;;  %3850 = vmatprep.subr.bf16.mxu1 %v4286_v0 }
  0x32   :  { %3835 = vmatmul.mubr.msk.bf16.vlgmr.msra.gmra.mrb[20].mxu0 %vm114_vm0, %v28_v37  ;;  %3841 = vmatmul.mubr.msk.bf16.vlgmr.msra.gmra.mrb[20].mxu1 %vm114_vm0, %v29_v38 }
  0x33   :  { %3845 = vmatpush3.bf16.xpose.msra.mxu0 %v671_v39  ;;  %3851 = vmatpush3.bf16.xpose.msra.mxu1 %v717_v40 }
  0x34   :  { %3846 = vmatprep.mubr.msk.bf16.mxu0 %vm4287_vm1, %v4286_v0  ;;  %3852 = vmatprep.mubr.msk.bf16.mxu1 %vm4287_vm1, %v4286_v0 }
  0x35   :  { %3856 = vmatprep.subr.bf16.mxu0 %v4286_v0  ;;  %3862 = vmatprep.subr.bf16.mxu1 %v4286_v0 }
  0x3a   :  { %3847 = vmatmul.mubr.msk.bf16.vlgmr.msra.gmra.mrb[24].mxu0 %vm114_vm0, %v30_v43  ;;  %3853 = vmatmul.mubr.msk.bf16.vlgmr.msra.gmra.mrb[24].mxu1 %vm114_vm0, %v31_v44 }
  0x3b   :  { %3857 = vmatpush3.bf16.xpose.msra.mxu0 %v763_v45  ;;  %3863 = vmatpush3.bf16.xpose.msra.mxu1 %v809_v46 }
  0x3c   :  { %3858 = vmatprep.mubr.msk.bf16.mxu0 %vm4287_vm1, %v4286_v0  ;;  %3864 = vmatprep.mubr.msk.bf16.mxu1 %vm4287_vm1, %v4286_v0 }
  0x3d   :  { %3868 = vmatprep.subr.bf16.mxu0 %v4286_v0  ;;  %3874 = vmatprep.subr.bf16.mxu1 %v4286_v0 }
  0x42   :  { %3859 = vmatmul.mubr.msk.bf16.vlgmr.msra.gmra.mrb[28].mxu0 %vm114_vm0, %v32_v49  ;;  %3865 = vmatmul.mubr.msk.bf16.vlgmr.msra.gmra.mrb[28].mxu1 %vm114_vm0, %v33_v50 }
  0x43   :  { %3869 = vmatpush3.bf16.xpose.msra.mxu0 %v855_v51  ;;  %3875 = vmatpush3.bf16.xpose.msra.mxu1 %v901_v52 }
  0x44   :  { %3870 = vmatprep.mubr.msk.bf16.mxu0 %vm4287_vm1, %v4286_v0  ;;  %3876 = vmatprep.mubr.msk.bf16.mxu1 %vm4287_vm1, %v4286_v0 }
  0x45   :  { %3880 = vmatprep.subr.bf16.mxu0 %v4286_v0  ;;  %3886 = vmatprep.subr.bf16.mxu1 %v4286_v0 }
  0x4a   :  { %3871 = vmatmul.mubr.msk.bf16.vlgmr.msra.gmra.mrb[32].mxu0 %vm114_vm0, %v34_v55  ;;  %3877 = vmatmul.mubr.msk.bf16.vlgmr.msra.gmra.mrb[32].mxu1 %vm114_vm0, %v35_v56 }
  0x4b   :  { %3881 = vmatpush3.bf16.xpose.msra.mxu0 %v947_v57  ;;  %3887 = vmatpush3.bf16.xpose.msra.mxu1 %v993_v58 }
  0x4c   :  { %3882 = vmatprep.mubr.msk.bf16.mxu0 %vm4287_vm1, %v4286_v0  ;;  %3888 = vmatprep.mubr.msk.bf16.mxu1 %vm4287_vm1, %v4286_v0 }
  0x4d   :  { %3892 = vmatprep.subr.bf16.mxu0 %v4286_v0  ;;  %3898 = vmatprep.subr.bf16.mxu1 %v4286_v0 }
  0x52   :  { %3883 = vmatmul.mubr.msk.bf16.vlgmr.msra.gmra.mrb[36].mxu0 %vm114_vm0, %v36_v61  ;;  %3889 = vmatmul.mubr.msk.bf16.vlgmr.msra.gmra.mrb[36].mxu1 %vm114_vm0, %v37_v62 }
  0x53   :  { %3893 = vmatpush3.bf16.xpose.msra.mxu0 %v1039_v63  ;;  %3899 = vmatpush3.bf16.xpose.msra.mxu1 %v1085_v1 }
  0x54   :  { %3894 = vmatprep.mubr.msk.bf16.mxu0 %vm4287_vm1, %v4286_v0  ;;  %3900 = vmatprep.mubr.msk.bf16.mxu1 %vm4287_vm1, %v4286_v0 }
  0x55   :  { %3904 = vmatprep.subr.bf16.mxu0 %v4286_v0  ;;  %3910 = vmatprep.subr.bf16.mxu1 %v4286_v0 }
  0x5a   :  { %3895 = vmatmul.mubr.msk.bf16.vlgmr.msra.gmra.mrb[40].mxu0 %vm114_vm0, %v38_v4  ;;  %3901 = vmatmul.mubr.msk.bf16.vlgmr.msra.gmra.mrb[40].mxu1 %vm114_vm0, %v39_v5 }
  0x5b   :  { %3905 = vmatpush3.bf16.xpose.msra.mxu0 %v1131_v6  ;;  %3911 = vmatpush3.bf16.xpose.msra.mxu1 %v1177_v7 }
  0x5c   :  { %3906 = vmatprep.mubr.msk.bf16.mxu0 %vm4287_vm1, %v4286_v0  ;;  %3912 = vmatprep.mubr.msk.bf16.mxu1 %vm4287_vm1, %v4286_v0 }
  0x5d   :  { %3916 = vmatprep.subr.bf16.mxu0 %v4286_v0  ;;  %3922 = vmatprep.subr.bf16.mxu1 %v4286_v0 }
  0x62   :  { %3907 = vmatmul.mubr.msk.bf16.vlgmr.msra.gmra.mrb[44].mxu0 %vm114_vm0, %v40_v10  ;;  %3913 = vmatmul.mubr.msk.bf16.vlgmr.msra.gmra.mrb[44].mxu1 %vm114_vm0, %v41_v11 }
  0x63   :  { %3917 = vmatpush3.bf16.xpose.msra.mxu0 %v1223_v12  ;;  %3923 = vmatpush3.bf16.xpose.msra.mxu1 %v1269_v13 }
  0x64   :  { %3918 = vmatprep.mubr.msk.bf16.mxu0 %vm4287_vm1, %v4286_v0  ;;  %3928 = vmatprep.subr.bf16.mxu0 %v4286_v0 }
  0x65   :  { %3924 = vmatprep.mubr.msk.bf16.mxu1 %vm4287_vm1, %v4286_v0  ;;  %3934 = vmatprep.subr.bf16.mxu1 %v4286_v0 }
  0x6a   :  { %3919 = vmatmul.mubr.msk.bf16.vlgmr.msra.gmra.mrb[48].mxu0 %vm114_vm0, %v42_v16  ;;  %3925 = vmatmul.mubr.msk.bf16.vlgmr.msra.gmra.mrb[48].mxu1 %vm114_vm0, %v43_v17 }
  0x6b   :  { %3929 = vmatpush3.bf16.xpose.msra.mxu0 %v1315_v18  ;;  %3935 = vmatpush3.bf16.xpose.msra.mxu1 %v1361_v19 }
  0x6c   :  { %3930 = vmatprep.mubr.msk.bf16.mxu0 %vm4287_vm1, %v4286_v0  ;;  %3940 = vmatprep.subr.bf16.mxu0 %v4286_v0 }
  0x6d   :  { %3936 = vmatprep.mubr.msk.bf16.mxu1 %vm4287_vm1, %v4286_v0  ;;  %3946 = vmatprep.subr.bf16.mxu1 %v4286_v0 }
  0x72   :  { %3931 = vmatmul.mubr.msk.bf16.vlgmr.msra.gmra.mrb[52].mxu0 %vm114_vm0, %v44_v22  ;;  %3937 = vmatmul.mubr.msk.bf16.vlgmr.msra.gmra.mrb[52].mxu1 %vm114_vm0, %v45_v23 }
  0x73   :  { %3941 = vmatpush3.bf16.xpose.msra.mxu0 %v1407_v24  ;;  %3947 = vmatpush3.bf16.xpose.msra.mxu1 %v1453_v25 }
  0x74   :  { %3942 = vmatprep.mubr.msk.bf16.mxu0 %vm4287_vm1, %v4286_v0  ;;  %3952 = vmatprep.subr.bf16.mxu0 %v4286_v0 }
  0x75   :  { %3948 = vmatprep.mubr.msk.bf16.mxu1 %vm4287_vm1, %v4286_v0  ;;  %3958 = vmatprep.subr.bf16.mxu1 %v4286_v0 }
  0x7a   :  { %3943 = vmatmul.mubr.msk.bf16.vlgmr.msra.gmra.mrb[56].mxu0 %vm114_vm0, %v46_v28  ;;  %3949 = vmatmul.mubr.msk.bf16.vlgmr.msra.gmra.mrb[56].mxu1 %vm114_vm0, %v47_v29 }
  0x7b   :  { %3953 = vmatpush3.bf16.xpose.msra.mxu0 %v1499_v30  ;;  %3959 = vmatpush3.bf16.xpose.msra.mxu1 %v1545_v31 }
  0x7c   :  { %3954 = vmatprep.mubr.msk.bf16.mxu0 %vm4287_vm1, %v4286_v0  ;;  %3960 = vmatprep.mubr.msk.bf16.mxu1 %vm4287_vm1, %v4286_v0 }
  0x7d   :  { %3964 = vmatprep.subr.bf16.mxu0 %v4286_v0  ;;  %3970 = vmatprep.subr.bf16.mxu1 %v4286_v0 }
  0x82   :  { %3955 = vmatmul.mubr.msk.bf16.vlgmr.msra.gmra.mrb[60].mxu0 %vm114_vm0, %v48_v32  ;;  %3961 = vmatmul.mubr.msk.bf16.vlgmr.msra.gmra.mrb[60].mxu1 %vm114_vm0, %v49_v33 }
  0x83   :  { %3966 = vmatprep.mubr.msk.bf16.mxu0 %vm4287_vm1, %v4286_v0  ;;  %3972 = vmatprep.mubr.msk.bf16.mxu1 %vm4287_vm1, %v4286_v0 }
  0xdd   :  { %v155_v34 = vpop.f32.mrb[0].mxu0  ;;  %v201_v35 = vpop.f32.mrb[0].mxu1 }
  0xde   :  { %v1587_v37 = vmul.f32 0.17677669, %v155_v34  ;;  %v3776_v38 = vpop.f32.mrb[1].mxu0  ;;  %v1588_v39 = vmul.f32 0.17677669, %v201_v35  ;;  %v3782_v40 = vpop.f32.mrb[1].mxu1 }
  0xdf   :  { %v158_v41 = vpop.f32.mrb[2].mxu0  ;;  %v204_v42 = vpop.f32.mrb[2].mxu1 }
  0xe0   :  { %v3777_v43 = vpop.f32.mrb[3].mxu0  ;;  %v3783_v44 = vpop.f32.mrb[3].mxu1  ;;  %v4677_v45 = vadd.f32 %v4674_v36, %v1587_v37  ;;  %v4680_v46 = vadd.f32 %v4674_v36, %v1588_v39 }
  0xe2   :  { %v1653_v47 = vsel %vm1652_vm2, %v4677_v45, -inf  ;;  %v1656_v48 = vsel %vm1652_vm2, %v4680_v46, -inf }
  0xe3   :  { %1654 = vmax.xlane.f32.xlu0 %v1653_v47 }
  0xe5   :  { %v247_v49 = vpop.f32.mrb[4].mxu0  ;;  %v293_v50 = vpop.f32.mrb[4].mxu1 }
  0xe6   :  { %v1589_v51 = vmul.f32 0.17677669, %v247_v49  ;;  %v3788_v52 = vpop.f32.mrb[5].mxu0  ;;  %v1590_v53 = vmul.f32 0.17677669, %v293_v50  ;;  %v3794_v54 = vpop.f32.mrb[5].mxu1 }
  0xe7   :  { %1657 = vmax.xlane.f32.xlu0 %v1656_v48  ;;  %v250_v55 = vpop.f32.mrb[6].mxu0  ;;  %v296_v56 = vpop.f32.mrb[6].mxu1 }
  0xe8   :  { %v3789_v57 = vpop.f32.mrb[7].mxu0  ;;  %v3795_v58 = vpop.f32.mrb[7].mxu1  ;;  %v4687_v59 = vadd.f32 %v4674_v36, %v1589_v51  ;;  %v4690_v60 = vadd.f32 %v4674_v36, %v1590_v53 }
  0xea   :  { %v1659_v61 = vsel %vm1652_vm2, %v4687_v59, -inf  ;;  %v1662_v62 = vsel %vm1652_vm2, %v4690_v60, -inf }
  0xeb   :  { %1660 = vmax.xlane.f32.xlu1 %v1659_v61 }
  0xed   :  { %v339_v63 = vpop.f32.mrb[8].mxu0  ;;  %v385_v1 = vpop.f32.mrb[8].mxu1 }
  0xee   :  { %v1591_v2 = vmul.f32 0.17677669, %v339_v63  ;;  %v1592_v3 = vmul.f32 0.17677669, %v385_v1  ;;  %v3800_v4 = vpop.f32.mrb[9].mxu0  ;;  %v3806_v5 = vpop.f32.mrb[9].mxu1 }
  0xef   :  { %1663 = vmax.xlane.f32.xlu1 %v1662_v62  ;;  %v342_v6 = vpop.f32.mrb[10].mxu0  ;;  %v388_v7 = vpop.f32.mrb[10].mxu1 }
  0xf0   :  { %v3801_v8 = vpop.f32.mrb[11].mxu0  ;;  %v3807_v9 = vpop.f32.mrb[11].mxu1  ;;  %v4697_v10 = vadd.f32 %v4674_v36, %v1592_v3  ;;  %v4700_v11 = vadd.f32 %v4674_v36, %v1591_v2 }
  0xf2   :  { %v1668_v12 = vsel %vm1652_vm2, %v4697_v10, -inf  ;;  %v1665_v13 = vsel %vm1652_vm2, %v4700_v11, -inf }
  0xf3   :  { %1669 = vmax.xlane.f32.xlu1 %v1668_v12  ;;  %1666 = vmax.xlane.f32.xlu0 %v1665_v13 }
  0xf5   :  { %v431_v14 = vpop.f32.mrb[12].mxu0  ;;  %v477_v15 = vpop.f32.mrb[12].mxu1 }
  0xf6   :  { %v1593_v16 = vmul.f32 0.17677669, %v431_v14  ;;  %v1594_v17 = vmul.f32 0.17677669, %v477_v15  ;;  %v3812_v18 = vpop.f32.mrb[13].mxu0  ;;  %v3818_v19 = vpop.f32.mrb[13].mxu1 }
  0xf7   :  { %v434_v20 = vpop.f32.mrb[14].mxu0  ;;  %v480_v21 = vpop.f32.mrb[14].mxu1 }
  0xf8   :  { %v3813_v22 = vpop.f32.mrb[15].mxu0  ;;  %v3819_v23 = vpop.f32.mrb[15].mxu1  ;;  %v4707_v24 = vadd.f32 %v4674_v36, %v1594_v17  ;;  %v4710_v25 = vadd.f32 %v4674_v36, %v1593_v16 }
  0xfa   :  { %v1674_v26 = vsel %vm1652_vm2, %v4707_v24, -inf  ;;  %v1671_v27 = vsel %vm1652_vm2, %v4710_v25, -inf }
  0xfb   :  { %1675 = vmax.xlane.f32.xlu1 %v1674_v26  ;;  %1672 = vmax.xlane.f32.xlu0 %v1671_v27 }
  0xfd   :  { %v523_v28 = vpop.f32.mrb[16].mxu0  ;;  %v569_v29 = vpop.f32.mrb[16].mxu1 }
  0xfe   :  { %v1595_v30 = vmul.f32 0.17677669, %v523_v28  ;;  %v1596_v31 = vmul.f32 0.17677669, %v569_v29  ;;  %v3824_v32 = vpop.f32.mrb[17].mxu0  ;;  %v3830_v33 = vpop.f32.mrb[17].mxu1 }
  0xff   :  { %v572_v34 = vpop.f32.mrb[18].mxu1  ;;  %v526_v35 = vpop.f32.mrb[18].mxu0 }
 0x100   :  { %v4717_v37 = vadd.f32 %v4674_v36, %v1596_v31  ;;  %v4720_v38 = vadd.f32 %v4674_v36, %v1595_v30  ;;  %v3825_v39 = vpop.f32.mrb[19].mxu0  ;;  %v3831_v40 = vpop.f32.mrb[19].mxu1 }
 0x102   :  { %v1680_v41 = vsel %vm1652_vm2, %v4717_v37, -inf  ;;  %v1677_v42 = vsel %vm1652_vm2, %v4720_v38, -inf }
 0x103   :  { %1681 = vmax.xlane.f32.xlu1 %v1680_v41  ;;  %1678 = vmax.xlane.f32.xlu0 %v1677_v42 }
 0x105   :  { %v615_v43 = vpop.f32.mrb[20].mxu0  ;;  %v661_v44 = vpop.f32.mrb[20].mxu1 }
 0x106   :  { %v1597_v47 = vmul.f32 0.17677669, %v615_v43  ;;  %v1598_v48 = vmul.f32 0.17677669, %v661_v44  ;;  %v3836_v49 = vpop.f32.mrb[21].mxu0  ;;  %v3842_v50 = vpop.f32.mrb[21].mxu1 }
 0x107   :  { %v664_v51 = vpop.f32.mrb[22].mxu1  ;;  %v618_v52 = vpop.f32.mrb[22].mxu0 }
 0x108   :  { %v4727_v53 = vadd.f32 %v4674_v36, %v1598_v48  ;;  %v4730_v54 = vadd.f32 %v4674_v36, %v1597_v47  ;;  %v3837_v55 = vpop.f32.mrb[23].mxu0  ;;  %v3843_v56 = vpop.f32.mrb[23].mxu1 }
 0x10a   :  { %v1686_v57 = vsel %vm1652_vm2, %v4727_v53, -inf  ;;  %v1683_v58 = vsel %vm1652_vm2, %v4730_v54, -inf }
 0x10b   :  { %1687 = vmax.xlane.f32.xlu1 %v1686_v57  ;;  %1684 = vmax.xlane.f32.xlu0 %v1683_v58 }
 0x10d   :  { %v707_v61 = vpop.f32.mrb[24].mxu0  ;;  %v753_v62 = vpop.f32.mrb[24].mxu1 }
 0x10e   :  { %v1599_v63 = vmul.f32 0.17677669, %v707_v61  ;;  %v1600_v1 = vmul.f32 0.17677669, %v753_v62  ;;  %v3848_v2 = vpop.f32.mrb[25].mxu0  ;;  %v3854_v3 = vpop.f32.mrb[25].mxu1 }
 0x10f   :  { %v756_v4 = vpop.f32.mrb[26].mxu1  ;;  %v710_v5 = vpop.f32.mrb[26].mxu0 }
 0x110   :  { %v4737_v6 = vadd.f32 %v4674_v36, %v1600_v1  ;;  %v4740_v7 = vadd.f32 %v4674_v36, %v1599_v63  ;;  %v3849_v8 = vpop.f32.mrb[27].mxu0  ;;  %v3855_v9 = vpop.f32.mrb[27].mxu1 }
 0x112   :  { %v1692_v12 = vsel %vm1652_vm2, %v4737_v6, -inf  ;;  %v1689_v13 = vsel %vm1652_vm2, %v4740_v7, -inf }
 0x113   :  { %1693 = vmax.xlane.f32.xlu1 %v1692_v12  ;;  %1690 = vmax.xlane.f32.xlu0 %v1689_v13 }
 0x115   :  { %v799_v14 = vpop.f32.mrb[28].mxu0  ;;  %v845_v15 = vpop.f32.mrb[28].mxu1 }
 0x116   :  { %v1601_v16 = vmul.f32 0.17677669, %v799_v14  ;;  %v1602_v17 = vmul.f32 0.17677669, %v845_v15  ;;  %v3860_v18 = vpop.f32.mrb[29].mxu0  ;;  %v3866_v19 = vpop.f32.mrb[29].mxu1 }
 0x117   :  { %v848_v20 = vpop.f32.mrb[30].mxu1  ;;  %v802_v21 = vpop.f32.mrb[30].mxu0 }
 0x118   :  { %v4747_v22 = vadd.f32 %v4674_v36, %v1602_v17  ;;  %v4750_v23 = vadd.f32 %v4674_v36, %v1601_v16  ;;  %v3861_v26 = vpop.f32.mrb[31].mxu0  ;;  %v3867_v27 = vpop.f32.mrb[31].mxu1 }
 0x11a   :  { %v1698_v28 = vsel %vm1652_vm2, %v4747_v22, -inf  ;;  %v1695_v29 = vsel %vm1652_vm2, %v4750_v23, -inf }
 0x11b   :  { %1699 = vmax.xlane.f32.xlu1 %v1698_v28  ;;  %1696 = vmax.xlane.f32.xlu0 %v1695_v29 }
 0x11d   :  { %v891_v30 = vpop.f32.mrb[32].mxu0  ;;  %v937_v31 = vpop.f32.mrb[32].mxu1 }
 0x11e   :  { %v1603_v32 = vmul.f32 0.17677669, %v891_v30  ;;  %v1604_v33 = vmul.f32 0.17677669, %v937_v31  ;;  %v3872_v34 = vpop.f32.mrb[33].mxu0  ;;  %v3878_v35 = vpop.f32.mrb[33].mxu1 }
 0x11f   :  { %v940_v39 = vpop.f32.mrb[34].mxu1  ;;  %v894_v40 = vpop.f32.mrb[34].mxu0 }
 0x120   :  { %v4757_v41 = vadd.f32 %v4674_v36, %v1604_v33  ;;  %v4760_v42 = vadd.f32 %v4674_v36, %v1603_v32  ;;  %v3873_v43 = vpop.f32.mrb[35].mxu0  ;;  %v3879_v44 = vpop.f32.mrb[35].mxu1 }
 0x122   :  { %v1704_v47 = vsel %vm1652_vm2, %v4757_v41, -inf  ;;  %v1701_v48 = vsel %vm1652_vm2, %v4760_v42, -inf }
 0x123   :  { %1705 = vmax.xlane.f32.xlu1 %v1704_v47  ;;  %1702 = vmax.xlane.f32.xlu0 %v1701_v48 }
 0x125   :  { %v983_v49 = vpop.f32.mrb[36].mxu0  ;;  %v1029_v50 = vpop.f32.mrb[36].mxu1 }
 0x126   :  { %v1605_v51 = vmul.f32 0.17677669, %v983_v49  ;;  %v1606_v52 = vmul.f32 0.17677669, %v1029_v50  ;;  %v3884_v55 = vpop.f32.mrb[37].mxu0  ;;  %v3890_v56 = vpop.f32.mrb[37].mxu1 }
 0x127   :  { %v1032_v57 = vpop.f32.mrb[38].mxu1  ;;  %v986_v58 = vpop.f32.mrb[38].mxu0 }
 0x128   :  { %v4767_v61 = vadd.f32 %v4674_v36, %v1606_v52  ;;  %v4770_v62 = vadd.f32 %v4674_v36, %v1605_v51  ;;  %v3885_v63 = vpop.f32.mrb[39].mxu0  ;;  %v3891_v1 = vpop.f32.mrb[39].mxu1 }
 0x12a   :  { %v1710_v2 = vsel %vm1652_vm2, %v4767_v61, -inf  ;;  %v1707_v3 = vsel %vm1652_vm2, %v4770_v62, -inf }
 0x12b   :  { %1711 = vmax.xlane.f32.xlu1 %v1710_v2  ;;  %1708 = vmax.xlane.f32.xlu0 %v1707_v3 }
 0x12d   :  { %v1075_v4 = vpop.f32.mrb[40].mxu0  ;;  %v1121_v5 = vpop.f32.mrb[40].mxu1 }
 0x12e   :  { %v1607_v8 = vmul.f32 0.17677669, %v1075_v4  ;;  %v1608_v9 = vmul.f32 0.17677669, %v1121_v5  ;;  %v3896_v12 = vpop.f32.mrb[41].mxu0  ;;  %v3902_v13 = vpop.f32.mrb[41].mxu1 }
 0x12f   :  { %v1124_v14 = vpop.f32.mrb[42].mxu1  ;;  %v1078_v15 = vpop.f32.mrb[42].mxu0 }
 0x130   :  { %v4777_v16 = vadd.f32 %v4674_v36, %v1608_v9  ;;  %v4780_v17 = vadd.f32 %v4674_v36, %v1607_v8  ;;  %v3897_v18 = vpop.f32.mrb[43].mxu0  ;;  %v3903_v19 = vpop.f32.mrb[43].mxu1 }
 0x132   :  { %v1716_v20 = vsel %vm1652_vm2, %v4777_v16, -inf  ;;  %v1713_v21 = vsel %vm1652_vm2, %v4780_v17, -inf }
 0x133   :  { %1717 = vmax.xlane.f32.xlu1 %v1716_v20  ;;  %1714 = vmax.xlane.f32.xlu0 %v1713_v21 }
 0x135   :  { %v1167_v26 = vpop.f32.mrb[44].mxu0  ;;  %v1213_v27 = vpop.f32.mrb[44].mxu1 }
 0x136   :  { %v1609_v28 = vmul.f32 0.17677669, %v1167_v26  ;;  %v1610_v29 = vmul.f32 0.17677669, %v1213_v27  ;;  %v3908_v30 = vpop.f32.mrb[45].mxu0  ;;  %v3914_v31 = vpop.f32.mrb[45].mxu1 }
 0x137   :  { %v1170_v32 = vpop.f32.mrb[46].mxu0  ;;  %v1216_v33 = vpop.f32.mrb[46].mxu1 }
 0x138   :  { %v4787_v34 = vadd.f32 %v4674_v36, %v1610_v29  ;;  %v4790_v35 = vadd.f32 %v4674_v36, %v1609_v28  ;;  %v3915_v39 = vpop.f32.mrb[47].mxu1  ;;  %v3909_v40 = vpop.f32.mrb[47].mxu0 }
 0x13a   :  { %v1722_v43 = vsel %vm1652_vm2, %v4787_v34, -inf  ;;  %v1719_v44 = vsel %vm1652_vm2, %v4790_v35, -inf }
 0x13b   :  { %1723 = vmax.xlane.f32.xlu1 %v1722_v43  ;;  %1720 = vmax.xlane.f32.xlu0 %v1719_v44 }
 0x13d   :  { %v1259_v47 = vpop.f32.mrb[48].mxu0  ;;  %v1305_v48 = vpop.f32.mrb[48].mxu1 }
 0x13e   :  { %v3920_v49 = vpop.f32.mrb[49].mxu0  ;;  %v3926_v50 = vpop.f32.mrb[49].mxu1 }
 0x13f   :  { %v1262_v51 = vpop.f32.mrb[50].mxu0  ;;  %v1308_v52 = vpop.f32.mrb[50].mxu1 }
 0x140   :  { %v3921_v55 = vpop.f32.mrb[51].mxu0  ;;  %v3927_v56 = vpop.f32.mrb[51].mxu1  ;;  %v1611_v51 = vmul.f32 0.17677669, %v1259_v47 }
 0x145   :  { %v1351_v57 = vpop.f32.mrb[52].mxu0  ;;  %v1397_v58 = vpop.f32.mrb[52].mxu1 }
 0x146   :  { %v3932_v63 = vpop.f32.mrb[53].mxu0  ;;  %v3938_v1 = vpop.f32.mrb[53].mxu1 }
 0x147   :  { %v1354_v2 = vpop.f32.mrb[54].mxu0  ;;  %v1400_v3 = vpop.f32.mrb[54].mxu1  ;;  %v1612_v63 = vmul.f32 0.17677669, %v1305_v48  ;;  %v4809_v1 = vadd.f32 %v4674_v36, %v1611_v51  ;;  %v1613_v48 = vmul.f32 0.17677669, %v1351_v57 }
 0x148   :  { %v3933_v4 = vpop.f32.mrb[55].mxu0  ;;  %v3939_v5 = vpop.f32.mrb[55].mxu1 }
 0x149   :  { %v4820_v5 = vadd.f32 %v4674_v36, %v1612_v63 }
 0x14d   :  { %v4796_v8 = vpop.f32.mrb[56].mxu0  ;;  %v4798_v9 = vpop.f32.mrb[56].mxu1 }
 0x14e   :  { %v3944_v12 = vpop.f32.mrb[57].mxu0  ;;  %v3950_v13 = vpop.f32.mrb[57].mxu1 }
 0x14f   :  { %v1446_v14 = vpop.f32.mrb[58].mxu0  ;;  %v1492_v15 = vpop.f32.mrb[58].mxu1 }
 0x150   :  { %v3945_v18 = vpop.f32.mrb[59].mxu0  ;;  %v3951_v19 = vpop.f32.mrb[59].mxu1 }
 0x151   :  { %v4829_v18 = vadd.f32 %v4674_v36, %v1613_v48 }
 0x155   :  { %v4800_v20 = vpop.f32.mrb[60].mxu0  ;;  %v4802_v21 = vpop.f32.mrb[60].mxu1 }
 0x156   :  { %v3956_v26 = vpop.f32.mrb[61].mxu0  ;;  %v3962_v27 = vpop.f32.mrb[61].mxu1 }
 0x157   :  { %v1538_v28 = vpop.f32.mrb[62].mxu0  ;;  %v1584_v29 = vpop.f32.mrb[62].mxu1 }
 0x158   :  { %v3957_v30 = vpop.f32.mrb[63].mxu0  ;;  %v3963_v31 = vpop.f32.mrb[63].mxu1 }
 0x159   :  { %v1615_v30 = vmul.f32 0.17677669, %v4796_v8 }
 0x15b   :  { %v4851_v8 = vadd.f32 %v4674_v36, %v1615_v30 }
 0x170   :  { %v1655_v32 = vpop.xlane.xlu0 %1654 }
 0x171   :  { %v1749_v33 = vsub.f32 %v4677_v45, %v1655_v32 }
 0x173   :  { %v1781_v39 = vmul.f32 1.442695, %v1749_v33 }
 0x174   :  { %v1658_v40 = vpop.xlane.xlu0 %1657 }
 0x175   :  { %4158 = vpow2.f32 %v1781_v39  ;;  %v1750_v43 = vsub.f32 %v4680_v46, %v1658_v40 }
 0x177   :  { %v1783_v44 = vmul.f32 1.442695, %v1750_v43 }
 0x178   :  { %v1661_v49 = vpop.xlane.xlu1 %1660 }
 0x179   :  { %4160 = vpow2.f32 %v1783_v44  ;;  %v1751_v50 = vsub.f32 %v4687_v59, %v1661_v49 }
 0x17b   :  { %v1785_v52 = vmul.f32 1.442695, %v1751_v50 }
 0x17c   :  { %v1664_v55 = vpop.xlane.xlu1 %1663 }
 0x17d   :  { %4162 = vpow2.f32 %v1785_v52  ;;  %v1752_v56 = vsub.f32 %v4690_v60, %v1664_v55  ;;  %v1725_v60 = vsel %vm1652_vm2, %v4809_v1, -inf  ;;  %v1737_v55 = vsel %vm1652_vm2, %v4851_v8, -inf }
 0x17f   :  { %v4811_v45 = vpop.eup %4158  ;;  %v1787_v2 = vmul.f32 1.442695, %v1752_v56 }
 0x180   :  { %v1670_v3 = vpop.xlane.xlu1 %1669  ;;  %v1667_v46 = vpop.xlane.xlu0 %1666  ;;  %v1845_v4 = vsel %vm1652_vm2, %v4811_v45, 0.0 }
 0x181   :  { %4164 = vpow2.f32 %v1787_v2  ;;  %v1754_v59 = vsub.f32 %v4697_v10, %v1670_v3  ;;  %v1753_v47 = vsub.f32 %v4700_v11, %v1667_v46  ;;  %1846 = vadd.xlane.f32.xlu0 %v1845_v4  ;;  %v1614_v10 = vmul.f32 0.17677669, %v1397_v58 }
 0x182   :  { %v1728_v11 = vsel %vm1652_vm2, %v4820_v5, -inf  ;;  %v1731_v58 = vsel %vm1652_vm2, %v4829_v18, -inf  ;;  %v1617_v3 = vmul.f32 0.17677669, %v4800_v20 }
 0x183   :  { %v4822_v12 = vpop.eup %4160  ;;  %v1791_v13 = vmul.f32 1.442695, %v1754_v59  ;;  %v1789_v14 = vmul.f32 1.442695, %v1753_v47  ;;  %v4841_v31 = vadd.f32 %v4674_v36, %v1614_v10 }
 0x184   :  { %v1848_v15 = vsel %vm1652_vm2, %v4822_v12, 0.0  ;;  %v4873_v4 = vadd.f32 %v4674_v36, %v1617_v3 }
 0x185   :  { %1849 = vadd.xlane.f32.xlu1 %v1848_v15  ;;  %1726 = vmax.xlane.f32.xlu0 %v1725_v60  ;;  %4166 = vpow2.f32 %v1789_v14  ;;  %v82_v15 = vld [vmem:[%s5421_s2] sm:$0x3] }
 0x186   :  { %4168 = vpow2.f32 %v1791_v13 }
 0x187   :  { %v4831_v57 = vpop.eup %4162 }
 0x188   :  { %v1676_v19 = vpop.xlane.xlu1 %1675  ;;  %v1673_v26 = vpop.xlane.xlu0 %1672  ;;  %v1851_v27 = vsel %vm1652_vm2, %v4831_v57, 0.0 }
 0x189   :  { %v1756_v28 = vsub.f32 %v4707_v24, %v1676_v19  ;;  %v1755_v29 = vsub.f32 %v4710_v25, %v1673_v26  ;;  %1729 = vmax.xlane.f32.xlu1 %v1728_v11  ;;  %1852 = vadd.xlane.f32.xlu0 %v1851_v27  ;;  %v1616_v24 = vmul.f32 0.17677669, %v4798_v9  ;;  %v1734_v25 = vsel %vm1652_vm2, %v4841_v31, -inf  ;;  %v83_v26 = vld [vmem:[%s5421_s2 + $0x2] sm:$0x3] }
 0x18a   :  { %v2089_v27 = vsel %vm2041_vm3, %v83_v26, 0 }
 0x18b   :  { %v4843_v32 = vpop.eup %4164  ;;  %v1795_v33 = vmul.f32 1.442695, %v1756_v28  ;;  %v1793_v39 = vmul.f32 1.442695, %v1755_v29  ;;  %v4864_v56 = vadd.f32 %v4674_v36, %v1616_v24  ;;  %3971 = vmatpush3.bf16.msra.mxu1 %v2089_v27 }
 0x18c   :  { %v1854_v40 = vsel %vm1652_vm2, %v4843_v32, 0.0  ;;  %3982 = vmatprep.subr.bf16.mxu1 %v4286_v0 }
 0x18d   :  { %1855 = vadd.xlane.f32.xlu1 %v1854_v40  ;;  %1732 = vmax.xlane.f32.xlu0 %v1731_v58  ;;  %4170 = vpow2.f32 %v1793_v39  ;;  %v1740_v46 = vsel %vm1652_vm2, %v4864_v56, -inf }
 0x18e   :  { %4172 = vpow2.f32 %v1795_v33 }
 0x18f   :  { %v4853_v43 = vpop.eup %4166 }
 0x190   :  { %v1682_v44 = vpop.xlane.xlu1 %1681  ;;  %v1679_v49 = vpop.xlane.xlu0 %1678  ;;  %v1857_v9 = vsel %vm1652_vm2, %v4853_v43, 0.0 }
 0x191   :  { %v4855_v50 = vpop.eup %4168  ;;  %v1758_v51 = vsub.f32 %v4717_v37, %v1682_v44  ;;  %v1757_v52 = vsub.f32 %v4720_v38, %v1679_v49  ;;  %1735 = vmax.xlane.f32.xlu1 %v1734_v25  ;;  %1858 = vadd.xlane.f32.xlu0 %v1857_v9  ;;  %v1618_v38 = vmul.f32 0.17677669, %v4802_v21 }
 0x192   :  { %v1860_v37 = vsel %vm1652_vm2, %v4855_v50, 0.0 }
 0x193   :  { %v1799_v63 = vmul.f32 1.442695, %v1758_v51  ;;  %v1797_v2 = vmul.f32 1.442695, %v1757_v52  ;;  %v4884_v14 = vadd.f32 %v4674_v36, %v1618_v38 }
 0x195   :  { %1861 = vadd.xlane.f32.xlu1 %v1860_v37  ;;  %4174 = vpow2.f32 %v1797_v2  ;;  %1738 = vmax.xlane.f32.xlu0 %v1737_v55  ;;  %v1746_v36 = vsel %vm1652_vm2, %v4884_v14, -inf }
 0x196   :  { %4176 = vpow2.f32 %v1799_v63 }
 0x197   :  { %v4875_v59 = vpop.eup %4170 }
 0x198   :  { %v1688_v47 = vpop.xlane.xlu1 %1687  ;;  %v1685_v60 = vpop.xlane.xlu0 %1684  ;;  %v1863_v21 = vsel %vm1652_vm2, %v4875_v59, 0.0 }
 0x199   :  { %v4877_v20 = vpop.eup %4172  ;;  %v1760_v48 = vsub.f32 %v4727_v53, %v1688_v47  ;;  %v1759_v13 = vsub.f32 %v4730_v54, %v1685_v60  ;;  %1741 = vmax.xlane.f32.xlu1 %v1740_v46  ;;  %1864 = vadd.xlane.f32.xlu0 %v1863_v21  ;;  %v1743_v53 = vsel %vm1652_vm2, %v4873_v4, -inf  ;;  %v2043_v54 = vsel %vm2041_vm3, %v82_v15, 0 }
 0x19a   :  { %v1866_v19 = vsel %vm1652_vm2, %v4877_v20, 0.0  ;;  %3965 = vmatpush3.bf16.msra.mxu0 %v2043_v54 }
 0x19b   :  { %v1803_v10 = vmul.f32 1.442695, %v1760_v48  ;;  %v1801_v11 = vmul.f32 1.442695, %v1759_v13  ;;  %3976 = vmatprep.subr.bf16.mxu0 %v4286_v0 }
 0x19d   :  { %4178 = vpow2.f32 %v1803_v10  ;;  %1867 = vadd.xlane.f32.xlu1 %v1866_v19  ;;  %1744 = vmax.xlane.f32.xlu0 %v1743_v53 }
 0x19e   :  { %4180 = vpow2.f32 %v1801_v11 }
 0x19f   :  { %v4901_v28 = vpop.eup %4174 }
 0x1a0   :  { %v1694_v29 = vpop.xlane.xlu1 %1693  ;;  %v1691_v58 = vpop.xlane.xlu0 %1690  ;;  %v1869_v40 = vsel %vm1652_vm2, %v4901_v28, 0.0 }
 0x1a1   :  { %v4903_v30 = vpop.eup %4176  ;;  %v1762_v33 = vsub.f32 %v4737_v6, %v1694_v29  ;;  %v1761_v39 = vsub.f32 %v4740_v7, %v1691_v58  ;;  %1747 = vmax.xlane.f32.xlu1 %v1746_v36  ;;  %1870 = vadd.xlane.f32.xlu0 %v1869_v40 }
 0x1a2   :  { %v1872_v44 = vsel %vm1652_vm2, %v4903_v30, 0.0 }
 0x1a3   :  { %v1807_v24 = vmul.f32 1.442695, %v1762_v33  ;;  %v1805_v25 = vmul.f32 1.442695, %v1761_v39 }
 0x1a5   :  { %4182 = vpow2.f32 %v1807_v24  ;;  %1873 = vadd.xlane.f32.xlu1 %v1872_v44 }
 0x1a6   :  { %4184 = vpow2.f32 %v1805_v25 }
 0x1a7   :  { %v4912_v49 = vpop.eup %4178 }
 0x1a8   :  { %v4914_v6 = vpop.eup %4180  ;;  %v1700_v7 = vpop.xlane.xlu1 %1699  ;;  %v1878_v52 = vsel %vm1652_vm2, %v4912_v49, 0.0 }
 0x1a9   :  { %v1697_v51 = vpop.xlane.xlu0 %1696  ;;  %v1764_v9 = vsub.f32 %v4747_v22, %v1700_v7  ;;  %1879 = vadd.xlane.f32.xlu1 %v1878_v52  ;;  %v1875_v63 = vsel %vm1652_vm2, %v4914_v6, 0.0 }
 0x1aa   :  { %v1763_v55 = vsub.f32 %v4750_v23, %v1697_v51  ;;  %1876 = vadd.xlane.f32.xlu0 %v1875_v63 }
 0x1ab   :  { %v1811_v2 = vmul.f32 1.442695, %v1764_v9 }
 0x1ac   :  { %v1809_v3 = vmul.f32 1.442695, %v1763_v55 }
 0x1ad   :  { %4186 = vpow2.f32 %v1811_v2 }
 0x1ae   :  { %4188 = vpow2.f32 %v1809_v3 }
 0x1af   :  { %v4922_v37 = vpop.eup %4182 }
 0x1b0   :  { %v4924_v38 = vpop.eup %4184  ;;  %v1706_v46 = vpop.xlane.xlu1 %1705  ;;  %v1884_v22 = vsel %vm1652_vm2, %v4922_v37, 0.0 }
 0x1b1   :  { %v1703_v47 = vpop.xlane.xlu0 %1702  ;;  %v1766_v23 = vsub.f32 %v4757_v41, %v1706_v46  ;;  %1885 = vadd.xlane.f32.xlu1 %v1884_v22  ;;  %v1881_v48 = vsel %vm1652_vm2, %v4924_v38, 0.0 }
 0x1b2   :  { %v1765_v60 = vsub.f32 %v4760_v42, %v1703_v47  ;;  %1882 = vadd.xlane.f32.xlu0 %v1881_v48 }
 0x1b3   :  { %v1815_v13 = vmul.f32 1.442695, %v1766_v23 }
 0x1b4   :  { %v1813_v21 = vmul.f32 1.442695, %v1765_v60 }
 0x1b5   :  { %4190 = vpow2.f32 %v1815_v13 }
 0x1b6   :  { %4192 = vpow2.f32 %v1813_v21 }
 0x1b7   :  { %v4932_v15 = vpop.eup %4186 }
 0x1b8   :  { %v4934_v10 = vpop.eup %4188  ;;  %v1712_v11 = vpop.xlane.xlu1 %1711  ;;  %v1890_v41 = vsel %vm1652_vm2, %v4932_v15, 0.0 }
 0x1b9   :  { %v1709_v53 = vpop.xlane.xlu0 %1708  ;;  %v1768_v42 = vsub.f32 %v4767_v61, %v1712_v11  ;;  %1891 = vadd.xlane.f32.xlu1 %v1890_v41  ;;  %v1887_v19 = vsel %vm1652_vm2, %v4934_v10, 0.0 }
 0x1ba   :  { %v1767_v54 = vsub.f32 %v4770_v62, %v1709_v53  ;;  %1888 = vadd.xlane.f32.xlu0 %v1887_v19 }
 0x1bb   :  { %v1819_v36 = vmul.f32 1.442695, %v1768_v42 }
 0x1bc   :  { %v1817_v26 = vmul.f32 1.442695, %v1767_v54 }
 0x1bd   :  { %4194 = vpow2.f32 %v1819_v36 }
 0x1be   :  { %4196 = vpow2.f32 %v1817_v26  ;;  %v84_v26 = vld [vmem:[%s5421_s2 + $0x4] sm:$0x3] }
 0x1bf   :  { %v4942_v27 = vpop.eup %4190 }
 0x1c0   :  { %v4944_v29 = vpop.eup %4192  ;;  %v1718_v58 = vpop.xlane.xlu1 %1717  ;;  %v1896_v61 = vsel %vm1652_vm2, %v4942_v27, 0.0 }
 0x1c1   :  { %v1715_v33 = vpop.xlane.xlu0 %1714  ;;  %v1770_v62 = vsub.f32 %v4777_v16, %v1718_v58  ;;  %1897 = vadd.xlane.f32.xlu1 %v1896_v61  ;;  %v1893_v40 = vsel %vm1652_vm2, %v4944_v29, 0.0 }
 0x1c2   :  { %v1769_v39 = vsub.f32 %v4780_v17, %v1715_v33  ;;  %1894 = vadd.xlane.f32.xlu0 %v1893_v40 }
 0x1c3   :  { %v1823_v24 = vmul.f32 1.442695, %v1770_v62 }
 0x1c4   :  { %v1821_v25 = vmul.f32 1.442695, %v1769_v39  ;;  %v2135_v39 = vsel %vm2041_vm3, %v84_v26, 0 }
 0x1c5   :  { %4198 = vpow2.f32 %v1823_v24  ;;  %v85_v24 = vld [vmem:[%s5421_s2 + $0x6] sm:$0x3] }
 0x1c6   :  { %4200 = vpow2.f32 %v1821_v25 }
 0x1c7   :  { %v4952_v44 = vpop.eup %4194 }
 0x1c8   :  { %v4954_v7 = vpop.eup %4196  ;;  %v1724_v51 = vpop.xlane.xlu1 %1723  ;;  %v1902_v16 = vsel %vm1652_vm2, %v4952_v44, 0.0 }
 0x1c9   :  { %v1721_v52 = vpop.xlane.xlu0 %1720  ;;  %v1772_v17 = vsub.f32 %v4787_v34, %v1724_v51  ;;  %1903 = vadd.xlane.f32.xlu1 %v1902_v16  ;;  %v1899_v55 = vsel %vm1652_vm2, %v4954_v7, 0.0  ;;  %v2181_v16 = vsel %vm2041_vm3, %v85_v24, 0 }
 0x1ca   :  { %v1771_v9 = vsub.f32 %v4790_v35, %v1721_v52  ;;  %1900 = vadd.xlane.f32.xlu0 %v1899_v55 }
 0x1cb   :  { %v1827_v63 = vmul.f32 1.442695, %v1772_v17 }
 0x1cc   :  { %v1825_v2 = vmul.f32 1.442695, %v1771_v9 }
 0x1cd   :  { %4202 = vpow2.f32 %v1827_v63  ;;  %v86_v63 = vld [vmem:[%s5421_s2 + $0x8] sm:$0x3] }
 0x1ce   :  { %4204 = vpow2.f32 %v1825_v2 }
 0x1cf   :  { %v4962_v3 = vpop.eup %4198 }
 0x1d0   :  { %v4964_v46 = vpop.eup %4200  ;;  %v1908_v47 = vsel %vm1652_vm2, %v4962_v3, 0.0 }
 0x1d1   :  { %1909 = vadd.xlane.f32.xlu1 %v1908_v47  ;;  %v1905_v34 = vsel %vm1652_vm2, %v4964_v46, 0.0 }
 0x1d2   :  { %1906 = vadd.xlane.f32.xlu0 %v1905_v34 }
 0x1d7   :  { %v4970_v35 = vpop.eup %4202 }
 0x1d8   :  { %v4972_v22 = vpop.eup %4204  ;;  %v1914_v23 = vsel %vm1652_vm2, %v4970_v35, 0.0 }
 0x1d9   :  { %1915 = vadd.xlane.f32.xlu1 %v1914_v23  ;;  %v1911_v60 = vsel %vm1652_vm2, %v4972_v22, 0.0 }
 0x1da   :  { %1912 = vadd.xlane.f32.xlu0 %v1911_v60 }
 0x20e   :  { %v1847_v48 = vpop.xlane.xlu0 %1846 }
 0x20f   :  { %4206 = vrcp.f32 %v1847_v48  ;;  %v2227_v48 = vsel %vm2041_vm3, %v86_v63, 0  ;;  %v90_v63 = vld [vmem:[%s5421_s2 + $0x10] sm:$0x3] }
 0x212   :  { %v1850_v13 = vpop.xlane.xlu1 %1849  ;;  %v1727_v21 = vpop.xlane.xlu0 %1726 }
 0x213   :  { %4208 = vrcp.f32 %v1850_v13  ;;  %v1773_v11 = vsub.f32 %v4809_v1, %v1727_v21 }
 0x215   :  { %v1829_v53 = vmul.f32 1.442695, %v1773_v11 }
 0x216   :  { %v1730_v41 = vpop.xlane.xlu1 %1729  ;;  %v1853_v42 = vpop.xlane.xlu0 %1852 }
 0x217   :  { %4210 = vpow2.f32 %v1829_v53  ;;  %v1774_v54 = vsub.f32 %v4820_v5, %v1730_v41 }
 0x218   :  { %4212 = vrcp.f32 %v1853_v42 }
 0x219   :  { %v4207_v19 = vpop.eup %4206  ;;  %v1831_v36 = vmul.f32 1.442695, %v1774_v54 }
 0x21a   :  { %v1973_v58 = vmul.f32 %v4207_v19, %v4811_v45  ;;  %v1856_v33 = vpop.xlane.xlu1 %1855  ;;  %v1733_v61 = vpop.xlane.xlu0 %1732 }
 0x21b   :  { %4214 = vpow2.f32 %v1831_v36  ;;  %v1775_v1 = vsub.f32 %v4829_v18, %v1733_v61 }
 0x21c   :  { %4216 = vrcp.f32 %v1856_v33  ;;  %v2005_v62 = vpack.c.bf16 %v1973_v58, %v1973_v58  ;;  %v88_v33 = vld [vmem:[%s5421_s2 + $0xc] sm:$0x3] }
 0x21d   :  { %v4209_v5 = vpop.eup %4208  ;;  %v1833_v40 = vmul.f32 1.442695, %v1775_v1 }
 0x21e   :  { %v1974_v25 = vmul.f32 %v4209_v5, %v4822_v12  ;;  %v1736_v51 = vpop.xlane.xlu1 %1735  ;;  %3967 = vmatmul.mubr.msk.bf16.vlgmr.msra.gmra.mrb[64].mxu0 %vm2037_vm4, %v2005_v62  ;;  %v1859_v18 = vpop.xlane.xlu0 %1858 }
 0x21f   :  { %4218 = vpow2.f32 %v1833_v40  ;;  %v1776_v45 = vsub.f32 %v4841_v31, %v1736_v51  ;;  %3977 = vmatpush3.bf16.msra.mxu0 %v2135_v39  ;;  %3978 = vmatprep.mubr.msk.bf16.mxu0 %vm4287_vm1, %v4286_v0  ;;  %v2319_v40 = vsel %vm2041_vm3, %v88_v33, 0 }
 0x220   :  { %4220 = vrcp.f32 %v1859_v18  ;;  %v2006_v52 = vpack.c.bf16 %v1974_v25, %v1974_v25  ;;  %3988 = vmatprep.subr.bf16.mxu0 %v4286_v0 }
 0x221   :  { %v4996_v17 = vpop.eup %4210  ;;  %v1835_v12 = vmul.f32 1.442695, %v1776_v45 }
 0x222   :  { %v4213_v9 = vpop.eup %4212  ;;  %3973 = vmatmul.mubr.msk.bf16.vlgmr.msra.gmra.mrb[64].mxu1 %vm2037_vm4, %v2006_v52  ;;  %v1862_v55 = vpop.xlane.xlu1 %1861  ;;  %v1917_v31 = vsel %vm1652_vm2, %v4996_v17, 0.0 }
 0x223   :  { %v1975_v2 = vmul.f32 %v4213_v9, %v4831_v57  ;;  %4222 = vpow2.f32 %v1835_v12  ;;  %v1739_v47 = vpop.xlane.xlu0 %1738  ;;  %1918 = vadd.xlane.f32.xlu0 %v1917_v31  ;;  %3983 = vmatpush3.bf16.msra.mxu1 %v2181_v16 }
 0x224   :  { %4224 = vrcp.f32 %v1862_v55  ;;  %v1777_v34 = vsub.f32 %v4851_v8, %v1739_v47  ;;  %3984 = vmatprep.mubr.msk.bf16.mxu1 %vm4287_vm1, %v4286_v0  ;;  %3994 = vmatprep.subr.bf16.mxu1 %v4286_v0  ;;  %v87_v8 = vld [vmem:[%s5421_s2 + $0xa] sm:$0x3] }
 0x225   :  { %v5009_v23 = vpop.eup %4214  ;;  %v2007_v60 = vpack.c.bf16 %v1975_v2, %v1975_v2  ;;  %v2273_v26 = vsel %vm2041_vm3, %v87_v8, 0 }
 0x226   :  { %v4217_v13 = vpop.eup %4216  ;;  %v1837_v21 = vmul.f32 1.442695, %v1777_v34  ;;  %v1742_v57 = vpop.xlane.xlu1 %1741  ;;  %v1920_v11 = vsel %vm1652_vm2, %v5009_v23, 0.0 }
 0x227   :  { %v1976_v53 = vmul.f32 %v4217_v13, %v4843_v32  ;;  %v1778_v41 = vsub.f32 %v4864_v56, %v1742_v57  ;;  %3979 = vmatmul.mubr.msk.bf16.vlgmr.msra.gmra.mrb[68].mxu0 %vm2037_vm4, %v2007_v60  ;;  %v1865_v42 = vpop.xlane.xlu0 %1864  ;;  %1921 = vadd.xlane.f32.xlu1 %v1920_v11 }
 0x228   :  { %4226 = vpow2.f32 %v1837_v21  ;;  %3989 = vmatpush3.bf16.msra.mxu0 %v2227_v48  ;;  %3990 = vmatprep.mubr.msk.bf16.mxu0 %vm4287_vm1, %v4286_v0  ;;  %v2411_v21 = vsel %vm2041_vm3, %v90_v63, 0 }
 0x229   :  { %v5022_v54 = vpop.eup %4218  ;;  %v1839_v19 = vmul.f32 1.442695, %v1778_v41  ;;  %4228 = vrcp.f32 %v1865_v42  ;;  %v2008_v36 = vpack.c.bf16 %v1976_v53, %v1976_v53  ;;  %4000 = vmatprep.subr.bf16.mxu0 %v4286_v0 }
 0x22a   :  { %v4221_v32 = vpop.eup %4220  ;;  %v1868_v56 = vpop.xlane.xlu1 %1867  ;;  %v1923_v58 = vsel %vm1652_vm2, %v5022_v54, 0.0 }
 0x22b   :  { %v1977_v61 = vmul.f32 %v4221_v32, %v4853_v43  ;;  %4230 = vpow2.f32 %v1839_v19  ;;  %3985 = vmatmul.mubr.msk.bf16.vlgmr.msra.gmra.mrb[68].mxu1 %vm2037_vm4, %v2008_v36  ;;  %v1745_v1 = vpop.xlane.xlu0 %1744  ;;  %1924 = vadd.xlane.f32.xlu0 %v1923_v58  ;;  %v92_v19 = vld [vmem:[%s5421_s2 + $0x14] sm:$0x3] }
 0x22c   :  { %4232 = vrcp.f32 %v1868_v56  ;;  %v1779_v62 = vsub.f32 %v4873_v4, %v1745_v1  ;;  %3995 = vmatpush3.bf16.msra.mxu1 %v2273_v26  ;;  %3996 = vmatprep.mubr.msk.bf16.mxu1 %vm4287_vm1, %v4286_v0  ;;  %v89_v4 = vld [vmem:[%s5421_s2 + $0xe] sm:$0x3] }
 0x22d   :  { %v5036_v39 = vpop.eup %4222  ;;  %v2009_v5 = vpack.c.bf16 %v1977_v61, %v1977_v61  ;;  %4006 = vmatprep.subr.bf16.mxu1 %v4286_v0  ;;  %v2365_v9 = vsel %vm2041_vm3, %v89_v4, 0  ;;  %v2503_v61 = vsel %vm2041_vm3, %v92_v19, 0 }
 0x22e   :  { %v4225_v43 = vpop.eup %4224  ;;  %v1841_v24 = vmul.f32 1.442695, %v1779_v62  ;;  %v1748_v25 = vpop.xlane.xlu1 %1747  ;;  %v1926_v51 = vsel %vm1652_vm2, %v5036_v39, 0.0 }
 0x22f   :  { %v1978_v45 = vmul.f32 %v4225_v43, %v4855_v50  ;;  %v1780_v18 = vsub.f32 %v4884_v14, %v1748_v25  ;;  %3991 = vmatmul.mubr.msk.bf16.vlgmr.msra.gmra.mrb[72].mxu0 %vm2037_vm4, %v2009_v5  ;;  %v1871_v52 = vpop.xlane.xlu0 %1870  ;;  %1927 = vadd.xlane.f32.xlu1 %v1926_v51 }
 0x230   :  { %4234 = vpow2.f32 %v1841_v24  ;;  %4001 = vmatpush3.bf16.msra.mxu0 %v2319_v40  ;;  %4002 = vmatprep.mubr.msk.bf16.mxu0 %vm4287_vm1, %v4286_v0 }
 0x231   :  { %v1843_v16 = vmul.f32 1.442695, %v1780_v18  ;;  %4236 = vrcp.f32 %v1871_v52  ;;  %v2010_v12 = vpack.c.bf16 %v1978_v45, %v1978_v45  ;;  %4012 = vmatprep.subr.bf16.mxu0 %v4286_v0 }
 0x232   :  { %v5052_v55 = vpop.eup %4226  ;;  %v1874_v50 = vpop.xlane.xlu1 %1873 }
 0x233   :  { %v4229_v14 = vpop.eup %4228  ;;  %4238 = vpow2.f32 %v1843_v16  ;;  %3997 = vmatmul.mubr.msk.bf16.vlgmr.msra.gmra.mrb[72].mxu1 %vm2037_vm4, %v2010_v12  ;;  %v1929_v31 = vsel %vm1652_vm2, %v5052_v55, 0.0 }
 0x234   :  { %v1979_v2 = vmul.f32 %v4229_v14, %v4875_v59  ;;  %4240 = vrcp.f32 %v1874_v50  ;;  %1930 = vadd.xlane.f32.xlu0 %v1929_v31  ;;  %4007 = vmatpush3.bf16.msra.mxu1 %v2365_v9  ;;  %v91_v59 = vld [vmem:[%s5421_s2 + $0x12] sm:$0x3]  ;;  %v96_v14 = vld [vmem:[%s5421_s2 + $0x1c] sm:$0x3] }
 0x235   :  { %v5061_v47 = vpop.eup %4230  ;;  %4008 = vmatprep.mubr.msk.bf16.mxu1 %vm4287_vm1, %v4286_v0  ;;  %4018 = vmatprep.subr.bf16.mxu1 %v4286_v0  ;;  %v2457_v53 = vsel %vm2041_vm3, %v91_v59, 0 }
 0x236   :  { %v4233_v34 = vpop.eup %4232  ;;  %v1880_v60 = vpop.xlane.xlu1 %1879  ;;  %v2011_v48 = vpack.c.bf16 %v1979_v2, %v1979_v2  ;;  %v1932_v13 = vsel %vm1652_vm2, %v5061_v47, 0.0 }
 0x237   :  { %v1980_v57 = vmul.f32 %v4233_v34, %v4877_v20  ;;  %4242 = vrcp.f32 %v1880_v60  ;;  %v1877_v11 = vpop.xlane.xlu0 %1876  ;;  %1933 = vadd.xlane.f32.xlu1 %v1932_v13  ;;  %v2687_v34 = vsel %vm2041_vm3, %v96_v14, 0 }
 0x238   :  { %4003 = vmatmul.mubr.msk.bf16.vlgmr.msra.gmra.mrb[76].mxu0 %vm2037_vm4, %v2011_v48  ;;  %4244 = vrcp.f32 %v1877_v11 }
 0x239   :  { %v2012_v8 = vpack.c.bf16 %v1980_v57, %v1980_v57  ;;  %4013 = vmatpush3.bf16.msra.mxu0 %v2411_v21  ;;  %4014 = vmatprep.mubr.msk.bf16.mxu0 %vm4287_vm1, %v4286_v0  ;;  %v98_v57 = vld [vmem:[%s5421_s2 + $0x20] sm:$0x3] }
 0x23a   :  { %v5077_v41 = vpop.eup %4234  ;;  %4024 = vmatprep.subr.bf16.mxu0 %v4286_v0 }
 0x23b   :  { %v4237_v42 = vpop.eup %4236  ;;  %4009 = vmatmul.mubr.msk.bf16.vlgmr.msra.gmra.mrb[76].mxu1 %vm2037_vm4, %v2012_v8  ;;  %v1935_v20 = vsel %vm1652_vm2, %v5077_v41, 0.0 }
 0x23c   :  { %v1981_v36 = vmul.f32 %v4237_v42, %v4901_v28  ;;  %1936 = vadd.xlane.f32.xlu0 %v1935_v20  ;;  %4019 = vmatpush3.bf16.msra.mxu1 %v2457_v53  ;;  %v93_v28 = vld [vmem:[%s5421_s2 + $0x16] sm:$0x3]  ;;  %v2779_v42 = vsel %vm2041_vm3, %v98_v57, 0 }
 0x23d   :  { %v5087_v26 = vpop.eup %4238  ;;  %4020 = vmatprep.mubr.msk.bf16.mxu1 %vm4287_vm1, %v4286_v0  ;;  %4030 = vmatprep.subr.bf16.mxu1 %v4286_v0  ;;  %v2549_v43 = vsel %vm2041_vm3, %v93_v28, 0 }
 0x23e   :  { %v4241_v32 = vpop.eup %4240  ;;  %v1886_v56 = vpop.xlane.xlu1 %1885  ;;  %v2013_v58 = vpack.c.bf16 %v1981_v36, %v1981_v36  ;;  %v1938_v33 = vsel %vm1652_vm2, %v5087_v26, 0.0 }
 0x23f   :  { %v1982_v1 = vmul.f32 %v4241_v32, %v4903_v30  ;;  %4246 = vrcp.f32 %v1886_v56  ;;  %v1883_v62 = vpop.xlane.xlu0 %1882  ;;  %1939 = vadd.xlane.f32.xlu1 %v1938_v33  ;;  %v94_v30 = vld [vmem:[%s5421_s2 + $0x18] sm:$0x3] }
 0x240   :  { %4015 = vmatmul.mubr.msk.bf16.vlgmr.msra.gmra.mrb[80].mxu0 %vm2037_vm4, %v2013_v58  ;;  %4248 = vrcp.f32 %v1883_v62  ;;  %v2595_v18 = vsel %vm2041_vm3, %v94_v30, 0  ;;  %v100_v58 = vld [vmem:[%s5421_s2 + $0x24] sm:$0x3] }
 0x241   :  { %v4243_v5 = vpop.eup %4242  ;;  %v2014_v40 = vpack.c.bf16 %v1982_v1, %v1982_v1  ;;  %4025 = vmatpush3.bf16.msra.mxu0 %v2503_v61  ;;  %4026 = vmatprep.mubr.msk.bf16.mxu0 %vm4287_vm1, %v4286_v0  ;;  %v2871_v1 = vsel %vm2041_vm3, %v100_v58, 0 }
 0x242   :  { %v4245_v24 = vpop.eup %4244  ;;  %4036 = vmatprep.subr.bf16.mxu0 %v4286_v0  ;;  %v1984_v51 = vmul.f32 %v4243_v5, %v4912_v49 }
 0x243   :  { %v1983_v25 = vmul.f32 %v4245_v24, %v4914_v6  ;;  %4021 = vmatmul.mubr.msk.bf16.vlgmr.msra.gmra.mrb[80].mxu1 %vm2037_vm4, %v2014_v40  ;;  %v95_v6 = vld [vmem:[%s5421_s2 + $0x1a] sm:$0x3] }
 0x244   :  { %4031 = vmatpush3.bf16.msra.mxu1 %v2549_v43  ;;  %4032 = vmatprep.mubr.msk.bf16.mxu1 %vm4287_vm1, %v4286_v0  ;;  %v2016_v12 = vpack.c.bf16 %v1984_v51, %v1984_v51  ;;  %v2641_v49 = vsel %vm2041_vm3, %v95_v6, 0 }
 0x245   :  { %v2015_v4 = vpack.c.bf16 %v1983_v25, %v1983_v25  ;;  %4042 = vmatprep.subr.bf16.mxu1 %v4286_v0  ;;  %v102_v25 = vld [vmem:[%s5421_s2 + $0x28] sm:$0x3] }
 0x246   :  { %v1892_v45 = vpop.xlane.xlu1 %1891 }
 0x247   :  { %4250 = vrcp.f32 %v1892_v45  ;;  %v1889_v52 = vpop.xlane.xlu0 %1888  ;;  %v2963_v45 = vsel %vm2041_vm3, %v102_v25, 0 }
 0x248   :  { %4027 = vmatmul.mubr.msk.bf16.vlgmr.msra.gmra.mrb[84].mxu0 %vm2037_vm4, %v2015_v4  ;;  %4252 = vrcp.f32 %v1889_v52 }
 0x249   :  { %v4247_v16 = vpop.eup %4246  ;;  %4037 = vmatpush3.bf16.msra.mxu0 %v2595_v18  ;;  %4038 = vmatprep.mubr.msk.bf16.mxu0 %vm4287_vm1, %v4286_v0 }
 0x24a   :  { %v4249_v9 = vpop.eup %4248  ;;  %4048 = vmatprep.subr.bf16.mxu0 %v4286_v0  ;;  %v1986_v31 = vmul.f32 %v4247_v16, %v4922_v37 }
 0x24b   :  { %v1985_v50 = vmul.f32 %v4249_v9, %v4924_v38  ;;  %4033 = vmatmul.mubr.msk.bf16.vlgmr.msra.gmra.mrb[84].mxu1 %vm2037_vm4, %v2016_v12  ;;  %v97_v38 = vld [vmem:[%s5421_s2 + $0x1e] sm:$0x3] }
 0x24c   :  { %4043 = vmatpush3.bf16.msra.mxu1 %v2641_v49  ;;  %4044 = vmatprep.mubr.msk.bf16.mxu1 %vm4287_vm1, %v4286_v0  ;;  %v2018_v13 = vpack.c.bf16 %v1986_v31, %v1986_v31  ;;  %v2733_v37 = vsel %vm2041_vm3, %v97_v38, 0  ;;  %v104_v49 = vld [vmem:[%s5421_s2 + $0x2c] sm:$0x3]  ;;  %v106_v38 = vld [vmem:[%s5421_s2 + $0x30] sm:$0x3] }
 0x24d   :  { %v2017_v63 = vpack.c.bf16 %v1985_v50, %v1985_v50  ;;  %4054 = vmatprep.subr.bf16.mxu1 %v4286_v0  ;;  %v3055_v14 = vsel %vm2041_vm3, %v104_v49, 0 }
 0x24e   :  { %v1898_v2 = vpop.xlane.xlu1 %1897 }
 0x24f   :  { %4254 = vrcp.f32 %v1898_v2  ;;  %v1895_v60 = vpop.xlane.xlu0 %1894 }
 0x250   :  { %4039 = vmatmul.mubr.msk.bf16.vlgmr.msra.gmra.mrb[88].mxu0 %vm2037_vm4, %v2017_v63  ;;  %4256 = vrcp.f32 %v1895_v60 }
 0x251   :  { %v4251_v48 = vpop.eup %4250  ;;  %4049 = vmatpush3.bf16.msra.mxu0 %v2687_v34  ;;  %4050 = vmatprep.mubr.msk.bf16.mxu0 %vm4287_vm1, %v4286_v0 }
 0x252   :  { %v4253_v21 = vpop.eup %4252  ;;  %4060 = vmatprep.subr.bf16.mxu0 %v4286_v0  ;;  %v1988_v11 = vmul.f32 %v4251_v48, %v4932_v15 }
 0x253   :  { %v1987_v59 = vmul.f32 %v4253_v21, %v4934_v10  ;;  %4045 = vmatmul.mubr.msk.bf16.vlgmr.msra.gmra.mrb[88].mxu1 %vm2037_vm4, %v2018_v13  ;;  %v99_v10 = vld [vmem:[%s5421_s2 + $0x22] sm:$0x3]  ;;  %v3147_v13 = vsel %vm2041_vm3, %v106_v38, 0 }
 0x254   :  { %4055 = vmatpush3.bf16.msra.mxu1 %v2733_v37  ;;  %4056 = vmatprep.mubr.msk.bf16.mxu1 %vm4287_vm1, %v4286_v0  ;;  %v2020_v36 = vpack.c.bf16 %v1988_v11, %v1988_v11  ;;  %v2825_v15 = vsel %vm2041_vm3, %v99_v10, 0 }
 0x255   :  { %v2019_v8 = vpack.c.bf16 %v1987_v59, %v1987_v59  ;;  %4066 = vmatprep.subr.bf16.mxu1 %v4286_v0 }
 0x256   :  { %v1904_v53 = vpop.xlane.xlu1 %1903 }
 0x257   :  { %4258 = vrcp.f32 %v1904_v53  ;;  %v1901_v20 = vpop.xlane.xlu0 %1900 }
 0x258   :  { %4051 = vmatmul.mubr.msk.bf16.vlgmr.msra.gmra.mrb[92].mxu0 %vm2037_vm4, %v2019_v8  ;;  %4260 = vrcp.f32 %v1901_v20  ;;  %v108_v8 = vld [vmem:[%s5421_s2 + $0x34] sm:$0x3] }
 0x259   :  { %v4255_v19 = vpop.eup %4254  ;;  %4061 = vmatpush3.bf16.msra.mxu0 %v2779_v42  ;;  %4062 = vmatprep.mubr.msk.bf16.mxu0 %vm4287_vm1, %v4286_v0  ;;  %v3239_v20 = vsel %vm2041_vm3, %v108_v8, 0 }
 0x25a   :  { %v4257_v32 = vpop.eup %4256  ;;  %4072 = vmatprep.subr.bf16.mxu0 %v4286_v0  ;;  %v1990_v33 = vmul.f32 %v4255_v19, %v4942_v27 }
 0x25b   :  { %v1989_v56 = vmul.f32 %v4257_v32, %v4944_v29  ;;  %4057 = vmatmul.mubr.msk.bf16.vlgmr.msra.gmra.mrb[92].mxu1 %vm2037_vm4, %v2020_v36  ;;  %v101_v29 = vld [vmem:[%s5421_s2 + $0x26] sm:$0x3]  ;;  %v109_v36 = vld [vmem:[%s5421_s2 + $0x36] sm:$0x3] }
 0x25c   :  { %4067 = vmatpush3.bf16.msra.mxu1 %v2825_v15  ;;  %4068 = vmatprep.mubr.msk.bf16.mxu1 %vm4287_vm1, %v4286_v0  ;;  %v2022_v40 = vpack.c.bf16 %v1990_v33, %v1990_v33  ;;  %v2917_v27 = vsel %vm2041_vm3, %v101_v29, 0  ;;  %v110_v33 = vld [vmem:[%s5421_s2 + $0x38] sm:$0x3] }
 0x25d   :  { %v2021_v61 = vpack.c.bf16 %v1989_v56, %v1989_v56  ;;  %4078 = vmatprep.subr.bf16.mxu1 %v4286_v0  ;;  %v3285_v56 = vsel %vm2041_vm3, %v109_v36, 0 }
 0x25e   :  { %v1910_v28 = vpop.xlane.xlu1 %1909 }
 0x25f   :  { %4262 = vrcp.f32 %v1910_v28  ;;  %v1907_v62 = vpop.xlane.xlu0 %1906 }
 0x260   :  { %4063 = vmatmul.mubr.msk.bf16.vlgmr.msra.gmra.mrb[96].mxu0 %vm2037_vm4, %v2021_v61  ;;  %4264 = vrcp.f32 %v1907_v62  ;;  %v111_v62 = vld [vmem:[%s5421_s2 + $0x3a] sm:$0x3] }
 0x261   :  { %v4259_v5 = vpop.eup %4258  ;;  %4073 = vmatpush3.bf16.msra.mxu0 %v2871_v1  ;;  %4074 = vmatprep.mubr.msk.bf16.mxu0 %vm4287_vm1, %v4286_v0  ;;  %v3331_v1 = vsel %vm2041_vm3, %v110_v33, 0 }
 0x262   :  { %v4261_v43 = vpop.eup %4260  ;;  %4084 = vmatprep.subr.bf16.mxu0 %v4286_v0  ;;  %v1992_v30 = vmul.f32 %v4259_v5, %v4952_v44 }
 0x263   :  { %v1991_v24 = vmul.f32 %v4261_v43, %v4954_v7  ;;  %4069 = vmatmul.mubr.msk.bf16.vlgmr.msra.gmra.mrb[96].mxu1 %vm2037_vm4, %v2022_v40  ;;  %v103_v7 = vld [vmem:[%s5421_s2 + $0x2a] sm:$0x3] }
 0x264   :  { %4079 = vmatpush3.bf16.msra.mxu1 %v2917_v27  ;;  %4080 = vmatprep.mubr.msk.bf16.mxu1 %vm4287_vm1, %v4286_v0  ;;  %v2024_v52 = vpack.c.bf16 %v1992_v30, %v1992_v30  ;;  %v3009_v44 = vsel %vm2041_vm3, %v103_v7, 0  ;;  %v3377_v27 = vsel %vm2041_vm3, %v111_v62, 0 }
 0x265   :  { %v2023_v51 = vpack.c.bf16 %v1991_v24, %v1991_v24  ;;  %4090 = vmatprep.subr.bf16.mxu1 %v4286_v0 }
 0x266   :  { %v1916_v4 = vpop.xlane.xlu1 %1915 }
 0x267   :  { %4266 = vrcp.f32 %v1916_v4  ;;  %v1913_v18 = vpop.xlane.xlu0 %1912 }
 0x268   :  { %4075 = vmatmul.mubr.msk.bf16.vlgmr.msra.gmra.mrb[100].mxu0 %vm2037_vm4, %v2023_v51  ;;  %4268 = vrcp.f32 %v1913_v18 }
 0x269   :  { %v4263_v6 = vpop.eup %4262  ;;  %4085 = vmatpush3.bf16.msra.mxu0 %v2963_v45  ;;  %4086 = vmatprep.mubr.msk.bf16.mxu0 %vm4287_vm1, %v4286_v0  ;;  %v113_v45 = vld [vmem:[%s5421_s2 + $0x3e] sm:$0x3] }
 0x26a   :  { %v4265_v16 = vpop.eup %4264  ;;  %4096 = vmatprep.subr.bf16.mxu0 %v4286_v0  ;;  %v1994_v9 = vmul.f32 %v4263_v6, %v4962_v3  ;;  %v3469_v18 = vsel %vm2041_vm3, %v113_v45, 0 }
 0x26b   :  { %v1993_v12 = vmul.f32 %v4265_v16, %v4964_v46  ;;  %4081 = vmatmul.mubr.msk.bf16.vlgmr.msra.gmra.mrb[100].mxu1 %vm2037_vm4, %v2024_v52  ;;  %v105_v46 = vld [vmem:[%s5421_s2 + $0x2e] sm:$0x3] }
 0x26c   :  { %4091 = vmatpush3.bf16.msra.mxu1 %v3009_v44  ;;  %4092 = vmatprep.mubr.msk.bf16.mxu1 %vm4287_vm1, %v4286_v0  ;;  %v2026_v63 = vpack.c.bf16 %v1994_v9, %v1994_v9  ;;  %v3101_v2 = vsel %vm2041_vm3, %v105_v46, 0 }
 0x26d   :  { %v2025_v50 = vpack.c.bf16 %v1993_v12, %v1993_v12  ;;  %4102 = vmatprep.subr.bf16.mxu1 %v4286_v0 }
 0x270   :  { %4087 = vmatmul.mubr.msk.bf16.vlgmr.msra.gmra.mrb[104].mxu0 %vm2037_vm4, %v2025_v50 }
 0x271   :  { %v4267_v31 = vpop.eup %4266  ;;  %4097 = vmatpush3.bf16.msra.mxu0 %v3055_v14  ;;  %4098 = vmatprep.mubr.msk.bf16.mxu0 %vm4287_vm1, %v4286_v0 }
 0x272   :  { %v4269_v3 = vpop.eup %4268  ;;  %4108 = vmatprep.subr.bf16.mxu0 %v4286_v0  ;;  %v1996_v60 = vmul.f32 %v4267_v31, %v4970_v35 }
 0x273   :  { %v1995_v34 = vmul.f32 %v4269_v3, %v4972_v22  ;;  %4093 = vmatmul.mubr.msk.bf16.vlgmr.msra.gmra.mrb[104].mxu1 %vm2037_vm4, %v2026_v63  ;;  %v107_v22 = vld [vmem:[%s5421_s2 + $0x32] sm:$0x3] }
 0x274   :  { %4103 = vmatpush3.bf16.msra.mxu1 %v3101_v2  ;;  %4104 = vmatprep.mubr.msk.bf16.mxu1 %vm4287_vm1, %v4286_v0  ;;  %v2028_v37 = vpack.c.bf16 %v1996_v60, %v1996_v60  ;;  %v3193_v21 = vsel %vm2041_vm3, %v107_v22, 0 }
 0x275   :  { %v2027_v48 = vpack.c.bf16 %v1995_v34, %v1995_v34  ;;  %4114 = vmatprep.subr.bf16.mxu1 %v4286_v0 }
 0x278   :  { %4099 = vmatmul.mubr.msk.bf16.vlgmr.msra.gmra.mrb[108].mxu0 %vm2037_vm4, %v2027_v48 }
 0x279   :  { %4109 = vmatpush3.bf16.msra.mxu0 %v3147_v13  ;;  %4110 = vmatprep.mubr.msk.bf16.mxu0 %vm4287_vm1, %v4286_v0 }
 0x27a   :  { %4120 = vmatprep.subr.bf16.mxu0 %v4286_v0 }
 0x27b   :  { %4105 = vmatmul.mubr.msk.bf16.vlgmr.msra.gmra.mrb[108].mxu1 %vm2037_vm4, %v2028_v37 }
 0x27c   :  { %4115 = vmatpush3.bf16.msra.mxu1 %v3193_v21  ;;  %4116 = vmatprep.mubr.msk.bf16.mxu1 %vm4287_vm1, %v4286_v0 }
 0x27d   :  { %4126 = vmatprep.subr.bf16.mxu1 %v4286_v0 }
 0x2b0   :  { %v1919_v35 = vpop.xlane.xlu0 %1918 }
 0x2b1   :  { %4270 = vrcp.f32 %v1919_v35 }
 0x2b4   :  { %v1922_v59 = vpop.xlane.xlu1 %1921 }
 0x2b5   :  { %4272 = vrcp.f32 %v1922_v59 }
 0x2b8   :  { %v1925_v57 = vpop.xlane.xlu0 %1924 }
 0x2b9   :  { %4274 = vrcp.f32 %v1925_v57 }
 0x2bb   :  { %v4271_v11 = vpop.eup %4270 }
 0x2bc   :  { %v1997_v53 = vmul.f32 %v4271_v11, %v4996_v17  ;;  %v1928_v42 = vpop.xlane.xlu1 %1927 }
 0x2bd   :  { %4276 = vrcp.f32 %v1928_v42 }
 0x2be   :  { %v2029_v10 = vpack.c.bf16 %v1997_v53, %v1997_v53 }
 0x2bf   :  { %v4273_v19 = vpop.eup %4272 }
 0x2c0   :  { %v1998_v15 = vmul.f32 %v4273_v19, %v5009_v23  ;;  %4111 = vmatmul.mubr.msk.bf16.vlgmr.msra.gmra.mrb[112].mxu0 %vm2037_vm4, %v2029_v10 }
 0x2c1   :  { %v1931_v32 = vpop.xlane.xlu0 %1930  ;;  %4121 = vmatpush3.bf16.msra.mxu0 %v3239_v20  ;;  %4122 = vmatprep.mubr.msk.bf16.mxu0 %vm4287_vm1, %v4286_v0 }
 0x2c2   :  { %4278 = vrcp.f32 %v1931_v32  ;;  %v2030_v17 = vpack.c.bf16 %v1998_v15, %v1998_v15  ;;  %4132 = vmatprep.subr.bf16.mxu0 %v4286_v0 }
 0x2c3   :  { %v4275_v58 = vpop.eup %4274 }
 0x2c4   :  { %v1999_v23 = vmul.f32 %v4275_v58, %v5022_v54  ;;  %4117 = vmatmul.mubr.msk.bf16.vlgmr.msra.gmra.mrb[112].mxu1 %vm2037_vm4, %v2030_v17  ;;  %v1934_v61 = vpop.xlane.xlu1 %1933 }
 0x2c5   :  { %4280 = vrcp.f32 %v1934_v61  ;;  %4127 = vmatpush3.bf16.msra.mxu1 %v3285_v56  ;;  %4128 = vmatprep.mubr.msk.bf16.mxu1 %vm4287_vm1, %v4286_v0 }
 0x2c6   :  { %v2031_v28 = vpack.c.bf16 %v1999_v23, %v1999_v23  ;;  %4138 = vmatprep.subr.bf16.mxu1 %v4286_v0 }
 0x2c7   :  { %v4277_v29 = vpop.eup %4276 }
 0x2c8   :  { %v2000_v54 = vmul.f32 %v4277_v29, %v5036_v39  ;;  %4123 = vmatmul.mubr.msk.bf16.vlgmr.msra.gmra.mrb[116].mxu0 %vm2037_vm4, %v2031_v28  ;;  %v112_v39 = vld [vmem:[%s5421_s2 + $0x3c] sm:$0x3] }
 0x2c9   :  { %v1937_v5 = vpop.xlane.xlu0 %1936  ;;  %4133 = vmatpush3.bf16.msra.mxu0 %v3331_v1  ;;  %4134 = vmatprep.mubr.msk.bf16.mxu0 %vm4287_vm1, %v4286_v0  ;;  %v3423_v4 = vsel %vm2041_vm3, %v112_v39, 0 }
 0x2ca   :  { %4282 = vrcp.f32 %v1937_v5  ;;  %v2032_v40 = vpack.c.bf16 %v2000_v54, %v2000_v54  ;;  %4144 = vmatprep.subr.bf16.mxu0 %v4286_v0 }
 0x2cc   :  { %v4279_v43 = vpop.eup %4278  ;;  %4129 = vmatmul.mubr.msk.bf16.vlgmr.msra.gmra.mrb[116].mxu1 %vm2037_vm4, %v2032_v40  ;;  %v1940_v24 = vpop.xlane.xlu1 %1939 }
 0x2cd   :  { %v2001_v25 = vmul.f32 %v4279_v43, %v5052_v55  ;;  %4284 = vrcp.f32 %v1940_v24  ;;  %4139 = vmatpush3.bf16.msra.mxu1 %v3377_v27  ;;  %4140 = vmatprep.mubr.msk.bf16.mxu1 %vm4287_vm1, %v4286_v0 }
 0x2ce   :  { %4150 = vmatprep.subr.bf16.mxu1 %v4286_v0 }
 0x2cf   :  { %v4281_v30 = vpop.eup %4280  ;;  %v2033_v51 = vpack.c.bf16 %v2001_v25, %v2001_v25 }
 0x2d0   :  { %v2002_v7 = vmul.f32 %v4281_v30, %v5061_v47 }
 0x2d1   :  { %4135 = vmatmul.mubr.msk.bf16.vlgmr.msra.gmra.mrb[120].mxu0 %vm2037_vm4, %v2033_v51 }
 0x2d2   :  { %v2034_v55 = vpack.c.bf16 %v2002_v7, %v2002_v7  ;;  %4145 = vmatpush3.bf16.msra.mxu0 %v3423_v4  ;;  %4146 = vmatprep.mubr.msk.bf16.mxu0 %vm4287_vm1, %v4286_v0 }
 0x2d4   :  { %v4283_v6 = vpop.eup %4282  ;;  %4141 = vmatmul.mubr.msk.bf16.vlgmr.msra.gmra.mrb[120].mxu1 %vm2037_vm4, %v2034_v55 }
 0x2d5   :  { %v2003_v52 = vmul.f32 %v4283_v6, %v5077_v41  ;;  %4151 = vmatpush3.bf16.msra.mxu1 %v3469_v18  ;;  %4152 = vmatprep.mubr.msk.bf16.mxu1 %vm4287_vm1, %v4286_v0 }
 0x2d7   :  { %v4285_v44 = vpop.eup %4284  ;;  %v2035_v47 = vpack.c.bf16 %v2003_v52, %v2003_v52 }
 0x2d8   :  { %v2004_v16 = vmul.f32 %v4285_v44, %v5087_v26 }
 0x2d9   :  { %4147 = vmatmul.mubr.msk.bf16.vlgmr.msra.gmra.mrb[124].mxu0 %vm2037_vm4, %v2035_v47 }
 0x2da   :  { %v2036_v12 = vpack.c.bf16 %v2004_v16, %v2004_v16 }
 0x2dc   :  { %4153 = vmatmul.mubr.msk.bf16.vlgmr.msra.gmra.mrb[124].mxu1 %vm2037_vm4, %v2036_v12 }
 0x2f1   :  { %v2079_v49 = vpop.f32.mrb[64].mxu0 }
 0x2f2   :  { %v3511_v9 = vpack.c.bf16 %v2079_v49, %v2079_v49  ;;  %v3968_v50 = vpop.f32.mrb[65].mxu0 }
 0x2f3   :  { %v2082_v14 = vpop.f32.mrb[66].mxu0 }
 0x2f4   :  { %3544 = vst.msk [vmem:[%s5422_s4] sm:$0x3] %vm3543_vm5, %v3511_v9  ;;  %v3969_v0 = vpop.f32.mrb[67].mxu0 }
 0x2f5   :  { %v2125_v41 = vpop.f32.mrb[64].mxu1 }
 0x2f6   :  { %v3512_v46 = vpack.c.bf16 %v2125_v41, %v2125_v41  ;;  %v3974_v31 = vpop.f32.mrb[65].mxu1 }
 0x2f7   :  { %v2128_v26 = vpop.f32.mrb[66].mxu1 }
 0x2f8   :  { %3545 = vst.msk [vmem:[%s5422_s4 + $0x2] sm:$0x3] %vm3543_vm5, %v3512_v46  ;;  %v3975_v63 = vpop.f32.mrb[67].mxu1 }
 0x2fa   :  { %v2171_v2 = vpop.f32.mrb[68].mxu0 }
 0x2fb   :  { %v3513_v3 = vpack.c.bf16 %v2171_v2, %v2171_v2  ;;  %v3980_v34 = vpop.f32.mrb[69].mxu0 }
 0x2fc   :  { %v2174_v38 = vpop.f32.mrb[70].mxu0 }
 0x2fd   :  { %3546 = vst.msk [vmem:[%s5422_s4 + $0x4] sm:$0x3] %vm3543_vm5, %v3513_v3  ;;  %v3981_v60 = vpop.f32.mrb[71].mxu0 }
 0x2fe   :  { %v2217_v48 = vpop.f32.mrb[68].mxu1 }
 0x2ff   :  { %v3514_v13 = vpack.c.bf16 %v2217_v48, %v2217_v48  ;;  %v3986_v22 = vpop.f32.mrb[69].mxu1 }
 0x300   :  { %v2220_v37 = vpop.f32.mrb[70].mxu1 }
 0x301   :  { %3547 = vst.msk [vmem:[%s5422_s4 + $0x6] sm:$0x3] %vm3543_vm5, %v3514_v13  ;;  %v3987_v21 = vpop.f32.mrb[71].mxu1 }
 0x302   :  { %v2263_v35 = vpop.f32.mrb[72].mxu0 }
 0x303   :  { %v3515_v59 = vpack.c.bf16 %v2263_v35, %v2263_v35  ;;  %v3992_v57 = vpop.f32.mrb[73].mxu0 }
 0x304   :  { %v2266_v11 = vpop.f32.mrb[74].mxu0 }
 0x305   :  { %3548 = vst.msk [vmem:[%s5422_s4 + $0x8] sm:$0x3] %vm3543_vm5, %v3515_v59  ;;  %v3993_v8 = vpop.f32.mrb[75].mxu0 }
 0x306   :  { %v2309_v53 = vpop.f32.mrb[72].mxu1 }
 0x307   :  { %v3516_v42 = vpack.c.bf16 %v2309_v53, %v2309_v53  ;;  %v3998_v10 = vpop.f32.mrb[73].mxu1 }
 0x308   :  { %v2312_v20 = vpop.f32.mrb[74].mxu1 }
 0x309   :  { %3549 = vst.msk [vmem:[%s5422_s4 + $0xa] sm:$0x3] %vm3543_vm5, %v3516_v42  ;;  %v3999_v19 = vpop.f32.mrb[75].mxu1 }
 0x30b   :  { %v2355_v36 = vpop.f32.mrb[76].mxu0 }
 0x30c   :  { %v3517_v15 = vpack.c.bf16 %v2355_v36, %v2355_v36  ;;  %v4004_v32 = vpop.f32.mrb[77].mxu0 }
 0x30d   :  { %v2358_v17 = vpop.f32.mrb[78].mxu0 }
 0x30e   :  { %3550 = vst.msk [vmem:[%s5422_s4 + $0xc] sm:$0x3] %vm3543_vm5, %v3517_v15  ;;  %v4005_v56 = vpop.f32.mrb[79].mxu0  ;;  %v2401_v58 = vpop.f32.mrb[76].mxu1 }
 0x30f   :  { %v3518_v33 = vpack.c.bf16 %v2401_v58, %v2401_v58  ;;  %v4010_v23 = vpop.f32.mrb[77].mxu1 }
 0x310   :  { %v2404_v61 = vpop.f32.mrb[78].mxu1 }
 0x311   :  { %3551 = vst.msk [vmem:[%s5422_s4 + $0xe] sm:$0x3] %vm3543_vm5, %v3518_v33  ;;  %v4011_v28 = vpop.f32.mrb[79].mxu1 }
 0x313   :  { %v2447_v1 = vpop.f32.mrb[80].mxu0 }
 0x314   :  { %v3519_v29 = vpack.c.bf16 %v2447_v1, %v2447_v1  ;;  %v4016_v62 = vpop.f32.mrb[81].mxu0 }
 0x315   :  { %v2450_v54 = vpop.f32.mrb[82].mxu0 }
 0x316   :  { %3552 = vst.msk [vmem:[%s5422_s4 + $0x10] sm:$0x3] %vm3543_vm5, %v3519_v29  ;;  %v4017_v5 = vpop.f32.mrb[83].mxu0  ;;  %v2493_v40 = vpop.f32.mrb[80].mxu1 }
 0x317   :  { %v3520_v27 = vpack.c.bf16 %v2493_v40, %v2493_v40  ;;  %v4022_v43 = vpop.f32.mrb[81].mxu1 }
 0x318   :  { %v2496_v24 = vpop.f32.mrb[82].mxu1 }
 0x319   :  { %3553 = vst.msk [vmem:[%s5422_s4 + $0x12] sm:$0x3] %vm3543_vm5, %v3520_v27  ;;  %v4023_v39 = vpop.f32.mrb[83].mxu1 }
 0x31b   :  { %v2539_v25 = vpop.f32.mrb[84].mxu0 }
 0x31c   :  { %v3521_v30 = vpack.c.bf16 %v2539_v25, %v2539_v25  ;;  %v4028_v51 = vpop.f32.mrb[85].mxu0 }
 0x31d   :  { %v2542_v4 = vpop.f32.mrb[86].mxu0 }
 0x31e   :  { %3554 = vst.msk [vmem:[%s5422_s4 + $0x14] sm:$0x3] %vm3543_vm5, %v3521_v30  ;;  %v4029_v45 = vpop.f32.mrb[87].mxu0  ;;  %v2585_v7 = vpop.f32.mrb[84].mxu1 }
 0x31f   :  { %v3522_v55 = vpack.c.bf16 %v2585_v7, %v2585_v7  ;;  %v4034_v18 = vpop.f32.mrb[85].mxu1 }
 0x320   :  { %v2588_v6 = vpop.f32.mrb[86].mxu1 }
 0x321   :  { %3555 = vst.msk [vmem:[%s5422_s4 + $0x16] sm:$0x3] %vm3543_vm5, %v3522_v55  ;;  %v4035_v52 = vpop.f32.mrb[87].mxu1 }
 0x323   :  { %v2631_v44 = vpop.f32.mrb[88].mxu0 }
 0x324   :  { %v3523_v47 = vpack.c.bf16 %v2631_v44, %v2631_v44  ;;  %v4040_v16 = vpop.f32.mrb[89].mxu0 }
 0x325   :  { %v2634_v12 = vpop.f32.mrb[90].mxu0 }
 0x326   :  { %3556 = vst.msk [vmem:[%s5422_s4 + $0x18] sm:$0x3] %vm3543_vm5, %v3523_v47  ;;  %v4041_v49 = vpop.f32.mrb[91].mxu0  ;;  %v2677_v9 = vpop.f32.mrb[88].mxu1 }
 0x327   :  { %v3524_v50 = vpack.c.bf16 %v2677_v9, %v2677_v9  ;;  %v4046_v14 = vpop.f32.mrb[89].mxu1 }
 0x328   :  { %v2680_v0 = vpop.f32.mrb[90].mxu1 }
 0x329   :  { %3557 = vst.msk [vmem:[%s5422_s4 + $0x1a] sm:$0x3] %vm3543_vm5, %v3524_v50  ;;  %v4047_v41 = vpop.f32.mrb[91].mxu1 }
 0x32b   :  { %v2723_v46 = vpop.f32.mrb[92].mxu0 }
 0x32c   :  { %v3525_v31 = vpack.c.bf16 %v2723_v46, %v2723_v46  ;;  %v4052_v26 = vpop.f32.mrb[93].mxu0 }
 0x32d   :  { %v2726_v63 = vpop.f32.mrb[94].mxu0 }
 0x32e   :  { %3558 = vst.msk [vmem:[%s5422_s4 + $0x1c] sm:$0x3] %vm3543_vm5, %v3525_v31  ;;  %v4053_v2 = vpop.f32.mrb[95].mxu0  ;;  %v2769_v3 = vpop.f32.mrb[92].mxu1 }
 0x32f   :  { %v3526_v34 = vpack.c.bf16 %v2769_v3, %v2769_v3  ;;  %v4058_v38 = vpop.f32.mrb[93].mxu1 }
 0x330   :  { %v2772_v60 = vpop.f32.mrb[94].mxu1 }
 0x331   :  { %3559 = vst.msk [vmem:[%s5422_s4 + $0x1e] sm:$0x3] %vm3543_vm5, %v3526_v34  ;;  %v4059_v48 = vpop.f32.mrb[95].mxu1 }
 0x333   :  { %v2815_v13 = vpop.f32.mrb[96].mxu0 }
 0x334   :  { %v3527_v22 = vpack.c.bf16 %v2815_v13, %v2815_v13  ;;  %v4064_v37 = vpop.f32.mrb[97].mxu0 }
 0x335   :  { %v2818_v21 = vpop.f32.mrb[98].mxu0 }
 0x336   :  { %3560 = vst.msk [vmem:[%s5422_s4 + $0x20] sm:$0x3] %vm3543_vm5, %v3527_v22  ;;  %v4065_v35 = vpop.f32.mrb[99].mxu0  ;;  %v2861_v59 = vpop.f32.mrb[96].mxu1 }
 0x337   :  { %v3528_v57 = vpack.c.bf16 %v2861_v59, %v2861_v59  ;;  %v4070_v11 = vpop.f32.mrb[97].mxu1 }
 0x338   :  { %v2864_v8 = vpop.f32.mrb[98].mxu1 }
 0x339   :  { %3561 = vst.msk [vmem:[%s5422_s4 + $0x22] sm:$0x3] %vm3543_vm5, %v3528_v57  ;;  %v4071_v53 = vpop.f32.mrb[99].mxu1 }
 0x33b   :  { %v2907_v42 = vpop.f32.mrb[100].mxu0 }
 0x33c   :  { %v3529_v10 = vpack.c.bf16 %v2907_v42, %v2907_v42  ;;  %v4076_v20 = vpop.f32.mrb[101].mxu0 }
 0x33d   :  { %v2910_v19 = vpop.f32.mrb[102].mxu0 }
 0x33e   :  { %3562 = vst.msk [vmem:[%s5422_s4 + $0x24] sm:$0x3] %vm3543_vm5, %v3529_v10  ;;  %v4077_v36 = vpop.f32.mrb[103].mxu0  ;;  %v2953_v15 = vpop.f32.mrb[100].mxu1 }
 0x33f   :  { %v3530_v32 = vpack.c.bf16 %v2953_v15, %v2953_v15  ;;  %v4082_v17 = vpop.f32.mrb[101].mxu1 }
 0x340   :  { %v2956_v56 = vpop.f32.mrb[102].mxu1 }
 0x341   :  { %3563 = vst.msk [vmem:[%s5422_s4 + $0x26] sm:$0x3] %vm3543_vm5, %v3530_v32  ;;  %v4083_v58 = vpop.f32.mrb[103].mxu1 }
 0x343   :  { %v2999_v33 = vpop.f32.mrb[104].mxu0 }
 0x344   :  { %v3531_v23 = vpack.c.bf16 %v2999_v33, %v2999_v33  ;;  %v4088_v61 = vpop.f32.mrb[105].mxu0 }
 0x345   :  { %v3002_v28 = vpop.f32.mrb[106].mxu0 }
 0x346   :  { %3564 = vst.msk [vmem:[%s5422_s4 + $0x28] sm:$0x3] %vm3543_vm5, %v3531_v23  ;;  %v4089_v1 = vpop.f32.mrb[107].mxu0  ;;  %v3045_v29 = vpop.f32.mrb[104].mxu1 }
 0x347   :  { %v3532_v62 = vpack.c.bf16 %v3045_v29, %v3045_v29  ;;  %v4094_v54 = vpop.f32.mrb[105].mxu1 }
 0x348   :  { %v3048_v5 = vpop.f32.mrb[106].mxu1 }
 0x349   :  { %3565 = vst.msk [vmem:[%s5422_s4 + $0x2a] sm:$0x3] %vm3543_vm5, %v3532_v62  ;;  %v4095_v40 = vpop.f32.mrb[107].mxu1 }
 0x34b   :  { %v3091_v27 = vpop.f32.mrb[108].mxu0 }
 0x34c   :  { %v3533_v43 = vpack.c.bf16 %v3091_v27, %v3091_v27  ;;  %v4100_v24 = vpop.f32.mrb[109].mxu0 }
 0x34d   :  { %v3094_v39 = vpop.f32.mrb[110].mxu0 }
 0x34e   :  { %3566 = vst.msk [vmem:[%s5422_s4 + $0x2c] sm:$0x3] %vm3543_vm5, %v3533_v43  ;;  %v4101_v25 = vpop.f32.mrb[111].mxu0  ;;  %v3137_v30 = vpop.f32.mrb[108].mxu1 }
 0x34f   :  { %v3534_v51 = vpack.c.bf16 %v3137_v30, %v3137_v30  ;;  %v4106_v4 = vpop.f32.mrb[109].mxu1 }
 0x350   :  { %v3140_v45 = vpop.f32.mrb[110].mxu1 }
 0x351   :  { %3567 = vst.msk [vmem:[%s5422_s4 + $0x2e] sm:$0x3] %vm3543_vm5, %v3534_v51  ;;  %v4107_v7 = vpop.f32.mrb[111].mxu1 }
 0x393   :  { %v3183_v55 = vpop.f32.mrb[112].mxu0 }
 0x394   :  { %v3535_v18 = vpack.c.bf16 %v3183_v55, %v3183_v55  ;;  %v4112_v6 = vpop.f32.mrb[113].mxu0 }
 0x395   :  { %v3186_v52 = vpop.f32.mrb[114].mxu0 }
 0x396   :  { %3568 = vst.msk [vmem:[%s5422_s4 + $0x30] sm:$0x3] %vm3543_vm5, %v3535_v18  ;;  %v4113_v44 = vpop.f32.mrb[115].mxu0 }
 0x397   :  { %v3229_v47 = vpop.f32.mrb[112].mxu1 }
 0x398   :  { %v3536_v16 = vpack.c.bf16 %v3229_v47, %v3229_v47  ;;  %v4118_v12 = vpop.f32.mrb[113].mxu1 }
 0x399   :  { %v3232_v49 = vpop.f32.mrb[114].mxu1 }
 0x39a   :  { %3569 = vst.msk [vmem:[%s5422_s4 + $0x32] sm:$0x3] %vm3543_vm5, %v3536_v16  ;;  %v4119_v9 = vpop.f32.mrb[115].mxu1 }
 0x39b   :  { %v3275_v50 = vpop.f32.mrb[116].mxu0 }
 0x39c   :  { %v3537_v14 = vpack.c.bf16 %v3275_v50, %v3275_v50  ;;  %v4124_v0 = vpop.f32.mrb[117].mxu0 }
 0x39d   :  { %v3278_v41 = vpop.f32.mrb[118].mxu0 }
 0x39e   :  { %3570 = vst.msk [vmem:[%s5422_s4 + $0x34] sm:$0x3] %vm3543_vm5, %v3537_v14  ;;  %v4125_v46 = vpop.f32.mrb[119].mxu0 }
 0x39f   :  { %v3321_v31 = vpop.f32.mrb[116].mxu1 }
 0x3a0   :  { %v3538_v26 = vpack.c.bf16 %v3321_v31, %v3321_v31  ;;  %v4130_v63 = vpop.f32.mrb[117].mxu1 }
 0x3a1   :  { %v3324_v2 = vpop.f32.mrb[118].mxu1 }
 0x3a2   :  { %3571 = vst.msk [vmem:[%s5422_s4 + $0x36] sm:$0x3] %vm3543_vm5, %v3538_v26  ;;  %v4131_v3 = vpop.f32.mrb[119].mxu1 }
 0x3a4   :  { %v3367_v34 = vpop.f32.mrb[120].mxu0 }
 0x3a5   :  { %v3539_v38 = vpack.c.bf16 %v3367_v34, %v3367_v34  ;;  %v4136_v60 = vpop.f32.mrb[121].mxu0 }
 0x3a6   :  { %v3370_v48 = vpop.f32.mrb[122].mxu0 }
 0x3a7   :  { %3572 = vst.msk [vmem:[%s5422_s4 + $0x38] sm:$0x3] %vm3543_vm5, %v3539_v38  ;;  %v4137_v13 = vpop.f32.mrb[123].mxu0  ;;  %v3413_v22 = vpop.f32.mrb[120].mxu1 }
 0x3a8   :  { %v3540_v37 = vpack.c.bf16 %v3413_v22, %v3413_v22  ;;  %v4142_v21 = vpop.f32.mrb[121].mxu1 }
 0x3a9   :  { %v3416_v35 = vpop.f32.mrb[122].mxu1 }
 0x3aa   :  { %3573 = vst.msk [vmem:[%s5422_s4 + $0x3a] sm:$0x3] %vm3543_vm5, %v3540_v37  ;;  %v4143_v59 = vpop.f32.mrb[123].mxu1 }
 0x3ac   :  { %v3459_v57 = vpop.f32.mrb[124].mxu0 }
 0x3ad   :  { %v3541_v11 = vpack.c.bf16 %v3459_v57, %v3459_v57  ;;  %v4148_v8 = vpop.f32.mrb[125].mxu0 }
 0x3ae   :  { %v3462_v53 = vpop.f32.mrb[126].mxu0 }
 0x3af   :  { %3574 = vst.msk [vmem:[%s5422_s4 + $0x3c] sm:$0x3] %vm3543_vm5, %v3541_v11  ;;  %v4149_v42 = vpop.f32.mrb[127].mxu0  ;;  %v3505_v10 = vpop.f32.mrb[124].mxu1 }
 0x3b0   :  { %v3542_v20 = vpack.c.bf16 %v3505_v10, %v3505_v10  ;;  %v4154_v19 = vpop.f32.mrb[125].mxu1 }
 0x3b1   :  { %v3508_v36 = vpop.f32.mrb[126].mxu1 }
 0x3b2   :  { %3575 = vst.msk [vmem:[%s5422_s4 + $0x3e] sm:$0x3] %vm3543_vm5, %v3542_v20  ;;  %v4155_v15 = vpop.f32.mrb[127].mxu1 }

// kernel: _lambda_.79
= control target key start
LH: loop header
LB: loop body
LE: loop exit
PB: predicated region body
PF: predicated region fallthrough
CT: control target
= control target key end

     0   :  { %vm19_vm0 = vcmask 523264   ;;  %v244_v1 = vmov 0.0   ;;  %s322_s1 = inlined_call_operand.vmem [shape: bf16[128,64], index: 1, kind: input, shape index: {}]   ;;  %s323_s0 = inlined_call_operand.vmem [shape: bf16[32,128], index: 0, kind: input, shape index: {}]   ;;  %s324_s2 = inlined_call_operand.vmem [shape: f32[1,64], index: 2, kind: input, shape index: {}]   ;;  %s325_s3 = inlined_call_operand.vmem [shape: f32[32,64], index: 3, kind: output, shape index: {}]  }
   0x1   :  { %v234_v0 = vld [vmem:[%s322_s1] sm:$0xff]   ;;  %22 = vst.msk [vmem:[#allocation2 + $0x10] sm:$0xff] %vm19_vm0, %v244_v1  ;;  %20 = vst.msk [vmem:[#allocation2] sm:$0xff] %vm19_vm0, %v244_v1  ;;  %v235_v2 = vld [vmem:[%s322_s1 + $0x8] sm:$0xff]  }
   0x2   :  { %21 = vst.msk [vmem:[#allocation2 + $0x8] sm:$0xff] %vm19_vm0, %v244_v1  ;;  %23 = vst.msk [vmem:[#allocation2 + $0x18] sm:$0xff] %vm19_vm0, %v244_v1  ;;  %213 = vmatprep.subr.bf16.mxu0 %v234_v0  ;;  %v236_v3 = vld [vmem:[%s322_s1 + $0x10] sm:$0xff]   ;;  %v237_v4 = vld [vmem:[%s322_s1 + $0x18] sm:$0xff]  }
   0x3   :  { %214 = vmatpush3.bf16.msra.mxu0 %v234_v0  ;;  %v242_v5 = vld [vmem:[%s323_s0] sm:$0xff]   ;;  %v239_v7 = vld [vmem:[%s322_s1 + $0x28] sm:$0xff]   ;;  %v240_v8 = vld [vmem:[%s322_s1 + $0x30] sm:$0xff]  }
   0x4   :  { %215 = vmatprep.subr.bf16.mxu0 %v235_v2  ;;  %229 = vmatprep.mubr.bf16.mxu0 %v242_v5  ;;  %v238_v6 = vld [vmem:[%s322_s1 + $0x20] sm:$0xff]   ;;  %v241_v9 = vld [vmem:[%s322_s1 + $0x38] sm:$0xff]   ;;  %v243_v10 = vld [vmem:[%s323_s0 + $0x8] sm:$0xff]  }
   0x5   :  { %v202_v23 = vld [vmem:[%s324_s2] ss:$0 sm:$0xff] }
   0x7   :  { %216 = vmatpush3.bf16.msra.mxu0 %v235_v2 }
   0x8   :  { %217 = vmatprep.subr.bf16.mxu0 %v236_v3  ;;  %v26_v11 = vld [vmem:[#allocation2 + $0x10] sm:$0xff]  ;;  %v24_v12 = vld [vmem:[#allocation2] sm:$0xff] }
   0x9   :  { %v27_v14 = vld [vmem:[#allocation2 + $0x18] sm:$0xff]  ;;  %v25_v17 = vld [vmem:[#allocation2 + $0x8] sm:$0xff] }
   0xb   :  { %218 = vmatpush3.bf16.msra.mxu0 %v236_v3 }
   0xc   :  { %219 = vmatprep.subr.bf16.mxu0 %v237_v4 }
   0xf   :  { %220 = vmatpush3.bf16.msra.mxu0 %v237_v4 }
  0x10   :  { %221 = vmatprep.subr.bf16.mxu0 %v238_v6 }
  0x13   :  { %222 = vmatpush3.bf16.msra.mxu0 %v238_v6 }
  0x14   :  { %223 = vmatprep.subr.bf16.mxu0 %v239_v7 }
  0x17   :  { %224 = vmatpush3.bf16.msra.mxu0 %v239_v7 }
  0x18   :  { %225 = vmatprep.subr.bf16.mxu0 %v240_v8 }
  0x1b   :  { %226 = vmatpush3.bf16.msra.mxu0 %v240_v8 }
  0x1c   :  { %227 = vmatprep.subr.bf16.mxu0 %v241_v9 }
  0x1f   :  { %228 = vmatpush3.bf16.msra.mxu0 %v241_v9 }
  0x22   :  { %230 = vmatmul.mubr.bf16.vlgmr.msra.gmra.mrb[0].mxu0 %v243_v10 }
  0xf5   :  { %v231_v13 = vpop.f32.mrb[0].mxu0 }
  0xf6   :  { %v159_v15 = vadd.f32 %v231_v13, %v26_v11  ;;  %v142_v16 = vpop.f32.mrb[1].mxu0 }
  0xf7   :  { %v157_v18 = vadd.f32 %v142_v16, %v24_v12  ;;  %v232_v19 = vpop.f32.mrb[2].mxu0 }
  0xf8   :  { %164 = vst.msk [vmem:[#allocation2 + $0x10] sm:$0xff] %vm19_vm0, %v159_v15  ;;  %v160_v20 = vadd.f32 %v232_v19, %v27_v14  ;;  %v145_v21 = vpop.f32.mrb[3].mxu0 }
  0xf9   :  { %162 = vst.msk [vmem:[#allocation2] sm:$0xff] %vm19_vm0, %v157_v18  ;;  %v158_v22 = vadd.f32 %v145_v21, %v25_v17 }
  0xfa   :  { %165 = vst.msk [vmem:[#allocation2 + $0x18] sm:$0xff] %vm19_vm0, %v160_v20 }
  0xfb   :  { %163 = vst.msk [vmem:[#allocation2 + $0x8] sm:$0xff] %vm19_vm0, %v158_v22 }
  0xff   :  { %v171_v24 = vld [vmem:[#allocation2 + $0x10] sm:$0xff] }
 0x100   :  { %v182_v25 = vadd.f32 %v202_v23, %v171_v24  ;;  %v169_v26 = vld [vmem:[#allocation2] sm:$0xff] }
 0x101   :  { %v180_v27 = vadd.f32 %v202_v23, %v169_v26  ;;  %v172_v28 = vld [vmem:[#allocation2 + $0x18] sm:$0xff] }
 0x102   :  { %186 = vst.msk [vmem:[%s325_s3 + $0x10] sm:$0xff] %vm19_vm0, %v182_v25  ;;  %v183_v29 = vadd.f32 %v202_v23, %v172_v28  ;;  %v170_v30 = vld [vmem:[#allocation2 + $0x8] sm:$0xff] }
 0x103   :  { %184 = vst.msk [vmem:[%s325_s3] sm:$0xff] %vm19_vm0, %v180_v27  ;;  %v181_v31 = vadd.f32 %v202_v23, %v170_v30 }
 0x104   :  { %187 = vst.msk [vmem:[%s325_s3 + $0x18] sm:$0xff] %vm19_vm0, %v183_v29 }
 0x105   :  { %185 = vst.msk [vmem:[%s325_s3 + $0x8] sm:$0xff] %vm19_vm0, %v181_v31 }

// kernel: _lambda_.80
= control target key start
LH: loop header
LB: loop body
LE: loop exit
PB: predicated region body
PF: predicated region fallthrough
CT: control target
= control target key end

     0   :  { %vm20_vm0 = vcmask 523264   ;;  %v284_v1 = vmov 0   ;;  %v285_v2 = vmov 0.0   ;;  %v187_v12 = vlaneseq  ;;  %s361_s1 = inlined_call_operand.vmem [shape: bf16[64,192], index: 1, kind: input, shape index: {}]   ;;  %s362_s0 = inlined_call_operand.vmem [shape: bf16[32,64], index: 0, kind: input, shape index: {}]   ;;  %s363_s2 = inlined_call_operand.vmem [shape: f32[1,192], index: 2, kind: input, shape index: {}]   ;;  %s364_s3 = inlined_call_operand.vmem [shape: bf16[32,192], index: 3, kind: output, shape index: {}]  }
   0x1   :  { %v270_v0 = vld [vmem:[%s361_s1 + $0x4] ss:$8 sps:$4 sm:$0xff]   ;;  %137 = vmatprep.mubr.bf16.mxu0 %v284_v1  ;;  %147 = vmatprep.mubr.bf16.mxu1 %v284_v1  ;;  %21 = vst.msk [vmem:[#allocation2 + $0x8] sm:$0xff] %vm20_vm0, %v285_v2  ;;  %23 = vst.msk [vmem:[#allocation2 + $0x18] sm:$0xff] %vm20_vm0, %v285_v2  ;;  %v272_v3 = vld [vmem:[%s361_s1] ss:$8 sps:$4 sm:$0xff]  }
   0x2   :  { %25 = vst.msk [vmem:[#allocation2 + $0x28] sm:$0xff] %vm20_vm0, %v285_v2  ;;  %27 = vst.msk [vmem:[#allocation2 + $0x38] sm:$0xff] %vm20_vm0, %v285_v2  ;;  %105 = vmatprep.subr.bf16.mxu0 %v270_v0  ;;  %260 = vmatprep.subr.bf16.mxu1 %v270_v0  ;;  %v273_v4 = vld [vmem:[%s361_s1 + $0x14] ss:$8 sps:$4 sm:$0xff]   ;;  %v275_v5 = vld [vmem:[%s361_s1 + $0x10] ss:$8 sps:$4 sm:$0xff]  }
   0x3   :  { %106 = vmatpush1.bf16.msra.mxu0 %v272_v3  ;;  %264 = vmatpush1.bf16.msra.mxu1 %v272_v3  ;;  %v276_v6 = vld [vmem:[%s361_s1 + $0x24] ss:$8 sps:$4 sm:$0xff]   ;;  %v278_v7 = vld [vmem:[%s361_s1 + $0x20] ss:$8 sps:$4 sm:$0xff]   ;;  %v279_v8 = vld [vmem:[%s361_s1 + $0x34] ss:$8 sps:$4 sm:$0xff]  }
   0x4   :  { %107 = vmatprep.subr.bf16.mxu0 %v273_v4  ;;  %261 = vmatprep.subr.bf16.mxu1 %v273_v4  ;;  %v281_v9 = vld [vmem:[%s361_s1 + $0x30] ss:$8 sps:$4 sm:$0xff]   ;;  %v282_v10 = vld [vmem:[%s362_s0] sm:$0xff]   ;;  %v283_v11 = vld [vmem:[%s362_s0 + $0x8] sm:$0xff]   ;;  %v188_v16 = vshrl.u32 %v187_v12, 7  ;;  %vm229_vm1 = vcmask 1043456  }
   0x5   :  { %v185_v32 = vld [vmem:[%s363_s2] sm:$0x3]  ;;  %vm230_vm2 = vcmask 523268  }
   0x6   :  { %v189_v28 = vsub.s32 0, %v188_v16  ;;  %v193_v29 = vsub.s32 1, %v188_v16  ;;  %vm231_vm3 = vmor %vm230_vm2, %vm229_vm1 }
   0x7   :  { %108 = vmatpush1.bf16.msra.mxu0 %v275_v5  ;;  %265 = vmatpush1.bf16.msra.mxu1 %v275_v5 }
   0x8   :  { %109 = vmatprep.subr.bf16.mxu0 %v276_v6  ;;  %262 = vmatprep.subr.bf16.mxu1 %v276_v6  ;;  %v29_v13 = vld [vmem:[#allocation2 + $0x8] sm:$0xff]  ;;  %v31_v20 = vld [vmem:[#allocation2 + $0x18] sm:$0xff]  ;;  %v190_v33 = vrot.slane %v185_v32, %v189_v28  ;;  %v194_v34 = vrot.slane %v185_v32, %v193_v29 }
   0x9   :  { %v33_v14 = vld [vmem:[#allocation2 + $0x28] sm:$0xff]  ;;  %v35_v21 = vld [vmem:[#allocation2 + $0x38] sm:$0xff] }
   0xb   :  { %110 = vmatpush1.bf16.msra.mxu0 %v278_v7  ;;  %266 = vmatpush1.bf16.msra.mxu1 %v278_v7 }
   0xc   :  { %111 = vmatprep.subr.bf16.mxu0 %v279_v8  ;;  %263 = vmatprep.subr.bf16.mxu1 %v279_v8 }
   0xf   :  { %112 = vmatpush1.bf16.msra.mxu0 %v281_v9  ;;  %267 = vmatpush1.bf16.msra.mxu1 %v281_v9 }
  0x12   :  { %250 = vmatmul.mubr.msk.bf16.vlgmr.msra.gmra.mrb[0].mxu0 %vm20_vm0, %v282_v10  ;;  %251 = vmatmul.mubr.msk.bf16.vlgmr.msra.gmra.mrb[0].mxu1 %vm20_vm0, %v283_v11 }
  0xe5   :  { %v139_v15 = vpop.f32.mrb[0].mxu0  ;;  %v149_v17 = vpop.f32.mrb[0].mxu1 }
  0xe6   :  { %v141_v18 = vpop.f32.mrb[1].mxu0  ;;  %v151_v19 = vpop.f32.mrb[1].mxu1  ;;  %v197_v37 = vadd.f32 %v190_v33, %v139_v15  ;;  %v201_v38 = vadd.f32 %v190_v33, %v149_v17 }
  0xe7   :  { %v159_v22 = vadd.f32 %v141_v18, %v29_v13  ;;  %v163_v23 = vadd.f32 %v151_v19, %v33_v14  ;;  %v143_v24 = vpop.f32.mrb[2].mxu0  ;;  %v153_v25 = vpop.f32.mrb[2].mxu1 }
  0xe8   :  { %v145_v26 = vpop.f32.mrb[3].mxu0  ;;  %v155_v27 = vpop.f32.mrb[3].mxu1  ;;  %v199_v41 = vadd.f32 %v190_v33, %v143_v24  ;;  %v203_v42 = vadd.f32 %v190_v33, %v153_v25 }
  0xe9   :  { %167 = vst.msk [vmem:[#allocation2 + $0x8] sm:$0xff] %vm20_vm0, %v159_v22  ;;  %171 = vst.msk [vmem:[#allocation2 + $0x28] sm:$0xff] %vm20_vm0, %v163_v23  ;;  %v161_v30 = vadd.f32 %v145_v26, %v31_v20  ;;  %v165_v31 = vadd.f32 %v155_v27, %v35_v21 }
  0xeb   :  { %169 = vst.msk [vmem:[#allocation2 + $0x18] sm:$0xff] %vm20_vm0, %v161_v30  ;;  %173 = vst.msk [vmem:[#allocation2 + $0x38] sm:$0xff] %vm20_vm0, %v165_v31 }
  0xf0   :  { %v178_v35 = vld [vmem:[#allocation2 + $0x8] sm:$0xff] }
  0xf1   :  { %v182_v36 = vld [vmem:[#allocation2 + $0x28] sm:$0xff]  ;;  %v198_v39 = vadd.f32 %v194_v34, %v178_v35 }
  0xf2   :  { %v202_v40 = vadd.f32 %v194_v34, %v182_v36  ;;  %v180_v43 = vld [vmem:[#allocation2 + $0x18] sm:$0xff] }
  0xf3   :  { %v184_v44 = vld [vmem:[#allocation2 + $0x38] sm:$0xff]  ;;  %v256_v45 = vpack.c.bf16 %v198_v39, %v197_v37  ;;  %v200_v47 = vadd.f32 %v194_v34, %v180_v43 }
  0xf4   :  { %v258_v46 = vpack.c.bf16 %v202_v40, %v201_v38  ;;  %v204_v48 = vadd.f32 %v194_v34, %v184_v44 }
  0xf5   :  { %232 = vst.msk [vmem:[%s364_s3] sm:$0xff] %vm231_vm3, %v256_v45  ;;  %v257_v49 = vpack.c.bf16 %v200_v47, %v199_v41 }
  0xf6   :  { %234 = vst.msk [vmem:[%s364_s3 + $0x10] sm:$0xff] %vm231_vm3, %v258_v46  ;;  %v259_v50 = vpack.c.bf16 %v204_v48, %v203_v42 }
  0xf7   :  { %233 = vst.msk [vmem:[%s364_s3 + $0x8] sm:$0xff] %vm231_vm3, %v257_v49 }
  0xf8   :  { %235 = vst.msk [vmem:[%s364_s3 + $0x18] sm:$0xff] %vm231_vm3, %v259_v50 }

// kernel: _lambda_.84
= control target key start
LH: loop header
LB: loop body
LE: loop exit
PB: predicated region body
PF: predicated region fallthrough
CT: control target
= control target key end

     0   :  { %vm100_vm0 = vcmask 523264   ;;  %s236_s0 = inlined_call_operand.vmem [shape: f32[4,32,64], index: 0, kind: input, shape index: {}]   ;;  %s237_s1 = inlined_call_operand.vmem [shape: f32[4,1,64], index: 1, kind: input, shape index: {}]   ;;  %s238_s2 = inlined_call_operand.vmem [shape: f32[32,64], index: 2, kind: input, shape index: {}]   ;;  %s239_s3 = inlined_call_operand.vmem [shape: f32[32,64], index: 3, kind: output, shape index: {}]  }
   0x1   :  { %v14_v0 = vld [vmem:[%s238_s2] sm:$0xff]  ;;  %v15_v13 = vld [vmem:[%s238_s2 + $0x8] sm:$0xff]  ;;  %v16_v20 = vld [vmem:[%s238_s2 + $0x10] sm:$0xff] }
   0x2   :  { %v18_v1 = vld [vmem:[%s236_s0] sm:$0xff]  ;;  %v19_v14 = vld [vmem:[%s236_s0 + $0x8] sm:$0xff]  ;;  %v20_v23 = vld [vmem:[%s236_s0 + $0x10] sm:$0xff] }
   0x3   :  { %v109_v2 = vld [vmem:[%s237_s1] ss:$0 sm:$0xff]  ;;  %v115_v5 = vld [vmem:[%s237_s1 + $0x1] ss:$0 sm:$0xff]  ;;  %v121_v8 = vld [vmem:[%s237_s1 + $0x2] ss:$0 sm:$0xff] }
   0x4   :  { %v29_v3 = vmul.f32 %v109_v2, %v18_v1  ;;  %v110_v4 = vld [vmem:[%s236_s0 + $0x20] sm:$0xff]  ;;  %v111_v15 = vld [vmem:[%s236_s0 + $0x28] sm:$0xff]  ;;  %v30_v16 = vmul.f32 %v109_v2, %v19_v14  ;;  %v112_v24 = vld [vmem:[%s236_s0 + $0x30] sm:$0xff]  ;;  %v31_v28 = vmul.f32 %v109_v2, %v20_v23 }
   0x5   :  { %v116_v6 = vld [vmem:[%s236_s0 + $0x40] sm:$0xff]  ;;  %v50_v7 = vmul.f32 %v115_v5, %v110_v4  ;;  %v51_v17 = vmul.f32 %v115_v5, %v111_v15  ;;  %v117_v18 = vld [vmem:[%s236_s0 + $0x48] sm:$0xff]  ;;  %v118_v25 = vld [vmem:[%s236_s0 + $0x50] sm:$0xff]  ;;  %v52_v29 = vmul.f32 %v115_v5, %v112_v24 }
   0x6   :  { %v122_v9 = vld [vmem:[%s236_s0 + $0x60] sm:$0xff]  ;;  %v33_v11 = vadd.f32 %v29_v3, %v14_v0  ;;  %v71_v12 = vmul.f32 %v121_v8, %v116_v6  ;;  %v123_v19 = vld [vmem:[%s236_s0 + $0x68] sm:$0xff]  ;;  %v34_v26 = vadd.f32 %v30_v16, %v15_v13  ;;  %v72_v27 = vmul.f32 %v121_v8, %v117_v18  ;;  %v17_v30 = vld [vmem:[%s238_s2 + $0x18] sm:$0xff] }
   0x7   :  { %v127_v10 = vld [vmem:[%s237_s1 + $0x3] ss:$0 sm:$0xff]  ;;  %v21_v31 = vld [vmem:[%s236_s0 + $0x18] sm:$0xff]  ;;  %v124_v34 = vld [vmem:[%s236_s0 + $0x70] sm:$0xff]  ;;  %v35_v39 = vadd.f32 %v31_v28, %v16_v20  ;;  %v73_v40 = vmul.f32 %v121_v8, %v118_v25 }
   0x8   :  { %v54_v21 = vadd.f32 %v50_v7, %v33_v11  ;;  %v92_v22 = vmul.f32 %v127_v10, %v122_v9  ;;  %v93_v33 = vmul.f32 %v127_v10, %v123_v19  ;;  %v32_v35 = vmul.f32 %v109_v2, %v21_v31  ;;  %v113_v36 = vld [vmem:[%s236_s0 + $0x38] sm:$0xff] }
   0x9   :  { %v119_v37 = vld [vmem:[%s236_s0 + $0x58] sm:$0xff]  ;;  %v55_v38 = vadd.f32 %v51_v17, %v34_v26  ;;  %v53_v41 = vmul.f32 %v115_v5, %v113_v36  ;;  %v56_v47 = vadd.f32 %v52_v29, %v35_v39  ;;  %v94_v48 = vmul.f32 %v127_v10, %v124_v34 }
   0xa   :  { %v75_v32 = vadd.f32 %v71_v12, %v54_v21  ;;  %v125_v42 = vld [vmem:[%s236_s0 + $0x78] sm:$0xff]  ;;  %v36_v44 = vadd.f32 %v32_v35, %v17_v30  ;;  %v74_v45 = vmul.f32 %v121_v8, %v119_v37 }
   0xb   :  { %v76_v46 = vadd.f32 %v72_v27, %v55_v38  ;;  %v95_v50 = vmul.f32 %v127_v10, %v125_v42  ;;  %v77_v52 = vadd.f32 %v73_v40, %v56_v47 }
   0xc   :  { %v96_v43 = vadd.f32 %v92_v22, %v75_v32  ;;  %v57_v49 = vadd.f32 %v53_v41, %v36_v44 }
   0xd   :  { %v97_v51 = vadd.f32 %v93_v33, %v76_v46  ;;  %v98_v54 = vadd.f32 %v94_v48, %v77_v52 }
   0xe   :  { %101 = vst.msk [vmem:[%s239_s3] sm:$0xff] %vm100_vm0, %v96_v43  ;;  %v78_v53 = vadd.f32 %v74_v45, %v57_v49 }
   0xf   :  { %102 = vst.msk [vmem:[%s239_s3 + $0x8] sm:$0xff] %vm100_vm0, %v97_v51  ;;  %103 = vst.msk [vmem:[%s239_s3 + $0x10] sm:$0xff] %vm100_vm0, %v98_v54 }
  0x10   :  { %v99_v55 = vadd.f32 %v95_v50, %v78_v53 }
  0x12   :  { %104 = vst.msk [vmem:[%s239_s3 + $0x18] sm:$0xff] %vm100_vm0, %v99_v55 }

// kernel: _lambda_.83
= control target key start
LH: loop header
LB: loop body
LE: loop exit
PB: predicated region body
PF: predicated region fallthrough
CT: control target
= control target key end

     0   :  { %vm40_vm0 = vcmask 523264   ;;  %s101_s0 = inlined_call_operand.vmem [shape: f32[32,64], index: 0, kind: input, shape index: {}]   ;;  %s102_s1 = inlined_call_operand.vmem [shape: f32[1,64], index: 1, kind: input, shape index: {}]   ;;  %s103_s2 = inlined_call_operand.vmem [shape: f32[1,64], index: 2, kind: input, shape index: {}]   ;;  %s104_s3 = inlined_call_operand.vmem [shape: f32[32,64], index: 3, kind: output, shape index: {}]  }
   0x1   :  { %v14_v0 = vld [vmem:[%s101_s0] sm:$0xff]  ;;  %v15_v4 = vld [vmem:[%s101_s0 + $0x8] sm:$0xff]  ;;  %v16_v5 = vld [vmem:[%s101_s0 + $0x10] sm:$0xff] }
   0x2   :  { %v49_v1 = vld [vmem:[%s102_s1] ss:$0 sm:$0xff]  ;;  %v17_v6 = vld [vmem:[%s101_s0 + $0x18] sm:$0xff] }
   0x3   :  { %v50_v2 = vld [vmem:[%s103_s2] ss:$0 sm:$0xff]  ;;  %v25_v3 = vmul.f32 %v49_v1, %v14_v0  ;;  %v26_v7 = vmul.f32 %v49_v1, %v15_v4  ;;  %v27_v8 = vmul.f32 %v49_v1, %v16_v5  ;;  %v28_v9 = vmul.f32 %v49_v1, %v17_v6 }
   0x5   :  { %v36_v10 = vadd.f32 %v50_v2, %v25_v3  ;;  %v37_v11 = vadd.f32 %v50_v2, %v26_v7  ;;  %v38_v12 = vadd.f32 %v50_v2, %v27_v8  ;;  %v39_v13 = vadd.f32 %v50_v2, %v28_v9 }
   0x7   :  { %41 = vst.msk [vmem:[%s104_s3] sm:$0xff] %vm40_vm0, %v36_v10  ;;  %42 = vst.msk [vmem:[%s104_s3 + $0x8] sm:$0xff] %vm40_vm0, %v37_v11 }
   0x8   :  { %43 = vst.msk [vmem:[%s104_s3 + $0x10] sm:$0xff] %vm40_vm0, %v38_v12  ;;  %44 = vst.msk [vmem:[%s104_s3 + $0x18] sm:$0xff] %vm40_vm0, %v39_v13 }

// kernel: _lambda_.82
= control target key start
LH: loop header
LB: loop body
LE: loop exit
PB: predicated region body
PF: predicated region fallthrough
CT: control target
= control target key end

     0   :  { %vm22_vm0 = vcmask 523264   ;;  %v209_v1 = vmov 0.0   ;;  %s294_s1 = inlined_call_operand.vmem [shape: bf16[64,64], index: 1, kind: input, shape index: {}]   ;;  %s295_s0 = inlined_call_operand.vmem [shape: bf16[32,64], index: 0, kind: input, shape index: {}]   ;;  %s296_s2 = inlined_call_operand.vmem [shape: f32[1,64], index: 2, kind: input, shape index: {}]   ;;  %s297_s3 = inlined_call_operand.vmem [shape: f32[32,64], index: 3, kind: input, shape index: {}]   ;;  %s298_s4 = inlined_call_operand.vmem [shape: f32[32,64], index: 4, kind: output, shape index: {}]  }
   0x1   :  { %v203_v0 = vld [vmem:[%s294_s1] sm:$0xff]   ;;  %25 = vst.msk [vmem:[#allocation2 + $0x10] sm:$0xff] %vm22_vm0, %v209_v1  ;;  %23 = vst.msk [vmem:[#allocation2] sm:$0xff] %vm22_vm0, %v209_v1  ;;  %v204_v2 = vld [vmem:[%s294_s1 + $0x8] sm:$0xff]  }
   0x2   :  { %24 = vst.msk [vmem:[#allocation2 + $0x8] sm:$0xff] %vm22_vm0, %v209_v1  ;;  %26 = vst.msk [vmem:[#allocation2 + $0x18] sm:$0xff] %vm22_vm0, %v209_v1  ;;  %190 = vmatprep.subr.bf16.mxu0 %v203_v0  ;;  %v205_v3 = vld [vmem:[%s294_s1 + $0x10] sm:$0xff]   ;;  %v207_v4 = vld [vmem:[%s295_s0] sm:$0xff]  }
   0x3   :  { %191 = vmatpush3.bf16.msra.mxu0 %v203_v0  ;;  %198 = vmatprep.mubr.msk.bf16.mxu0 %vm22_vm0, %v207_v4  ;;  %v206_v5 = vld [vmem:[%s294_s1 + $0x18] sm:$0xff]   ;;  %v208_v6 = vld [vmem:[%s295_s0 + $0x8] sm:$0xff]   ;;  %v183_v19 = vld [vmem:[%s296_s2] ss:$0 sm:$0xff] }
   0x4   :  { %192 = vmatprep.subr.bf16.mxu0 %v204_v2  ;;  %v161_v21 = vld [vmem:[%s297_s3 + $0x10] sm:$0xff]  ;;  %v159_v24 = vld [vmem:[%s297_s3] sm:$0xff]  ;;  %v162_v27 = vld [vmem:[%s297_s3 + $0x18] sm:$0xff] }
   0x5   :  { %v160_v31 = vld [vmem:[%s297_s3 + $0x8] sm:$0xff] }
   0x7   :  { %193 = vmatpush3.bf16.msra.mxu0 %v204_v2 }
   0x8   :  { %194 = vmatprep.subr.bf16.mxu0 %v205_v3  ;;  %v29_v7 = vld [vmem:[#allocation2 + $0x10] sm:$0xff]  ;;  %v27_v8 = vld [vmem:[#allocation2] sm:$0xff] }
   0x9   :  { %v30_v10 = vld [vmem:[#allocation2 + $0x18] sm:$0xff]  ;;  %v28_v13 = vld [vmem:[#allocation2 + $0x8] sm:$0xff] }
   0xb   :  { %195 = vmatpush3.bf16.msra.mxu0 %v205_v3 }
   0xc   :  { %196 = vmatprep.subr.bf16.mxu0 %v206_v5 }
   0xf   :  { %197 = vmatpush3.bf16.msra.mxu0 %v206_v5 }
  0x12   :  { %199 = vmatmul.mubr.msk.bf16.vlgmr.msra.gmra.mrb[0].mxu0 %vm22_vm0, %v208_v6 }
  0xe5   :  { %v200_v9 = vpop.f32.mrb[0].mxu0 }
  0xe6   :  { %v135_v11 = vadd.f32 %v200_v9, %v29_v7  ;;  %v118_v12 = vpop.f32.mrb[1].mxu0 }
  0xe7   :  { %v133_v14 = vadd.f32 %v118_v12, %v27_v8  ;;  %v201_v15 = vpop.f32.mrb[2].mxu0 }
  0xe8   :  { %139 = vst.msk [vmem:[#allocation2 + $0x10] sm:$0xff] %vm22_vm0, %v135_v11  ;;  %v136_v16 = vadd.f32 %v201_v15, %v30_v10  ;;  %v121_v17 = vpop.f32.mrb[3].mxu0 }
  0xe9   :  { %137 = vst.msk [vmem:[#allocation2] sm:$0xff] %vm22_vm0, %v133_v14  ;;  %v134_v18 = vadd.f32 %v121_v17, %v28_v13 }
  0xea   :  { %140 = vst.msk [vmem:[#allocation2 + $0x18] sm:$0xff] %vm22_vm0, %v136_v16 }
  0xeb   :  { %138 = vst.msk [vmem:[#allocation2 + $0x8] sm:$0xff] %vm22_vm0, %v134_v18 }
  0xef   :  { %v146_v20 = vld [vmem:[#allocation2 + $0x10] sm:$0xff] }
  0xf0   :  { %v157_v22 = vadd.f32 %v183_v19, %v146_v20  ;;  %v144_v23 = vld [vmem:[#allocation2] sm:$0xff] }
  0xf1   :  { %v155_v25 = vadd.f32 %v183_v19, %v144_v23  ;;  %v147_v26 = vld [vmem:[#allocation2 + $0x18] sm:$0xff] }
  0xf2   :  { %v165_v28 = vadd.f32 %v161_v21, %v157_v22  ;;  %v158_v29 = vadd.f32 %v183_v19, %v147_v26  ;;  %v145_v30 = vld [vmem:[#allocation2 + $0x8] sm:$0xff] }
  0xf3   :  { %v163_v32 = vadd.f32 %v159_v24, %v155_v25  ;;  %v156_v33 = vadd.f32 %v183_v19, %v145_v30 }
  0xf4   :  { %169 = vst.msk [vmem:[%s298_s4 + $0x10] sm:$0xff] %vm22_vm0, %v165_v28  ;;  %v166_v34 = vadd.f32 %v162_v27, %v158_v29 }
  0xf5   :  { %167 = vst.msk [vmem:[%s298_s4] sm:$0xff] %vm22_vm0, %v163_v32  ;;  %v164_v35 = vadd.f32 %v160_v31, %v156_v33 }
  0xf6   :  { %170 = vst.msk [vmem:[%s298_s4 + $0x18] sm:$0xff] %vm22_vm0, %v166_v34 }
  0xf7   :  { %168 = vst.msk [vmem:[%s298_s4 + $0x8] sm:$0xff] %vm22_vm0, %v164_v35 }

// kernel: _lambda_.81
= control target key start
LH: loop header
LB: loop body
LE: loop exit
PB: predicated region body
PF: predicated region fallthrough
CT: control target
= control target key end

     0   :  { %s1629_s15 = smov 0   ;;  %s1631_s16 = smov 0   ;;  %s1847_s0 = inlined_call_operand.vmem [shape: bf16[2,8,4,32], index: 0, kind: input, shape index: {}]   ;;  %s1848_s1 = inlined_call_operand.vmem [shape: bf16[2,8,4,32], index: 1, kind: input, shape index: {}]   ;;  %s1849_s2 = inlined_call_operand.vmem [shape: bf16[2,8,4,32], index: 2, kind: input, shape index: {}]   ;;  %s1850_s3 = inlined_call_operand.vmem [shape: f32[2,4,4], index: 3, kind: input, shape index: {}]   ;;  %s1851_s4 = inlined_call_operand.vmem [shape: bf16[2,8,4,32], index: 4, kind: output, shape index: {}]  }
   0x1   :  { %s1633_s17 = smov 0  }
   0x2 LB: > { %s26_s18 = sadd.s32 1, %s1596_s16  ;;  %p1360_p0 = scmp.ge.s32.totalorder %s1600_s17, 1  ;;  %s1600_s17 = sphi %s1633_s17, %s14_s17   ;;  %s1596_s16 = sphi %s1631_s16, %s1853_s16   ;;  %s1592_s15 = sphi %s1629_s15, %s1852_s15  }
   0x3   : > { %p28_p1 = scmp.ge.s32.totalorder %s26_s18, 2  ;;  %p226_p2 = scmp.lt.s32.totalorder %s1600_s17, 3 }
   0x5   : > { %s1855_s18 = smov (%p28_p1, %s26_s18), 0  ;;  %p227_p3 = pnand %p1360_p0, %p226_p2 }
   0x6   : > { %p283_p4 = scmp.lt.s32.totalorder (!%p227_p3), %s1592_s15, 1  ;;  %v1602_v0 = vmov (!%p227_p3), 0.0   ;;  %vm1603_vm0 = vmmov (!%p227_p3), 0   ;;  %vm351_vm1 = vcmask (!%p227_p3), 261120   ;;  %vm737_vm2 = vcmask (!%p227_p3), 27648  }
   0x7   : > { %230 = sbr.rel (%p227_p3) target bundleno = 801 (0x321), region = 36  ;;  %1424 = vmatprep.subr.bf16.mxu0 (!%p227_p3), %v1602_v0  ;;  %1430 = vmatprep.subr.bf16.mxu1 (!%p227_p3), %v1602_v0  ;;  %vm838_vm3 = vcmask (!%p227_p3), 1041408   ;;  %vm834_vm4 = vcmask (!%p227_p3), 31744   ;;  %vm1212_vm5 = vcmask (!%p227_p3), 254976  }
   0x8   : > { %1426 = vmatprep.mubr.msk.bf16.mxu0 (!%p227_p3), %vm1603_vm0, %v1602_v0  ;;  %1432 = vmatprep.mubr.msk.bf16.mxu1 (!%p227_p3), %vm1603_vm0, %v1602_v0 }
   0xe   : > { %s1857_s15 = smov (!%p283_p4, %s1592_s15), 1 }
   0xf   : > { %s1656_s19 = sshll.u32 %s1857_s15, 4  ;;  %s1367_s26 = sshll.u32 %s1857_s15, 2 }
  0x10   : > { %s1662_s22 = scalar_lea.vmem %s1848_s1, %s1656_s19  ;;  %s1672_s25 = scalar_lea.vmem %s1847_s0, %s1656_s19 }
  0x11   : > { %v335_v1 = vld [vmem:[%s1662_s22] sm:$0x3]  ;;  %v336_v2 = vld [vmem:[%s1662_s22 + $0x2] sm:$0x3]  ;;  %v337_v5 = vld [vmem:[%s1662_s22 + $0x4] sm:$0x3]  ;;  %s315_s29 = scalar_lea.vmem %s1850_s3, %s1367_s26  ;;  %s310_s6 = scalar_lea.vmem %s1849_s2, %s1656_s19 }
  0x12   : > { %v356_v3 = vsel %vm351_vm1, %v335_v1, 0  ;;  %v402_v4 = vsel %vm351_vm1, %v336_v2, 0  ;;  %v338_v6 = vld [vmem:[%s1662_s22 + $0x6] sm:$0x3]  ;;  %v327_v7 = vld [vmem:[%s1672_s25] sm:$0x3]  ;;  %s1820_s9 = scalar_lea.vmem %s1851_s4, %s1656_s19 }
  0x13   : > { %1425 = vmatpush3.bf16.xpose.msra.mxu0 %v356_v3  ;;  %1431 = vmatpush3.bf16.xpose.msra.mxu1 %v402_v4  ;;  %v328_v8 = vld [vmem:[%s1672_s25 + $0x2] sm:$0x3]  ;;  %v448_v9 = vsel %vm351_vm1, %v337_v5, 0  ;;  %v494_v10 = vsel %vm351_vm1, %v338_v6, 0  ;;  %v339_v11 = vld [vmem:[%s1662_s22 + $0x8] sm:$0x3] }
  0x14   : > { %1436 = vmatprep.subr.bf16.mxu0 %v1602_v0  ;;  %1442 = vmatprep.subr.bf16.mxu1 %v1602_v0  ;;  %v340_v12 = vld [vmem:[%s1662_s22 + $0xa] sm:$0x3]  ;;  %v329_v13 = vld [vmem:[%s1672_s25 + $0x4] sm:$0x3]  ;;  %v330_v14 = vld [vmem:[%s1672_s25 + $0x6] sm:$0x3] }
  0x15   : > { %v540_v15 = vsel %vm351_vm1, %v339_v11, 0  ;;  %v586_v16 = vsel %vm351_vm1, %v340_v12, 0  ;;  %v341_v17 = vld [vmem:[%s1662_s22 + $0xc] sm:$0x3]  ;;  %v342_v18 = vld [vmem:[%s1662_s22 + $0xe] sm:$0x3] }
  0x16   : > { %v331_v19 = vld [vmem:[%s1672_s25 + $0x8] sm:$0x3]  ;;  %v332_v20 = vld [vmem:[%s1672_s25 + $0xa] sm:$0x3]  ;;  %v632_v21 = vsel %vm351_vm1, %v341_v17, 0  ;;  %v678_v22 = vsel %vm351_vm1, %v342_v18, 0 }
  0x17   : > { %v333_v23 = vld [vmem:[%s1672_s25 + $0xc] sm:$0x3]  ;;  %v334_v24 = vld [vmem:[%s1672_s25 + $0xe] sm:$0x3]  ;;  %v728_v27 = vld [vmem:[%s315_s29] sm:$0xf] }
  0x1a   : > { %1427 = vmatmul.mubr.msk.bf16.vlgmr.msra.gmra.mrb[0].mxu0 %vm351_vm1, %v327_v7  ;;  %1433 = vmatmul.mubr.msk.bf16.vlgmr.msra.gmra.mrb[0].mxu1 %vm351_vm1, %v328_v8 }
  0x1b   : > { %1437 = vmatpush3.bf16.xpose.msra.mxu0 %v448_v9  ;;  %1443 = vmatpush3.bf16.xpose.msra.mxu1 %v494_v10 }
  0x1c   : > { %1438 = vmatprep.mubr.msk.bf16.mxu0 %vm1603_vm0, %v1602_v0  ;;  %1444 = vmatprep.mubr.msk.bf16.mxu1 %vm1603_vm0, %v1602_v0 }
  0x1d   : > { %1448 = vmatprep.subr.bf16.mxu0 %v1602_v0  ;;  %1454 = vmatprep.subr.bf16.mxu1 %v1602_v0 }
  0x22   : > { %1439 = vmatmul.mubr.msk.bf16.vlgmr.msra.gmra.mrb[4].mxu0 %vm351_vm1, %v329_v13  ;;  %1445 = vmatmul.mubr.msk.bf16.vlgmr.msra.gmra.mrb[4].mxu1 %vm351_vm1, %v330_v14 }
  0x23   : > { %1449 = vmatpush3.bf16.xpose.msra.mxu0 %v540_v15  ;;  %1455 = vmatpush3.bf16.xpose.msra.mxu1 %v586_v16 }
  0x24   : > { %1450 = vmatprep.mubr.msk.bf16.mxu0 %vm1603_vm0, %v1602_v0  ;;  %1456 = vmatprep.mubr.msk.bf16.mxu1 %vm1603_vm0, %v1602_v0 }
  0x25   : > { %1460 = vmatprep.subr.bf16.mxu0 %v1602_v0  ;;  %1466 = vmatprep.subr.bf16.mxu1 %v1602_v0 }
  0x2a   : > { %1451 = vmatmul.mubr.msk.bf16.vlgmr.msra.gmra.mrb[8].mxu0 %vm351_vm1, %v331_v19  ;;  %1457 = vmatmul.mubr.msk.bf16.vlgmr.msra.gmra.mrb[8].mxu1 %vm351_vm1, %v332_v20 }
  0x2b   : > { %1461 = vmatpush3.bf16.xpose.msra.mxu0 %v632_v21  ;;  %1467 = vmatpush3.bf16.xpose.msra.mxu1 %v678_v22 }
  0x2c   : > { %1462 = vmatprep.mubr.msk.bf16.mxu0 %vm1603_vm0, %v1602_v0  ;;  %1468 = vmatprep.mubr.msk.bf16.mxu1 %vm1603_vm0, %v1602_v0 }
  0x2d   : > { %1472 = vmatprep.subr.bf16.mxu0 %v1602_v0  ;;  %1478 = vmatprep.subr.bf16.mxu1 %v1602_v0 }
  0x32   : > { %1463 = vmatmul.mubr.msk.bf16.vlgmr.msra.gmra.mrb[12].mxu0 %vm351_vm1, %v333_v23  ;;  %1469 = vmatmul.mubr.msk.bf16.vlgmr.msra.gmra.mrb[12].mxu1 %vm351_vm1, %v334_v24 }
  0x33   : > { %1474 = vmatprep.mubr.msk.bf16.mxu0 %vm1603_vm0, %v1602_v0  ;;  %1480 = vmatprep.mubr.msk.bf16.mxu1 %vm1603_vm0, %v1602_v0 }
  0xed   : > { %v392_v25 = vpop.f32.mrb[0].mxu0  ;;  %v438_v26 = vpop.f32.mrb[0].mxu1 }
  0xee   : > { %v720_v28 = vmul.f32 0.17677669, %v392_v25  ;;  %v1428_v29 = vpop.f32.mrb[1].mxu0  ;;  %v721_v30 = vmul.f32 0.17677669, %v438_v26  ;;  %v1434_v31 = vpop.f32.mrb[1].mxu1 }
  0xef   : > { %v395_v32 = vpop.f32.mrb[2].mxu0  ;;  %v441_v33 = vpop.f32.mrb[2].mxu1 }
  0xf0   : > { %v1429_v34 = vpop.f32.mrb[3].mxu0  ;;  %v1435_v35 = vpop.f32.mrb[3].mxu1  ;;  %v729_v36 = vadd.f32 %v728_v27, %v720_v28  ;;  %v730_v37 = vadd.f32 %v728_v27, %v721_v30 }
  0xf2   : > { %v738_v38 = vsel %vm737_vm2, %v729_v36, -inf  ;;  %v741_v39 = vsel %vm737_vm2, %v730_v37, -inf }
  0xf3   : > { %739 = vmax.xlane.f32.xlu0 %v738_v38 }
  0xf5   : > { %v484_v40 = vpop.f32.mrb[4].mxu0  ;;  %v530_v41 = vpop.f32.mrb[4].mxu1 }
  0xf6   : > { %v722_v42 = vmul.f32 0.17677669, %v484_v40  ;;  %v1440_v43 = vpop.f32.mrb[5].mxu0  ;;  %v723_v44 = vmul.f32 0.17677669, %v530_v41  ;;  %v1446_v45 = vpop.f32.mrb[5].mxu1 }
  0xf7   : > { %742 = vmax.xlane.f32.xlu0 %v741_v39  ;;  %v487_v46 = vpop.f32.mrb[6].mxu0  ;;  %v533_v47 = vpop.f32.mrb[6].mxu1 }
  0xf8   : > { %v1441_v48 = vpop.f32.mrb[7].mxu0  ;;  %v1447_v49 = vpop.f32.mrb[7].mxu1  ;;  %v731_v50 = vadd.f32 %v728_v27, %v722_v42  ;;  %v732_v51 = vadd.f32 %v728_v27, %v723_v44 }
  0xfa   : > { %v744_v52 = vsel %vm737_vm2, %v731_v50, -inf  ;;  %v747_v53 = vsel %vm737_vm2, %v732_v51, -inf }
  0xfb   : > { %745 = vmax.xlane.f32.xlu1 %v744_v52 }
  0xfd   : > { %v576_v54 = vpop.f32.mrb[8].mxu0  ;;  %v622_v55 = vpop.f32.mrb[8].mxu1 }
  0xfe   : > { %v724_v56 = vmul.f32 0.17677669, %v576_v54  ;;  %v725_v57 = vmul.f32 0.17677669, %v622_v55  ;;  %v1452_v58 = vpop.f32.mrb[9].mxu0  ;;  %v1458_v59 = vpop.f32.mrb[9].mxu1 }
  0xff   : > { %748 = vmax.xlane.f32.xlu1 %v747_v53  ;;  %v579_v60 = vpop.f32.mrb[10].mxu0  ;;  %v625_v61 = vpop.f32.mrb[10].mxu1  ;;  %v343_v59 = vld [vmem:[%s310_s6] sm:$0x3] }
 0x100   : > { %v1453_v62 = vpop.f32.mrb[11].mxu0  ;;  %v1459_v63 = vpop.f32.mrb[11].mxu1  ;;  %v734_v1 = vadd.f32 %v728_v27, %v725_v57  ;;  %v733_v2 = vadd.f32 %v728_v27, %v724_v56  ;;  %v840_v60 = vsel %vm838_vm3, %v343_v59, 0  ;;  %v344_v61 = vld [vmem:[%s310_s6 + $0x2] sm:$0x3] }
 0x101   : > { %1473 = vmatpush3.bf16.msra.mxu0 %v840_v60  ;;  %v886_v62 = vsel %vm838_vm3, %v344_v61, 0  ;;  %v345_v63 = vld [vmem:[%s310_s6 + $0x4] sm:$0x3] }
 0x102   : > { %v753_v3 = vsel %vm737_vm2, %v734_v1, -inf  ;;  %v750_v4 = vsel %vm737_vm2, %v733_v2, -inf  ;;  %1484 = vmatprep.subr.bf16.mxu0 %v1602_v0  ;;  %1479 = vmatpush3.bf16.msra.mxu1 %v886_v62 }
 0x103   : > { %754 = vmax.xlane.f32.xlu1 %v753_v3  ;;  %751 = vmax.xlane.f32.xlu0 %v750_v4  ;;  %v347_v4 = vld [vmem:[%s310_s6 + $0x8] sm:$0x3] }
 0x104   : > { %1490 = vmatprep.subr.bf16.mxu1 %v1602_v0 }
 0x105   : > { %v668_v5 = vpop.f32.mrb[12].mxu0  ;;  %v714_v6 = vpop.f32.mrb[12].mxu1 }
 0x106   : > { %v726_v7 = vmul.f32 0.17677669, %v668_v5  ;;  %v727_v8 = vmul.f32 0.17677669, %v714_v6  ;;  %v1464_v9 = vpop.f32.mrb[13].mxu0  ;;  %v1470_v10 = vpop.f32.mrb[13].mxu1 }
 0x107   : > { %v671_v11 = vpop.f32.mrb[14].mxu0  ;;  %v717_v12 = vpop.f32.mrb[14].mxu1  ;;  %v1024_v5 = vsel %vm838_vm3, %v347_v4, 0  ;;  %v348_v6 = vld [vmem:[%s310_s6 + $0xa] sm:$0x3] }
 0x108   : > { %v1465_v13 = vpop.f32.mrb[15].mxu0  ;;  %v1471_v14 = vpop.f32.mrb[15].mxu1  ;;  %v736_v15 = vadd.f32 %v728_v27, %v727_v8  ;;  %v735_v16 = vadd.f32 %v728_v27, %v726_v7  ;;  %v1070_v7 = vsel %vm838_vm3, %v348_v6, 0  ;;  %v349_v8 = vld [vmem:[%s310_s6 + $0xc] sm:$0x3] }
 0x109   : > { %v1116_v9 = vsel %vm838_vm3, %v349_v8, 0  ;;  %v350_v10 = vld [vmem:[%s310_s6 + $0xe] sm:$0x3] }
 0x10a   : > { %v759_v17 = vsel %vm737_vm2, %v736_v15, -inf  ;;  %v756_v18 = vsel %vm737_vm2, %v735_v16, -inf  ;;  %v1162_v11 = vsel %vm838_vm3, %v350_v10, 0 }
 0x10b   : > { %760 = vmax.xlane.f32.xlu1 %v759_v17  ;;  %757 = vmax.xlane.f32.xlu0 %v756_v18 }
 0x180   : > { %v740_v19 = vpop.xlane.xlu0 %739 }
 0x181   : > { %v762_v20 = vsub.f32 %v729_v36, %v740_v19 }
 0x183   : > { %v770_v21 = vmul.f32 1.442695, %v762_v20 }
 0x184   : > { %v743_v22 = vpop.xlane.xlu0 %742 }
 0x185   : > { %1546 = vpow2.f32 %v770_v21  ;;  %v763_v23 = vsub.f32 %v730_v37, %v743_v22 }
 0x187   : > { %v772_v24 = vmul.f32 1.442695, %v763_v23 }
 0x188   : > { %v746_v25 = vpop.xlane.xlu1 %745 }
 0x189   : > { %1548 = vpow2.f32 %v772_v24  ;;  %v764_v26 = vsub.f32 %v731_v50, %v746_v25 }
 0x18b   : > { %v774_v28 = vmul.f32 1.442695, %v764_v26 }
 0x18c   : > { %v749_v29 = vpop.xlane.xlu1 %748 }
 0x18d   : > { %1550 = vpow2.f32 %v774_v28  ;;  %v765_v27 = vsub.f32 %v732_v51, %v749_v29 }
 0x18f   : > { %v1738_v30 = vpop.eup %1546  ;;  %v776_v31 = vmul.f32 1.442695, %v765_v27 }
 0x190   : > { %v755_v32 = vpop.xlane.xlu1 %754  ;;  %v752_v33 = vpop.xlane.xlu0 %751  ;;  %v786_v34 = vsel %vm737_vm2, %v1738_v30, 0.0 }
 0x191   : > { %1552 = vpow2.f32 %v776_v31  ;;  %v767_v35 = vsub.f32 %v734_v1, %v755_v32  ;;  %v766_v36 = vsub.f32 %v733_v2, %v752_v33  ;;  %787 = vadd.xlane.f32.xlu0 %v786_v34  ;;  %v932_v1 = vsel %vm838_vm3, %v345_v63, 0  ;;  %v346_v2 = vld [vmem:[%s310_s6 + $0x6] sm:$0x3] }
 0x192   : > { %v978_v3 = vsel %vm838_vm3, %v346_v2, 0 }
 0x193   : > { %v1742_v37 = vpop.eup %1548  ;;  %v780_v38 = vmul.f32 1.442695, %v767_v35  ;;  %v778_v39 = vmul.f32 1.442695, %v766_v36 }
 0x194   : > { %v789_v40 = vsel %vm737_vm2, %v1742_v37, 0.0 }
 0x195   : > { %1554 = vpow2.f32 %v780_v38  ;;  %790 = vadd.xlane.f32.xlu1 %v789_v40 }
 0x196   : > { %1556 = vpow2.f32 %v778_v39 }
 0x197   : > { %v1746_v41 = vpop.eup %1550 }
 0x198   : > { %v761_v42 = vpop.xlane.xlu1 %760  ;;  %v758_v43 = vpop.xlane.xlu0 %757  ;;  %v792_v44 = vsel %vm737_vm2, %v1746_v41, 0.0 }
 0x199   : > { %v769_v45 = vsub.f32 %v736_v15, %v761_v42  ;;  %v768_v46 = vsub.f32 %v735_v16, %v758_v43  ;;  %793 = vadd.xlane.f32.xlu0 %v792_v44 }
 0x19b   : > { %v1750_v47 = vpop.eup %1552  ;;  %v784_v48 = vmul.f32 1.442695, %v769_v45  ;;  %v782_v49 = vmul.f32 1.442695, %v768_v46 }
 0x19c   : > { %v795_v50 = vsel %vm737_vm2, %v1750_v47, 0.0 }
 0x19d   : > { %1558 = vpow2.f32 %v784_v48  ;;  %796 = vadd.xlane.f32.xlu1 %v795_v50 }
 0x19e   : > { %1560 = vpow2.f32 %v782_v49 }
 0x19f   : > { %v1754_v51 = vpop.eup %1554 }
 0x1a0   : > { %v1756_v52 = vpop.eup %1556  ;;  %v801_v53 = vsel %vm737_vm2, %v1754_v51, 0.0 }
 0x1a1   : > { %802 = vadd.xlane.f32.xlu1 %v801_v53  ;;  %v798_v54 = vsel %vm737_vm2, %v1756_v52, 0.0 }
 0x1a2   : > { %799 = vadd.xlane.f32.xlu0 %v798_v54 }
 0x1a7   : > { %v1762_v55 = vpop.eup %1558 }
 0x1a8   : > { %v1764_v56 = vpop.eup %1560  ;;  %v807_v57 = vsel %vm737_vm2, %v1762_v55, 0.0 }
 0x1a9   : > { %808 = vadd.xlane.f32.xlu1 %v807_v57  ;;  %v804_v58 = vsel %vm737_vm2, %v1764_v56, 0.0 }
 0x1aa   : > { %805 = vadd.xlane.f32.xlu0 %v804_v58 }
 0x21e   : > { %v788_v12 = vpop.xlane.xlu0 %787 }
 0x21f   : > { %1562 = vrcp.f32 %v788_v12 }
 0x222   : > { %v791_v13 = vpop.xlane.xlu1 %790 }
 0x223   : > { %1564 = vrcp.f32 %v791_v13 }
 0x226   : > { %v794_v14 = vpop.xlane.xlu0 %793 }
 0x227   : > { %1566 = vrcp.f32 %v794_v14 }
 0x229   : > { %v1563_v15 = vpop.eup %1562 }
 0x22a   : > { %v818_v16 = vmul.f32 %v1563_v15, %v1738_v30  ;;  %v797_v17 = vpop.xlane.xlu1 %796 }
 0x22b   : > { %1568 = vrcp.f32 %v797_v17 }
 0x22c   : > { %v826_v18 = vpack.c.bf16 %v818_v16, %v818_v16 }
 0x22d   : > { %v1565_v19 = vpop.eup %1564 }
 0x22e   : > { %v819_v20 = vmul.f32 %v1565_v19, %v1742_v37  ;;  %v803_v21 = vpop.xlane.xlu1 %802  ;;  %1475 = vmatmul.mubr.msk.bf16.vlgmr.msra.gmra.mrb[16].mxu0 %vm834_vm4, %v826_v18 }
 0x22f   : > { %1570 = vrcp.f32 %v803_v21  ;;  %v800_v22 = vpop.xlane.xlu0 %799  ;;  %1485 = vmatpush3.bf16.msra.mxu0 %v932_v1  ;;  %1486 = vmatprep.mubr.msk.bf16.mxu0 %vm1603_vm0, %v1602_v0 }
 0x230   : > { %1572 = vrcp.f32 %v800_v22  ;;  %v827_v23 = vpack.c.bf16 %v819_v20, %v819_v20  ;;  %1496 = vmatprep.subr.bf16.mxu0 %v1602_v0 }
 0x231   : > { %v1567_v24 = vpop.eup %1566 }
 0x232   : > { %v820_v25 = vmul.f32 %v1567_v24, %v1746_v41  ;;  %1481 = vmatmul.mubr.msk.bf16.vlgmr.msra.gmra.mrb[16].mxu1 %vm834_vm4, %v827_v23 }
 0x233   : > { %1491 = vmatpush3.bf16.msra.mxu1 %v978_v3  ;;  %1492 = vmatprep.mubr.msk.bf16.mxu1 %vm1603_vm0, %v1602_v0 }
 0x234   : > { %v828_v26 = vpack.c.bf16 %v820_v25, %v820_v25  ;;  %1502 = vmatprep.subr.bf16.mxu1 %v1602_v0 }
 0x235   : > { %v1569_v28 = vpop.eup %1568 }
 0x236   : > { %v821_v29 = vmul.f32 %v1569_v28, %v1750_v47  ;;  %v809_v27 = vpop.xlane.xlu1 %808  ;;  %1487 = vmatmul.mubr.msk.bf16.vlgmr.msra.gmra.mrb[20].mxu0 %vm834_vm4, %v828_v26 }
 0x237   : > { %1574 = vrcp.f32 %v809_v27  ;;  %v806_v30 = vpop.xlane.xlu0 %805  ;;  %1497 = vmatpush3.bf16.msra.mxu0 %v1024_v5  ;;  %1498 = vmatprep.mubr.msk.bf16.mxu0 %vm1603_vm0, %v1602_v0 }
 0x238   : > { %1576 = vrcp.f32 %v806_v30  ;;  %v829_v31 = vpack.c.bf16 %v821_v29, %v821_v29  ;;  %1508 = vmatprep.subr.bf16.mxu0 %v1602_v0 }
 0x239   : > { %v1571_v32 = vpop.eup %1570 }
 0x23a   : > { %v1573_v33 = vpop.eup %1572  ;;  %1493 = vmatmul.mubr.msk.bf16.vlgmr.msra.gmra.mrb[20].mxu1 %vm834_vm4, %v829_v31  ;;  %v823_v35 = vmul.f32 %v1571_v32, %v1754_v51 }
 0x23b   : > { %v822_v34 = vmul.f32 %v1573_v33, %v1756_v52  ;;  %1503 = vmatpush3.bf16.msra.mxu1 %v1070_v7  ;;  %1504 = vmatprep.mubr.msk.bf16.mxu1 %vm1603_vm0, %v1602_v0 }
 0x23c   : > { %1514 = vmatprep.subr.bf16.mxu1 %v1602_v0  ;;  %v831_v37 = vpack.c.bf16 %v823_v35, %v823_v35 }
 0x23d   : > { %v830_v36 = vpack.c.bf16 %v822_v34, %v822_v34 }
 0x23f   : > { %1499 = vmatmul.mubr.msk.bf16.vlgmr.msra.gmra.mrb[24].mxu0 %vm834_vm4, %v830_v36 }
 0x240   : > { %1509 = vmatpush3.bf16.msra.mxu0 %v1116_v9  ;;  %1510 = vmatprep.mubr.msk.bf16.mxu0 %vm1603_vm0, %v1602_v0 }
 0x241   : > { %v1575_v38 = vpop.eup %1574 }
 0x242   : > { %v1577_v39 = vpop.eup %1576  ;;  %1505 = vmatmul.mubr.msk.bf16.vlgmr.msra.gmra.mrb[24].mxu1 %vm834_vm4, %v831_v37  ;;  %v825_v41 = vmul.f32 %v1575_v38, %v1762_v55 }
 0x243   : > { %v824_v40 = vmul.f32 %v1577_v39, %v1764_v56  ;;  %1515 = vmatpush3.bf16.msra.mxu1 %v1162_v11  ;;  %1516 = vmatprep.mubr.msk.bf16.mxu1 %vm1603_vm0, %v1602_v0 }
 0x244   : > { %v833_v43 = vpack.c.bf16 %v825_v41, %v825_v41 }
 0x245   : > { %v832_v42 = vpack.c.bf16 %v824_v40, %v824_v40 }
 0x247   : > { %1511 = vmatmul.mubr.msk.bf16.vlgmr.msra.gmra.mrb[28].mxu0 %vm834_vm4, %v832_v42 }
 0x24a   : > { %1517 = vmatmul.mubr.msk.bf16.vlgmr.msra.gmra.mrb[28].mxu1 %vm834_vm4, %v833_v43 }
 0x301   : > { %v876_v44 = vpop.f32.mrb[16].mxu0 }
 0x302   : > { %v1204_v45 = vpack.c.bf16 %v876_v44, %v876_v44  ;;  %v1476_v0 = vpop.f32.mrb[17].mxu0 }
 0x303   : > { %v879_v46 = vpop.f32.mrb[18].mxu0 }
 0x304   : > { %1213 = vst.msk [vmem:[%s1820_s9] sm:$0x3] %vm1212_vm5, %v1204_v45  ;;  %v1477_v47 = vpop.f32.mrb[19].mxu0 }
 0x305   : > { %v922_v48 = vpop.f32.mrb[16].mxu1 }
 0x306   : > { %v1205_v49 = vpack.c.bf16 %v922_v48, %v922_v48  ;;  %v1482_v50 = vpop.f32.mrb[17].mxu1 }
 0x307   : > { %v925_v51 = vpop.f32.mrb[18].mxu1 }
 0x308   : > { %1214 = vst.msk [vmem:[%s1820_s9 + $0x2] sm:$0x3] %vm1212_vm5, %v1205_v49  ;;  %v1483_v52 = vpop.f32.mrb[19].mxu1 }
 0x309   : > { %v968_v53 = vpop.f32.mrb[20].mxu0 }
 0x30a   : > { %v1206_v54 = vpack.c.bf16 %v968_v53, %v968_v53  ;;  %v1488_v55 = vpop.f32.mrb[21].mxu0 }
 0x30b   : > { %v971_v56 = vpop.f32.mrb[22].mxu0 }
 0x30c   : > { %1215 = vst.msk [vmem:[%s1820_s9 + $0x4] sm:$0x3] %vm1212_vm5, %v1206_v54  ;;  %v1489_v57 = vpop.f32.mrb[23].mxu0 }
 0x30d   : > { %v1014_v58 = vpop.f32.mrb[20].mxu1 }
 0x30e   : > { %v1207_v59 = vpack.c.bf16 %v1014_v58, %v1014_v58  ;;  %v1494_v60 = vpop.f32.mrb[21].mxu1 }
 0x30f   : > { %v1017_v61 = vpop.f32.mrb[22].mxu1 }
 0x310   : > { %1216 = vst.msk [vmem:[%s1820_s9 + $0x6] sm:$0x3] %vm1212_vm5, %v1207_v59  ;;  %v1495_v62 = vpop.f32.mrb[23].mxu1 }
 0x312   : > { %v1060_v63 = vpop.f32.mrb[24].mxu0 }
 0x313   : > { %v1208_v1 = vpack.c.bf16 %v1060_v63, %v1060_v63  ;;  %v1500_v2 = vpop.f32.mrb[25].mxu0 }
 0x314   : > { %v1063_v3 = vpop.f32.mrb[26].mxu0 }
 0x315   : > { %1217 = vst.msk [vmem:[%s1820_s9 + $0x8] sm:$0x3] %vm1212_vm5, %v1208_v1  ;;  %v1501_v4 = vpop.f32.mrb[27].mxu0  ;;  %v1106_v5 = vpop.f32.mrb[24].mxu1 }
 0x316   : > { %v1209_v6 = vpack.c.bf16 %v1106_v5, %v1106_v5  ;;  %v1506_v7 = vpop.f32.mrb[25].mxu1 }
 0x317   : > { %v1109_v8 = vpop.f32.mrb[26].mxu1 }
 0x318   : > { %1218 = vst.msk [vmem:[%s1820_s9 + $0xa] sm:$0x3] %vm1212_vm5, %v1209_v6  ;;  %v1507_v9 = vpop.f32.mrb[27].mxu1 }
 0x31a   : > { %v1152_v10 = vpop.f32.mrb[28].mxu0 }
 0x31b   : > { %v1210_v11 = vpack.c.bf16 %v1152_v10, %v1152_v10  ;;  %v1512_v12 = vpop.f32.mrb[29].mxu0 }
 0x31c   : > { %v1155_v13 = vpop.f32.mrb[30].mxu0 }
 0x31d   : > { %1219 = vst.msk [vmem:[%s1820_s9 + $0xc] sm:$0x3] %vm1212_vm5, %v1210_v11  ;;  %v1513_v14 = vpop.f32.mrb[31].mxu0  ;;  %v1198_v15 = vpop.f32.mrb[28].mxu1 }
 0x31e   : > { %v1211_v16 = vpack.c.bf16 %v1198_v15, %v1198_v15  ;;  %v1518_v17 = vpop.f32.mrb[29].mxu1 }
 0x31f   : > { %v1201_v18 = vpop.f32.mrb[30].mxu1 }
 0x320   : > { %1220 = vst.msk [vmem:[%s1820_s9 + $0xe] sm:$0x3] %vm1212_vm5, %v1211_v16  ;;  %v1519_v19 = vpop.f32.mrb[31].mxu1 }
 0x321 PF: > { %s14_s17 = sadd.s32 1, %s1600_s17   ;;  %s1852_s15 = smov %s1596_s16 }
 0x322   : > { %p11_p5 = scmp.ge.s32.totalorder %s14_s17, 4   ;;  %s1853_s16 = smov %s1855_s18 }
 0x324   :  { %13 = sbr.rel (!%p11_p5) target bundleno = 2 (0x2), region = 75 }

// kernel: tile.33
= control target key start
LH: loop header
LB: loop body
LE: loop exit
PB: predicated region body
PF: predicated region fallthrough
CT: control target
= control target key end

     0   :  { %s22_s0 = inlined_call_operand.vmem [shape: f32[64], index: 0, kind: input, shape index: {}]   ;;  %s23_s1 = inlined_call_operand.vmem [shape: f32[4,64], index: 1, kind: output, shape index: {}]  }
   0x1   :  { %v4_v0 = vld [vmem:[%s22_s0] ss:$0 sm:$0xff] }
   0x2   :  { %5 = vst [vmem:[%s23_s1] sm:$0xf] %v4_v0 }

// kernel: mul.195
= control target key start
LH: loop header
LB: loop body
LE: loop exit
PB: predicated region body
PF: predicated region fallthrough
CT: control target
= control target key end

     0   :  { %s6_s8 = smov 3  ;;  %vm8_vm0 = vcmask 523264   ;;  %s24_s9 = smov 64   ;;  %vm15_vm1 = vcmask 1048064   ;;  %s41_s0 = inlined_call_operand.vmem [shape: f32[4,64], index: 0, kind: input, shape index: {}]   ;;  %s42_s1 = inlined_call_operand.vmem [shape: f32[256], index: 1, kind: output, shape index: {}]  }
   0x1   :  { %v4_v0 = vld [vmem:[%s41_s0] sm:$0xf]  ;;  %s11_s0 = smov 3 }
   0x2   :  { %5 = vst [vmem:[#allocation1] sm:$0xf] %v4_v0 }
   0x9   :  { %v12_v1 = vld [vmem:[#allocation1 + $0x1] ss:$2 sm:%s11_s0]   ;;  %v7_v2 = vld [vmem:[#allocation1] ss:$2 sm:%s6_s8]  }
   0xa   :  { %13 = vrot.lane.b32.xlu0 %v12_v1, %s24_s9  ;;  %9 = vst.msk [vmem:[#allocation0] sm:$0x3] %vm8_vm0, %v7_v2  }
  0x7c   :  { %v14_v3 = vpop.permute.xlu0 %13  }
  0x7d   :  { %16 = vst.msk [vmem:[#allocation0] sm:$0x3] %vm15_vm1, %v14_v3  }
  0x84   :  { %v20_v4 = vld [vmem:[#allocation0] sm:$0x3] }
  0x85   :  { %22 = vst [vmem:[%s42_s1] sm:$0x3] %v20_v4 }

// kernel: _lambda_.85
= control target key start
LH: loop header
LB: loop body
LE: loop exit
PB: predicated region body
PF: predicated region fallthrough
CT: control target
= control target key end

     0   :  { %v295_v1 = vmov 0   ;;  %vm97_vm0 = vcmask 523264   ;;  %v186_v11 = vlaneseq  ;;  %s361_s1 = inlined_call_operand.vmem [shape: bf16[64,256], index: 1, kind: input, shape index: {}]   ;;  %s362_s0 = inlined_call_operand.vmem [shape: bf16[32,64], index: 0, kind: input, shape index: {}]   ;;  %s363_s2 = inlined_call_operand.vmem [shape: f32[1,256], index: 2, kind: input, shape index: {}]   ;;  %s364_s3 = inlined_call_operand.vmem [shape: bf16[32,256], index: 3, kind: output, shape index: {}]  }
   0x1   :  { %v281_v0 = vld [vmem:[%s361_s1 + $0x4] ss:$8 sps:$4 sm:$0xff]   ;;  %136 = vmatprep.mubr.bf16.mxu0 %v295_v1  ;;  %146 = vmatprep.mubr.bf16.mxu1 %v295_v1  ;;  %v283_v2 = vld [vmem:[%s361_s1] ss:$8 sps:$4 sm:$0xff]   ;;  %v284_v3 = vld [vmem:[%s361_s1 + $0x14] ss:$8 sps:$4 sm:$0xff]  }
   0x2   :  { %104 = vmatprep.subr.bf16.mxu0 %v281_v0  ;;  %272 = vmatprep.subr.bf16.mxu1 %v281_v0  ;;  %v286_v4 = vld [vmem:[%s361_s1 + $0x10] ss:$8 sps:$4 sm:$0xff]   ;;  %v287_v5 = vld [vmem:[%s361_s1 + $0x24] ss:$8 sps:$4 sm:$0xff]   ;;  %v289_v6 = vld [vmem:[%s361_s1 + $0x20] ss:$8 sps:$4 sm:$0xff]  }
   0x3   :  { %105 = vmatpush1.bf16.msra.mxu0 %v283_v2  ;;  %276 = vmatpush1.bf16.msra.mxu1 %v283_v2  ;;  %v290_v7 = vld [vmem:[%s361_s1 + $0x34] ss:$8 sps:$4 sm:$0xff]   ;;  %v292_v8 = vld [vmem:[%s361_s1 + $0x30] ss:$8 sps:$4 sm:$0xff]   ;;  %v293_v9 = vld [vmem:[%s362_s0] sm:$0xff]   ;;  %v187_v12 = vshrl.u32 %v186_v11, 7 }
   0x4   :  { %106 = vmatprep.subr.bf16.mxu0 %v284_v3  ;;  %273 = vmatprep.subr.bf16.mxu1 %v284_v3  ;;  %v294_v10 = vld [vmem:[%s362_s0 + $0x8] sm:$0xff]   ;;  %v184_v14 = vld [vmem:[%s363_s2] sm:$0x3] }
   0x5   :  { %v188_v13 = vsub.s32 0, %v187_v12  ;;  %v192_v15 = vsub.s32 1, %v187_v12 }
   0x7   :  { %107 = vmatpush1.bf16.msra.mxu0 %v286_v4  ;;  %277 = vmatpush1.bf16.msra.mxu1 %v286_v4  ;;  %v189_v16 = vrot.slane %v184_v14, %v188_v13  ;;  %v193_v17 = vrot.slane %v184_v14, %v192_v15 }
   0x8   :  { %108 = vmatprep.subr.bf16.mxu0 %v287_v5  ;;  %274 = vmatprep.subr.bf16.mxu1 %v287_v5 }
   0xb   :  { %109 = vmatpush1.bf16.msra.mxu0 %v289_v6  ;;  %278 = vmatpush1.bf16.msra.mxu1 %v289_v6 }
   0xc   :  { %110 = vmatprep.subr.bf16.mxu0 %v290_v7  ;;  %275 = vmatprep.subr.bf16.mxu1 %v290_v7 }
   0xf   :  { %111 = vmatpush1.bf16.msra.mxu0 %v292_v8  ;;  %279 = vmatpush1.bf16.msra.mxu1 %v292_v8 }
  0x12   :  { %262 = vmatmul.mubr.msk.bf16.vlgmr.msra.gmra.mrb[0].mxu0 %vm97_vm0, %v293_v9  ;;  %263 = vmatmul.mubr.msk.bf16.vlgmr.msra.gmra.mrb[0].mxu1 %vm97_vm0, %v294_v10 }
  0xe5   :  { %v138_v18 = vpop.f32.mrb[0].mxu0  ;;  %v148_v19 = vpop.f32.mrb[0].mxu1 }
  0xe6   :  { %v196_v20 = vadd.f32 %v189_v16, %v138_v18  ;;  %v200_v21 = vadd.f32 %v189_v16, %v148_v19  ;;  %v140_v22 = vpop.f32.mrb[1].mxu0  ;;  %v150_v23 = vpop.f32.mrb[1].mxu1 }
  0xe7   :  { %v197_v24 = vadd.f32 %v193_v17, %v140_v22  ;;  %v201_v25 = vadd.f32 %v193_v17, %v150_v23  ;;  %v142_v26 = vpop.f32.mrb[2].mxu0  ;;  %v152_v27 = vpop.f32.mrb[2].mxu1 }
  0xe8   :  { %v204_v28 = vmax.f32 %v196_v20, 0.0  ;;  %v208_v29 = vmax.f32 %v200_v21, 0.0  ;;  %v198_v30 = vadd.f32 %v189_v16, %v142_v26  ;;  %v202_v31 = vadd.f32 %v189_v16, %v152_v27  ;;  %v144_v32 = vpop.f32.mrb[3].mxu0  ;;  %v154_v33 = vpop.f32.mrb[3].mxu1 }
  0xe9   :  { %v205_v34 = vmax.f32 %v197_v24, 0.0  ;;  %v209_v35 = vmax.f32 %v201_v25, 0.0  ;;  %v199_v36 = vadd.f32 %v193_v17, %v144_v32  ;;  %v203_v37 = vadd.f32 %v193_v17, %v154_v33 }
  0xea   :  { %v212_v38 = vmin.f32 %v204_v28, 6.0  ;;  %v216_v39 = vmin.f32 %v208_v29, 6.0  ;;  %v206_v40 = vmax.f32 %v198_v30, 0.0  ;;  %v210_v41 = vmax.f32 %v202_v31, 0.0 }
  0xeb   :  { %v213_v42 = vmin.f32 %v205_v34, 6.0  ;;  %v217_v43 = vmin.f32 %v209_v35, 6.0  ;;  %v207_v44 = vmax.f32 %v199_v36, 0.0  ;;  %v211_v45 = vmax.f32 %v203_v37, 0.0 }
  0xec   :  { %v214_v46 = vmin.f32 %v206_v40, 6.0  ;;  %v218_v47 = vmin.f32 %v210_v41, 6.0 }
  0xed   :  { %v268_v48 = vpack.c.bf16 %v213_v42, %v212_v38  ;;  %v270_v49 = vpack.c.bf16 %v217_v43, %v216_v39  ;;  %v215_v50 = vmin.f32 %v207_v44, 6.0  ;;  %v219_v51 = vmin.f32 %v211_v45, 6.0 }
  0xef   :  { %244 = vst [vmem:[%s364_s3] sm:$0xff] %v268_v48  ;;  %246 = vst [vmem:[%s364_s3 + $0x10] sm:$0xff] %v270_v49  ;;  %v269_v52 = vpack.c.bf16 %v215_v50, %v214_v46  ;;  %v271_v53 = vpack.c.bf16 %v219_v51, %v218_v47 }
  0xf1   :  { %245 = vst [vmem:[%s364_s3 + $0x8] sm:$0xff] %v269_v52  ;;  %247 = vst [vmem:[%s364_s3 + $0x18] sm:$0xff] %v271_v53 }

// kernel: _lambda_.86
= control target key start
LH: loop header
LB: loop body
LE: loop exit
PB: predicated region body
PF: predicated region fallthrough
CT: control target
= control target key end

     0   :  { %vm22_vm0 = vcmask 523264   ;;  %v363_v20 = vmov 0.0   ;;  %s488_s1 = inlined_call_operand.vmem [shape: bf16[256,64], index: 1, kind: input, shape index: {}]   ;;  %s489_s0 = inlined_call_operand.vmem [shape: bf16[32,256], index: 0, kind: input, shape index: {}]   ;;  %s490_s2 = inlined_call_operand.vmem [shape: f32[1,64], index: 2, kind: input, shape index: {}]   ;;  %s491_s3 = inlined_call_operand.vmem [shape: f32[32,64], index: 3, kind: input, shape index: {}]   ;;  %s492_s4 = inlined_call_operand.vmem [shape: f32[32,64], index: 4, kind: output, shape index: {}]  }
   0x1   :  { %v341_v0 = vld [vmem:[%s488_s1 + $0x40] sm:$0xff]   ;;  %v343_v2 = vld [vmem:[%s488_s1 + $0x48] sm:$0xff]   ;;  %v345_v4 = vld [vmem:[%s488_s1 + $0x50] sm:$0xff]   ;;  %23 = vst.msk [vmem:[#allocation2] sm:$0xff] %vm22_vm0, %v363_v20 }
   0x2   :  { %v342_v1 = vld [vmem:[%s488_s1] sm:$0xff]   ;;  %296 = vmatprep.subr.bf16.mxu0 %v341_v0  ;;  %324 = vmatprep.subr.bf16.mxu1 %v341_v0  ;;  %v344_v3 = vld [vmem:[%s488_s1 + $0x8] sm:$0xff]   ;;  %v346_v5 = vld [vmem:[%s488_s1 + $0x10] sm:$0xff]   ;;  %24 = vst.msk [vmem:[#allocation2 + $0x8] sm:$0xff] %vm22_vm0, %v363_v20 }
   0x3   :  { %297 = vmatpush3.bf16.msra.mxu0 %v342_v1  ;;  %332 = vmatpush3.bf16.msra.mxu1 %v342_v1  ;;  %v347_v6 = vld [vmem:[%s488_s1 + $0x58] sm:$0xff]   ;;  %v349_v8 = vld [vmem:[%s488_s1 + $0x60] sm:$0xff]   ;;  %v351_v10 = vld [vmem:[%s488_s1 + $0x68] sm:$0xff]   ;;  %25 = vst.msk [vmem:[#allocation2 + $0x10] sm:$0xff] %vm22_vm0, %v363_v20 }
   0x4   :  { %298 = vmatprep.subr.bf16.mxu0 %v343_v2  ;;  %325 = vmatprep.subr.bf16.mxu1 %v343_v2  ;;  %v348_v7 = vld [vmem:[%s488_s1 + $0x18] sm:$0xff]   ;;  %v350_v9 = vld [vmem:[%s488_s1 + $0x20] sm:$0xff]   ;;  %v352_v13 = vld [vmem:[%s488_s1 + $0x28] sm:$0xff]   ;;  %26 = vst.msk [vmem:[#allocation2 + $0x18] sm:$0xff] %vm22_vm0, %v363_v20 }
   0x5   :  { %v359_v11 = vld [vmem:[%s489_s0 + $0x4] ss:$8 sps:$4 sm:$0xff]   ;;  %v362_v12 = vld [vmem:[%s489_s0 + $0x14] ss:$8 sps:$4 sm:$0xff]   ;;  %v357_v18 = vld [vmem:[%s489_s0] ss:$8 sps:$4 sm:$0xff]  }
   0x6   :  { %v353_v14 = vld [vmem:[%s488_s1 + $0x70] sm:$0xff]   ;;  %215 = vmatprep.mubr.bf16.mxu0 %v359_v11  ;;  %223 = vmatprep.mubr.bf16.mxu1 %v362_v12  ;;  %v355_v16 = vld [vmem:[%s488_s1 + $0x78] sm:$0xff]   ;;  %v295_v41 = vld [vmem:[%s490_s2] ss:$0 sm:$0xff] }
   0x7   :  { %299 = vmatpush3.bf16.msra.mxu0 %v344_v3  ;;  %333 = vmatpush3.bf16.msra.mxu1 %v344_v3  ;;  %v354_v15 = vld [vmem:[%s488_s1 + $0x30] sm:$0xff]   ;;  %v356_v17 = vld [vmem:[%s488_s1 + $0x38] sm:$0xff]   ;;  %v259_v42 = vld [vmem:[%s491_s3] sm:$0xff] }
   0x8   :  { %300 = vmatprep.subr.bf16.mxu0 %v345_v4  ;;  %326 = vmatprep.subr.bf16.mxu1 %v345_v4  ;;  %v360_v19 = vld [vmem:[%s489_s0 + $0x10] ss:$8 sps:$4 sm:$0xff]   ;;  %v27_v23 = vld [vmem:[#allocation2] sm:$0xff]  ;;  %v260_v48 = vld [vmem:[%s491_s3 + $0x8] sm:$0xff] }
   0x9   :  { %v28_v31 = vld [vmem:[#allocation2 + $0x8] sm:$0xff]  ;;  %v261_v45 = vld [vmem:[%s491_s3 + $0x10] sm:$0xff]  ;;  %v262_v51 = vld [vmem:[%s491_s3 + $0x18] sm:$0xff] }
   0xa   :  { %v29_v25 = vld [vmem:[#allocation2 + $0x10] sm:$0xff] }
   0xb   :  { %301 = vmatpush3.bf16.msra.mxu0 %v346_v5  ;;  %334 = vmatpush3.bf16.msra.mxu1 %v346_v5  ;;  %v30_v33 = vld [vmem:[#allocation2 + $0x18] sm:$0xff] }
   0xc   :  { %302 = vmatprep.subr.bf16.mxu0 %v347_v6  ;;  %327 = vmatprep.subr.bf16.mxu1 %v347_v6 }
   0xf   :  { %303 = vmatpush3.bf16.msra.mxu0 %v348_v7  ;;  %335 = vmatpush3.bf16.msra.mxu1 %v348_v7 }
  0x10   :  { %304 = vmatprep.subr.bf16.mxu0 %v349_v8  ;;  %328 = vmatprep.subr.bf16.mxu1 %v349_v8 }
  0x13   :  { %305 = vmatpush3.bf16.msra.mxu0 %v350_v9  ;;  %336 = vmatpush3.bf16.msra.mxu1 %v350_v9 }
  0x14   :  { %306 = vmatprep.subr.bf16.mxu0 %v351_v10  ;;  %329 = vmatprep.subr.bf16.mxu1 %v351_v10 }
  0x17   :  { %307 = vmatpush3.bf16.msra.mxu0 %v352_v13  ;;  %337 = vmatpush3.bf16.msra.mxu1 %v352_v13 }
  0x18   :  { %308 = vmatprep.subr.bf16.mxu0 %v353_v14  ;;  %330 = vmatprep.subr.bf16.mxu1 %v353_v14 }
  0x1b   :  { %309 = vmatpush3.bf16.msra.mxu0 %v354_v15  ;;  %338 = vmatpush3.bf16.msra.mxu1 %v354_v15 }
  0x1c   :  { %310 = vmatprep.subr.bf16.mxu0 %v355_v16  ;;  %331 = vmatprep.subr.bf16.mxu1 %v355_v16 }
  0x1f   :  { %311 = vmatpush3.bf16.msra.mxu0 %v356_v17  ;;  %339 = vmatpush3.bf16.msra.mxu1 %v356_v17 }
  0x22   :  { %216 = vmatmul.mubr.bf16.vlgmr.msra.gmra.mrb[0].mxu0 %v357_v18  ;;  %224 = vmatmul.mubr.bf16.vlgmr.msra.gmra.mrb[0].mxu1 %v360_v19 }
  0xf5   :  { %v312_v21 = vpop.f32.mrb[0].mxu0  ;;  %v318_v22 = vpop.f32.mrb[0].mxu1 }
  0xf6   :  { %v313_v24 = vpop.f32.mrb[1].mxu0  ;;  %v319_v26 = vpop.f32.mrb[1].mxu1 }
  0xf7   :  { %v314_v27 = vadd.f32 %v313_v24, %v312_v21  ;;  %v320_v28 = vadd.f32 %v319_v26, %v318_v22  ;;  %v315_v29 = vpop.f32.mrb[2].mxu0  ;;  %v321_v30 = vpop.f32.mrb[2].mxu1 }
  0xf8   :  { %v316_v32 = vpop.f32.mrb[3].mxu0  ;;  %v322_v34 = vpop.f32.mrb[3].mxu1 }
  0xf9   :  { %v232_v35 = vadd.f32 %v314_v27, %v27_v23  ;;  %v234_v36 = vadd.f32 %v320_v28, %v29_v25  ;;  %v317_v37 = vadd.f32 %v316_v32, %v315_v29  ;;  %v323_v38 = vadd.f32 %v322_v34, %v321_v30 }
  0xfb   :  { %237 = vst.msk [vmem:[#allocation2] sm:$0xff] %vm22_vm0, %v232_v35  ;;  %239 = vst.msk [vmem:[#allocation2 + $0x10] sm:$0xff] %vm22_vm0, %v234_v36  ;;  %v233_v39 = vadd.f32 %v317_v37, %v28_v31  ;;  %v235_v40 = vadd.f32 %v323_v38, %v30_v33 }
  0xfd   :  { %238 = vst.msk [vmem:[#allocation2 + $0x8] sm:$0xff] %vm22_vm0, %v233_v39  ;;  %240 = vst.msk [vmem:[#allocation2 + $0x18] sm:$0xff] %vm22_vm0, %v235_v40 }
 0x102   :  { %v244_v43 = vld [vmem:[#allocation2] sm:$0xff]  ;;  %v246_v44 = vld [vmem:[#allocation2 + $0x10] sm:$0xff] }
 0x103   :  { %v255_v46 = vadd.f32 %v295_v41, %v244_v43  ;;  %v257_v47 = vadd.f32 %v295_v41, %v246_v44 }
 0x104   :  { %v245_v49 = vld [vmem:[#allocation2 + $0x8] sm:$0xff]  ;;  %v247_v50 = vld [vmem:[#allocation2 + $0x18] sm:$0xff] }
 0x105   :  { %v263_v52 = vadd.f32 %v259_v42, %v255_v46  ;;  %v265_v53 = vadd.f32 %v261_v45, %v257_v47  ;;  %v256_v54 = vadd.f32 %v295_v41, %v245_v49  ;;  %v258_v55 = vadd.f32 %v295_v41, %v247_v50 }
 0x107   :  { %267 = vst.msk [vmem:[%s492_s4] sm:$0xff] %vm22_vm0, %v263_v52  ;;  %269 = vst.msk [vmem:[%s492_s4 + $0x10] sm:$0xff] %vm22_vm0, %v265_v53  ;;  %v264_v56 = vadd.f32 %v260_v48, %v256_v54  ;;  %v266_v57 = vadd.f32 %v262_v51, %v258_v55 }
 0x109   :  { %268 = vst.msk [vmem:[%s492_s4 + $0x8] sm:$0xff] %vm22_vm0, %v264_v56  ;;  %270 = vst.msk [vmem:[%s492_s4 + $0x18] sm:$0xff] %vm22_vm0, %v266_v57 }

// kernel: _lambda_.108
= control target key start
LH: loop header
LB: loop body
LE: loop exit
PB: predicated region body
PF: predicated region fallthrough
CT: control target
= control target key end

     0   :  { %s352_s1 = inlined_call_operand.vmem [shape: bf16[256,128], index: 1, kind: input, shape index: {}]   ;;  %s353_s0 = inlined_call_operand.vmem [shape: bf16[8,256], index: 0, kind: input, shape index: {}]   ;;  %s354_s2 = inlined_call_operand.vmem [shape: f32[1,128], index: 2, kind: input, shape index: {}]   ;;  %s355_s3 = inlined_call_operand.vmem [shape: f32[8,128], index: 3, kind: output, shape index: {}]  }
   0x1   :  { %v257_v0 = vld [vmem:[%s352_s1 + $0x40] sm:$0xff]   ;;  %v259_v2 = vld [vmem:[%s352_s1 + $0x48] sm:$0xff]   ;;  %v261_v4 = vld [vmem:[%s352_s1 + $0x50] sm:$0xff]  }
   0x2   :  { %v258_v1 = vld [vmem:[%s352_s1] sm:$0xff]   ;;  %235 = vmatprep.subr.bf16.mxu0 %v257_v0  ;;  %v260_v3 = vld [vmem:[%s352_s1 + $0x8] sm:$0xff]   ;;  %v262_v5 = vld [vmem:[%s352_s1 + $0x10] sm:$0xff]  }
   0x3   :  { %236 = vmatpush3.bf16.msra.mxu0 %v258_v1  ;;  %v263_v6 = vld [vmem:[%s352_s1 + $0x58] sm:$0xff]   ;;  %v265_v8 = vld [vmem:[%s352_s1 + $0x60] sm:$0xff]   ;;  %v267_v10 = vld [vmem:[%s352_s1 + $0x68] sm:$0xff]  }
   0x4   :  { %237 = vmatprep.subr.bf16.mxu0 %v259_v2  ;;  %v264_v7 = vld [vmem:[%s352_s1 + $0x18] sm:$0xff]   ;;  %v266_v9 = vld [vmem:[%s352_s1 + $0x20] sm:$0xff]   ;;  %v268_v13 = vld [vmem:[%s352_s1 + $0x28] sm:$0xff]  }
   0x5   :  { %v21_v11 = vld [vmem:[%s353_s0] sm:$0xff]  ;;  %v269_v14 = vld [vmem:[%s352_s1 + $0x70] sm:$0xff]   ;;  %v271_v16 = vld [vmem:[%s352_s1 + $0x78] sm:$0xff]  }
   0x6   :  { %v217_v12 = vcombine.high %v21_v11, %v21_v11  ;;  %v270_v15 = vld [vmem:[%s352_s1 + $0x30] sm:$0xff]   ;;  %v272_v17 = vld [vmem:[%s352_s1 + $0x38] sm:$0xff]   ;;  %v216_v18 = vcombine.low %v21_v11, %v21_v11  ;;  %v234_v21 = vld [vmem:[%s354_s2] ss:$0 sm:$0xff] }
   0x7   :  { %238 = vmatpush3.bf16.msra.mxu0 %v260_v3 }
   0x8   :  { %239 = vmatprep.subr.bf16.mxu0 %v261_v4  ;;  %189 = vmatprep.mubr.bf16.mxu0 %v217_v12 }
   0xb   :  { %240 = vmatpush3.bf16.msra.mxu0 %v262_v5 }
   0xc   :  { %241 = vmatprep.subr.bf16.mxu0 %v263_v6 }
   0xf   :  { %242 = vmatpush3.bf16.msra.mxu0 %v264_v7 }
  0x10   :  { %243 = vmatprep.subr.bf16.mxu0 %v265_v8 }
  0x13   :  { %244 = vmatpush3.bf16.msra.mxu0 %v266_v9 }
  0x14   :  { %245 = vmatprep.subr.bf16.mxu0 %v267_v10 }
  0x17   :  { %246 = vmatpush3.bf16.msra.mxu0 %v268_v13 }
  0x18   :  { %247 = vmatprep.subr.bf16.mxu0 %v269_v14 }
  0x1b   :  { %248 = vmatpush3.bf16.msra.mxu0 %v270_v15 }
  0x1c   :  { %249 = vmatprep.subr.bf16.mxu0 %v271_v16 }
  0x1f   :  { %250 = vmatpush3.bf16.msra.mxu0 %v272_v17 }
  0x22   :  { %190 = vmatmul.mubr.bf16.vlgmr.msra.gmra.mrb[0].mxu0 %v216_v18 }
  0xf5   :  { %v251_v19 = vpop.f32.mrb[0].mxu0 }
  0xf6   :  { %v252_v20 = vpop.f32.mrb[1].mxu0 }
  0xf7   :  { %v253_v22 = vadd.f32 %v252_v20, %v251_v19  ;;  %v254_v23 = vpop.f32.mrb[2].mxu0 }
  0xf8   :  { %v255_v24 = vpop.f32.mrb[3].mxu0 }
  0xf9   :  { %v210_v25 = vadd.f32 %v253_v22, %v234_v21 }
  0xfb   :  { %211 = vst [vmem:[%s355_s3] sm:$0xff] %v210_v25 }

// kernel: _lambda_.109
= control target key start
LH: loop header
LB: loop body
LE: loop exit
PB: predicated region body
PF: predicated region fallthrough
CT: control target
= control target key end

     0   :  { %v410_v0 = vmov 0.0   ;;  %vm411_vm0 = vmmov 0   ;;  %v412_v3 = vmov 0   ;;  %v281_v27 = vlaneseq  ;;  %s517_s1 = inlined_call_operand.vmem [shape: bf16[128,384], index: 1, kind: input, shape index: {}]   ;;  %s518_s0 = inlined_call_operand.vmem [shape: bf16[8,128], index: 0, kind: input, shape index: {}]   ;;  %s519_s2 = inlined_call_operand.vmem [shape: f32[1,384], index: 2, kind: input, shape index: {}]   ;;  %s520_s3 = inlined_call_operand.vmem [shape: bf16[8,384], index: 3, kind: output, shape index: {}]  }
   0x1   :  { %355 = vmatprep.subr.bf16.mxu1 %v410_v0  ;;  %v378_v1 = vld [vmem:[%s517_s1 + $0x4] ss:$12 sps:$4 sm:$0xff]   ;;  %371 = vmatprep.mubr.msk.bf16.mxu1 %vm411_vm0, %v410_v0  ;;  %v380_v2 = vld [vmem:[%s517_s1 + $0x8] ss:$12 sps:$4 sm:$0xff]   ;;  %v381_v4 = vld [vmem:[%s517_s1] ss:$12 sps:$4 sm:$0xff]  }
   0x2   :  { %218 = vmatprep.mubr.bf16.mxu0 %v412_v3  ;;  %186 = vmatprep.subr.bf16.mxu0 %v378_v1  ;;  %v382_v5 = vld [vmem:[%s517_s1 + $0x1c] ss:$12 sps:$4 sm:$0xff]   ;;  %v384_v6 = vld [vmem:[%s517_s1 + $0x20] ss:$12 sps:$4 sm:$0xff]   ;;  %v385_v7 = vld [vmem:[%s517_s1 + $0x18] ss:$12 sps:$4 sm:$0xff]  }
   0x3   :  { %356 = vmatpush3.bf16.msra.mxu1 %v380_v2  ;;  %187 = vmatpush1.bf16.msra.mxu0 %v381_v4  ;;  %v386_v8 = vld [vmem:[%s517_s1 + $0x34] ss:$12 sps:$4 sm:$0xff]   ;;  %v388_v9 = vld [vmem:[%s517_s1 + $0x38] ss:$12 sps:$4 sm:$0xff]   ;;  %v389_v10 = vld [vmem:[%s517_s1 + $0x30] ss:$12 sps:$4 sm:$0xff]  }
   0x4   :  { %357 = vmatprep.subr.bf16.mxu1 %v410_v0  ;;  %188 = vmatprep.subr.bf16.mxu0 %v382_v5  ;;  %v390_v11 = vld [vmem:[%s517_s1 + $0x4c] ss:$12 sps:$4 sm:$0xff]   ;;  %v392_v12 = vld [vmem:[%s517_s1 + $0x50] ss:$12 sps:$4 sm:$0xff]   ;;  %v393_v13 = vld [vmem:[%s517_s1 + $0x48] ss:$12 sps:$4 sm:$0xff]  }
   0x5   :  { %v394_v14 = vld [vmem:[%s517_s1 + $0x64] ss:$12 sps:$4 sm:$0xff]   ;;  %v396_v15 = vld [vmem:[%s517_s1 + $0x68] ss:$12 sps:$4 sm:$0xff]   ;;  %v397_v16 = vld [vmem:[%s517_s1 + $0x60] ss:$12 sps:$4 sm:$0xff]  }
   0x6   :  { %v398_v17 = vld [vmem:[%s517_s1 + $0x7c] ss:$12 sps:$4 sm:$0xff]   ;;  %v400_v18 = vld [vmem:[%s517_s1 + $0x80] ss:$12 sps:$4 sm:$0xff]   ;;  %v401_v19 = vld [vmem:[%s517_s1 + $0x78] ss:$12 sps:$4 sm:$0xff]  }
   0x7   :  { %358 = vmatpush3.bf16.msra.mxu1 %v384_v6  ;;  %189 = vmatpush1.bf16.msra.mxu0 %v385_v7  ;;  %v402_v20 = vld [vmem:[%s517_s1 + $0x94] ss:$12 sps:$4 sm:$0xff]   ;;  %v404_v21 = vld [vmem:[%s517_s1 + $0x98] ss:$12 sps:$4 sm:$0xff]   ;;  %v405_v22 = vld [vmem:[%s517_s1 + $0x90] ss:$12 sps:$4 sm:$0xff]  }
   0x8   :  { %359 = vmatprep.subr.bf16.mxu1 %v410_v0  ;;  %190 = vmatprep.subr.bf16.mxu0 %v386_v8  ;;  %v406_v23 = vld [vmem:[%s517_s1 + $0xac] ss:$12 sps:$4 sm:$0xff]   ;;  %v408_v24 = vld [vmem:[%s517_s1 + $0xb0] ss:$12 sps:$4 sm:$0xff]   ;;  %v409_v25 = vld [vmem:[%s517_s1 + $0xa8] ss:$12 sps:$4 sm:$0xff]  }
   0x9   :  { %v25_v26 = vld [vmem:[%s518_s0] sm:$0xf]  ;;  %v282_v28 = vshrl.u32 %v281_v27, 7 }
   0xa   :  { %v279_v30 = vld [vmem:[%s519_s2] sm:$0x7] }
   0xb   :  { %360 = vmatpush3.bf16.msra.mxu1 %v388_v9  ;;  %191 = vmatpush1.bf16.msra.mxu0 %v389_v10  ;;  %v291_v29 = vsub.s32 2, %v282_v28  ;;  %v283_v31 = vsub.s32 0, %v282_v28  ;;  %v287_v32 = vsub.s32 1, %v282_v28 }
   0xc   :  { %361 = vmatprep.subr.bf16.mxu1 %v410_v0  ;;  %192 = vmatprep.subr.bf16.mxu0 %v390_v11 }
   0xd   :  { %v292_v33 = vrot.slane %v279_v30, %v291_v29  ;;  %v284_v34 = vrot.slane %v279_v30, %v283_v31  ;;  %v288_v35 = vrot.slane %v279_v30, %v287_v32 }
   0xf   :  { %362 = vmatpush3.bf16.msra.mxu1 %v392_v12  ;;  %193 = vmatpush1.bf16.msra.mxu0 %v393_v13 }
  0x10   :  { %363 = vmatprep.subr.bf16.mxu1 %v410_v0  ;;  %194 = vmatprep.subr.bf16.mxu0 %v394_v14 }
  0x13   :  { %364 = vmatpush3.bf16.msra.mxu1 %v396_v15  ;;  %195 = vmatpush1.bf16.msra.mxu0 %v397_v16 }
  0x14   :  { %365 = vmatprep.subr.bf16.mxu1 %v410_v0  ;;  %196 = vmatprep.subr.bf16.mxu0 %v398_v17 }
  0x17   :  { %366 = vmatpush3.bf16.msra.mxu1 %v400_v18  ;;  %197 = vmatpush1.bf16.msra.mxu0 %v401_v19 }
  0x18   :  { %367 = vmatprep.subr.bf16.mxu1 %v410_v0  ;;  %198 = vmatprep.subr.bf16.mxu0 %v402_v20 }
  0x1b   :  { %368 = vmatpush3.bf16.msra.mxu1 %v404_v21  ;;  %199 = vmatpush1.bf16.msra.mxu0 %v405_v22 }
  0x1c   :  { %369 = vmatprep.subr.bf16.mxu1 %v410_v0  ;;  %200 = vmatprep.subr.bf16.mxu0 %v406_v23 }
  0x1f   :  { %370 = vmatpush3.bf16.msra.mxu1 %v408_v24  ;;  %201 = vmatpush1.bf16.msra.mxu0 %v409_v25 }
  0x22   :  { %372 = vmatmul.mubr.bf16.vlgmr.msra.gmra.mrb[0].mxu1 %v25_v26  ;;  %219 = vmatmul.mubr.bf16.vlgmr.msra.gmra.mrb[0].mxu0 %v25_v26 }
  0xf5   :  { %v261_v36 = vpop.f32.mrb[0].mxu1  ;;  %v220_v38 = vpop.f32.mrb[0].mxu0 }
  0xf6   :  { %v298_v37 = vadd.f32 %v292_v33, %v261_v36  ;;  %v373_v39 = vpop.f32.mrb[1].mxu1  ;;  %v296_v40 = vadd.f32 %v284_v34, %v220_v38  ;;  %v222_v41 = vpop.f32.mrb[1].mxu0 }
  0xf7   :  { %v264_v42 = vpop.f32.mrb[2].mxu1  ;;  %v297_v44 = vadd.f32 %v288_v35, %v222_v41  ;;  %v224_v45 = vpop.f32.mrb[2].mxu0 }
  0xf8   :  { %v345_v43 = vpack.c.bf16 %v298_v37, %v298_v37  ;;  %v374_v46 = vpop.f32.mrb[3].mxu1  ;;  %v225_v47 = vpop.f32.mrb[3].mxu0 }
  0xf9   :  { %v344_v48 = vpack.c.bf16 %v297_v44, %v296_v40 }
  0xfa   :  { %313 = vst [vmem:[%s520_s3 + $0x8] sm:$0xf] %v345_v43 }
  0xfb   :  { %312 = vst [vmem:[%s520_s3] sm:$0xff] %v344_v48 }

// kernel: _lambda_.110
= control target key start
LH: loop header
LB: loop body
LE: loop exit
PB: predicated region body
PF: predicated region fallthrough
CT: control target
= control target key end

     0   :  { %s831_s15 = smov 0   ;;  %s833_s16 = smov 0   ;;  %s888_s0 = inlined_call_operand.vmem [shape: bf16[4,2,4,32], index: 0, kind: input, shape index: {}]   ;;  %s889_s1 = inlined_call_operand.vmem [shape: bf16[4,2,4,32], index: 1, kind: input, shape index: {}]   ;;  %s890_s2 = inlined_call_operand.vmem [shape: bf16[4,2,4,32], index: 2, kind: input, shape index: {}]   ;;  %s891_s3 = inlined_call_operand.vmem [shape: f32[4,4,4], index: 3, kind: input, shape index: {}]   ;;  %s892_s4 = inlined_call_operand.vmem [shape: bf16[4,2,4,32], index: 4, kind: output, shape index: {}]  }
   0x1   :  { %s835_s17 = smov 0  }
   0x2 LB: > { %s26_s18 = sadd.s32 1, %s798_s16  ;;  %p694_p0 = scmp.ge.s32.totalorder %s802_s17, 1  ;;  %s802_s17 = sphi %s835_s17, %s14_s17   ;;  %s798_s16 = sphi %s833_s16, %s894_s16   ;;  %s794_s15 = sphi %s831_s15, %s893_s15  }
   0x3   : > { %p28_p1 = scmp.ge.s32.totalorder %s26_s18, 4  ;;  %p226_p2 = scmp.lt.s32.totalorder %s802_s17, 5 }
   0x5   : > { %s896_s18 = smov (%p28_p1, %s26_s18), 0  ;;  %p227_p3 = pnand %p694_p0, %p226_p2 }
   0x6   : > { %p283_p4 = scmp.lt.s32.totalorder (!%p227_p3), %s794_s15, 3  ;;  %v804_v0 = vmov (!%p227_p3), 0.0   ;;  %vm805_vm0 = vmmov (!%p227_p3), 0   ;;  %vm333_vm1 = vcmask (!%p227_p3), 261120   ;;  %vm431_vm2 = vcmask (!%p227_p3), 27648  }
   0x7   : > { %230 = sbr.rel (%p227_p3) target bundleno = 777 (0x309), region = 36  ;;  %722 = vmatprep.subr.bf16.mxu0 (!%p227_p3), %v804_v0  ;;  %728 = vmatprep.subr.bf16.mxu1 (!%p227_p3), %v804_v0  ;;  %vm460_vm3 = vcmask (!%p227_p3), 1041408   ;;  %vm456_vm4 = vcmask (!%p227_p3), 31744   ;;  %vm552_vm5 = vcmask (!%p227_p3), 254976  }
   0x8   : > { %724 = vmatprep.mubr.msk.bf16.mxu0 (!%p227_p3), %vm805_vm0, %v804_v0  ;;  %730 = vmatprep.mubr.msk.bf16.mxu1 (!%p227_p3), %vm805_vm0, %v804_v0 }
   0xe   : > { %s898_s15 = smov (!%p283_p4, %s794_s15), 3 }
   0xf   : > { %s851_s19 = sshll.u32 %s898_s15, 2 }
  0x10   : > { %s300_s22 = scalar_lea.vmem %s889_s1, %s851_s19  ;;  %s290_s25 = scalar_lea.vmem %s888_s0, %s851_s19 }
  0x11   : > { %v329_v1 = vld [vmem:[%s300_s22] sm:$0x3]  ;;  %v330_v2 = vld [vmem:[%s300_s22 + $0x2] sm:$0x3]  ;;  %s315_s28 = scalar_lea.vmem %s891_s3, %s851_s19  ;;  %s310_s5 = scalar_lea.vmem %s890_s2, %s851_s19 }
  0x12   : > { %v338_v3 = vsel %vm333_vm1, %v329_v1, 0  ;;  %v384_v4 = vsel %vm333_vm1, %v330_v2, 0  ;;  %v327_v5 = vld [vmem:[%s290_s25] sm:$0x3]  ;;  %v328_v6 = vld [vmem:[%s290_s25 + $0x2] sm:$0x3]  ;;  %s324_s8 = scalar_lea.vmem %s892_s4, %s851_s19 }
  0x13   : > { %723 = vmatpush3.bf16.xpose.msra.mxu0 %v338_v3  ;;  %729 = vmatpush3.bf16.xpose.msra.mxu1 %v384_v4  ;;  %v428_v9 = vld [vmem:[%s315_s28] sm:$0xf] }
  0x14   : > { %734 = vmatprep.subr.bf16.mxu0 %v804_v0  ;;  %740 = vmatprep.subr.bf16.mxu1 %v804_v0  ;;  %v331_v32 = vld [vmem:[%s310_s5] sm:$0x3]  ;;  %v332_v34 = vld [vmem:[%s310_s5 + $0x2] sm:$0x3] }
  0x15   : > { %v462_v33 = vsel %vm460_vm3, %v331_v32, 0  ;;  %v508_v35 = vsel %vm460_vm3, %v332_v34, 0 }
  0x1a   : > { %725 = vmatmul.mubr.msk.bf16.vlgmr.msra.gmra.mrb[0].mxu0 %vm333_vm1, %v327_v5  ;;  %731 = vmatmul.mubr.msk.bf16.vlgmr.msra.gmra.mrb[0].mxu1 %vm333_vm1, %v328_v6 }
  0x1b   : > { %736 = vmatprep.mubr.msk.bf16.mxu0 %vm805_vm0, %v804_v0  ;;  %742 = vmatprep.mubr.msk.bf16.mxu1 %vm805_vm0, %v804_v0 }
  0x1c   : > { %735 = vmatpush3.bf16.msra.mxu0 %v462_v33  ;;  %741 = vmatpush3.bf16.msra.mxu1 %v508_v35 }
  0xed   : > { %v374_v7 = vpop.f32.mrb[0].mxu0  ;;  %v420_v8 = vpop.f32.mrb[0].mxu1 }
  0xee   : > { %v426_v10 = vmul.f32 0.17677669, %v374_v7  ;;  %v726_v11 = vpop.f32.mrb[1].mxu0  ;;  %v427_v12 = vmul.f32 0.17677669, %v420_v8  ;;  %v732_v13 = vpop.f32.mrb[1].mxu1 }
  0xef   : > { %v377_v14 = vpop.f32.mrb[2].mxu0  ;;  %v423_v15 = vpop.f32.mrb[2].mxu1 }
  0xf0   : > { %v727_v16 = vpop.f32.mrb[3].mxu0  ;;  %v733_v17 = vpop.f32.mrb[3].mxu1  ;;  %v429_v18 = vadd.f32 %v428_v9, %v426_v10  ;;  %v430_v19 = vadd.f32 %v428_v9, %v427_v12 }
  0xf2   : > { %v432_v20 = vsel %vm431_vm2, %v429_v18, -inf  ;;  %v435_v21 = vsel %vm431_vm2, %v430_v19, -inf }
  0xf3   : > { %433 = vmax.xlane.f32.xlu0 %v432_v20 }
  0xf7   : > { %436 = vmax.xlane.f32.xlu0 %v435_v21 }
 0x180   : > { %v434_v22 = vpop.xlane.xlu0 %433 }
 0x181   : > { %v438_v23 = vsub.f32 %v429_v18, %v434_v22 }
 0x183   : > { %v440_v24 = vmul.f32 1.442695, %v438_v23 }
 0x184   : > { %v437_v25 = vpop.xlane.xlu0 %436 }
 0x185   : > { %772 = vpow2.f32 %v440_v24  ;;  %v439_v26 = vsub.f32 %v430_v19, %v437_v25 }
 0x187   : > { %v442_v27 = vmul.f32 1.442695, %v439_v26 }
 0x189   : > { %774 = vpow2.f32 %v442_v27 }
 0x18f   : > { %v773_v28 = vpop.eup %772 }
 0x190   : > { %v444_v29 = vsel %vm431_vm2, %v773_v28, 0.0 }
 0x191   : > { %445 = vadd.xlane.f32.xlu1 %v444_v29 }
 0x193   : > { %v775_v30 = vpop.eup %774 }
 0x194   : > { %v447_v31 = vsel %vm431_vm2, %v775_v30, 0.0 }
 0x195   : > { %448 = vadd.xlane.f32.xlu1 %v447_v31 }
 0x21e   : > { %v446_v36 = vpop.xlane.xlu1 %445 }
 0x21f   : > { %776 = vrcp.f32 %v446_v36 }
 0x222   : > { %v449_v37 = vpop.xlane.xlu1 %448 }
 0x223   : > { %778 = vrcp.f32 %v449_v37 }
 0x229   : > { %v777_v38 = vpop.eup %776 }
 0x22a   : > { %v452_v39 = vmul.f32 %v777_v38, %v773_v28 }
 0x22c   : > { %v454_v40 = vpack.c.bf16 %v452_v39, %v452_v39 }
 0x22d   : > { %v779_v41 = vpop.eup %778 }
 0x22e   : > { %v453_v42 = vmul.f32 %v779_v41, %v775_v30  ;;  %737 = vmatmul.mubr.msk.bf16.vlgmr.msra.gmra.mrb[4].mxu0 %vm456_vm4, %v454_v40 }
 0x230   : > { %v455_v43 = vpack.c.bf16 %v453_v42, %v453_v42 }
 0x232   : > { %743 = vmatmul.mubr.msk.bf16.vlgmr.msra.gmra.mrb[4].mxu1 %vm456_vm4, %v455_v43 }
 0x301   : > { %v498_v44 = vpop.f32.mrb[4].mxu0 }
 0x302   : > { %v550_v45 = vpack.c.bf16 %v498_v44, %v498_v44  ;;  %v738_v46 = vpop.f32.mrb[5].mxu0 }
 0x303   : > { %v501_v47 = vpop.f32.mrb[6].mxu0 }
 0x304   : > { %553 = vst.msk [vmem:[%s324_s8] sm:$0x3] %vm552_vm5, %v550_v45  ;;  %v739_v48 = vpop.f32.mrb[7].mxu0 }
 0x305   : > { %v544_v49 = vpop.f32.mrb[4].mxu1 }
 0x306   : > { %v551_v50 = vpack.c.bf16 %v544_v49, %v544_v49  ;;  %v744_v51 = vpop.f32.mrb[5].mxu1 }
 0x307   : > { %v547_v52 = vpop.f32.mrb[6].mxu1 }
 0x308   : > { %554 = vst.msk [vmem:[%s324_s8 + $0x2] sm:$0x3] %vm552_vm5, %v551_v50  ;;  %v745_v53 = vpop.f32.mrb[7].mxu1 }
 0x309 PF: > { %s14_s17 = sadd.s32 1, %s802_s17   ;;  %s893_s15 = smov %s798_s16 }
 0x30a   : > { %p11_p5 = scmp.ge.s32.totalorder %s14_s17, 6   ;;  %s894_s16 = smov %s896_s18 }
 0x30c   :  { %13 = sbr.rel (!%p11_p5) target bundleno = 2 (0x2), region = 75 }

// kernel: _lambda_.112
= control target key start
LH: loop header
LB: loop body
LE: loop exit
PB: predicated region body
PF: predicated region fallthrough
CT: control target
= control target key end

     0   :  { %s70_s0 = inlined_call_operand.vmem [shape: f32[8,128], index: 0, kind: input, shape index: {}]   ;;  %s71_s1 = inlined_call_operand.vmem [shape: f32[1,128], index: 1, kind: input, shape index: {}]   ;;  %s72_s2 = inlined_call_operand.vmem [shape: f32[1,128], index: 2, kind: input, shape index: {}]   ;;  %s73_s3 = inlined_call_operand.vmem [shape: f32[8,128], index: 3, kind: output, shape index: {}]  }
   0x1   :  { %v14_v0 = vld [vmem:[%s70_s0] sm:$0xff] }
   0x2   :  { %v36_v1 = vld [vmem:[%s71_s1] ss:$0 sm:$0xff] }
   0x3   :  { %v37_v2 = vld [vmem:[%s72_s2] ss:$0 sm:$0xff]  ;;  %v22_v3 = vmul.f32 %v36_v1, %v14_v0 }
   0x5   :  { %v30_v4 = vadd.f32 %v37_v2, %v22_v3 }
   0x7   :  { %31 = vst [vmem:[%s73_s3] sm:$0xff] %v30_v4 }

// kernel: _lambda_.111
= control target key start
LH: loop header
LB: loop body
LE: loop exit
PB: predicated region body
PF: predicated region fallthrough
CT: control target
= control target key end

     0   :  { %v198_v0 = vmov 0.0   ;;  %vm199_vm0 = vmmov 0   ;;  %s261_s1 = inlined_call_operand.vmem [shape: bf16[128,128], index: 1, kind: input, shape index: {}]   ;;  %s262_s0 = inlined_call_operand.vmem [shape: bf16[8,128], index: 0, kind: input, shape index: {}]   ;;  %s263_s2 = inlined_call_operand.vmem [shape: f32[1,128], index: 2, kind: input, shape index: {}]   ;;  %s264_s3 = inlined_call_operand.vmem [shape: f32[8,128], index: 3, kind: input, shape index: {}]   ;;  %s265_s4 = inlined_call_operand.vmem [shape: f32[8,128], index: 4, kind: output, shape index: {}]  }
   0x1   :  { %168 = vmatprep.subr.bf16.mxu0 %v198_v0  ;;  %v190_v1 = vld [vmem:[%s261_s1] sm:$0xff]   ;;  %184 = vmatprep.mubr.msk.bf16.mxu0 %vm199_vm0, %v198_v0  ;;  %v191_v2 = vld [vmem:[%s261_s1 + $0x8] sm:$0xff]   ;;  %v192_v3 = vld [vmem:[%s261_s1 + $0x10] sm:$0xff]  }
   0x2   :  { %169 = vmatpush3.bf16.msra.mxu0 %v190_v1  ;;  %v193_v4 = vld [vmem:[%s261_s1 + $0x18] sm:$0xff]   ;;  %v194_v5 = vld [vmem:[%s261_s1 + $0x20] sm:$0xff]   ;;  %v195_v6 = vld [vmem:[%s261_s1 + $0x28] sm:$0xff]  }
   0x3   :  { %170 = vmatprep.subr.bf16.mxu0 %v198_v0  ;;  %v196_v7 = vld [vmem:[%s261_s1 + $0x30] sm:$0xff]   ;;  %v197_v8 = vld [vmem:[%s261_s1 + $0x38] sm:$0xff]   ;;  %v24_v9 = vld [vmem:[%s262_s0] sm:$0xf] }
   0x4   :  { %v158_v10 = vld [vmem:[%s263_s2] ss:$0 sm:$0xff] }
   0x5   :  { %v143_v12 = vld [vmem:[%s264_s3] sm:$0xff] }
   0x6   :  { %171 = vmatpush3.bf16.msra.mxu0 %v191_v2 }
   0x7   :  { %172 = vmatprep.subr.bf16.mxu0 %v198_v0 }
   0xa   :  { %173 = vmatpush3.bf16.msra.mxu0 %v192_v3 }
   0xb   :  { %174 = vmatprep.subr.bf16.mxu0 %v198_v0 }
   0xe   :  { %175 = vmatpush3.bf16.msra.mxu0 %v193_v4 }
   0xf   :  { %176 = vmatprep.subr.bf16.mxu0 %v198_v0 }
  0x12   :  { %177 = vmatpush3.bf16.msra.mxu0 %v194_v5 }
  0x13   :  { %178 = vmatprep.subr.bf16.mxu0 %v198_v0 }
  0x16   :  { %179 = vmatpush3.bf16.msra.mxu0 %v195_v6 }
  0x17   :  { %180 = vmatprep.subr.bf16.mxu0 %v198_v0 }
  0x1a   :  { %181 = vmatpush3.bf16.msra.mxu0 %v196_v7 }
  0x1b   :  { %182 = vmatprep.subr.bf16.mxu0 %v198_v0 }
  0x1e   :  { %183 = vmatpush3.bf16.msra.mxu0 %v197_v8 }
  0x21   :  { %185 = vmatmul.mubr.bf16.vlgmr.msra.gmra.mrb[0].mxu0 %v24_v9 }
  0xf4   :  { %v123_v11 = vpop.f32.mrb[0].mxu0 }
  0xf5   :  { %v142_v13 = vadd.f32 %v158_v10, %v123_v11  ;;  %v186_v14 = vpop.f32.mrb[1].mxu0 }
  0xf6   :  { %v126_v15 = vpop.f32.mrb[2].mxu0 }
  0xf7   :  { %v144_v16 = vadd.f32 %v143_v12, %v142_v13  ;;  %v187_v17 = vpop.f32.mrb[3].mxu0 }
  0xf9   :  { %145 = vst [vmem:[%s265_s4] sm:$0xff] %v144_v16 }

// kernel: _lambda_.113
= control target key start
LH: loop header
LB: loop body
LE: loop exit
PB: predicated region body
PF: predicated region fallthrough
CT: control target
= control target key end

     0   :  { %s126_s0 = inlined_call_operand.vmem [shape: f32[4,8,128], index: 0, kind: input, shape index: {}]   ;;  %s127_s1 = inlined_call_operand.vmem [shape: f32[4,1,128], index: 1, kind: input, shape index: {}]   ;;  %s128_s2 = inlined_call_operand.vmem [shape: f32[8,128], index: 2, kind: input, shape index: {}]   ;;  %s129_s3 = inlined_call_operand.vmem [shape: f32[8,128], index: 3, kind: output, shape index: {}]  }
   0x1   :  { %v14_v0 = vld [vmem:[%s128_s2] sm:$0xff]  ;;  %v67_v4 = vld [vmem:[%s126_s0 + $0x8] sm:$0xff]  ;;  %v70_v6 = vld [vmem:[%s126_s0 + $0x10] sm:$0xff] }
   0x2   :  { %v15_v1 = vld [vmem:[%s126_s0] sm:$0xff]  ;;  %v73_v9 = vld [vmem:[%s126_s0 + $0x18] sm:$0xff] }
   0x3   :  { %v66_v2 = vld [vmem:[%s127_s1] ss:$0 sm:$0xff]  ;;  %v69_v5 = vld [vmem:[%s127_s1 + $0x1] ss:$0 sm:$0xff]  ;;  %v72_v8 = vld [vmem:[%s127_s1 + $0x2] ss:$0 sm:$0xff] }
   0x4   :  { %v23_v3 = vmul.f32 %v66_v2, %v15_v1  ;;  %v35_v7 = vmul.f32 %v69_v5, %v67_v4  ;;  %v75_v10 = vld [vmem:[%s127_s1 + $0x3] ss:$0 sm:$0xff]  ;;  %v47_v12 = vmul.f32 %v72_v8, %v70_v6 }
   0x5   :  { %v59_v14 = vmul.f32 %v75_v10, %v73_v9 }
   0x6   :  { %v24_v11 = vadd.f32 %v23_v3, %v14_v0 }
   0x8   :  { %v36_v13 = vadd.f32 %v35_v7, %v24_v11 }
   0xa   :  { %v48_v15 = vadd.f32 %v47_v12, %v36_v13 }
   0xc   :  { %v60_v16 = vadd.f32 %v59_v14, %v48_v15 }
   0xe   :  { %61 = vst [vmem:[%s129_s3] sm:$0xff] %v60_v16 }

// kernel: _lambda_.114
= control target key start
LH: loop header
LB: loop body
LE: loop exit
PB: predicated region body
PF: predicated region fallthrough
CT: control target
= control target key end

     0   :  { %v458_v1 = vmov 0   ;;  %v319_v34 = vlaneseq  ;;  %s587_s1 = inlined_call_operand.vmem [shape: bf16[128,512], index: 1, kind: input, shape index: {}]   ;;  %s588_s0 = inlined_call_operand.vmem [shape: bf16[8,128], index: 0, kind: input, shape index: {}]   ;;  %s589_s2 = inlined_call_operand.vmem [shape: f32[1,512], index: 2, kind: input, shape index: {}]   ;;  %s590_s3 = inlined_call_operand.vmem [shape: bf16[8,512], index: 3, kind: output, shape index: {}]  }
   0x1   :  { %v410_v0 = vld [vmem:[%s587_s1 + $0x4] ss:$16 sps:$4 sm:$0xff]   ;;  %252 = vmatprep.mubr.bf16.mxu0 %v458_v1  ;;  %293 = vmatprep.mubr.bf16.mxu1 %v458_v1  ;;  %v412_v2 = vld [vmem:[%s587_s1 + $0xc] ss:$16 sps:$4 sm:$0xff]   ;;  %v414_v3 = vld [vmem:[%s587_s1] ss:$16 sps:$4 sm:$0xff]  }
   0x2   :  { %220 = vmatprep.subr.bf16.mxu0 %v410_v0  ;;  %v415_v4 = vld [vmem:[%s587_s1 + $0x8] ss:$16 sps:$4 sm:$0xff]   ;;  %261 = vmatprep.subr.bf16.mxu1 %v412_v2  ;;  %v416_v5 = vld [vmem:[%s587_s1 + $0x24] ss:$16 sps:$4 sm:$0xff]   ;;  %v418_v6 = vld [vmem:[%s587_s1 + $0x2c] ss:$16 sps:$4 sm:$0xff]  }
   0x3   :  { %221 = vmatpush1.bf16.msra.mxu0 %v414_v3  ;;  %262 = vmatpush1.bf16.msra.mxu1 %v415_v4  ;;  %v420_v7 = vld [vmem:[%s587_s1 + $0x20] ss:$16 sps:$4 sm:$0xff]   ;;  %v421_v8 = vld [vmem:[%s587_s1 + $0x28] ss:$16 sps:$4 sm:$0xff]   ;;  %v422_v9 = vld [vmem:[%s587_s1 + $0x44] ss:$16 sps:$4 sm:$0xff]  }
   0x4   :  { %222 = vmatprep.subr.bf16.mxu0 %v416_v5  ;;  %263 = vmatprep.subr.bf16.mxu1 %v418_v6  ;;  %v424_v10 = vld [vmem:[%s587_s1 + $0x4c] ss:$16 sps:$4 sm:$0xff]   ;;  %v426_v11 = vld [vmem:[%s587_s1 + $0x40] ss:$16 sps:$4 sm:$0xff]   ;;  %v427_v12 = vld [vmem:[%s587_s1 + $0x48] ss:$16 sps:$4 sm:$0xff]  }
   0x5   :  { %v428_v13 = vld [vmem:[%s587_s1 + $0x64] ss:$16 sps:$4 sm:$0xff]   ;;  %v430_v14 = vld [vmem:[%s587_s1 + $0x6c] ss:$16 sps:$4 sm:$0xff]   ;;  %v432_v15 = vld [vmem:[%s587_s1 + $0x60] ss:$16 sps:$4 sm:$0xff]  }
   0x6   :  { %v433_v16 = vld [vmem:[%s587_s1 + $0x68] ss:$16 sps:$4 sm:$0xff]   ;;  %v434_v17 = vld [vmem:[%s587_s1 + $0x84] ss:$16 sps:$4 sm:$0xff]   ;;  %v436_v18 = vld [vmem:[%s587_s1 + $0x8c] ss:$16 sps:$4 sm:$0xff]  }
   0x7   :  { %223 = vmatpush1.bf16.msra.mxu0 %v420_v7  ;;  %264 = vmatpush1.bf16.msra.mxu1 %v421_v8  ;;  %v438_v19 = vld [vmem:[%s587_s1 + $0x80] ss:$16 sps:$4 sm:$0xff]   ;;  %v439_v20 = vld [vmem:[%s587_s1 + $0x88] ss:$16 sps:$4 sm:$0xff]   ;;  %v440_v21 = vld [vmem:[%s587_s1 + $0xa4] ss:$16 sps:$4 sm:$0xff]  }
   0x8   :  { %224 = vmatprep.subr.bf16.mxu0 %v422_v9  ;;  %265 = vmatprep.subr.bf16.mxu1 %v424_v10  ;;  %v442_v22 = vld [vmem:[%s587_s1 + $0xac] ss:$16 sps:$4 sm:$0xff]   ;;  %v444_v23 = vld [vmem:[%s587_s1 + $0xa0] ss:$16 sps:$4 sm:$0xff]   ;;  %v445_v24 = vld [vmem:[%s587_s1 + $0xa8] ss:$16 sps:$4 sm:$0xff]  }
   0x9   :  { %v446_v25 = vld [vmem:[%s587_s1 + $0xc4] ss:$16 sps:$4 sm:$0xff]   ;;  %v448_v26 = vld [vmem:[%s587_s1 + $0xcc] ss:$16 sps:$4 sm:$0xff]   ;;  %v450_v27 = vld [vmem:[%s587_s1 + $0xc0] ss:$16 sps:$4 sm:$0xff]  }
   0xa   :  { %v451_v28 = vld [vmem:[%s587_s1 + $0xc8] ss:$16 sps:$4 sm:$0xff]   ;;  %v452_v29 = vld [vmem:[%s587_s1 + $0xe4] ss:$16 sps:$4 sm:$0xff]   ;;  %v454_v30 = vld [vmem:[%s587_s1 + $0xec] ss:$16 sps:$4 sm:$0xff]  }
   0xb   :  { %225 = vmatpush1.bf16.msra.mxu0 %v426_v11  ;;  %266 = vmatpush1.bf16.msra.mxu1 %v427_v12  ;;  %v456_v31 = vld [vmem:[%s587_s1 + $0xe0] ss:$16 sps:$4 sm:$0xff]   ;;  %v457_v32 = vld [vmem:[%s587_s1 + $0xe8] ss:$16 sps:$4 sm:$0xff]   ;;  %v320_v35 = vshrl.u32 %v319_v34, 7 }
   0xc   :  { %226 = vmatprep.subr.bf16.mxu0 %v428_v13  ;;  %267 = vmatprep.subr.bf16.mxu1 %v430_v14  ;;  %v27_v33 = vld [vmem:[%s588_s0] sm:$0xf] }
   0xd   :  { %v321_v36 = vsub.s32 0, %v320_v35  ;;  %v329_v37 = vsub.s32 2, %v320_v35  ;;  %v317_v38 = vld [vmem:[%s589_s2] sm:$0xf]  ;;  %v325_v39 = vsub.s32 1, %v320_v35  ;;  %v333_v40 = vsub.s32 3, %v320_v35 }
   0xf   :  { %227 = vmatpush1.bf16.msra.mxu0 %v432_v15  ;;  %268 = vmatpush1.bf16.msra.mxu1 %v433_v16  ;;  %v322_v41 = vrot.slane %v317_v38, %v321_v36  ;;  %v330_v42 = vrot.slane %v317_v38, %v329_v37  ;;  %v326_v43 = vrot.slane %v317_v38, %v325_v39 }
  0x10   :  { %228 = vmatprep.subr.bf16.mxu0 %v434_v17  ;;  %269 = vmatprep.subr.bf16.mxu1 %v436_v18  ;;  %v334_v44 = vrot.slane %v317_v38, %v333_v40 }
  0x13   :  { %229 = vmatpush1.bf16.msra.mxu0 %v438_v19  ;;  %270 = vmatpush1.bf16.msra.mxu1 %v439_v20 }
  0x14   :  { %230 = vmatprep.subr.bf16.mxu0 %v440_v21  ;;  %271 = vmatprep.subr.bf16.mxu1 %v442_v22 }
  0x17   :  { %231 = vmatpush1.bf16.msra.mxu0 %v444_v23  ;;  %272 = vmatpush1.bf16.msra.mxu1 %v445_v24 }
  0x18   :  { %232 = vmatprep.subr.bf16.mxu0 %v446_v25  ;;  %273 = vmatprep.subr.bf16.mxu1 %v448_v26 }
  0x1b   :  { %233 = vmatpush1.bf16.msra.mxu0 %v450_v27  ;;  %274 = vmatpush1.bf16.msra.mxu1 %v451_v28 }
  0x1c   :  { %234 = vmatprep.subr.bf16.mxu0 %v452_v29  ;;  %275 = vmatprep.subr.bf16.mxu1 %v454_v30 }
  0x1f   :  { %235 = vmatpush1.bf16.msra.mxu0 %v456_v31  ;;  %276 = vmatpush1.bf16.msra.mxu1 %v457_v32 }
  0x22   :  { %253 = vmatmul.mubr.bf16.vlgmr.msra.gmra.mrb[0].mxu0 %v27_v33  ;;  %294 = vmatmul.mubr.bf16.vlgmr.msra.gmra.mrb[0].mxu1 %v27_v33 }
  0xf5   :  { %v254_v45 = vpop.f32.mrb[0].mxu0  ;;  %v295_v46 = vpop.f32.mrb[0].mxu1 }
  0xf6   :  { %v339_v47 = vadd.f32 %v322_v41, %v254_v45  ;;  %v341_v48 = vadd.f32 %v330_v42, %v295_v46  ;;  %v256_v49 = vpop.f32.mrb[1].mxu0  ;;  %v297_v50 = vpop.f32.mrb[1].mxu1 }
  0xf7   :  { %v340_v51 = vadd.f32 %v326_v43, %v256_v49  ;;  %v342_v52 = vadd.f32 %v334_v44, %v297_v50  ;;  %v258_v53 = vpop.f32.mrb[2].mxu0  ;;  %v299_v54 = vpop.f32.mrb[2].mxu1 }
  0xf8   :  { %v343_v55 = vmax.f32 %v339_v47, 0.0  ;;  %v345_v56 = vmax.f32 %v341_v48, 0.0  ;;  %v259_v57 = vpop.f32.mrb[3].mxu0  ;;  %v300_v58 = vpop.f32.mrb[3].mxu1 }
  0xf9   :  { %v344_v59 = vmax.f32 %v340_v51, 0.0  ;;  %v346_v60 = vmax.f32 %v342_v52, 0.0 }
  0xfa   :  { %v347_v61 = vmin.f32 %v343_v55, 6.0  ;;  %v349_v62 = vmin.f32 %v345_v56, 6.0 }
  0xfb   :  { %v348_v63 = vmin.f32 %v344_v59, 6.0  ;;  %v350_v0 = vmin.f32 %v346_v60, 6.0 }
  0xfd   :  { %v407_v1 = vpack.c.bf16 %v348_v63, %v347_v61  ;;  %v408_v2 = vpack.c.bf16 %v350_v0, %v349_v62 }
  0xff   :  { %367 = vst [vmem:[%s590_s3] sm:$0xff] %v407_v1  ;;  %368 = vst [vmem:[%s590_s3 + $0x8] sm:$0xff] %v408_v2 }

// kernel: _lambda_.123
= control target key start
LH: loop header
LB: loop body
LE: loop exit
PB: predicated region body
PF: predicated region fallthrough
CT: control target
= control target key end

     0   :  { %vm19_vm0 = vcmask 80896   ;;  %v195_v0 = vmov 0.0   ;;  %vm196_vm1 = vmmov 0   ;;  %s253_s1 = inlined_call_operand.vmem [shape: bf16[128,10], index: 1, kind: input, shape index: {}]   ;;  %s254_s0 = inlined_call_operand.vmem [shape: bf16[8,128], index: 0, kind: input, shape index: {}]   ;;  %s255_s2 = inlined_call_operand.vmem [shape: f32[1,10], index: 2, kind: input, shape index: {}]   ;;  %s256_s3 = inlined_call_operand.vmem [shape: f32[8,10], index: 3, kind: output, shape index: {}]  }
   0x1   :  { %165 = vmatprep.subr.bf16.mxu0 %v195_v0  ;;  %v187_v1 = vld [vmem:[%s253_s1] sm:$0xff]   ;;  %181 = vmatprep.mubr.msk.bf16.mxu0 %vm196_vm1, %v195_v0  ;;  %20 = vst.msk [vmem:[#allocation2] sm:$0xff] %vm19_vm0, %v195_v0  ;;  %v188_v2 = vld [vmem:[%s253_s1 + $0x8] sm:$0xff]   ;;  %v189_v3 = vld [vmem:[%s253_s1 + $0x10] sm:$0xff]  }
   0x2   :  { %166 = vmatpush3.bf16.msra.mxu0 %v187_v1  ;;  %v190_v4 = vld [vmem:[%s253_s1 + $0x18] sm:$0xff]   ;;  %v191_v5 = vld [vmem:[%s253_s1 + $0x20] sm:$0xff]   ;;  %v192_v6 = vld [vmem:[%s253_s1 + $0x28] sm:$0xff]  }
   0x3   :  { %167 = vmatprep.subr.bf16.mxu0 %v195_v0  ;;  %v193_v7 = vld [vmem:[%s253_s1 + $0x30] sm:$0xff]   ;;  %v194_v8 = vld [vmem:[%s253_s1 + $0x38] sm:$0xff]   ;;  %v22_v9 = vld [vmem:[%s254_s0] sm:$0xf] }
   0x4   :  { %v155_v16 = vld [vmem:[%s255_s2] ss:$0 sm:$0xff] }
   0x6   :  { %168 = vmatpush3.bf16.msra.mxu0 %v188_v2 }
   0x7   :  { %169 = vmatprep.subr.bf16.mxu0 %v195_v0 }
   0x8   :  { %v21_v10 = vld [vmem:[#allocation2] sm:$0xff] }
   0xa   :  { %170 = vmatpush3.bf16.msra.mxu0 %v189_v3 }
   0xb   :  { %171 = vmatprep.subr.bf16.mxu0 %v195_v0 }
   0xe   :  { %172 = vmatpush3.bf16.msra.mxu0 %v190_v4 }
   0xf   :  { %173 = vmatprep.subr.bf16.mxu0 %v195_v0 }
  0x12   :  { %174 = vmatpush3.bf16.msra.mxu0 %v191_v5 }
  0x13   :  { %175 = vmatprep.subr.bf16.mxu0 %v195_v0 }
  0x16   :  { %176 = vmatpush3.bf16.msra.mxu0 %v192_v6 }
  0x17   :  { %177 = vmatprep.subr.bf16.mxu0 %v195_v0 }
  0x1a   :  { %178 = vmatpush3.bf16.msra.mxu0 %v193_v7 }
  0x1b   :  { %179 = vmatprep.subr.bf16.mxu0 %v195_v0 }
  0x1e   :  { %180 = vmatpush3.bf16.msra.mxu0 %v194_v8 }
  0x21   :  { %182 = vmatmul.mubr.bf16.vlgmr.msra.gmra.mrb[0].mxu0 %v22_v9 }
  0xf4   :  { %v121_v11 = vpop.f32.mrb[0].mxu0 }
  0xf5   :  { %v127_v12 = vadd.f32 %v121_v11, %v21_v10  ;;  %v183_v13 = vpop.f32.mrb[1].mxu0 }
  0xf6   :  { %v124_v14 = vpop.f32.mrb[2].mxu0 }
  0xf7   :  { %129 = vst.msk [vmem:[#allocation2] sm:$0xff] %vm19_vm0, %v127_v12  ;;  %v184_v15 = vpop.f32.mrb[3].mxu0 }
  0xfe   :  { %v133_v17 = vld [vmem:[#allocation2] sm:$0xff] }
  0xff   :  { %v141_v18 = vadd.f32 %v155_v16, %v133_v17 }
 0x101   :  { %142 = vst.msk [vmem:[%s256_s3] sm:$0xff] %vm19_vm0, %v141_v18 }

// kernel: _lambda_.115
= control target key start
LH: loop header
LB: loop body
LE: loop exit
PB: predicated region body
PF: predicated region fallthrough
CT: control target
= control target key end

     0   :  { %s704_s15 = smov 0   ;;  %s706_s16 = smov 0   ;;  %s770_s0 = inlined_call_operand.vmem [shape: bf16[8,512], index: 0, kind: input, shape index: {}]   ;;  %s771_s1 = inlined_call_operand.vmem [shape: bf16[512,128], index: 1, kind: input, shape index: {}]   ;;  %s772_s2 = inlined_call_operand.vmem [shape: f32[1,128], index: 2, kind: input, shape index: {}]   ;;  %s773_s3 = inlined_call_operand.vmem [shape: f32[8,128], index: 3, kind: input, shape index: {}]   ;;  %s774_s4 = inlined_call_operand.vmem [shape: f32[8,128], index: 4, kind: output, shape index: {}]  }
   0x1   :  { %s708_s17 = smov 0  }
   0x2 LB: > { %s23_s18 = sadd.s32 1, %s672_s16  ;;  %p560_p0 = scmp.ge.s32.totalorder %s676_s17, 1  ;;  %s676_s17 = sphi %s708_s17, %s14_s17   ;;  %s672_s16 = sphi %s706_s16, %s776_s16   ;;  %s668_s15 = sphi %s704_s15, %s775_s15  }
   0x3   : > { %p24_p1 = scmp.ge.s32.totalorder %s23_s18, 2  ;;  %p201_p2 = scmp.lt.s32.totalorder %s676_s17, 3 }
   0x5   : > { %s778_s18 = smov (%p24_p1, %s23_s18), 0  ;;  %p202_p3 = pnand %p560_p0, %p201_p2 }
   0x6   : > { %s561_s19 = sshll.u32 (!%p202_p3), %s668_s15, 1  ;;  %s563_s20 = sshll.u32 (!%p202_p3), %s668_s15, 5 }
   0x7   : > { %205 = sbr.rel (%p202_p3) target bundleno = 287 (0x11f), region = 36  ;;  %p242_p4 = scmp.lt.s32.totalorder (!%p202_p3), %s561_s19, 3 }
   0x8   : > { %p250_p5 = scmp.lt.s32.totalorder (!%p202_p3), %s563_s20, 63  ;;  %p565_p6 = scmp.ne.s32.totalorder (!%p202_p3), %s668_s15, 0 }
   0xe   : > { %s780_s19 = smov (!%p242_p4, %s561_s19), 3  ;;  %s782_s20 = smov (!%p250_p5, %s563_s20), 63 }
   0xf   : > { %s562_s21 = sshll.u32 %s780_s19, 2  ;;  %s564_s25 = sshll.u32 %s782_s20, 2  ;;  %v678_v0 = vmov (!%p565_p6), 0.0  }
  0x10   : > { %s247_s24 = scalar_lea.vmem %s770_s0, %s562_s21  ;;  %s732_s28 = scalar_lea.vmem %s771_s1, %s564_s25  ;;  %268 = vst [vmem:[#allocation2] sm:$0xff] (!%p565_p6), %v678_v0 }
  0x11   : > { %267 = sbr.rel (%p565_p6) target bundleno = 24 (0x18), region = 40 }
  0x18 PF: > { %v636_v1 = vld [vmem:[%s732_s28 + $0x40] sm:$0xff]   ;;  %v638_v3 = vld [vmem:[%s732_s28 + $0x48] sm:$0xff]   ;;  %v640_v5 = vld [vmem:[%s732_s28 + $0x50] sm:$0xff]   ;;  %p584_p7 = scmp.ne.s32.totalorder %s668_s15, 1 }
  0x19   : > { %v637_v2 = vld [vmem:[%s732_s28] sm:$0xff]   ;;  %589 = vmatprep.subr.bf16.mxu0 %v636_v1  ;;  %v639_v4 = vld [vmem:[%s732_s28 + $0x8] sm:$0xff]   ;;  %v641_v6 = vld [vmem:[%s732_s28 + $0x10] sm:$0xff]  }
  0x1a   : > { %590 = vmatpush3.bf16.msra.mxu0 %v637_v2  ;;  %v642_v7 = vld [vmem:[%s732_s28 + $0x58] sm:$0xff]   ;;  %v644_v9 = vld [vmem:[%s732_s28 + $0x60] sm:$0xff]   ;;  %v646_v11 = vld [vmem:[%s732_s28 + $0x68] sm:$0xff]  }
  0x1b   : > { %591 = vmatprep.subr.bf16.mxu0 %v638_v3  ;;  %v643_v8 = vld [vmem:[%s732_s28 + $0x18] sm:$0xff]   ;;  %v645_v10 = vld [vmem:[%s732_s28 + $0x20] sm:$0xff]   ;;  %v647_v14 = vld [vmem:[%s732_s28 + $0x28] sm:$0xff]  }
  0x1c   : > { %v270_v12 = vld [vmem:[%s247_s24] sm:$0xff]  ;;  %v648_v15 = vld [vmem:[%s732_s28 + $0x70] sm:$0xff]   ;;  %v650_v17 = vld [vmem:[%s732_s28 + $0x78] sm:$0xff]  }
  0x1d   : > { %v567_v13 = vcombine.high %v270_v12, %v270_v12  ;;  %v649_v16 = vld [vmem:[%s732_s28 + $0x30] sm:$0xff]   ;;  %v651_v18 = vld [vmem:[%s732_s28 + $0x38] sm:$0xff]   ;;  %v566_v19 = vcombine.low %v270_v12, %v270_v12  ;;  %v269_v21 = vld [vmem:[#allocation2] sm:$0xff] }
  0x1e   : > { %592 = vmatpush3.bf16.msra.mxu0 %v639_v4  ;;  %v585_v28 = vld [vmem:[%s772_s2] ss:$0 sm:$0xff] (!%p584_p7) }
  0x1f   : > { %593 = vmatprep.subr.bf16.mxu0 %v640_v5  ;;  %438 = vmatprep.mubr.bf16.mxu0 %v567_v13  ;;  %v461_v29 = vld [vmem:[%s773_s3] sm:$0xff] (!%p584_p7) }
  0x22   : > { %594 = vmatpush3.bf16.msra.mxu0 %v641_v6 }
  0x23   : > { %595 = vmatprep.subr.bf16.mxu0 %v642_v7 }
  0x26   : > { %596 = vmatpush3.bf16.msra.mxu0 %v643_v8 }
  0x27   : > { %597 = vmatprep.subr.bf16.mxu0 %v644_v9 }
  0x2a   : > { %598 = vmatpush3.bf16.msra.mxu0 %v645_v10 }
  0x2b   : > { %599 = vmatprep.subr.bf16.mxu0 %v646_v11 }
  0x2e   : > { %600 = vmatpush3.bf16.msra.mxu0 %v647_v14 }
  0x2f   : > { %601 = vmatprep.subr.bf16.mxu0 %v648_v15 }
  0x32   : > { %602 = vmatpush3.bf16.msra.mxu0 %v649_v16 }
  0x33   : > { %603 = vmatprep.subr.bf16.mxu0 %v650_v17 }
  0x36   : > { %604 = vmatpush3.bf16.msra.mxu0 %v651_v18 }
  0x39   : > { %439 = vmatmul.mubr.bf16.vlgmr.msra.gmra.mrb[0].mxu0 %v566_v19 }
 0x10c   : > { %v605_v20 = vpop.f32.mrb[0].mxu0  ;;  %451 = sbr.rel (%p584_p7) target bundleno = 287 (0x11f), region = 44 }
 0x10d   : > { %v606_v22 = vpop.f32.mrb[1].mxu0 }
 0x10e   : > { %v607_v23 = vadd.f32 %v606_v22, %v605_v20  ;;  %v608_v24 = vpop.f32.mrb[2].mxu0 }
 0x10f   : > { %v609_v25 = vpop.f32.mrb[3].mxu0 }
 0x110   : > { %v446_v26 = vadd.f32 %v607_v23, %v269_v21 }
 0x112   : > { %447 = vst [vmem:[#allocation2] sm:$0xff] %v446_v26 }
 0x119   : > { %v452_v27 = vld [vmem:[#allocation2] sm:$0xff] }
 0x11a   : > { %v460_v30 = vadd.f32 %v585_v28, %v452_v27 }
 0x11c   : > { %v462_v31 = vadd.f32 %v461_v29, %v460_v30 }
 0x11e   : > { %463 = vst [vmem:[%s774_s4] sm:$0xff] %v462_v31 }
 0x11f PF: > { %s14_s17 = sadd.s32 1, %s676_s17   ;;  %s775_s15 = smov %s672_s16 }
 0x120   : > { %p11_p8 = scmp.ge.s32.totalorder %s14_s17, 4   ;;  %s776_s16 = smov %s778_s18 }
 0x122   :  { %13 = sbr.rel (!%p11_p8) target bundleno = 2 (0x2), region = 80 }

</bundles_post_ra>
